<compile_context>
chip_gen: v6e
topology: v6e:2x2x1
jax: 0.10.0
libtpu: 0.0.40
codegen_flags: <defaults>
</compile_context>

<pallas_src>
import functools
import math

import jax
import jax.numpy as jnp
from jax import lax
from jax.experimental import pallas as pl
from jax.experimental.pallas import tpu as pltpu

CF = 32            # feature channels (scaled-down stand-in for 256)
KAPPA = 20.0
STAGE_NUM = 10
NUM_PRO_LIST = [1, 3, 6]
KPAD = 8           # prototype rows padded to a full sublane group
NEG = -1.0e30      # additive softmax mask for inactive prototype rows

# bf16 MXU inputs: large win on v5e/v6e/v7x (bf16-native MXUs) and halves the DMA bytes of the
# 9x-duplicated im2col operand; introduces ~1e-2 rel error vs the f32 PyTorch reference.
# Accumulation, bias, EM and softmax math stay f32.
USE_BF16_MATMUL = True

GEMM_TILE_N = 1024     # spatial (lane) tile cap
GEMM_TILE_K = 512      # reduction tile cap (balanced split below)
GEMM_VMEM_LIMIT = 32 * 1024 * 1024


def _round_up(x, m):
    return ((x + m - 1) // m) * m


def _cdiv(a, b):
    return -(-a // b)


def _pick_tn(nc):
    """Lane tile: multiple of 128, capped, and >=2 tiles whenever nc > 128 (v7x megacore)."""
    nblocks = _round_up(nc, 128) // 128
    if nblocks <= 1:
        return 128
    target_tiles = max(2, _cdiv(nblocks * 128, GEMM_TILE_N))
    return min(GEMM_TILE_N, 128 * _cdiv(nblocks, target_tiles))


def _pick_tk(k):
    """Balanced reduction split: nk = cdiv(K, cap), tk = round_up(cdiv(K, nk), 8)."""
    nk = max(1, _cdiv(k, GEMM_TILE_K))
    tk = _round_up(_cdiv(k, nk), 8)
    return tk, nk


# ---------------------------------------------------------------------------
# Pallas kernels
# ---------------------------------------------------------------------------
def _gemm_kernel(w_ref, a_ref, bias_ref, o_ref, *, relu, input_relu):
    """One (Cout, tn) output tile; reduction over the K grid axis (axis 1).

    w_ref is the FULL weight, resident in VMEM as (nk, Cout, tk); o_ref is the
    VMEM-resident accumulator (its block index is constant along kk).
    """
    kk = pl.program_id(1)

    @pl.when(kk == 0)
    def _():
        o_ref[...] = jnp.zeros_like(o_ref)

    a = a_ref[...]
    if input_relu:
        a = jnp.maximum(a, jnp.zeros((), a.dtype))
    o_ref[...] += jnp.dot(w_ref[kk], a, preferred_element_type=jnp.float32)

    @pl.when(kk == pl.num_programs(1) - 1)
    def _():
        acc = o_ref[...] + bias_ref[...]
        if relu:
            acc = jnp.maximum(acc, 0.0)
        o_ref[...] = acc


def matmul_bias_act_t(wt, a, bias, relu=False, input_relu=False):
    """out (Cout, Nc) = wt (Cout, K) @ a (K, Nc) + bias (Cout, 1) (+ ReLU).

    Transposed conv/im2col hot path: spatial axis Nc on lanes; weight fully
    VMEM-resident; output block doubles as the f32 accumulator.
    """
    Cout, K = wt.shape
    Nc = a.shape[1]

    tn = _pick_tn(Nc)
    tk, nk = _pick_tk(K)
    Kp = tk * nk
    Np = _round_up(Nc, tn)
    if Kp != K:
        wt = jnp.pad(wt, ((0, 0), (0, Kp - K)))
        a = jnp.pad(a, ((0, Kp - K), (0, 0)))
    if Np != Nc:
        a = jnp.pad(a, ((0, 0), (0, Np - Nc)))

    w_r = jnp.transpose(wt.reshape(Cout, nk, tk), (1, 0, 2))   # (nk, Cout, tk), resident
    if USE_BF16_MATMUL:
        w_r = w_r.astype(jnp.bfloat16)
        a = a.astype(jnp.bfloat16)

    grid = (Np // tn, nk)
    kern = functools.partial(_gemm_kernel, relu=relu, input_relu=input_relu)
    out = pl.pallas_call(
        kern,
        out_shape=jax.ShapeDtypeStruct((Cout, Np), jnp.float32),
        grid=grid,
        in_specs=[pl.BlockSpec((nk, Cout, tk), lambda n, kk: (0, 0, 0)),   # resident W
                  pl.BlockSpec((tk, tn), lambda n, kk: (kk, n)),
                  pl.BlockSpec((Cout, 1), lambda n, kk: (0, 0))],
        out_specs=pl.BlockSpec((Cout, tn), lambda n, kk: (0, n)),
        compiler_params=pltpu.CompilerParams(
            dimension_semantics=("parallel", "arbitrary"),
            vmem_limit_bytes=GEMM_VMEM_LIMIT),
    )(w_r, a, bias)
    return out[:, :Nc]


def _em_kernel(x_ref, mu0_ref, msk_ref, out_ref, *, kappa, stage_num):
    """PMMs.EM for one (batch-element, prototype-count) pair; (k, c)/(k, n) layout.

    x: (c, n), mu0: (KPAD, c), msk: additive (KPAD, 1) mask (0 active / -1e30 inactive).
    Inactive rows stay exactly zero; active rows match the unpadded computation exactly.
    """
    x = x_ref[0]                      # (c, n), f32
    msk = msk_ref[0]                  # (KPAD, 1)

    def body(_, mu):                  # mu: (KPAD, c)
        z = kappa * jnp.dot(mu, x, preferred_element_type=jnp.float32) + msk   # (KPAD, n)
        z = z - jnp.max(z, axis=0, keepdims=True)                              # softmax over k
        e = jnp.exp(z)
        z = e / jnp.sum(e, axis=0, keepdims=True)
        z = z / (1e-6 + jnp.sum(z, axis=1, keepdims=True))                     # normalize over n
        mu = lax.dot_general(z, x, (((1,), (1,)), ((), ())),
                             preferred_element_type=jnp.float32)               # (KPAD, c)
        mu = mu / (1e-6 + jnp.sqrt(jnp.sum(mu * mu, axis=1, keepdims=True)))   # l2norm over c
        return mu

    mu = lax.fori_loop(0, stage_num, body, mu0_ref[0], unroll=True)
    out_ref[0, 0] = mu                # (KPAD, c)


def pmms_em_all(x_bcn, mu0_pad, em_mask):
    """x: (2b, c, n); mu0_pad: (3, KPAD, c); em_mask: (3, KPAD, 1) -> (2b, 3, KPAD, c).

    One pallas_call covers fg+bg (batch axis) and all three prototype counts."""
    tb, c, n = x_bcn.shape
    nmix = mu0_pad.shape[0]
    kern = functools.partial(_em_kernel, kappa=KAPPA, stage_num=STAGE_NUM)
    return pl.pallas_call(
        kern,
        out_shape=jax.ShapeDtypeStruct((tb, nmix, KPAD, c), jnp.float32),
        grid=(tb, nmix),
        in_specs=[pl.BlockSpec((1, c, n), lambda i, j: (i, 0, 0)),
                  pl.BlockSpec((1, KPAD, c), lambda i, j: (j, 0, 0)),
                  pl.BlockSpec((1, KPAD, 1), lambda i, j: (j, 0, 0))],
        out_specs=pl.BlockSpec((1, 1, KPAD, c), lambda i, j: (i, j, 0, 0)),
        compiler_params=pltpu.CompilerParams(
            dimension_semantics=("parallel", "parallel")),
    )(x_bcn, mu0_pad, em_mask)


def _discrim_kernel(x_ref, mu_ref, msk_ref, prob_ref, *, kp):
    """PMMs.discriminative_model; padded (2*KPAD, n) layout, channel order (bg, fg)."""
    x = x_ref[0]                      # (c, n)
    mu = mu_ref[0, 0]                 # (2*KPAD, c)
    msk = msk_ref[0]                  # (2*KPAD, 1)
    z = jnp.dot(mu, x, preferred_element_type=jnp.float32) + msk              # (2*KPAD, n)
    z = z - jnp.max(z, axis=0, keepdims=True)
    e = jnp.exp(z)
    p = e / jnp.sum(e, axis=0, keepdims=True)                                 # softmax over 2k
    pf = jnp.sum(p[:kp, :], axis=0, keepdims=True)
    pb = jnp.sum(p[kp:, :], axis=0, keepdims=True)
    prob_ref[0, 0] = jnp.concatenate([pb, pf], axis=0)                        # (2, n), [bg, fg]


def pmms_discrim_all(x_bcn, mu_disc, disc_mask):
    """x: (b, c, n); mu: (b, 3, 2*KPAD, c); mask: (3, 2*KPAD, 1) -> Prob_map (b, 3, 2, n)."""
    b, c, n = x_bcn.shape
    nmix = mu_disc.shape[1]
    kern = functools.partial(_discrim_kernel, kp=KPAD)
    return pl.pallas_call(
        kern,
        out_shape=jax.ShapeDtypeStruct((b, nmix, 2, n), jnp.float32),
        grid=(b, nmix),
        in_specs=[pl.BlockSpec((1, c, n), lambda i, j: (i, 0, 0)),
                  pl.BlockSpec((1, 1, 2 * KPAD, c), lambda i, j: (i, j, 0, 0)),
                  pl.BlockSpec((1, 2 * KPAD, 1), lambda i, j: (j, 0, 0))],
        out_specs=pl.BlockSpec((1, 1, 2, n), lambda i, j: (i, j, 0, 0)),
        compiler_params=pltpu.CompilerParams(
            dimension_semantics=("parallel", "parallel")),
    )(x_bcn, mu_disc, disc_mask)


def _head_kernel(w7_ref, a_ref, b7_ref, w9_ref, b9_ref, out_ref, sm_ref):
    """Fused layer7 (1x1, ReLU) + layer9 (1x1) + channel softmax; (CF, tn) stays in VMEM."""
    h = jnp.dot(w7_ref[...], a_ref[...], preferred_element_type=jnp.float32) + b7_ref[...]
    h = jnp.maximum(h, 0.0)
    o = jnp.dot(w9_ref[...], h, preferred_element_type=jnp.float32) + b9_ref[...]
    out_ref[...] = o
    m = jnp.max(o, axis=0, keepdims=True)
    e = jnp.exp(o - m)
    sm_ref[...] = e / jnp.sum(e, axis=0, keepdims=True)


def head_layer7_9(p, x_cm):
    """x: (5CF, N, h, w) channel-major -> (logits, softmax) both (2, N, h, w)."""
    w7, b7 = p['layer7']
    w9, b9 = p['layer9']
    c5, nb, h, w = x_cm.shape
    nc = nb * h * w
    A = x_cm.reshape(c5, nc)
    tn = _pick_tn(nc)
    npad = _round_up(nc, tn)
    if npad != nc:
        A = jnp.pad(A, ((0, 0), (0, npad - nc)))
    W7 = w7.reshape(CF, c5)
    W9 = w9.reshape(2, CF)
    if USE_BF16_MATMUL:
        A = A.astype(jnp.bfloat16)
        W7 = W7.astype(jnp.bfloat16)

    logits, sm = pl.pallas_call(
        _head_kernel,
        out_shape=(jax.ShapeDtypeStruct((2, npad), jnp.float32),
                   jax.ShapeDtypeStruct((2, npad), jnp.float32)),
        grid=(npad // tn,),
        in_specs=[pl.BlockSpec((CF, c5), lambda n: (0, 0)),
                  pl.BlockSpec((c5, tn), lambda n: (0, n)),
                  pl.BlockSpec((CF, 1), lambda n: (0, 0)),
                  pl.BlockSpec((2, CF), lambda n: (0, 0)),
                  pl.BlockSpec((2, 1), lambda n: (0, 0))],
        out_specs=(pl.BlockSpec((2, tn), lambda n: (0, n)),
                   pl.BlockSpec((2, tn), lambda n: (0, n))),
        compiler_params=pltpu.CompilerParams(
            dimension_semantics=("parallel",),
            vmem_limit_bytes=GEMM_VMEM_LIMIT),
    )(W7, A, b7.reshape(CF, 1), W9, b9.reshape(2, 1))
    logits = logits[:, :nc].reshape(2, nb, h, w)
    sm = sm[:, :nc].reshape(2, nb, h, w)
    return logits, sm


# ---------------------------------------------------------------------------
# Conv via K-major im2col + transposed Pallas GEMM  (CHANNEL-MAJOR interface)
# ---------------------------------------------------------------------------
def conv2d(x, w, b, stride=1, padding=0, dilation=1, relu=False, input_relu=False):
    """x: (Cin, N, H, W) channel-major -> (Cout, N, Ho, Wo) channel-major."""
    Cin, N, H, W = x.shape
    Cout, _, kh, kw = w.shape
    Hp, Wp = H + 2 * padding, W + 2 * padding
    Ho = (Hp - dilation * (kh - 1) - 1) // stride + 1
    Wo = (Wp - dilation * (kw - 1) - 1) // stride + 1

    if kh == 1 and kw == 1 and stride == 1 and padding == 0:
        A = x.reshape(Cin, N * H * W)
    else:
        xp = jnp.pad(x, ((0, 0), (0, 0), (padding, padding), (padding, padding)))
        cols = []
        for i in range(kh):
            for j in range(kw):
                sl = xp[:, :,
                        i * dilation: i * dilation + (Ho - 1) * stride + 1: stride,
                        j * dilation: j * dilation + (Wo - 1) * stride + 1: stride]
                cols.append(sl)                               # (Cin, N, Ho, Wo)
        # K-major (Cin, kh, kw) x spatial-last (N, Ho, Wo) — matches w.reshape below.
        A = jnp.stack(cols, axis=1).reshape(Cin * kh * kw, N * Ho * Wo)

    Wt = w.reshape(Cout, Cin * kh * kw)
    out = matmul_bias_act_t(Wt, A, b.reshape(Cout, 1), relu=relu, input_relu=input_relu)
    return out.reshape(Cout, N, Ho, Wo)


def _resize_mat(out_s, in_s):
    if out_s == 1 or in_s == 1:
        m = jnp.zeros((out_s, in_s), jnp.float32)
        return m.at[:, 0].set(1.0)
    pos = jnp.arange(out_s, dtype=jnp.float32) * (in_s - 1) / (out_s - 1)
    lo = jnp.floor(pos).astype(jnp.int32)
    hi = jnp.minimum(lo + 1, in_s - 1)
    frac = pos - lo.astype(jnp.float32)
    m = jnp.zeros((out_s, in_s), jnp.float32)
    m = m.at[jnp.arange(out_s), lo].add(1.0 - frac)
    m = m.at[jnp.arange(out_s), hi].add(frac)
    return m


def bilinear_resize_ac(x, out_h, out_w):
    """F.interpolate(..., mode='bilinear', align_corners=True) on NCHW."""
    Mh, Mw = _resize_mat(out_h, x.shape[2]), _resize_mat(out_w, x.shape[3])
    return jnp.einsum('oh,nchw,pw->ncop', Mh, x, Mw)


def bilinear_resize_cm(x, out_h, out_w):
    """Same, on channel-major (C, N, H, W)."""
    Mh, Mw = _resize_mat(out_h, x.shape[2]), _resize_mat(out_w, x.shape[3])
    return jnp.einsum('oh,cnhw,pw->cnop', Mh, x, Mw)


# ---------------------------------------------------------------------------
# RPMMs head (channel-major internals)
# ---------------------------------------------------------------------------
def extract_feature_res(p, rgb_nchw):
    # TODO(synk): pretrained ResNet50 backbone (model_res) is external code; a
    # small deterministic conv stem producing stage2/stage3-like features is
    # used instead.
    x = jnp.transpose(rgb_nchw, (1, 0, 2, 3))                            # (3, N, H, W)
    x = conv2d(x, *p['bb1'], stride=2, padding=1, relu=True)             # (16, N, H/2, W/2)
    s2 = conv2d(x, *p['bb2'], stride=2, padding=1, relu=True)            # (16, N, H/4, W/4)
    s3 = conv2d(s2, *p['bb3'], stride=1, padding=1, relu=True)           # (CF, N, H/4, W/4)
    out23 = jnp.concatenate([s2, s3], axis=0)                            # (48, N, ., .)
    # layer5: conv(3x3, d=2, p=2) + BatchNorm2d (eval stats folded) + ReLU
    w5, b5 = p['layer5']
    bn_scale = 1.0 / math.sqrt(1.0 + 1e-5)   # gamma=1, beta=0, mean=0, var=1
    return conv2d(out23, w5 * bn_scale, b5 * bn_scale, padding=2, dilation=2, relu=True)


def aspp(p, x):
    # TODO(synk): backbones.ASPP(tail=False) is external; standard 5-branch
    # DeepLab ASPP (pool, 1x1, 3x3 d=6/12/18) is used so that layer7 sees 5*CF.
    c, b, h, w = x.shape
    pooled = jnp.mean(x, axis=(2, 3), keepdims=True)
    bpool = conv2d(pooled, *p['aspp_pool'], relu=True)
    bpool = jnp.broadcast_to(bpool, (bpool.shape[0], b, h, w))
    b1 = conv2d(x, *p['aspp1'], relu=True)
    b2 = conv2d(x, *p['aspp2'], padding=6, dilation=6, relu=True)
    b3 = conv2d(x, *p['aspp3'], padding=12, dilation=12, relu=True)
    b4 = conv2d(x, *p['aspp4'], padding=18, dilation=18, relu=True)
    return jnp.concatenate([bpool, b1, b2, b3, b4], axis=0)


def segmentation(p, feature, history_mask):
    """feature: (CF, N, h, w); history_mask: (2, N, h, w)  (both channel-major)."""
    c, b, h, w = feature.shape
    hist = bilinear_resize_cm(history_mask, h, w)
    out = feature
    oph = jnp.concatenate([feature, hist], axis=0)
    # residule1: ReLU -> conv -> ReLU -> conv   (leading ReLU folded into the GEMM)
    r = conv2d(oph, *p['res1a'], padding=1, relu=True, input_relu=True)
    r = conv2d(r, *p['res1b'], padding=1, relu=False)
    out = out + r
    # residule2
    r = conv2d(out, *p['res2a'], padding=1, relu=True, input_relu=True)
    r = conv2d(r, *p['res2b'], padding=1, relu=False)
    out = out + r
    # residule3
    r = conv2d(out, *p['res3a'], padding=1, relu=True, input_relu=True)
    r = conv2d(r, *p['res3b'], padding=1, relu=False)
    out = out + r
    out = aspp(p, out)                                    # layer6
    # layer7 (1x1+ReLU+Dropout=id) + layer9 (1x1) + softmax fused in one kernel
    logits, out_softmax = head_layer7_9(p, out)
    return logits, out_softmax                            # (2, N, h, w) each


def _build_padded_mu(mu_init_list):
    """Per prototype-count: mu rows padded to KPAD plus additive softmax masks."""
    mu_rows, masks = [], []
    for mu in mu_init_list:                              # (c, num), l2-normalized
        c, num = mu.shape
        mu_kc = jnp.concatenate(
            [mu.T, jnp.zeros((KPAD - num, c), jnp.float32)], axis=0)       # (KPAD, c)
        msk = jnp.concatenate(
            [jnp.zeros((num, 1), jnp.float32),
             jnp.full((KPAD - num, 1), NEG, jnp.float32)], axis=0)          # (KPAD, 1)
        mu_rows.append(mu_kc)
        masks.append(msk)
    mu0_pad = jnp.stack(mu_rows, axis=0)                 # (3, KPAD, c)
    em_mask = jnp.stack(masks, axis=0)                   # (3, KPAD, 1)
    disc_mask = jnp.concatenate([em_mask, em_mask], axis=1)   # (3, 2*KPAD, 1)
    return mu0_pad, em_mask, disc_mask


def rpmms_forward(params, sup_img, sup_mask, qry_img):
    B, S, channel, H, W = sup_img.shape
    Q = qry_img.shape[1]
    query_rgb = qry_img.reshape(B * Q, channel, H, W)
    support_rgb = sup_img.reshape(B * S, channel, H, W)
    support_mask = sup_mask.reshape(B * S, 2, H, W)[:, :1]

    support_feature_cm = extract_feature_res(params, support_rgb)    # (CF, bS, fh, fw)
    query_feature_cm = extract_feature_res(params, query_rgb)        # (CF, bQ, fh, fw)
    c, bq, fh, fw = query_feature_cm.shape
    bs = support_feature_cm.shape[1]
    n = fh * fw

    # --- PMMs: all three prototype counts + fg/bg in ONE EM call and ONE discrim call ---
    mu0_pad, em_mask, disc_mask = _build_padded_mu(params['mu_init'])
    mask = bilinear_resize_ac(support_mask, fh, fw)                  # (bS, 1, fh, fw)
    mask_cm = jnp.transpose(mask, (1, 0, 2, 3))                      # (1, bS, fh, fw)
    z_f = mask_cm * support_feature_cm
    z_b = (1.0 - mask_cm) * support_feature_cm
    x_em = jnp.concatenate([z_f, z_b], axis=1).reshape(c, 2 * bs, n)
    x_em = jnp.transpose(x_em, (1, 0, 2))                            # (2bS, c, n)
    mu_all = pmms_em_all(x_em, mu0_pad, em_mask)                     # (2bS, 3, KPAD, c)
    mu_f_all, mu_b_all = mu_all[:bs], mu_all[bs:]

    x_q = jnp.transpose(query_feature_cm.reshape(c, bq, n), (1, 0, 2))   # (bQ, c, n)
    mu_disc = jnp.concatenate([mu_f_all, mu_b_all], axis=2)          # (b, 3, 2*KPAD, c)
    prob_all = pmms_discrim_all(x_q, mu_disc, disc_mask)             # (b, 3, 2, n)

    # torch.zeros(B, 2, 50, 50) bilinearly resized to feature_size is zeros.
    pseudo_mask = jnp.zeros((2, bq, fh, fw), jnp.float32)            # channel-major

    out_list = []
    for idx, num in enumerate(NUM_PRO_LIST):
        # Batched layer55: all `num` prototype-concat features through ONE im2col + GEMM.
        mu_f = mu_f_all[:, idx, :num, :]                             # (b, num, c)
        fea = jnp.transpose(mu_f, (2, 1, 0)).reshape(c, num * bq, 1, 1)
        fea = jnp.broadcast_to(fea, (c, num * bq, fh, fw))
        qrep = jnp.broadcast_to(query_feature_cm[:, None], (c, num, bq, fh, fw))
        qrep = qrep.reshape(c, num * bq, fh, fw)
        ef = conv2d(jnp.concatenate([qrep, fea], axis=0), *params['layer55'],
                    padding=2, dilation=2, relu=True)                # (CF, num*b, fh, fw)
        exit_feat_in = jnp.sum(ef.reshape(CF, num, bq, fh, fw), axis=1)
        prob_cm = jnp.transpose(prob_all[:, idx], (1, 0, 2)).reshape(2, bq, fh, fw)
        exit_feat_in = jnp.concatenate([exit_feat_in, prob_cm], axis=0)
        # layer56: conv(3x3, p=1) + ReLU (+ Dropout2d = identity in eval)
        exit_feat_in = conv2d(exit_feat_in, *params['layer56'], padding=1, relu=True)
        logits_cm, softmax_cm = segmentation(params, exit_feat_in, pseudo_mask)
        pseudo_mask = softmax_cm
        out_list.append(jnp.transpose(logits_cm, (1, 0, 2, 3)))      # back to NCHW

    support_feature = jnp.transpose(support_feature_cm, (1, 0, 2, 3))
    return support_feature, out_list[0], out_list[1], out_list[2]


# ---------------------------------------------------------------------------
# Deterministic parameter initialization
# ---------------------------------------------------------------------------
def _init_conv(key, cout, cin, kh, kw):
    kw_, kb = jax.random.split(key)
    std = 1.0 / math.sqrt(cin * kh * kw)
    w = jax.random.normal(kw_, (cout, cin, kh, kw), jnp.float32) * std
    b = jax.random.normal(kb, (cout,), jnp.float32) * std
    return w, b


def make_params(key):
    keys = jax.random.split(key, 32)
    ki = iter(keys)
    p = {}
    p['bb1'] = _init_conv(next(ki), 16, 3, 3, 3)
    p['bb2'] = _init_conv(next(ki), 16, 16, 3, 3)
    p['bb3'] = _init_conv(next(ki), CF, 16, 3, 3)
    p['layer5'] = _init_conv(next(ki), CF, 48, 3, 3)
    p['layer55'] = _init_conv(next(ki), CF, 2 * CF, 3, 3)
    p['layer56'] = _init_conv(next(ki), CF, CF + 2, 3, 3)
    p['res1a'] = _init_conv(next(ki), CF, CF + 2, 3, 3)
    p['res1b'] = _init_conv(next(ki), CF, CF, 3, 3)
    p['res2a'] = _init_conv(next(ki), CF, CF, 3, 3)
    p['res2b'] = _init_conv(next(ki), CF, CF, 3, 3)
    p['res3a'] = _init_conv(next(ki), CF, CF, 3, 3)
    p['res3b'] = _init_conv(next(ki), CF, CF, 3, 3)
    p['aspp_pool'] = _init_conv(next(ki), CF, CF, 1, 1)
    p['aspp1'] = _init_conv(next(ki), CF, CF, 1, 1)
    p['aspp2'] = _init_conv(next(ki), CF, CF, 3, 3)
    p['aspp3'] = _init_conv(next(ki), CF, CF, 3, 3)
    p['aspp4'] = _init_conv(next(ki), CF, CF, 3, 3)
    p['layer7'] = _init_conv(next(ki), CF, 5 * CF, 1, 1)
    p['layer9'] = _init_conv(next(ki), 2, CF, 1, 1)
    mu_inits = []
    for k in NUM_PRO_LIST:
        mu = jax.random.normal(next(ki), (CF, k), jnp.float32) * math.sqrt(2.0 / k)
        mu = mu / (1e-6 + jnp.sqrt(jnp.sum(mu * mu, axis=0, keepdims=True)))
        mu_inits.append(mu)
    p['mu_init'] = tuple(mu_inits)
    return p


if __name__ == "__main__":
    key = jax.random.PRNGKey(0)
    pkey, dkey = jax.random.split(key)
    params = make_params(pkey)

    B, S, Q, H, W = 1, 1, 1, 32, 32
    k1, k2, k3 = jax.random.split(dkey, 3)
    sup_img = jax.random.normal(k1, (B, S, 3, H, W), jnp.float32)
    qry_img = jax.random.normal(k2, (B, Q, 3, H, W), jnp.float32)
    sup_mask = (jax.random.normal(k3, (B, S, 2, H, W), jnp.float32) > 0).astype(jnp.float32)

    fwd = jax.jit(rpmms_forward)
    support_feature, out0, out1, out2 = fwd(params, sup_img, sup_mask, qry_img)
    jax.block_until_ready((support_feature, out0, out1, out2))

    assert support_feature.shape == (B * S, CF, 8, 8)
    assert out0.shape == (B * Q, 2, 8, 8)
    assert out1.shape == (B * Q, 2, 8, 8)
    assert out2.shape == (B * Q, 2, 8, 8)
    assert all(bool(jnp.all(jnp.isfinite(o)))
               for o in (support_feature, out0, out1, out2))
    print("KERNEL_OK")
</pallas_src>

<mosaic_0001>
module attributes {stable_mosaic.version = 11 : i64} {
  func.func private @main(%arg0: i32) attributes {dimension_semantics = [#tpu.dimension_semantics<core_parallel>], iteration_bounds = array<i64: 2>, tpu.core_type = #tpu.core_type<sc_scalar_subcore>, window_params = []} {
    return
  }
}

module attributes {stable_mosaic.version = 11 : i64} {
  func.func private @main(%arg0: i32) attributes {dimension_semantics = [#tpu.dimension_semantics<core_parallel>], iteration_bounds = array<i64: 2>, tpu.core_type = #tpu.core_type<sc_scalar_subcore>, window_params = []} {
    return
  }
}

module attributes {stable_mosaic.version = 11 : i64} {
  func.func @_gemm_kernel(%arg0: i32, %arg1: i32, %arg2: memref<1x16x32xbf16, #tpu.memory_space<vmem>>, %arg3: memref<32x128xbf16, #tpu.memory_space<vmem>>, %arg4: memref<16x1xf32, #tpu.memory_space<vmem>>, %arg5: memref<16x128xf32, #tpu.memory_space<vmem>>) attributes {dimension_semantics = [#tpu.dimension_semantics<parallel>, #tpu.dimension_semantics<arbitrary>], iteration_bounds = array<i64: 2, 1>, scalar_prefetch = 0 : i64, scratch_operands = 0 : i64, tpu.core_type = #tpu.core_type<tc>, window_params = [{pipeline_mode = #tpu.pipeline_mode<synchronous>, transform_indices = @transform_0, window_bounds = array<i64: 1, 16, 32>}, {transform_indices = @transform_1, window_bounds = array<i64: 32, 128>}, {pipeline_mode = #tpu.pipeline_mode<synchronous>, transform_indices = @transform_2, window_bounds = array<i64: 16, 1>}, {transform_indices = @transform_3, window_bounds = array<i64: 16, 128>}]} {
    %c0_i32 = arith.constant 0 : i32
    %0 = arith.cmpi eq, %arg1, %c0_i32 : i32
    %1 = arith.extui %0 : i1 to i32
    %c0_i32_0 = arith.constant 0 : i32
    %2 = arith.cmpi ne, %1, %c0_i32_0 : i32
    scf.if %2 {
      %cst_10 = arith.constant 0.000000e+00 : f32
      %14 = vector.broadcast %cst_10 : f32 to vector<16x128xf32>
      %c0_11 = arith.constant 0 : index
      %c0_12 = arith.constant 0 : index
      %15 = vector.load %arg5[%c0_11, %c0_12] : memref<16x128xf32, #tpu.memory_space<vmem>>, vector<16x128xf32>
      tpu.vector_store %arg5[%c0_11, %c0_12], %14 {strides = array<i32>} : memref<16x128xf32, #tpu.memory_space<vmem>>, vector<16x128xf32>,
    } else {
    }
    %c0 = arith.constant 0 : index
    %c0_1 = arith.constant 0 : index
    %3 = vector.load %arg3[%c0, %c0_1] : memref<32x128xbf16, #tpu.memory_space<vmem>>, vector<32x128xbf16>
    %c0_2 = arith.constant 0 : index
    %c0_3 = arith.constant 0 : index
    %4 = vector.load %arg5[%c0_2, %c0_3] : memref<16x128xf32, #tpu.memory_space<vmem>>, vector<16x128xf32>
    %5 = arith.index_cast %arg1 : i32 to index
    %c0_4 = arith.constant 0 : index
    %c0_5 = arith.constant 0 : index
    %6 = vector.load %arg2[%5, %c0_4, %c0_5] : memref<1x16x32xbf16, #tpu.memory_space<vmem>>, vector<1x16x32xbf16>
    %7 = vector.shape_cast %6 : vector<1x16x32xbf16> to vector<16x32xbf16>
    %cst = arith.constant dense<0.000000e+00> : vector<16x128xf32>
    %8 = tpu.matmul %7, %3, %cst {dimension_numbers = #tpu.dot_dimension_numbers<[1], [0], [0], [1], [0, 0, 1, 1], [], []>} : vector<16x32xbf16>, vector<32x128xbf16>, vector<16x128xf32> -> vector<16x128xf32>
    %9 = arith.addf %4, %8 : vector<16x128xf32>
    %c0_6 = arith.constant 0 : index
    %c0_7 = arith.constant 0 : index
    %10 = vector.load %arg5[%c0_6, %c0_7] : memref<16x128xf32, #tpu.memory_space<vmem>>, vector<16x128xf32>
    tpu.vector_store %arg5[%c0_6, %c0_7], %9 {strides = array<i32>} : memref<16x128xf32, #tpu.memory_space<vmem>>, vector<16x128xf32>,
    %c0_i32_8 = arith.constant 0 : i32
    %11 = arith.cmpi eq, %arg1, %c0_i32_8 : i32
    %12 = arith.extui %11 : i1 to i32
    %c0_i32_9 = arith.constant 0 : i32
    %13 = arith.cmpi ne, %12, %c0_i32_9 : i32
    scf.if %13 {
      %c0_10 = arith.constant 0 : index
      %c0_11 = arith.constant 0 : index
      %14 = vector.load %arg5[%c0_10, %c0_11] : memref<16x128xf32, #tpu.memory_space<vmem>>, vector<16x128xf32>
      %c0_12 = arith.constant 0 : index
      %c0_13 = arith.constant 0 : index
      %15 = vector.load %arg4[%c0_12, %c0_13] : memref<16x1xf32, #tpu.memory_space<vmem>>, vector<16x1xf32>
      %16 = vector.broadcast %15 : vector<16x1xf32> to vector<16x128xf32>
      %17 = arith.addf %14, %16 : vector<16x128xf32>
      %cst_14 = arith.constant 0.000000e+00 : f32
      %18 = vector.broadcast %cst_14 : f32 to vector<16x128xf32>
      %19 = arith.maximumf %17, %18 : vector<16x128xf32>
      %c0_15 = arith.constant 0 : index
      %c0_16 = arith.constant 0 : index
      %20 = vector.load %arg5[%c0_15, %c0_16] : memref<16x128xf32, #tpu.memory_space<vmem>>, vector<16x128xf32>
      tpu.vector_store %arg5[%c0_15, %c0_16], %19 {strides = array<i32>} : memref<16x128xf32, #tpu.memory_space<vmem>>, vector<16x128xf32>,
    } else {
    }
    return
  }
  func.func @transform_0(%arg0: i32, %arg1: i32) -> (i32, i32, i32) {
    %c0_i32 = arith.constant 0 : i32
    %c0_i32_0 = arith.constant 0 : i32
    %c0_i32_1 = arith.constant 0 : i32
    %c0_i32_2 = arith.constant 0 : i32
    return %c0_i32, %c0_i32_0, %c0_i32_1 : i32, i32, i32
  }
  func.func @transform_1(%arg0: i32, %arg1: i32) -> (i32, i32) {
    %c0_i32 = arith.constant 0 : i32
    return %arg1, %arg0 : i32, i32
  }
  func.func @transform_2(%arg0: i32, %arg1: i32) -> (i32, i32) {
    %c0_i32 = arith.constant 0 : i32
    %c0_i32_0 = arith.constant 0 : i32
    %c0_i32_1 = arith.constant 0 : i32
    return %c0_i32, %c0_i32_0 : i32, i32
  }
  func.func @transform_3(%arg0: i32, %arg1: i32) -> (i32, i32) {
    %c0_i32 = arith.constant 0 : i32
    %c0_i32_0 = arith.constant 0 : i32
    return %c0_i32, %arg0 : i32, i32
  }
}

module attributes {stable_mosaic.version = 11 : i64} {
  func.func @_gemm_kernel(%arg0: i32, %arg1: i32, %arg2: memref<1x16x144xbf16, #tpu.memory_space<vmem>>, %arg3: memref<144x128xbf16, #tpu.memory_space<vmem>>, %arg4: memref<16x1xf32, #tpu.memory_space<vmem>>, %arg5: memref<16x128xf32, #tpu.memory_space<vmem>>) attributes {dimension_semantics = [#tpu.dimension_semantics<parallel>, #tpu.dimension_semantics<arbitrary>], iteration_bounds = array<i64: 1, 1>, scalar_prefetch = 0 : i64, scratch_operands = 0 : i64, tpu.core_type = #tpu.core_type<tc>, window_params = [{pipeline_mode = #tpu.pipeline_mode<synchronous>, transform_indices = @transform_0, window_bounds = array<i64: 1, 16, 144>}, {transform_indices = @transform_1, window_bounds = array<i64: 144, 128>}, {pipeline_mode = #tpu.pipeline_mode<synchronous>, transform_indices = @transform_2, window_bounds = array<i64: 16, 1>}, {transform_indices = @transform_3, window_bounds = array<i64: 16, 128>}]} {
    %c0_i32 = arith.constant 0 : i32
    %0 = arith.cmpi eq, %arg1, %c0_i32 : i32
    %1 = arith.extui %0 : i1 to i32
    %c0_i32_0 = arith.constant 0 : i32
    %2 = arith.cmpi ne, %1, %c0_i32_0 : i32
    scf.if %2 {
      %cst_10 = arith.constant 0.000000e+00 : f32
      %14 = vector.broadcast %cst_10 : f32 to vector<16x128xf32>
      %c0_11 = arith.constant 0 : index
      %c0_12 = arith.constant 0 : index
      %15 = vector.load %arg5[%c0_11, %c0_12] : memref<16x128xf32, #tpu.memory_space<vmem>>, vector<16x128xf32>
      tpu.vector_store %arg5[%c0_11, %c0_12], %14 {strides = array<i32>} : memref<16x128xf32, #tpu.memory_space<vmem>>, vector<16x128xf32>,
    } else {
    }
    %c0 = arith.constant 0 : index
    %c0_1 = arith.constant 0 : index
    %3 = vector.load %arg3[%c0, %c0_1] : memref<144x128xbf16, #tpu.memory_space<vmem>>, vector<144x128xbf16>
    %c0_2 = arith.constant 0 : index
    %c0_3 = arith.constant 0 : index
    %4 = vector.load %arg5[%c0_2, %c0_3] : memref<16x128xf32, #tpu.memory_space<vmem>>, vector<16x128xf32>
    %5 = arith.index_cast %arg1 : i32 to index
    %c0_4 = arith.constant 0 : index
    %c0_5 = arith.constant 0 : index
    %6 = vector.load %arg2[%5, %c0_4, %c0_5] : memref<1x16x144xbf16, #tpu.memory_space<vmem>>, vector<1x16x144xbf16>
    %7 = vector.shape_cast %6 : vector<1x16x144xbf16> to vector<16x144xbf16>
    %cst = arith.constant dense<0.000000e+00> : vector<16x128xf32>
    %8 = tpu.matmul %7, %3, %cst {dimension_numbers = #tpu.dot_dimension_numbers<[1], [0], [0], [1], [0, 0, 1, 1], [], []>} : vector<16x144xbf16>, vector<144x128xbf16>, vector<16x128xf32> -> vector<16x128xf32>
    %9 = arith.addf %4, %8 : vector<16x128xf32>
    %c0_6 = arith.constant 0 : index
    %c0_7 = arith.constant 0 : index
    %10 = vector.load %arg5[%c0_6, %c0_7] : memref<16x128xf32, #tpu.memory_space<vmem>>, vector<16x128xf32>
    tpu.vector_store %arg5[%c0_6, %c0_7], %9 {strides = array<i32>} : memref<16x128xf32, #tpu.memory_space<vmem>>, vector<16x128xf32>,
    %c0_i32_8 = arith.constant 0 : i32
    %11 = arith.cmpi eq, %arg1, %c0_i32_8 : i32
    %12 = arith.extui %11 : i1 to i32
    %c0_i32_9 = arith.constant 0 : i32
    %13 = arith.cmpi ne, %12, %c0_i32_9 : i32
    scf.if %13 {
      %c0_10 = arith.constant 0 : index
      %c0_11 = arith.constant 0 : index
      %14 = vector.load %arg5[%c0_10, %c0_11] : memref<16x128xf32, #tpu.memory_space<vmem>>, vector<16x128xf32>
      %c0_12 = arith.constant 0 : index
      %c0_13 = arith.constant 0 : index
      %15 = vector.load %arg4[%c0_12, %c0_13] : memref<16x1xf32, #tpu.memory_space<vmem>>, vector<16x1xf32>
      %16 = vector.broadcast %15 : vector<16x1xf32> to vector<16x128xf32>
      %17 = arith.addf %14, %16 : vector<16x128xf32>
      %cst_14 = arith.constant 0.000000e+00 : f32
      %18 = vector.broadcast %cst_14 : f32 to vector<16x128xf32>
      %19 = arith.maximumf %17, %18 : vector<16x128xf32>
      %c0_15 = arith.constant 0 : index
      %c0_16 = arith.constant 0 : index
      %20 = vector.load %arg5[%c0_15, %c0_16] : memref<16x128xf32, #tpu.memory_space<vmem>>, vector<16x128xf32>
      tpu.vector_store %arg5[%c0_15, %c0_16], %19 {strides = array<i32>} : memref<16x128xf32, #tpu.memory_space<vmem>>, vector<16x128xf32>,
    } else {
    }
    return
  }
  func.func @transform_0(%arg0: i32, %arg1: i32) -> (i32, i32, i32) {
    %c0_i32 = arith.constant 0 : i32
    %c0_i32_0 = arith.constant 0 : i32
    %c0_i32_1 = arith.constant 0 : i32
    %c0_i32_2 = arith.constant 0 : i32
    return %c0_i32, %c0_i32_0, %c0_i32_1 : i32, i32, i32
  }
  func.func @transform_1(%arg0: i32, %arg1: i32) -> (i32, i32) {
    %c0_i32 = arith.constant 0 : i32
    return %arg1, %arg0 : i32, i32
  }
  func.func @transform_2(%arg0: i32, %arg1: i32) -> (i32, i32) {
    %c0_i32 = arith.constant 0 : i32
    %c0_i32_0 = arith.constant 0 : i32
    %c0_i32_1 = arith.constant 0 : i32
    return %c0_i32, %c0_i32_0 : i32, i32
  }
  func.func @transform_3(%arg0: i32, %arg1: i32) -> (i32, i32) {
    %c0_i32 = arith.constant 0 : i32
    %c0_i32_0 = arith.constant 0 : i32
    return %c0_i32, %arg0 : i32, i32
  }
}

module attributes {stable_mosaic.version = 11 : i64} {
  func.func @_gemm_kernel(%arg0: i32, %arg1: i32, %arg2: memref<1x32x144xbf16, #tpu.memory_space<vmem>>, %arg3: memref<144x128xbf16, #tpu.memory_space<vmem>>, %arg4: memref<32x1xf32, #tpu.memory_space<vmem>>, %arg5: memref<32x128xf32, #tpu.memory_space<vmem>>) attributes {dimension_semantics = [#tpu.dimension_semantics<parallel>, #tpu.dimension_semantics<arbitrary>], iteration_bounds = array<i64: 1, 1>, scalar_prefetch = 0 : i64, scratch_operands = 0 : i64, tpu.core_type = #tpu.core_type<tc>, window_params = [{pipeline_mode = #tpu.pipeline_mode<synchronous>, transform_indices = @transform_0, window_bounds = array<i64: 1, 32, 144>}, {transform_indices = @transform_1, window_bounds = array<i64: 144, 128>}, {pipeline_mode = #tpu.pipeline_mode<synchronous>, transform_indices = @transform_2, window_bounds = array<i64: 32, 1>}, {transform_indices = @transform_3, window_bounds = array<i64: 32, 128>}]} {
    %c0_i32 = arith.constant 0 : i32
    %0 = arith.cmpi eq, %arg1, %c0_i32 : i32
    %1 = arith.extui %0 : i1 to i32
    %c0_i32_0 = arith.constant 0 : i32
    %2 = arith.cmpi ne, %1, %c0_i32_0 : i32
    scf.if %2 {
      %cst_10 = arith.constant 0.000000e+00 : f32
      %14 = vector.broadcast %cst_10 : f32 to vector<32x128xf32>
      %c0_11 = arith.constant 0 : index
      %c0_12 = arith.constant 0 : index
      %15 = vector.load %arg5[%c0_11, %c0_12] : memref<32x128xf32, #tpu.memory_space<vmem>>, vector<32x128xf32>
      tpu.vector_store %arg5[%c0_11, %c0_12], %14 {strides = array<i32>} : memref<32x128xf32, #tpu.memory_space<vmem>>, vector<32x128xf32>,
    } else {
    }
    %c0 = arith.constant 0 : index
    %c0_1 = arith.constant 0 : index
    %3 = vector.load %arg3[%c0, %c0_1] : memref<144x128xbf16, #tpu.memory_space<vmem>>, vector<144x128xbf16>
    %c0_2 = arith.constant 0 : index
    %c0_3 = arith.constant 0 : index
    %4 = vector.load %arg5[%c0_2, %c0_3] : memref<32x128xf32, #tpu.memory_space<vmem>>, vector<32x128xf32>
    %5 = arith.index_cast %arg1 : i32 to index
    %c0_4 = arith.constant 0 : index
    %c0_5 = arith.constant 0 : index
    %6 = vector.load %arg2[%5, %c0_4, %c0_5] : memref<1x32x144xbf16, #tpu.memory_space<vmem>>, vector<1x32x144xbf16>
    %7 = vector.shape_cast %6 : vector<1x32x144xbf16> to vector<32x144xbf16>
    %cst = arith.constant dense<0.000000e+00> : vector<32x128xf32>
    %8 = tpu.matmul %7, %3, %cst {dimension_numbers = #tpu.dot_dimension_numbers<[1], [0], [0], [1], [0, 0, 1, 1], [], []>} : vector<32x144xbf16>, vector<144x128xbf16>, vector<32x128xf32> -> vector<32x128xf32>
    %9 = arith.addf %4, %8 : vector<32x128xf32>
    %c0_6 = arith.constant 0 : index
    %c0_7 = arith.constant 0 : index
    %10 = vector.load %arg5[%c0_6, %c0_7] : memref<32x128xf32, #tpu.memory_space<vmem>>, vector<32x128xf32>
    tpu.vector_store %arg5[%c0_6, %c0_7], %9 {strides = array<i32>} : memref<32x128xf32, #tpu.memory_space<vmem>>, vector<32x128xf32>,
    %c0_i32_8 = arith.constant 0 : i32
    %11 = arith.cmpi eq, %arg1, %c0_i32_8 : i32
    %12 = arith.extui %11 : i1 to i32
    %c0_i32_9 = arith.constant 0 : i32
    %13 = arith.cmpi ne, %12, %c0_i32_9 : i32
    scf.if %13 {
      %c0_10 = arith.constant 0 : index
      %c0_11 = arith.constant 0 : index
      %14 = vector.load %arg5[%c0_10, %c0_11] : memref<32x128xf32, #tpu.memory_space<vmem>>, vector<32x128xf32>
      %c0_12 = arith.constant 0 : index
      %c0_13 = arith.constant 0 : index
      %15 = vector.load %arg4[%c0_12, %c0_13] : memref<32x1xf32, #tpu.memory_space<vmem>>, vector<32x1xf32>
      %16 = vector.broadcast %15 : vector<32x1xf32> to vector<32x128xf32>
      %17 = arith.addf %14, %16 : vector<32x128xf32>
      %cst_14 = arith.constant 0.000000e+00 : f32
      %18 = vector.broadcast %cst_14 : f32 to vector<32x128xf32>
      %19 = arith.maximumf %17, %18 : vector<32x128xf32>
      %c0_15 = arith.constant 0 : index
      %c0_16 = arith.constant 0 : index
      %20 = vector.load %arg5[%c0_15, %c0_16] : memref<32x128xf32, #tpu.memory_space<vmem>>, vector<32x128xf32>
      tpu.vector_store %arg5[%c0_15, %c0_16], %19 {strides = array<i32>} : memref<32x128xf32, #tpu.memory_space<vmem>>, vector<32x128xf32>,
    } else {
    }
    return
  }
  func.func @transform_0(%arg0: i32, %arg1: i32) -> (i32, i32, i32) {
    %c0_i32 = arith.constant 0 : i32
    %c0_i32_0 = arith.constant 0 : i32
    %c0_i32_1 = arith.constant 0 : i32
    %c0_i32_2 = arith.constant 0 : i32
    return %c0_i32, %c0_i32_0, %c0_i32_1 : i32, i32, i32
  }
  func.func @transform_1(%arg0: i32, %arg1: i32) -> (i32, i32) {
    %c0_i32 = arith.constant 0 : i32
    return %arg1, %arg0 : i32, i32
  }
  func.func @transform_2(%arg0: i32, %arg1: i32) -> (i32, i32) {
    %c0_i32 = arith.constant 0 : i32
    %c0_i32_0 = arith.constant 0 : i32
    %c0_i32_1 = arith.constant 0 : i32
    return %c0_i32, %c0_i32_0 : i32, i32
  }
  func.func @transform_3(%arg0: i32, %arg1: i32) -> (i32, i32) {
    %c0_i32 = arith.constant 0 : i32
    %c0_i32_0 = arith.constant 0 : i32
    return %c0_i32, %arg0 : i32, i32
  }
}

module attributes {stable_mosaic.version = 11 : i64} {
  func.func @_gemm_kernel(%arg0: i32, %arg1: i32, %arg2: memref<1x32x432xbf16, #tpu.memory_space<vmem>>, %arg3: memref<432x128xbf16, #tpu.memory_space<vmem>>, %arg4: memref<32x1xf32, #tpu.memory_space<vmem>>, %arg5: memref<32x128xf32, #tpu.memory_space<vmem>>) attributes {dimension_semantics = [#tpu.dimension_semantics<parallel>, #tpu.dimension_semantics<arbitrary>], iteration_bounds = array<i64: 1, 1>, scalar_prefetch = 0 : i64, scratch_operands = 0 : i64, tpu.core_type = #tpu.core_type<tc>, window_params = [{pipeline_mode = #tpu.pipeline_mode<synchronous>, transform_indices = @transform_0, window_bounds = array<i64: 1, 32, 432>}, {transform_indices = @transform_1, window_bounds = array<i64: 432, 128>}, {pipeline_mode = #tpu.pipeline_mode<synchronous>, transform_indices = @transform_2, window_bounds = array<i64: 32, 1>}, {transform_indices = @transform_3, window_bounds = array<i64: 32, 128>}]} {
    %c0_i32 = arith.constant 0 : i32
    %0 = arith.cmpi eq, %arg1, %c0_i32 : i32
    %1 = arith.extui %0 : i1 to i32
    %c0_i32_0 = arith.constant 0 : i32
    %2 = arith.cmpi ne, %1, %c0_i32_0 : i32
    scf.if %2 {
      %cst_10 = arith.constant 0.000000e+00 : f32
      %14 = vector.broadcast %cst_10 : f32 to vector<32x128xf32>
      %c0_11 = arith.constant 0 : index
      %c0_12 = arith.constant 0 : index
      %15 = vector.load %arg5[%c0_11, %c0_12] : memref<32x128xf32, #tpu.memory_space<vmem>>, vector<32x128xf32>
      tpu.vector_store %arg5[%c0_11, %c0_12], %14 {strides = array<i32>} : memref<32x128xf32, #tpu.memory_space<vmem>>, vector<32x128xf32>,
    } else {
    }
    %c0 = arith.constant 0 : index
    %c0_1 = arith.constant 0 : index
    %3 = vector.load %arg3[%c0, %c0_1] : memref<432x128xbf16, #tpu.memory_space<vmem>>, vector<432x128xbf16>
    %c0_2 = arith.constant 0 : index
    %c0_3 = arith.constant 0 : index
    %4 = vector.load %arg5[%c0_2, %c0_3] : memref<32x128xf32, #tpu.memory_space<vmem>>, vector<32x128xf32>
    %5 = arith.index_cast %arg1 : i32 to index
    %c0_4 = arith.constant 0 : index
    %c0_5 = arith.constant 0 : index
    %6 = vector.load %arg2[%5, %c0_4, %c0_5] : memref<1x32x432xbf16, #tpu.memory_space<vmem>>, vector<1x32x432xbf16>
    %7 = vector.shape_cast %6 : vector<1x32x432xbf16> to vector<32x432xbf16>
    %cst = arith.constant dense<0.000000e+00> : vector<32x128xf32>
    %8 = tpu.matmul %7, %3, %cst {dimension_numbers = #tpu.dot_dimension_numbers<[1], [0], [0], [1], [0, 0, 1, 1], [], []>} : vector<32x432xbf16>, vector<432x128xbf16>, vector<32x128xf32> -> vector<32x128xf32>
    %9 = arith.addf %4, %8 : vector<32x128xf32>
    %c0_6 = arith.constant 0 : index
    %c0_7 = arith.constant 0 : index
    %10 = vector.load %arg5[%c0_6, %c0_7] : memref<32x128xf32, #tpu.memory_space<vmem>>, vector<32x128xf32>
    tpu.vector_store %arg5[%c0_6, %c0_7], %9 {strides = array<i32>} : memref<32x128xf32, #tpu.memory_space<vmem>>, vector<32x128xf32>,
    %c0_i32_8 = arith.constant 0 : i32
    %11 = arith.cmpi eq, %arg1, %c0_i32_8 : i32
    %12 = arith.extui %11 : i1 to i32
    %c0_i32_9 = arith.constant 0 : i32
    %13 = arith.cmpi ne, %12, %c0_i32_9 : i32
    scf.if %13 {
      %c0_10 = arith.constant 0 : index
      %c0_11 = arith.constant 0 : index
      %14 = vector.load %arg5[%c0_10, %c0_11] : memref<32x128xf32, #tpu.memory_space<vmem>>, vector<32x128xf32>
      %c0_12 = arith.constant 0 : index
      %c0_13 = arith.constant 0 : index
      %15 = vector.load %arg4[%c0_12, %c0_13] : memref<32x1xf32, #tpu.memory_space<vmem>>, vector<32x1xf32>
      %16 = vector.broadcast %15 : vector<32x1xf32> to vector<32x128xf32>
      %17 = arith.addf %14, %16 : vector<32x128xf32>
      %cst_14 = arith.constant 0.000000e+00 : f32
      %18 = vector.broadcast %cst_14 : f32 to vector<32x128xf32>
      %19 = arith.maximumf %17, %18 : vector<32x128xf32>
      %c0_15 = arith.constant 0 : index
      %c0_16 = arith.constant 0 : index
      %20 = vector.load %arg5[%c0_15, %c0_16] : memref<32x128xf32, #tpu.memory_space<vmem>>, vector<32x128xf32>
      tpu.vector_store %arg5[%c0_15, %c0_16], %19 {strides = array<i32>} : memref<32x128xf32, #tpu.memory_space<vmem>>, vector<32x128xf32>,
    } else {
    }
    return
  }
  func.func @transform_0(%arg0: i32, %arg1: i32) -> (i32, i32, i32) {
    %c0_i32 = arith.constant 0 : i32
    %c0_i32_0 = arith.constant 0 : i32
    %c0_i32_1 = arith.constant 0 : i32
    %c0_i32_2 = arith.constant 0 : i32
    return %c0_i32, %c0_i32_0, %c0_i32_1 : i32, i32, i32
  }
  func.func @transform_1(%arg0: i32, %arg1: i32) -> (i32, i32) {
    %c0_i32 = arith.constant 0 : i32
    return %arg1, %arg0 : i32, i32
  }
  func.func @transform_2(%arg0: i32, %arg1: i32) -> (i32, i32) {
    %c0_i32 = arith.constant 0 : i32
    %c0_i32_0 = arith.constant 0 : i32
    %c0_i32_1 = arith.constant 0 : i32
    return %c0_i32, %c0_i32_0 : i32, i32
  }
  func.func @transform_3(%arg0: i32, %arg1: i32) -> (i32, i32) {
    %c0_i32 = arith.constant 0 : i32
    %c0_i32_0 = arith.constant 0 : i32
    return %c0_i32, %arg0 : i32, i32
  }
}

module attributes {stable_mosaic.version = 11 : i64} {
  func.func @_em_kernel(%arg0: i32, %arg1: i32, %arg2: memref<1x32x64xf32, #tpu.memory_space<vmem>>, %arg3: memref<1x8x32xf32, #tpu.memory_space<vmem>>, %arg4: memref<1x8x1xf32, #tpu.memory_space<vmem>>, %arg5: memref<1x1x8x32xf32, #tpu.memory_space<vmem>>) attributes {dimension_semantics = [#tpu.dimension_semantics<parallel>, #tpu.dimension_semantics<parallel>], iteration_bounds = array<i64: 2, 3>, scalar_prefetch = 0 : i64, scratch_operands = 0 : i64, tpu.core_type = #tpu.core_type<tc>, window_params = [{transform_indices = @transform_0, window_bounds = array<i64: 1, 32, 64>}, {transform_indices = @transform_1, window_bounds = array<i64: 1, 8, 32>}, {transform_indices = @transform_2, window_bounds = array<i64: 1, 8, 1>}, {transform_indices = @transform_3, window_bounds = array<i64: 1, 1, 8, 32>}]} {
    %c0 = arith.constant 0 : index
    %c0_0 = arith.constant 0 : index
    %c0_1 = arith.constant 0 : index
    %0 = vector.load %arg2[%c0, %c0_0, %c0_1] : memref<1x32x64xf32, #tpu.memory_space<vmem>>, vector<1x32x64xf32>
    %1 = vector.shape_cast %0 : vector<1x32x64xf32> to vector<32x64xf32>
    %c0_2 = arith.constant 0 : index
    %c0_3 = arith.constant 0 : index
    %c0_4 = arith.constant 0 : index
    %2 = vector.load %arg4[%c0_2, %c0_3, %c0_4] : memref<1x8x1xf32, #tpu.memory_space<vmem>>, vector<1x8x1xf32>
    %3 = vector.shape_cast %2 : vector<1x8x1xf32> to vector<8x1xf32>
    %c0_5 = arith.constant 0 : index
    %c0_6 = arith.constant 0 : index
    %c0_7 = arith.constant 0 : index
    %4 = vector.load %arg3[%c0_5, %c0_6, %c0_7] : memref<1x8x32xf32, #tpu.memory_space<vmem>>, vector<1x8x32xf32>
    %5 = vector.shape_cast %4 : vector<1x8x32xf32> to vector<8x32xf32>
    %c0_i32 = arith.constant 0 : i32
    %cst = arith.constant dense<0.000000e+00> : vector<8x64xf32>
    %6 = tpu.matmul %5, %1, %cst {dimension_numbers = #tpu.dot_dimension_numbers<[1], [0], [0], [1], [0, 0, 1, 1], [], []>} : vector<8x32xf32>, vector<32x64xf32>, vector<8x64xf32> -> vector<8x64xf32>
    %cst_8 = arith.constant 2.000000e+01 : f32
    %7 = vector.broadcast %cst_8 : f32 to vector<8x64xf32>
    %8 = arith.mulf %7, %6 : vector<8x64xf32>
    %9 = vector.broadcast %3 : vector<8x1xf32> to vector<8x64xf32>
    %10 = arith.addf %8, %9 : vector<8x64xf32>
    %cst_9 = arith.constant dense<0xFF800000> : vector<64xf32>
    %11 = vector.multi_reduction <maximumf>, %10, %cst_9 [0] : vector<8x64xf32> to vector<64xf32>
    %12 = vector.shape_cast %11 : vector<64xf32> to vector<1x64xf32>
    %13 = vector.broadcast %12 : vector<1x64xf32> to vector<8x64xf32>
    %14 = arith.subf %10, %13 : vector<8x64xf32>
    %15 = math.exp %14 : vector<8x64xf32>
    %cst_10 = arith.constant dense<0.000000e+00> : vector<64xf32>
    %16 = vector.multi_reduction <add>, %15, %cst_10 [0] : vector<8x64xf32> to vector<64xf32>
    %17 = vector.shape_cast %16 : vector<64xf32> to vector<1x64xf32>
    %18 = vector.broadcast %17 : vector<1x64xf32> to vector<8x64xf32>
    %19 = arith.divf %15, %18 : vector<8x64xf32>
    %cst_11 = arith.constant dense<0.000000e+00> : vector<8xf32>
    %20 = vector.multi_reduction <add>, %19, %cst_11 [1] : vector<8x64xf32> to vector<8xf32>
    %21 = vector.shape_cast %20 : vector<8xf32> to vector<8x1xf32>
    %cst_12 = arith.constant 9.99999997E-7 : f32
    %22 = vector.broadcast %cst_12 : f32 to vector<8x1xf32>
    %23 = arith.addf %22, %21 : vector<8x1xf32>
    %24 = vector.broadcast %23 : vector<8x1xf32> to vector<8x64xf32>
    %25 = arith.divf %19, %24 : vector<8x64xf32>
    %cst_13 = arith.constant dense<0.000000e+00> : vector<8x32xf32>
    %26 = tpu.matmul %25, %1, %cst_13 {dimension_numbers = #tpu.dot_dimension_numbers<[1], [1], [0], [0], [0, 0, 1, 0], [], []>} : vector<8x64xf32>, vector<32x64xf32>, vector<8x32xf32> -> vector<8x32xf32>
    %27 = arith.mulf %26, %26 : vector<8x32xf32>
    %cst_14 = arith.constant dense<0.000000e+00> : vector<8xf32>
    %28 = vector.multi_reduction <add>, %27, %cst_14 [1] : vector<8x32xf32> to vector<8xf32>
    %29 = vector.shape_cast %28 : vector<8xf32> to vector<8x1xf32>
    %30 = math.sqrt %29 : vector<8x1xf32>
    %cst_15 = arith.constant 9.99999997E-7 : f32
    %31 = vector.broadcast %cst_15 : f32 to vector<8x1xf32>
    %32 = arith.addf %31, %30 : vector<8x1xf32>
    %33 = vector.broadcast %32 : vector<8x1xf32> to vector<8x32xf32>
    %34 = arith.divf %26, %33 : vector<8x32xf32>
    %c1_i32 = arith.constant 1 : i32
    %cst_16 = arith.constant dense<0.000000e+00> : vector<8x64xf32>
    %35 = tpu.matmul %34, %1, %cst_16 {dimension_numbers = #tpu.dot_dimension_numbers<[1], [0], [0], [1], [0, 0, 1, 1], [], []>} : vector<8x32xf32>, vector<32x64xf32>, vector<8x64xf32> -> vector<8x64xf32>
    %cst_17 = arith.constant 2.000000e+01 : f32
    %36 = vector.broadcast %cst_17 : f32 to vector<8x64xf32>
    %37 = arith.mulf %36, %35 : vector<8x64xf32>
    %38 = vector.broadcast %3 : vector<8x1xf32> to vector<8x64xf32>
    %39 = arith.addf %37, %38 : vector<8x64xf32>
    %cst_18 = arith.constant dense<0xFF800000> : vector<64xf32>
    %40 = vector.multi_reduction <maximumf>, %39, %cst_18 [0] : vector<8x64xf32> to vector<64xf32>
    %41 = vector.shape_cast %40 : vector<64xf32> to vector<1x64xf32>
    %42 = vector.broadcast %41 : vector<1x64xf32> to vector<8x64xf32>
    %43 = arith.subf %39, %42 : vector<8x64xf32>
    %44 = math.exp %43 : vector<8x64xf32>
    %cst_19 = arith.constant dense<0.000000e+00> : vector<64xf32>
    %45 = vector.multi_reduction <add>, %44, %cst_19 [0] : vector<8x64xf32> to vector<64xf32>
    %46 = vector.shape_cast %45 : vector<64xf32> to vector<1x64xf32>
    %47 = vector.broadcast %46 : vector<1x64xf32> to vector<8x64xf32>
    %48 = arith.divf %44, %47 : vector<8x64xf32>
    %cst_20 = arith.constant dense<0.000000e+00> : vector<8xf32>
    %49 = vector.multi_reduction <add>, %48, %cst_20 [1] : vector<8x64xf32> to vector<8xf32>
    %50 = vector.shape_cast %49 : vector<8xf32> to vector<8x1xf32>
    %cst_21 = arith.constant 9.99999997E-7 : f32
    %51 = vector.broadcast %cst_21 : f32 to vector<8x1xf32>
    %52 = arith.addf %51, %50 : vector<8x1xf32>
    %53 = vector.broadcast %52 : vector<8x1xf32> to vector<8x64xf32>
    %54 = arith.divf %48, %53 : vector<8x64xf32>
    %cst_22 = arith.constant dense<0.000000e+00> : vector<8x32xf32>
    %55 = tpu.matmul %54, %1, %cst_22 {dimension_numbers = #tpu.dot_dimension_numbers<[1], [1], [0], [0], [0, 0, 1, 0], [], []>} : vector<8x64xf32>, vector<32x64xf32>, vector<8x32xf32> -> vector<8x32xf32>
    %56 = arith.mulf %55, %55 : vector<8x32xf32>
    %cst_23 = arith.constant dense<0.000000e+00> : vector<8xf32>
    %57 = vector.multi_reduction <add>, %56, %cst_23 [1] : vector<8x32xf32> to vector<8xf32>
    %58 = vector.shape_cast %57 : vector<8xf32> to vector<8x1xf32>
    %59 = math.sqrt %58 : vector<8x1xf32>
    %cst_24 = arith.constant 9.99999997E-7 : f32
    %60 = vector.broadcast %cst_24 : f32 to vector<8x1xf32>
    %61 = arith.addf %60, %59 : vector<8x1xf32>
    %62 = vector.broadcast %61 : vector<8x1xf32> to vector<8x32xf32>
    %63 = arith.divf %55, %62 : vector<8x32xf32>
    %c2_i32 = arith.constant 2 : i32
    %cst_25 = arith.constant dense<0.000000e+00> : vector<8x64xf32>
    %64 = tpu.matmul %63, %1, %cst_25 {dimension_numbers = #tpu.dot_dimension_numbers<[1], [0], [0], [1], [0, 0, 1, 1], [], []>} : vector<8x32xf32>, vector<32x64xf32>, vector<8x64xf32> -> vector<8x64xf32>
    %cst_26 = arith.constant 2.000000e+01 : f32
    %65 = vector.broadcast %cst_26 : f32 to vector<8x64xf32>
    %66 = arith.mulf %65, %64 : vector<8x64xf32>
    %67 = vector.broadcast %3 : vector<8x1xf32> to vector<8x64xf32>
    %68 = arith.addf %66, %67 : vector<8x64xf32>
    %cst_27 = arith.constant dense<0xFF800000> : vector<64xf32>
    %69 = vector.multi_reduction <maximumf>, %68, %cst_27 [0] : vector<8x64xf32> to vector<64xf32>
    %70 = vector.shape_cast %69 : vector<64xf32> to vector<1x64xf32>
    %71 = vector.broadcast %70 : vector<1x64xf32> to vector<8x64xf32>
    %72 = arith.subf %68, %71 : vector<8x64xf32>
    %73 = math.exp %72 : vector<8x64xf32>
    %cst_28 = arith.constant dense<0.000000e+00> : vector<64xf32>
    %74 = vector.multi_reduction <add>, %73, %cst_28 [0] : vector<8x64xf32> to vector<64xf32>
    %75 = vector.shape_cast %74 : vector<64xf32> to vector<1x64xf32>
    %76 = vector.broadcast %75 : vector<1x64xf32> to vector<8x64xf32>
    %77 = arith.divf %73, %76 : vector<8x64xf32>
    %cst_29 = arith.constant dense<0.000000e+00> : vector<8xf32>
    %78 = vector.multi_reduction <add>, %77, %cst_29 [1] : vector<8x64xf32> to vector<8xf32>
    %79 = vector.shape_cast %78 : vector<8xf32> to vector<8x1xf32>
    %cst_30 = arith.constant 9.99999997E-7 : f32
    %80 = vector.broadcast %cst_30 : f32 to vector<8x1xf32>
    %81 = arith.addf %80, %79 : vector<8x1xf32>
    %82 = vector.broadcast %81 : vector<8x1xf32> to vector<8x64xf32>
    %83 = arith.divf %77, %82 : vector<8x64xf32>
    %cst_31 = arith.constant dense<0.000000e+00> : vector<8x32xf32>
    %84 = tpu.matmul %83, %1, %cst_31 {dimension_numbers = #tpu.dot_dimension_numbers<[1], [1], [0], [0], [0, 0, 1, 0], [], []>} : vector<8x64xf32>, vector<32x64xf32>, vector<8x32xf32> -> vector<8x32xf32>
    %85 = arith.mulf %84, %84 : vector<8x32xf32>
    %cst_32 = arith.constant dense<0.000000e+00> : vector<8xf32>
    %86 = vector.multi_reduction <add>, %85, %cst_32 [1] : vector<8x32xf32> to vector<8xf32>
    %87 = vector.shape_cast %86 : vector<8xf32> to vector<8x1xf32>
    %88 = math.sqrt %87 : vector<8x1xf32>
    %cst_33 = arith.constant 9.99999997E-7 : f32
    %89 = vector.broadcast %cst_33 : f32 to vector<8x1xf32>
    %90 = arith.addf %89, %88 : vector<8x1xf32>
    %91 = vector.broadcast %90 : vector<8x1xf32> to vector<8x32xf32>
    %92 = arith.divf %84, %91 : vector<8x32xf32>
    %c3_i32 = arith.constant 3 : i32
    %cst_34 = arith.constant dense<0.000000e+00> : vector<8x64xf32>
    %93 = tpu.matmul %92, %1, %cst_34 {dimension_numbers = #tpu.dot_dimension_numbers<[1], [0], [0], [1], [0, 0, 1, 1], [], []>} : vector<8x32xf32>, vector<32x64xf32>, vector<8x64xf32> -> vector<8x64xf32>
    %cst_35 = arith.constant 2.000000e+01 : f32
    %94 = vector.broadcast %cst_35 : f32 to vector<8x64xf32>
    %95 = arith.mulf %94, %93 : vector<8x64xf32>
    %96 = vector.broadcast %3 : vector<8x1xf32> to vector<8x64xf32>
    %97 = arith.addf %95, %96 : vector<8x64xf32>
    %cst_36 = arith.constant dense<0xFF800000> : vector<64xf32>
    %98 = vector.multi_reduction <maximumf>, %97, %cst_36 [0] : vector<8x64xf32> to vector<64xf32>
    %99 = vector.shape_cast %98 : vector<64xf32> to vector<1x64xf32>
    %100 = vector.broadcast %99 : vector<1x64xf32> to vector<8x64xf32>
    %101 = arith.subf %97, %100 : vector<8x64xf32>
    %102 = math.exp %101 : vector<8x64xf32>
    %cst_37 = arith.constant dense<0.000000e+00> : vector<64xf32>
    %103 = vector.multi_reduction <add>, %102, %cst_37 [0] : vector<8x64xf32> to vector<64xf32>
    %104 = vector.shape_cast %103 : vector<64xf32> to vector<1x64xf32>
    %105 = vector.broadcast %104 : vector<1x64xf32> to vector<8x64xf32>
    %106 = arith.divf %102, %105 : vector<8x64xf32>
    %cst_38 = arith.constant dense<0.000000e+00> : vector<8xf32>
    %107 = vector.multi_reduction <add>, %106, %cst_38 [1] : vector<8x64xf32> to vector<8xf32>
    %108 = vector.shape_cast %107 : vector<8xf32> to vector<8x1xf32>
    %cst_39 = arith.constant 9.99999997E-7 : f32
    %109 = vector.broadcast %cst_39 : f32 to vector<8x1xf32>
    %110 = arith.addf %109, %108 : vector<8x1xf32>
    %111 = vector.broadcast %110 : vector<8x1xf32> to vector<8x64xf32>
    %112 = arith.divf %106, %111 : vector<8x64xf32>
    %cst_40 = arith.constant dense<0.000000e+00> : vector<8x32xf32>
    %113 = tpu.matmul %112, %1, %cst_40 {dimension_numbers = #tpu.dot_dimension_numbers<[1], [1], [0], [0], [0, 0, 1, 0], [], []>} : vector<8x64xf32>, vector<32x64xf32>, vector<8x32xf32> -> vector<8x32xf32>
    %114 = arith.mulf %113, %113 : vector<8x32xf32>
    %cst_41 = arith.constant dense<0.000000e+00> : vector<8xf32>
    %115 = vector.multi_reduction <add>, %114, %cst_41 [1] : vector<8x32xf32> to vector<8xf32>
    %116 = vector.shape_cast %115 : vector<8xf32> to vector<8x1xf32>
    %117 = math.sqrt %116 : vector<8x1xf32>
    %cst_42 = arith.constant 9.99999997E-7 : f32
    %118 = vector.broadcast %cst_42 : f32 to vector<8x1xf32>
    %119 = arith.addf %118, %117 : vector<8x1xf32>
    %120 = vector.broadcast %119 : vector<8x1xf32> to vector<8x32xf32>
    %121 = arith.divf %113, %120 : vector<8x32xf32>
    %c4_i32 = arith.constant 4 : i32
    %cst_43 = arith.constant dense<0.000000e+00> : vector<8x64xf32>
    %122 = tpu.matmul %121, %1, %cst_43 {dimension_numbers = #tpu.dot_dimension_numbers<[1], [0], [0], [1], [0, 0, 1, 1], [], []>} : vector<8x32xf32>, vector<32x64xf32>, vector<8x64xf32> -> vector<8x64xf32>
    %cst_44 = arith.constant 2.000000e+01 : f32
    %123 = vector.broadcast %cst_44 : f32 to vector<8x64xf32>
    %124 = arith.mulf %123, %122 : vector<8x64xf32>
    %125 = vector.broadcast %3 : vector<8x1xf32> to vector<8x64xf32>
    %126 = arith.addf %124, %125 : vector<8x64xf32>
    %cst_45 = arith.constant dense<0xFF800000> : vector<64xf32>
    %127 = vector.multi_reduction <maximumf>, %126, %cst_45 [0] : vector<8x64xf32> to vector<64xf32>
    %128 = vector.shape_cast %127 : vector<64xf32> to vector<1x64xf32>
    %129 = vector.broadcast %128 : vector<1x64xf32> to vector<8x64xf32>
    %130 = arith.subf %126, %129 : vector<8x64xf32>
    %131 = math.exp %130 : vector<8x64xf32>
    %cst_46 = arith.constant dense<0.000000e+00> : vector<64xf32>
    %132 = vector.multi_reduction <add>, %131, %cst_46 [0] : vector<8x64xf32> to vector<64xf32>
    %133 = vector.shape_cast %132 : vector<64xf32> to vector<1x64xf32>
    %134 = vector.broadcast %133 : vector<1x64xf32> to vector<8x64xf32>
    %135 = arith.divf %131, %134 : vector<8x64xf32>
    %cst_47 = arith.constant dense<0.000000e+00> : vector<8xf32>
    %136 = vector.multi_reduction <add>, %135, %cst_47 [1] : vector<8x64xf32> to vector<8xf32>
    %137 = vector.shape_cast %136 : vector<8xf32> to vector<8x1xf32>
    %cst_48 = arith.constant 9.99999997E-7 : f32
    %138 = vector.broadcast %cst_48 : f32 to vector<8x1xf32>
    %139 = arith.addf %138, %137 : vector<8x1xf32>
    %140 = vector.broadcast %139 : vector<8x1xf32> to vector<8x64xf32>
    %141 = arith.divf %135, %140 : vector<8x64xf32>
    %cst_49 = arith.constant dense<0.000000e+00> : vector<8x32xf32>
    %142 = tpu.matmul %141, %1, %cst_49 {dimension_numbers = #tpu.dot_dimension_numbers<[1], [1], [0], [0], [0, 0, 1, 0], [], []>} : vector<8x64xf32>, vector<32x64xf32>, vector<8x32xf32> -> vector<8x32xf32>
    %143 = arith.mulf %142, %142 : vector<8x32xf32>
    %cst_50 = arith.constant dense<0.000000e+00> : vector<8xf32>
    %144 = vector.multi_reduction <add>, %143, %cst_50 [1] : vector<8x32xf32> to vector<8xf32>
    %145 = vector.shape_cast %144 : vector<8xf32> to vector<8x1xf32>
    %146 = math.sqrt %145 : vector<8x1xf32>
    %cst_51 = arith.constant 9.99999997E-7 : f32
    %147 = vector.broadcast %cst_51 : f32 to vector<8x1xf32>
    %148 = arith.addf %147, %146 : vector<8x1xf32>
    %149 = vector.broadcast %148 : vector<8x1xf32> to vector<8x32xf32>
    %150 = arith.divf %142, %149 : vector<8x32xf32>
    %c5_i32 = arith.constant 5 : i32
    %cst_52 = arith.constant dense<0.000000e+00> : vector<8x64xf32>
    %151 = tpu.matmul %150, %1, %cst_52 {dimension_numbers = #tpu.dot_dimension_numbers<[1], [0], [0], [1], [0, 0, 1, 1], [], []>} : vector<8x32xf32>, vector<32x64xf32>, vector<8x64xf32> -> vector<8x64xf32>
    %cst_53 = arith.constant 2.000000e+01 : f32
    %152 = vector.broadcast %cst_53 : f32 to vector<8x64xf32>
    %153 = arith.mulf %152, %151 : vector<8x64xf32>
    %154 = vector.broadcast %3 : vector<8x1xf32> to vector<8x64xf32>
    %155 = arith.addf %153, %154 : vector<8x64xf32>
    %cst_54 = arith.constant dense<0xFF800000> : vector<64xf32>
    %156 = vector.multi_reduction <maximumf>, %155, %cst_54 [0] : vector<8x64xf32> to vector<64xf32>
    %157 = vector.shape_cast %156 : vector<64xf32> to vector<1x64xf32>
    %158 = vector.broadcast %157 : vector<1x64xf32> to vector<8x64xf32>
    %159 = arith.subf %155, %158 : vector<8x64xf32>
    %160 = math.exp %159 : vector<8x64xf32>
    %cst_55 = arith.constant dense<0.000000e+00> : vector<64xf32>
    %161 = vector.multi_reduction <add>, %160, %cst_55 [0] : vector<8x64xf32> to vector<64xf32>
    %162 = vector.shape_cast %161 : vector<64xf32> to vector<1x64xf32>
    %163 = vector.broadcast %162 : vector<1x64xf32> to vector<8x64xf32>
    %164 = arith.divf %160, %163 : vector<8x64xf32>
    %cst_56 = arith.constant dense<0.000000e+00> : vector<8xf32>
    %165 = vector.multi_reduction <add>, %164, %cst_56 [1] : vector<8x64xf32> to vector<8xf32>
    %166 = vector.shape_cast %165 : vector<8xf32> to vector<8x1xf32>
    %cst_57 = arith.constant 9.99999997E-7 : f32
    %167 = vector.broadcast %cst_57 : f32 to vector<8x1xf32>
    %168 = arith.addf %167, %166 : vector<8x1xf32>
    %169 = vector.broadcast %168 : vector<8x1xf32> to vector<8x64xf32>
    %170 = arith.divf %164, %169 : vector<8x64xf32>
    %cst_58 = arith.constant dense<0.000000e+00> : vector<8x32xf32>
    %171 = tpu.matmul %170, %1, %cst_58 {dimension_numbers = #tpu.dot_dimension_numbers<[1], [1], [0], [0], [0, 0, 1, 0], [], []>} : vector<8x64xf32>, vector<32x64xf32>, vector<8x32xf32> -> vector<8x32xf32>
    %172 = arith.mulf %171, %171 : vector<8x32xf32>
    %cst_59 = arith.constant dense<0.000000e+00> : vector<8xf32>
    %173 = vector.multi_reduction <add>, %172, %cst_59 [1] : vector<8x32xf32> to vector<8xf32>
    %174 = vector.shape_cast %173 : vector<8xf32> to vector<8x1xf32>
    %175 = math.sqrt %174 : vector<8x1xf32>
    %cst_60 = arith.constant 9.99999997E-7 : f32
    %176 = vector.broadcast %cst_60 : f32 to vector<8x1xf32>
    %177 = arith.addf %176, %175 : vector<8x1xf32>
    %178 = vector.broadcast %177 : vector<8x1xf32> to vector<8x32xf32>
    %179 = arith.divf %171, %178 : vector<8x32xf32>
    %c6_i32 = arith.constant 6 : i32
    %cst_61 = arith.constant dense<0.000000e+00> : vector<8x64xf32>
    %180 = tpu.matmul %179, %1, %cst_61 {dimension_numbers = #tpu.dot_dimension_numbers<[1], [0], [0], [1], [0, 0, 1, 1], [], []>} : vector<8x32xf32>, vector<32x64xf32>, vector<8x64xf32> -> vector<8x64xf32>
    %cst_62 = arith.constant 2.000000e+01 : f32
    %181 = vector.broadcast %cst_62 : f32 to vector<8x64xf32>
    %182 = arith.mulf %181, %180 : vector<8x64xf32>
    %183 = vector.broadcast %3 : vector<8x1xf32> to vector<8x64xf32>
    %184 = arith.addf %182, %183 : vector<8x64xf32>
    %cst_63 = arith.constant dense<0xFF800000> : vector<64xf32>
    %185 = vector.multi_reduction <maximumf>, %184, %cst_63 [0] : vector<8x64xf32> to vector<64xf32>
    %186 = vector.shape_cast %185 : vector<64xf32> to vector<1x64xf32>
    %187 = vector.broadcast %186 : vector<1x64xf32> to vector<8x64xf32>
    %188 = arith.subf %184, %187 : vector<8x64xf32>
    %189 = math.exp %188 : vector<8x64xf32>
    %cst_64 = arith.constant dense<0.000000e+00> : vector<64xf32>
    %190 = vector.multi_reduction <add>, %189, %cst_64 [0] : vector<8x64xf32> to vector<64xf32>
    %191 = vector.shape_cast %190 : vector<64xf32> to vector<1x64xf32>
    %192 = vector.broadcast %191 : vector<1x64xf32> to vector<8x64xf32>
    %193 = arith.divf %189, %192 : vector<8x64xf32>
    %cst_65 = arith.constant dense<0.000000e+00> : vector<8xf32>
    %194 = vector.multi_reduction <add>, %193, %cst_65 [1] : vector<8x64xf32> to vector<8xf32>
    %195 = vector.shape_cast %194 : vector<8xf32> to vector<8x1xf32>
    %cst_66 = arith.constant 9.99999997E-7 : f32
    %196 = vector.broadcast %cst_66 : f32 to vector<8x1xf32>
    %197 = arith.addf %196, %195 : vector<8x1xf32>
    %198 = vector.broadcast %197 : vector<8x1xf32> to vector<8x64xf32>
    %199 = arith.divf %193, %198 : vector<8x64xf32>
    %cst_67 = arith.constant dense<0.000000e+00> : vector<8x32xf32>
    %200 = tpu.matmul %199, %1, %cst_67 {dimension_numbers = #tpu.dot_dimension_numbers<[1], [1], [0], [0], [0, 0, 1, 0], [], []>} : vector<8x64xf32>, vector<32x64xf32>, vector<8x32xf32> -> vector<8x32xf32>
    %201 = arith.mulf %200, %200 : vector<8x32xf32>
    %cst_68 = arith.constant dense<0.000000e+00> : vector<8xf32>
    %202 = vector.multi_reduction <add>, %201, %cst_68 [1] : vector<8x32xf32> to vector<8xf32>
    %203 = vector.shape_cast %202 : vector<8xf32> to vector<8x1xf32>
    %204 = math.sqrt %203 : vector<8x1xf32>
    %cst_69 = arith.constant 9.99999997E-7 : f32
    %205 = vector.broadcast %cst_69 : f32 to vector<8x1xf32>
    %206 = arith.addf %205, %204 : vector<8x1xf32>
    %207 = vector.broadcast %206 : vector<8x1xf32> to vector<8x32xf32>
    %208 = arith.divf %200, %207 : vector<8x32xf32>
    %c7_i32 = arith.constant 7 : i32
    %cst_70 = arith.constant dense<0.000000e+00> : vector<8x64xf32>
    %209 = tpu.matmul %208, %1, %cst_70 {dimension_numbers = #tpu.dot_dimension_numbers<[1], [0], [0], [1], [0, 0, 1, 1], [], []>} : vector<8x32xf32>, vector<32x64xf32>, vector<8x64xf32> -> vector<8x64xf32>
    %cst_71 = arith.constant 2.000000e+01 : f32
    %210 = vector.broadcast %cst_71 : f32 to vector<8x64xf32>
    %211 = arith.mulf %210, %209 : vector<8x64xf32>
    %212 = vector.broadcast %3 : vector<8x1xf32> to vector<8x64xf32>
    %213 = arith.addf %211, %212 : vector<8x64xf32>
    %cst_72 = arith.constant dense<0xFF800000> : vector<64xf32>
    %214 = vector.multi_reduction <maximumf>, %213, %cst_72 [0] : vector<8x64xf32> to vector<64xf32>
    %215 = vector.shape_cast %214 : vector<64xf32> to vector<1x64xf32>
    %216 = vector.broadcast %215 : vector<1x64xf32> to vector<8x64xf32>
    %217 = arith.subf %213, %216 : vector<8x64xf32>
    %218 = math.exp %217 : vector<8x64xf32>
    %cst_73 = arith.constant dense<0.000000e+00> : vector<64xf32>
    %219 = vector.multi_reduction <add>, %218, %cst_73 [0] : vector<8x64xf32> to vector<64xf32>
    %220 = vector.shape_cast %219 : vector<64xf32> to vector<1x64xf32>
    %221 = vector.broadcast %220 : vector<1x64xf32> to vector<8x64xf32>
    %222 = arith.divf %218, %221 : vector<8x64xf32>
    %cst_74 = arith.constant dense<0.000000e+00> : vector<8xf32>
    %223 = vector.multi_reduction <add>, %222, %cst_74 [1] : vector<8x64xf32> to vector<8xf32>
    %224 = vector.shape_cast %223 : vector<8xf32> to vector<8x1xf32>
    %cst_75 = arith.constant 9.99999997E-7 : f32
    %225 = vector.broadcast %cst_75 : f32 to vector<8x1xf32>
    %226 = arith.addf %225, %224 : vector<8x1xf32>
    %227 = vector.broadcast %226 : vector<8x1xf32> to vector<8x64xf32>
    %228 = arith.divf %222, %227 : vector<8x64xf32>
    %cst_76 = arith.constant dense<0.000000e+00> : vector<8x32xf32>
    %229 = tpu.matmul %228, %1, %cst_76 {dimension_numbers = #tpu.dot_dimension_numbers<[1], [1], [0], [0], [0, 0, 1, 0], [], []>} : vector<8x64xf32>, vector<32x64xf32>, vector<8x32xf32> -> vector<8x32xf32>
    %230 = arith.mulf %229, %229 : vector<8x32xf32>
    %cst_77 = arith.constant dense<0.000000e+00> : vector<8xf32>
    %231 = vector.multi_reduction <add>, %230, %cst_77 [1] : vector<8x32xf32> to vector<8xf32>
    %232 = vector.shape_cast %231 : vector<8xf32> to vector<8x1xf32>
    %233 = math.sqrt %232 : vector<8x1xf32>
    %cst_78 = arith.constant 9.99999997E-7 : f32
    %234 = vector.broadcast %cst_78 : f32 to vector<8x1xf32>
    %235 = arith.addf %234, %233 : vector<8x1xf32>
    %236 = vector.broadcast %235 : vector<8x1xf32> to vector<8x32xf32>
    %237 = arith.divf %229, %236 : vector<8x32xf32>
    %c8_i32 = arith.constant 8 : i32
    %cst_79 = arith.constant dense<0.000000e+00> : vector<8x64xf32>
    %238 = tpu.matmul %237, %1, %cst_79 {dimension_numbers = #tpu.dot_dimension_numbers<[1], [0], [0], [1], [0, 0, 1, 1], [], []>} : vector<8x32xf32>, vector<32x64xf32>, vector<8x64xf32> -> vector<8x64xf32>
    %cst_80 = arith.constant 2.000000e+01 : f32
    %239 = vector.broadcast %cst_80 : f32 to vector<8x64xf32>
    %240 = arith.mulf %239, %238 : vector<8x64xf32>
    %241 = vector.broadcast %3 : vector<8x1xf32> to vector<8x64xf32>
    %242 = arith.addf %240, %241 : vector<8x64xf32>
    %cst_81 = arith.constant dense<0xFF800000> : vector<64xf32>
    %243 = vector.multi_reduction <maximumf>, %242, %cst_81 [0] : vector<8x64xf32> to vector<64xf32>
    %244 = vector.shape_cast %243 : vector<64xf32> to vector<1x64xf32>
    %245 = vector.broadcast %244 : vector<1x64xf32> to vector<8x64xf32>
    %246 = arith.subf %242, %245 : vector<8x64xf32>
    %247 = math.exp %246 : vector<8x64xf32>
    %cst_82 = arith.constant dense<0.000000e+00> : vector<64xf32>
    %248 = vector.multi_reduction <add>, %247, %cst_82 [0] : vector<8x64xf32> to vector<64xf32>
    %249 = vector.shape_cast %248 : vector<64xf32> to vector<1x64xf32>
    %250 = vector.broadcast %249 : vector<1x64xf32> to vector<8x64xf32>
    %251 = arith.divf %247, %250 : vector<8x64xf32>
    %cst_83 = arith.constant dense<0.000000e+00> : vector<8xf32>
    %252 = vector.multi_reduction <add>, %251, %cst_83 [1] : vector<8x64xf32> to vector<8xf32>
    %253 = vector.shape_cast %252 : vector<8xf32> to vector<8x1xf32>
    %cst_84 = arith.constant 9.99999997E-7 : f32
    %254 = vector.broadcast %cst_84 : f32 to vector<8x1xf32>
    %255 = arith.addf %254, %253 : vector<8x1xf32>
    %256 = vector.broadcast %255 : vector<8x1xf32> to vector<8x64xf32>
    %257 = arith.divf %251, %256 : vector<8x64xf32>
    %cst_85 = arith.constant dense<0.000000e+00> : vector<8x32xf32>
    %258 = tpu.matmul %257, %1, %cst_85 {dimension_numbers = #tpu.dot_dimension_numbers<[1], [1], [0], [0], [0, 0, 1, 0], [], []>} : vector<8x64xf32>, vector<32x64xf32>, vector<8x32xf32> -> vector<8x32xf32>
    %259 = arith.mulf %258, %258 : vector<8x32xf32>
    %cst_86 = arith.constant dense<0.000000e+00> : vector<8xf32>
    %260 = vector.multi_reduction <add>, %259, %cst_86 [1] : vector<8x32xf32> to vector<8xf32>
    %261 = vector.shape_cast %260 : vector<8xf32> to vector<8x1xf32>
    %262 = math.sqrt %261 : vector<8x1xf32>
    %cst_87 = arith.constant 9.99999997E-7 : f32
    %263 = vector.broadcast %cst_87 : f32 to vector<8x1xf32>
    %264 = arith.addf %263, %262 : vector<8x1xf32>
    %265 = vector.broadcast %264 : vector<8x1xf32> to vector<8x32xf32>
    %266 = arith.divf %258, %265 : vector<8x32xf32>
    %c9_i32 = arith.constant 9 : i32
    %cst_88 = arith.constant dense<0.000000e+00> : vector<8x64xf32>
    %267 = tpu.matmul %266, %1, %cst_88 {dimension_numbers = #tpu.dot_dimension_numbers<[1], [0], [0], [1], [0, 0, 1, 1], [], []>} : vector<8x32xf32>, vector<32x64xf32>, vector<8x64xf32> -> vector<8x64xf32>
    %cst_89 = arith.constant 2.000000e+01 : f32
    %268 = vector.broadcast %cst_89 : f32 to vector<8x64xf32>
    %269 = arith.mulf %268, %267 : vector<8x64xf32>
    %270 = vector.broadcast %3 : vector<8x1xf32> to vector<8x64xf32>
    %271 = arith.addf %269, %270 : vector<8x64xf32>
    %cst_90 = arith.constant dense<0xFF800000> : vector<64xf32>
    %272 = vector.multi_reduction <maximumf>, %271, %cst_90 [0] : vector<8x64xf32> to vector<64xf32>
    %273 = vector.shape_cast %272 : vector<64xf32> to vector<1x64xf32>
    %274 = vector.broadcast %273 : vector<1x64xf32> to vector<8x64xf32>
    %275 = arith.subf %271, %274 : vector<8x64xf32>
    %276 = math.exp %275 : vector<8x64xf32>
    %cst_91 = arith.constant dense<0.000000e+00> : vector<64xf32>
    %277 = vector.multi_reduction <add>, %276, %cst_91 [0] : vector<8x64xf32> to vector<64xf32>
    %278 = vector.shape_cast %277 : vector<64xf32> to vector<1x64xf32>
    %279 = vector.broadcast %278 : vector<1x64xf32> to vector<8x64xf32>
    %280 = arith.divf %276, %279 : vector<8x64xf32>
    %cst_92 = arith.constant dense<0.000000e+00> : vector<8xf32>
    %281 = vector.multi_reduction <add>, %280, %cst_92 [1] : vector<8x64xf32> to vector<8xf32>
    %282 = vector.shape_cast %281 : vector<8xf32> to vector<8x1xf32>
    %cst_93 = arith.constant 9.99999997E-7 : f32
    %283 = vector.broadcast %cst_93 : f32 to vector<8x1xf32>
    %284 = arith.addf %283, %282 : vector<8x1xf32>
    %285 = vector.broadcast %284 : vector<8x1xf32> to vector<8x64xf32>
    %286 = arith.divf %280, %285 : vector<8x64xf32>
    %cst_94 = arith.constant dense<0.000000e+00> : vector<8x32xf32>
    %287 = tpu.matmul %286, %1, %cst_94 {dimension_numbers = #tpu.dot_dimension_numbers<[1], [1], [0], [0], [0, 0, 1, 0], [], []>} : vector<8x64xf32>, vector<32x64xf32>, vector<8x32xf32> -> vector<8x32xf32>
    %288 = arith.mulf %287, %287 : vector<8x32xf32>
    %cst_95 = arith.constant dense<0.000000e+00> : vector<8xf32>
    %289 = vector.multi_reduction <add>, %288, %cst_95 [1] : vector<8x32xf32> to vector<8xf32>
    %290 = vector.shape_cast %289 : vector<8xf32> to vector<8x1xf32>
    %291 = math.sqrt %290 : vector<8x1xf32>
    %cst_96 = arith.constant 9.99999997E-7 : f32
    %292 = vector.broadcast %cst_96 : f32 to vector<8x1xf32>
    %293 = arith.addf %292, %291 : vector<8x1xf32>
    %294 = vector.broadcast %293 : vector<8x1xf32> to vector<8x32xf32>
    %295 = arith.divf %287, %294 : vector<8x32xf32>
    %c0_97 = arith.constant 0 : index
    %c0_98 = arith.constant 0 : index
    %c0_99 = arith.constant 0 : index
    %c0_100 = arith.constant 0 : index
    %296 = vector.load %arg5[%c0_97, %c0_98, %c0_99, %c0_100] : memref<1x1x8x32xf32, #tpu.memory_space<vmem>>, vector<1x1x8x32xf32>
    %297 = vector.shape_cast %296 : vector<1x1x8x32xf32> to vector<8x32xf32>
    %298 = vector.shape_cast %295 : vector<8x32xf32> to vector<1x1x8x32xf32>
    tpu.vector_store %arg5[%c0_97, %c0_98, %c0_99, %c0_100], %298 {strides = array<i32>} : memref<1x1x8x32xf32, #tpu.memory_space<vmem>>, vector<1x1x8x32xf32>,
    return
  }
  func.func @transform_0(%arg0: i32, %arg1: i32) -> (i32, i32, i32) {
    %c0_i32 = arith.constant 0 : i32
    %c0_i32_0 = arith.constant 0 : i32
    %c0_i32_1 = arith.constant 0 : i32
    return %arg0, %c0_i32, %c0_i32_0 : i32, i32, i32
  }
  func.func @transform_1(%arg0: i32, %arg1: i32) -> (i32, i32, i32) {
    %c0_i32 = arith.constant 0 : i32
    %c0_i32_0 = arith.constant 0 : i32
    %c0_i32_1 = arith.constant 0 : i32
    return %arg1, %c0_i32, %c0_i32_0 : i32, i32, i32
  }
  func.func @transform_2(%arg0: i32, %arg1: i32) -> (i32, i32, i32) {
    %c0_i32 = arith.constant 0 : i32
    %c0_i32_0 = arith.constant 0 : i32
    %c0_i32_1 = arith.constant 0 : i32
    return %arg1, %c0_i32, %c0_i32_0 : i32, i32, i32
  }
  func.func @transform_3(%arg0: i32, %arg1: i32) -> (i32, i32, i32, i32) {
    %c0_i32 = arith.constant 0 : i32
    %c0_i32_0 = arith.constant 0 : i32
    %c0_i32_1 = arith.constant 0 : i32
    return %arg0, %arg1, %c0_i32, %c0_i32_0 : i32, i32, i32, i32
  }
}

module attributes {stable_mosaic.version = 11 : i64} {
  func.func @_discrim_kernel(%arg0: i32, %arg1: i32, %arg2: memref<1x32x64xf32, #tpu.memory_space<vmem>>, %arg3: memref<1x1x16x32xf32, #tpu.memory_space<vmem>>, %arg4: memref<1x16x1xf32, #tpu.memory_space<vmem>>, %arg5: memref<1x1x2x64xf32, #tpu.memory_space<vmem>>) attributes {dimension_semantics = [#tpu.dimension_semantics<parallel>, #tpu.dimension_semantics<parallel>], iteration_bounds = array<i64: 1, 3>, scalar_prefetch = 0 : i64, scratch_operands = 0 : i64, tpu.core_type = #tpu.core_type<tc>, window_params = [{transform_indices = @transform_0, window_bounds = array<i64: 1, 32, 64>}, {transform_indices = @transform_1, window_bounds = array<i64: 1, 1, 16, 32>}, {transform_indices = @transform_2, window_bounds = array<i64: 1, 16, 1>}, {transform_indices = @transform_3, window_bounds = array<i64: 1, 1, 2, 64>}]} {
    %c0 = arith.constant 0 : index
    %c0_0 = arith.constant 0 : index
    %c0_1 = arith.constant 0 : index
    %0 = vector.load %arg2[%c0, %c0_0, %c0_1] : memref<1x32x64xf32, #tpu.memory_space<vmem>>, vector<1x32x64xf32>
    %1 = vector.shape_cast %0 : vector<1x32x64xf32> to vector<32x64xf32>
    %c0_2 = arith.constant 0 : index
    %c0_3 = arith.constant 0 : index
    %c0_4 = arith.constant 0 : index
    %c0_5 = arith.constant 0 : index
    %2 = vector.load %arg3[%c0_2, %c0_3, %c0_4, %c0_5] : memref<1x1x16x32xf32, #tpu.memory_space<vmem>>, vector<1x1x16x32xf32>
    %3 = vector.shape_cast %2 : vector<1x1x16x32xf32> to vector<16x32xf32>
    %c0_6 = arith.constant 0 : index
    %c0_7 = arith.constant 0 : index
    %c0_8 = arith.constant 0 : index
    %4 = vector.load %arg4[%c0_6, %c0_7, %c0_8] : memref<1x16x1xf32, #tpu.memory_space<vmem>>, vector<1x16x1xf32>
    %5 = vector.shape_cast %4 : vector<1x16x1xf32> to vector<16x1xf32>
    %cst = arith.constant dense<0.000000e+00> : vector<16x64xf32>
    %6 = tpu.matmul %3, %1, %cst {dimension_numbers = #tpu.dot_dimension_numbers<[1], [0], [0], [1], [0, 0, 1, 1], [], []>} : vector<16x32xf32>, vector<32x64xf32>, vector<16x64xf32> -> vector<16x64xf32>
    %7 = vector.broadcast %5 : vector<16x1xf32> to vector<16x64xf32>
    %8 = arith.addf %6, %7 : vector<16x64xf32>
    %cst_9 = arith.constant dense<0xFF800000> : vector<64xf32>
    %9 = vector.multi_reduction <maximumf>, %8, %cst_9 [0] : vector<16x64xf32> to vector<64xf32>
    %10 = vector.shape_cast %9 : vector<64xf32> to vector<1x64xf32>
    %11 = vector.broadcast %10 : vector<1x64xf32> to vector<16x64xf32>
    %12 = arith.subf %8, %11 : vector<16x64xf32>
    %13 = math.exp %12 : vector<16x64xf32>
    %cst_10 = arith.constant dense<0.000000e+00> : vector<64xf32>
    %14 = vector.multi_reduction <add>, %13, %cst_10 [0] : vector<16x64xf32> to vector<64xf32>
    %15 = vector.shape_cast %14 : vector<64xf32> to vector<1x64xf32>
    %16 = vector.broadcast %15 : vector<1x64xf32> to vector<16x64xf32>
    %17 = arith.divf %13, %16 : vector<16x64xf32>
    %18 = vector.extract_strided_slice %17 {offsets = [0, 0], sizes = [8, 64], strides = [1, 1]} : vector<16x64xf32> to vector<8x64xf32>
    %cst_11 = arith.constant dense<0.000000e+00> : vector<64xf32>
    %19 = vector.multi_reduction <add>, %18, %cst_11 [0] : vector<8x64xf32> to vector<64xf32>
    %20 = vector.shape_cast %19 : vector<64xf32> to vector<1x64xf32>
    %21 = vector.extract_strided_slice %17 {offsets = [8, 0], sizes = [8, 64], strides = [1, 1]} : vector<16x64xf32> to vector<8x64xf32>
    %cst_12 = arith.constant dense<0.000000e+00> : vector<64xf32>
    %22 = vector.multi_reduction <add>, %21, %cst_12 [0] : vector<8x64xf32> to vector<64xf32>
    %23 = vector.shape_cast %22 : vector<64xf32> to vector<1x64xf32>
    %24 = tpu.concatenate %23, %20 in 0 : vector<1x64xf32>, vector<1x64xf32> -> vector<2x64xf32>
    %c0_13 = arith.constant 0 : index
    %c0_14 = arith.constant 0 : index
    %c0_15 = arith.constant 0 : index
    %c0_16 = arith.constant 0 : index
    %25 = vector.load %arg5[%c0_13, %c0_14, %c0_15, %c0_16] : memref<1x1x2x64xf32, #tpu.memory_space<vmem>>, vector<1x1x2x64xf32>
    %26 = vector.shape_cast %25 : vector<1x1x2x64xf32> to vector<2x64xf32>
    %27 = vector.shape_cast %24 : vector<2x64xf32> to vector<1x1x2x64xf32>
    tpu.vector_store %arg5[%c0_13, %c0_14, %c0_15, %c0_16], %27 {strides = array<i32>} : memref<1x1x2x64xf32, #tpu.memory_space<vmem>>, vector<1x1x2x64xf32>,
    return
  }
  func.func @transform_0(%arg0: i32, %arg1: i32) -> (i32, i32, i32) {
    %c0_i32 = arith.constant 0 : i32
    %c0_i32_0 = arith.constant 0 : i32
    %c0_i32_1 = arith.constant 0 : i32
    return %arg0, %c0_i32, %c0_i32_0 : i32, i32, i32
  }
  func.func @transform_1(%arg0: i32, %arg1: i32) -> (i32, i32, i32, i32) {
    %c0_i32 = arith.constant 0 : i32
    %c0_i32_0 = arith.constant 0 : i32
    %c0_i32_1 = arith.constant 0 : i32
    return %arg0, %arg1, %c0_i32, %c0_i32_0 : i32, i32, i32, i32
  }
  func.func @transform_2(%arg0: i32, %arg1: i32) -> (i32, i32, i32) {
    %c0_i32 = arith.constant 0 : i32
    %c0_i32_0 = arith.constant 0 : i32
    %c0_i32_1 = arith.constant 0 : i32
    return %arg1, %c0_i32, %c0_i32_0 : i32, i32, i32
  }
  func.func @transform_3(%arg0: i32, %arg1: i32) -> (i32, i32, i32, i32) {
    %c0_i32 = arith.constant 0 : i32
    %c0_i32_0 = arith.constant 0 : i32
    %c0_i32_1 = arith.constant 0 : i32
    return %arg0, %arg1, %c0_i32, %c0_i32_0 : i32, i32, i32, i32
  }
}

module attributes {stable_mosaic.version = 11 : i64} {
  func.func @_gemm_kernel(%arg0: i32, %arg1: i32, %arg2: memref<2x32x288xbf16, #tpu.memory_space<vmem>>, %arg3: memref<288x128xbf16, #tpu.memory_space<vmem>>, %arg4: memref<32x1xf32, #tpu.memory_space<vmem>>, %arg5: memref<32x128xf32, #tpu.memory_space<vmem>>) attributes {dimension_semantics = [#tpu.dimension_semantics<parallel>, #tpu.dimension_semantics<arbitrary>], iteration_bounds = array<i64: 1, 2>, scalar_prefetch = 0 : i64, scratch_operands = 0 : i64, tpu.core_type = #tpu.core_type<tc>, window_params = [{pipeline_mode = #tpu.pipeline_mode<synchronous>, transform_indices = @transform_0, window_bounds = array<i64: 2, 32, 288>}, {transform_indices = @transform_1, window_bounds = array<i64: 288, 128>}, {pipeline_mode = #tpu.pipeline_mode<synchronous>, transform_indices = @transform_2, window_bounds = array<i64: 32, 1>}, {transform_indices = @transform_3, window_bounds = array<i64: 32, 128>}]} {
    %c0_i32 = arith.constant 0 : i32
    %0 = arith.cmpi eq, %arg1, %c0_i32 : i32
    %1 = arith.extui %0 : i1 to i32
    %c0_i32_0 = arith.constant 0 : i32
    %2 = arith.cmpi ne, %1, %c0_i32_0 : i32
    scf.if %2 {
      %cst_9 = arith.constant 0.000000e+00 : f32
      %14 = vector.broadcast %cst_9 : f32 to vector<32x128xf32>
      %c0_10 = arith.constant 0 : index
      %c0_11 = arith.constant 0 : index
      %15 = vector.load %arg5[%c0_10, %c0_11] : memref<32x128xf32, #tpu.memory_space<vmem>>, vector<32x128xf32>
      tpu.vector_store %arg5[%c0_10, %c0_11], %14 {strides = array<i32>} : memref<32x128xf32, #tpu.memory_space<vmem>>, vector<32x128xf32>,
    } else {
    }
    %c0 = arith.constant 0 : index
    %c0_1 = arith.constant 0 : index
    %3 = vector.load %arg3[%c0, %c0_1] : memref<288x128xbf16, #tpu.memory_space<vmem>>, vector<288x128xbf16>
    %c0_2 = arith.constant 0 : index
    %c0_3 = arith.constant 0 : index
    %4 = vector.load %arg5[%c0_2, %c0_3] : memref<32x128xf32, #tpu.memory_space<vmem>>, vector<32x128xf32>
    %5 = arith.index_cast %arg1 : i32 to index
    %c0_4 = arith.constant 0 : index
    %c0_5 = arith.constant 0 : index
    %6 = vector.load %arg2[%5, %c0_4, %c0_5] : memref<2x32x288xbf16, #tpu.memory_space<vmem>>, vector<1x32x288xbf16>
    %7 = vector.shape_cast %6 : vector<1x32x288xbf16> to vector<32x288xbf16>
    %cst = arith.constant dense<0.000000e+00> : vector<32x128xf32>
    %8 = tpu.matmul %7, %3, %cst {dimension_numbers = #tpu.dot_dimension_numbers<[1], [0], [0], [1], [0, 0, 1, 1], [], []>} : vector<32x288xbf16>, vector<288x128xbf16>, vector<32x128xf32> -> vector<32x128xf32>
    %9 = arith.addf %4, %8 : vector<32x128xf32>
    %c0_6 = arith.constant 0 : index
    %c0_7 = arith.constant 0 : index
    %10 = vector.load %arg5[%c0_6, %c0_7] : memref<32x128xf32, #tpu.memory_space<vmem>>, vector<32x128xf32>
    tpu.vector_store %arg5[%c0_6, %c0_7], %9 {strides = array<i32>} : memref<32x128xf32, #tpu.memory_space<vmem>>, vector<32x128xf32>,
    %c1_i32 = arith.constant 1 : i32
    %11 = arith.cmpi eq, %arg1, %c1_i32 : i32
    %12 = arith.extui %11 : i1 to i32
    %c0_i32_8 = arith.constant 0 : i32
    %13 = arith.cmpi ne, %12, %c0_i32_8 : i32
    scf.if %13 {
      %c0_9 = arith.constant 0 : index
      %c0_10 = arith.constant 0 : index
      %14 = vector.load %arg5[%c0_9, %c0_10] : memref<32x128xf32, #tpu.memory_space<vmem>>, vector<32x128xf32>
      %c0_11 = arith.constant 0 : index
      %c0_12 = arith.constant 0 : index
      %15 = vector.load %arg4[%c0_11, %c0_12] : memref<32x1xf32, #tpu.memory_space<vmem>>, vector<32x1xf32>
      %16 = vector.broadcast %15 : vector<32x1xf32> to vector<32x128xf32>
      %17 = arith.addf %14, %16 : vector<32x128xf32>
      %cst_13 = arith.constant 0.000000e+00 : f32
      %18 = vector.broadcast %cst_13 : f32 to vector<32x128xf32>
      %19 = arith.maximumf %17, %18 : vector<32x128xf32>
      %c0_14 = arith.constant 0 : index
      %c0_15 = arith.constant 0 : index
      %20 = vector.load %arg5[%c0_14, %c0_15] : memref<32x128xf32, #tpu.memory_space<vmem>>, vector<32x128xf32>
      tpu.vector_store %arg5[%c0_14, %c0_15], %19 {strides = array<i32>} : memref<32x128xf32, #tpu.memory_space<vmem>>, vector<32x128xf32>,
    } else {
    }
    return
  }
  func.func @transform_0(%arg0: i32, %arg1: i32) -> (i32, i32, i32) {
    %c0_i32 = arith.constant 0 : i32
    %c0_i32_0 = arith.constant 0 : i32
    %c0_i32_1 = arith.constant 0 : i32
    %c0_i32_2 = arith.constant 0 : i32
    return %c0_i32, %c0_i32_0, %c0_i32_1 : i32, i32, i32
  }
  func.func @transform_1(%arg0: i32, %arg1: i32) -> (i32, i32) {
    %c0_i32 = arith.constant 0 : i32
    return %arg1, %arg0 : i32, i32
  }
  func.func @transform_2(%arg0: i32, %arg1: i32) -> (i32, i32) {
    %c0_i32 = arith.constant 0 : i32
    %c0_i32_0 = arith.constant 0 : i32
    %c0_i32_1 = arith.constant 0 : i32
    return %c0_i32, %c0_i32_0 : i32, i32
  }
  func.func @transform_3(%arg0: i32, %arg1: i32) -> (i32, i32) {
    %c0_i32 = arith.constant 0 : i32
    %c0_i32_0 = arith.constant 0 : i32
    return %c0_i32, %arg0 : i32, i32
  }
}

module attributes {stable_mosaic.version = 11 : i64} {
  func.func @_gemm_kernel(%arg0: i32, %arg1: i32, %arg2: memref<1x32x312xbf16, #tpu.memory_space<vmem>>, %arg3: memref<312x128xbf16, #tpu.memory_space<vmem>>, %arg4: memref<32x1xf32, #tpu.memory_space<vmem>>, %arg5: memref<32x128xf32, #tpu.memory_space<vmem>>) attributes {dimension_semantics = [#tpu.dimension_semantics<parallel>, #tpu.dimension_semantics<arbitrary>], iteration_bounds = array<i64: 1, 1>, scalar_prefetch = 0 : i64, scratch_operands = 0 : i64, tpu.core_type = #tpu.core_type<tc>, window_params = [{pipeline_mode = #tpu.pipeline_mode<synchronous>, transform_indices = @transform_0, window_bounds = array<i64: 1, 32, 312>}, {transform_indices = @transform_1, window_bounds = array<i64: 312, 128>}, {pipeline_mode = #tpu.pipeline_mode<synchronous>, transform_indices = @transform_2, window_bounds = array<i64: 32, 1>}, {transform_indices = @transform_3, window_bounds = array<i64: 32, 128>}]} {
    %c0_i32 = arith.constant 0 : i32
    %0 = arith.cmpi eq, %arg1, %c0_i32 : i32
    %1 = arith.extui %0 : i1 to i32
    %c0_i32_0 = arith.constant 0 : i32
    %2 = arith.cmpi ne, %1, %c0_i32_0 : i32
    scf.if %2 {
      %cst_10 = arith.constant 0.000000e+00 : f32
      %14 = vector.broadcast %cst_10 : f32 to vector<32x128xf32>
      %c0_11 = arith.constant 0 : index
      %c0_12 = arith.constant 0 : index
      %15 = vector.load %arg5[%c0_11, %c0_12] : memref<32x128xf32, #tpu.memory_space<vmem>>, vector<32x128xf32>
      tpu.vector_store %arg5[%c0_11, %c0_12], %14 {strides = array<i32>} : memref<32x128xf32, #tpu.memory_space<vmem>>, vector<32x128xf32>,
    } else {
    }
    %c0 = arith.constant 0 : index
    %c0_1 = arith.constant 0 : index
    %3 = vector.load %arg3[%c0, %c0_1] : memref<312x128xbf16, #tpu.memory_space<vmem>>, vector<312x128xbf16>
    %c0_2 = arith.constant 0 : index
    %c0_3 = arith.constant 0 : index
    %4 = vector.load %arg5[%c0_2, %c0_3] : memref<32x128xf32, #tpu.memory_space<vmem>>, vector<32x128xf32>
    %5 = arith.index_cast %arg1 : i32 to index
    %c0_4 = arith.constant 0 : index
    %c0_5 = arith.constant 0 : index
    %6 = vector.load %arg2[%5, %c0_4, %c0_5] : memref<1x32x312xbf16, #tpu.memory_space<vmem>>, vector<1x32x312xbf16>
    %7 = vector.shape_cast %6 : vector<1x32x312xbf16> to vector<32x312xbf16>
    %cst = arith.constant dense<0.000000e+00> : vector<32x128xf32>
    %8 = tpu.matmul %7, %3, %cst {dimension_numbers = #tpu.dot_dimension_numbers<[1], [0], [0], [1], [0, 0, 1, 1], [], []>} : vector<32x312xbf16>, vector<312x128xbf16>, vector<32x128xf32> -> vector<32x128xf32>
    %9 = arith.addf %4, %8 : vector<32x128xf32>
    %c0_6 = arith.constant 0 : index
    %c0_7 = arith.constant 0 : index
    %10 = vector.load %arg5[%c0_6, %c0_7] : memref<32x128xf32, #tpu.memory_space<vmem>>, vector<32x128xf32>
    tpu.vector_store %arg5[%c0_6, %c0_7], %9 {strides = array<i32>} : memref<32x128xf32, #tpu.memory_space<vmem>>, vector<32x128xf32>,
    %c0_i32_8 = arith.constant 0 : i32
    %11 = arith.cmpi eq, %arg1, %c0_i32_8 : i32
    %12 = arith.extui %11 : i1 to i32
    %c0_i32_9 = arith.constant 0 : i32
    %13 = arith.cmpi ne, %12, %c0_i32_9 : i32
    scf.if %13 {
      %c0_10 = arith.constant 0 : index
      %c0_11 = arith.constant 0 : index
      %14 = vector.load %arg5[%c0_10, %c0_11] : memref<32x128xf32, #tpu.memory_space<vmem>>, vector<32x128xf32>
      %c0_12 = arith.constant 0 : index
      %c0_13 = arith.constant 0 : index
      %15 = vector.load %arg4[%c0_12, %c0_13] : memref<32x1xf32, #tpu.memory_space<vmem>>, vector<32x1xf32>
      %16 = vector.broadcast %15 : vector<32x1xf32> to vector<32x128xf32>
      %17 = arith.addf %14, %16 : vector<32x128xf32>
      %cst_14 = arith.constant 0.000000e+00 : f32
      %18 = vector.broadcast %cst_14 : f32 to vector<32x128xf32>
      %19 = arith.maximumf %17, %18 : vector<32x128xf32>
      %c0_15 = arith.constant 0 : index
      %c0_16 = arith.constant 0 : index
      %20 = vector.load %arg5[%c0_15, %c0_16] : memref<32x128xf32, #tpu.memory_space<vmem>>, vector<32x128xf32>
      tpu.vector_store %arg5[%c0_15, %c0_16], %19 {strides = array<i32>} : memref<32x128xf32, #tpu.memory_space<vmem>>, vector<32x128xf32>,
    } else {
    }
    return
  }
  func.func @transform_0(%arg0: i32, %arg1: i32) -> (i32, i32, i32) {
    %c0_i32 = arith.constant 0 : i32
    %c0_i32_0 = arith.constant 0 : i32
    %c0_i32_1 = arith.constant 0 : i32
    %c0_i32_2 = arith.constant 0 : i32
    return %c0_i32, %c0_i32_0, %c0_i32_1 : i32, i32, i32
  }
  func.func @transform_1(%arg0: i32, %arg1: i32) -> (i32, i32) {
    %c0_i32 = arith.constant 0 : i32
    return %arg1, %arg0 : i32, i32
  }
  func.func @transform_2(%arg0: i32, %arg1: i32) -> (i32, i32) {
    %c0_i32 = arith.constant 0 : i32
    %c0_i32_0 = arith.constant 0 : i32
    %c0_i32_1 = arith.constant 0 : i32
    return %c0_i32, %c0_i32_0 : i32, i32
  }
  func.func @transform_3(%arg0: i32, %arg1: i32) -> (i32, i32) {
    %c0_i32 = arith.constant 0 : i32
    %c0_i32_0 = arith.constant 0 : i32
    return %c0_i32, %arg0 : i32, i32
  }
}

module attributes {stable_mosaic.version = 11 : i64} {
  func.func @_gemm_kernel(%arg0: i32, %arg1: i32, %arg2: memref<1x32x312xbf16, #tpu.memory_space<vmem>>, %arg3: memref<312x128xbf16, #tpu.memory_space<vmem>>, %arg4: memref<32x1xf32, #tpu.memory_space<vmem>>, %arg5: memref<32x128xf32, #tpu.memory_space<vmem>>) attributes {dimension_semantics = [#tpu.dimension_semantics<parallel>, #tpu.dimension_semantics<arbitrary>], iteration_bounds = array<i64: 1, 1>, scalar_prefetch = 0 : i64, scratch_operands = 0 : i64, tpu.core_type = #tpu.core_type<tc>, window_params = [{pipeline_mode = #tpu.pipeline_mode<synchronous>, transform_indices = @transform_0, window_bounds = array<i64: 1, 32, 312>}, {transform_indices = @transform_1, window_bounds = array<i64: 312, 128>}, {pipeline_mode = #tpu.pipeline_mode<synchronous>, transform_indices = @transform_2, window_bounds = array<i64: 32, 1>}, {transform_indices = @transform_3, window_bounds = array<i64: 32, 128>}]} {
    %c0_i32 = arith.constant 0 : i32
    %0 = arith.cmpi eq, %arg1, %c0_i32 : i32
    %1 = arith.extui %0 : i1 to i32
    %c0_i32_0 = arith.constant 0 : i32
    %2 = arith.cmpi ne, %1, %c0_i32_0 : i32
    scf.if %2 {
      %cst_11 = arith.constant 0.000000e+00 : f32
      %16 = vector.broadcast %cst_11 : f32 to vector<32x128xf32>
      %c0_12 = arith.constant 0 : index
      %c0_13 = arith.constant 0 : index
      %17 = vector.load %arg5[%c0_12, %c0_13] : memref<32x128xf32, #tpu.memory_space<vmem>>, vector<32x128xf32>
      tpu.vector_store %arg5[%c0_12, %c0_13], %16 {strides = array<i32>} : memref<32x128xf32, #tpu.memory_space<vmem>>, vector<32x128xf32>,
    } else {
    }
    %c0 = arith.constant 0 : index
    %c0_1 = arith.constant 0 : index
    %3 = vector.load %arg3[%c0, %c0_1] : memref<312x128xbf16, #tpu.memory_space<vmem>>, vector<312x128xbf16>
    %cst = arith.constant 0.000000e+00 : bf16
    %4 = vector.broadcast %cst : bf16 to vector<312x128xbf16>
    %5 = arith.maximumf %3, %4 : vector<312x128xbf16>
    %c0_2 = arith.constant 0 : index
    %c0_3 = arith.constant 0 : index
    %6 = vector.load %arg5[%c0_2, %c0_3] : memref<32x128xf32, #tpu.memory_space<vmem>>, vector<32x128xf32>
    %7 = arith.index_cast %arg1 : i32 to index
    %c0_4 = arith.constant 0 : index
    %c0_5 = arith.constant 0 : index
    %8 = vector.load %arg2[%7, %c0_4, %c0_5] : memref<1x32x312xbf16, #tpu.memory_space<vmem>>, vector<1x32x312xbf16>
    %9 = vector.shape_cast %8 : vector<1x32x312xbf16> to vector<32x312xbf16>
    %cst_6 = arith.constant dense<0.000000e+00> : vector<32x128xf32>
    %10 = tpu.matmul %9, %5, %cst_6 {dimension_numbers = #tpu.dot_dimension_numbers<[1], [0], [0], [1], [0, 0, 1, 1], [], []>} : vector<32x312xbf16>, vector<312x128xbf16>, vector<32x128xf32> -> vector<32x128xf32>
    %11 = arith.addf %6, %10 : vector<32x128xf32>
    %c0_7 = arith.constant 0 : index
    %c0_8 = arith.constant 0 : index
    %12 = vector.load %arg5[%c0_7, %c0_8] : memref<32x128xf32, #tpu.memory_space<vmem>>, vector<32x128xf32>
    tpu.vector_store %arg5[%c0_7, %c0_8], %11 {strides = array<i32>} : memref<32x128xf32, #tpu.memory_space<vmem>>, vector<32x128xf32>,
    %c0_i32_9 = arith.constant 0 : i32
    %13 = arith.cmpi eq, %arg1, %c0_i32_9 : i32
    %14 = arith.extui %13 : i1 to i32
    %c0_i32_10 = arith.constant 0 : i32
    %15 = arith.cmpi ne, %14, %c0_i32_10 : i32
    scf.if %15 {
      %c0_11 = arith.constant 0 : index
      %c0_12 = arith.constant 0 : index
      %16 = vector.load %arg5[%c0_11, %c0_12] : memref<32x128xf32, #tpu.memory_space<vmem>>, vector<32x128xf32>
      %c0_13 = arith.constant 0 : index
      %c0_14 = arith.constant 0 : index
      %17 = vector.load %arg4[%c0_13, %c0_14] : memref<32x1xf32, #tpu.memory_space<vmem>>, vector<32x1xf32>
      %18 = vector.broadcast %17 : vector<32x1xf32> to vector<32x128xf32>
      %19 = arith.addf %16, %18 : vector<32x128xf32>
      %cst_15 = arith.constant 0.000000e+00 : f32
      %20 = vector.broadcast %cst_15 : f32 to vector<32x128xf32>
      %21 = arith.maximumf %19, %20 : vector<32x128xf32>
      %c0_16 = arith.constant 0 : index
      %c0_17 = arith.constant 0 : index
      %22 = vector.load %arg5[%c0_16, %c0_17] : memref<32x128xf32, #tpu.memory_space<vmem>>, vector<32x128xf32>
      tpu.vector_store %arg5[%c0_16, %c0_17], %21 {strides = array<i32>} : memref<32x128xf32, #tpu.memory_space<vmem>>, vector<32x128xf32>,
    } else {
    }
    return
  }
  func.func @transform_0(%arg0: i32, %arg1: i32) -> (i32, i32, i32) {
    %c0_i32 = arith.constant 0 : i32
    %c0_i32_0 = arith.constant 0 : i32
    %c0_i32_1 = arith.constant 0 : i32
    %c0_i32_2 = arith.constant 0 : i32
    return %c0_i32, %c0_i32_0, %c0_i32_1 : i32, i32, i32
  }
  func.func @transform_1(%arg0: i32, %arg1: i32) -> (i32, i32) {
    %c0_i32 = arith.constant 0 : i32
    return %arg1, %arg0 : i32, i32
  }
  func.func @transform_2(%arg0: i32, %arg1: i32) -> (i32, i32) {
    %c0_i32 = arith.constant 0 : i32
    %c0_i32_0 = arith.constant 0 : i32
    %c0_i32_1 = arith.constant 0 : i32
    return %c0_i32, %c0_i32_0 : i32, i32
  }
  func.func @transform_3(%arg0: i32, %arg1: i32) -> (i32, i32) {
    %c0_i32 = arith.constant 0 : i32
    %c0_i32_0 = arith.constant 0 : i32
    return %c0_i32, %arg0 : i32, i32
  }
}

module attributes {stable_mosaic.version = 11 : i64} {
  func.func @_gemm_kernel(%arg0: i32, %arg1: i32, %arg2: memref<1x32x288xbf16, #tpu.memory_space<vmem>>, %arg3: memref<288x128xbf16, #tpu.memory_space<vmem>>, %arg4: memref<32x1xf32, #tpu.memory_space<vmem>>, %arg5: memref<32x128xf32, #tpu.memory_space<vmem>>) attributes {dimension_semantics = [#tpu.dimension_semantics<parallel>, #tpu.dimension_semantics<arbitrary>], iteration_bounds = array<i64: 1, 1>, scalar_prefetch = 0 : i64, scratch_operands = 0 : i64, tpu.core_type = #tpu.core_type<tc>, window_params = [{pipeline_mode = #tpu.pipeline_mode<synchronous>, transform_indices = @transform_0, window_bounds = array<i64: 1, 32, 288>}, {transform_indices = @transform_1, window_bounds = array<i64: 288, 128>}, {pipeline_mode = #tpu.pipeline_mode<synchronous>, transform_indices = @transform_2, window_bounds = array<i64: 32, 1>}, {transform_indices = @transform_3, window_bounds = array<i64: 32, 128>}]} {
    %c0_i32 = arith.constant 0 : i32
    %0 = arith.cmpi eq, %arg1, %c0_i32 : i32
    %1 = arith.extui %0 : i1 to i32
    %c0_i32_0 = arith.constant 0 : i32
    %2 = arith.cmpi ne, %1, %c0_i32_0 : i32
    scf.if %2 {
      %cst_10 = arith.constant 0.000000e+00 : f32
      %14 = vector.broadcast %cst_10 : f32 to vector<32x128xf32>
      %c0_11 = arith.constant 0 : index
      %c0_12 = arith.constant 0 : index
      %15 = vector.load %arg5[%c0_11, %c0_12] : memref<32x128xf32, #tpu.memory_space<vmem>>, vector<32x128xf32>
      tpu.vector_store %arg5[%c0_11, %c0_12], %14 {strides = array<i32>} : memref<32x128xf32, #tpu.memory_space<vmem>>, vector<32x128xf32>,
    } else {
    }
    %c0 = arith.constant 0 : index
    %c0_1 = arith.constant 0 : index
    %3 = vector.load %arg3[%c0, %c0_1] : memref<288x128xbf16, #tpu.memory_space<vmem>>, vector<288x128xbf16>
    %c0_2 = arith.constant 0 : index
    %c0_3 = arith.constant 0 : index
    %4 = vector.load %arg5[%c0_2, %c0_3] : memref<32x128xf32, #tpu.memory_space<vmem>>, vector<32x128xf32>
    %5 = arith.index_cast %arg1 : i32 to index
    %c0_4 = arith.constant 0 : index
    %c0_5 = arith.constant 0 : index
    %6 = vector.load %arg2[%5, %c0_4, %c0_5] : memref<1x32x288xbf16, #tpu.memory_space<vmem>>, vector<1x32x288xbf16>
    %7 = vector.shape_cast %6 : vector<1x32x288xbf16> to vector<32x288xbf16>
    %cst = arith.constant dense<0.000000e+00> : vector<32x128xf32>
    %8 = tpu.matmul %7, %3, %cst {dimension_numbers = #tpu.dot_dimension_numbers<[1], [0], [0], [1], [0, 0, 1, 1], [], []>} : vector<32x288xbf16>, vector<288x128xbf16>, vector<32x128xf32> -> vector<32x128xf32>
    %9 = arith.addf %4, %8 : vector<32x128xf32>
    %c0_6 = arith.constant 0 : index
    %c0_7 = arith.constant 0 : index
    %10 = vector.load %arg5[%c0_6, %c0_7] : memref<32x128xf32, #tpu.memory_space<vmem>>, vector<32x128xf32>
    tpu.vector_store %arg5[%c0_6, %c0_7], %9 {strides = array<i32>} : memref<32x128xf32, #tpu.memory_space<vmem>>, vector<32x128xf32>,
    %c0_i32_8 = arith.constant 0 : i32
    %11 = arith.cmpi eq, %arg1, %c0_i32_8 : i32
    %12 = arith.extui %11 : i1 to i32
    %c0_i32_9 = arith.constant 0 : i32
    %13 = arith.cmpi ne, %12, %c0_i32_9 : i32
    scf.if %13 {
      %c0_10 = arith.constant 0 : index
      %c0_11 = arith.constant 0 : index
      %14 = vector.load %arg5[%c0_10, %c0_11] : memref<32x128xf32, #tpu.memory_space<vmem>>, vector<32x128xf32>
      %c0_12 = arith.constant 0 : index
      %c0_13 = arith.constant 0 : index
      %15 = vector.load %arg4[%c0_12, %c0_13] : memref<32x1xf32, #tpu.memory_space<vmem>>, vector<32x1xf32>
      %16 = vector.broadcast %15 : vector<32x1xf32> to vector<32x128xf32>
      %17 = arith.addf %14, %16 : vector<32x128xf32>
      %c0_14 = arith.constant 0 : index
      %c0_15 = arith.constant 0 : index
      %18 = vector.load %arg5[%c0_14, %c0_15] : memref<32x128xf32, #tpu.memory_space<vmem>>, vector<32x128xf32>
      tpu.vector_store %arg5[%c0_14, %c0_15], %17 {strides = array<i32>} : memref<32x128xf32, #tpu.memory_space<vmem>>, vector<32x128xf32>,
    } else {
    }
    return
  }
  func.func @transform_0(%arg0: i32, %arg1: i32) -> (i32, i32, i32) {
    %c0_i32 = arith.constant 0 : i32
    %c0_i32_0 = arith.constant 0 : i32
    %c0_i32_1 = arith.constant 0 : i32
    %c0_i32_2 = arith.constant 0 : i32
    return %c0_i32, %c0_i32_0, %c0_i32_1 : i32, i32, i32
  }
  func.func @transform_1(%arg0: i32, %arg1: i32) -> (i32, i32) {
    %c0_i32 = arith.constant 0 : i32
    return %arg1, %arg0 : i32, i32
  }
  func.func @transform_2(%arg0: i32, %arg1: i32) -> (i32, i32) {
    %c0_i32 = arith.constant 0 : i32
    %c0_i32_0 = arith.constant 0 : i32
    %c0_i32_1 = arith.constant 0 : i32
    return %c0_i32, %c0_i32_0 : i32, i32
  }
  func.func @transform_3(%arg0: i32, %arg1: i32) -> (i32, i32) {
    %c0_i32 = arith.constant 0 : i32
    %c0_i32_0 = arith.constant 0 : i32
    return %c0_i32, %arg0 : i32, i32
  }
}

module attributes {stable_mosaic.version = 11 : i64} {
  func.func @_gemm_kernel(%arg0: i32, %arg1: i32, %arg2: memref<1x32x288xbf16, #tpu.memory_space<vmem>>, %arg3: memref<288x128xbf16, #tpu.memory_space<vmem>>, %arg4: memref<32x1xf32, #tpu.memory_space<vmem>>, %arg5: memref<32x128xf32, #tpu.memory_space<vmem>>) attributes {dimension_semantics = [#tpu.dimension_semantics<parallel>, #tpu.dimension_semantics<arbitrary>], iteration_bounds = array<i64: 1, 1>, scalar_prefetch = 0 : i64, scratch_operands = 0 : i64, tpu.core_type = #tpu.core_type<tc>, window_params = [{pipeline_mode = #tpu.pipeline_mode<synchronous>, transform_indices = @transform_0, window_bounds = array<i64: 1, 32, 288>}, {transform_indices = @transform_1, window_bounds = array<i64: 288, 128>}, {pipeline_mode = #tpu.pipeline_mode<synchronous>, transform_indices = @transform_2, window_bounds = array<i64: 32, 1>}, {transform_indices = @transform_3, window_bounds = array<i64: 32, 128>}]} {
    %c0_i32 = arith.constant 0 : i32
    %0 = arith.cmpi eq, %arg1, %c0_i32 : i32
    %1 = arith.extui %0 : i1 to i32
    %c0_i32_0 = arith.constant 0 : i32
    %2 = arith.cmpi ne, %1, %c0_i32_0 : i32
    scf.if %2 {
      %cst_11 = arith.constant 0.000000e+00 : f32
      %16 = vector.broadcast %cst_11 : f32 to vector<32x128xf32>
      %c0_12 = arith.constant 0 : index
      %c0_13 = arith.constant 0 : index
      %17 = vector.load %arg5[%c0_12, %c0_13] : memref<32x128xf32, #tpu.memory_space<vmem>>, vector<32x128xf32>
      tpu.vector_store %arg5[%c0_12, %c0_13], %16 {strides = array<i32>} : memref<32x128xf32, #tpu.memory_space<vmem>>, vector<32x128xf32>,
    } else {
    }
    %c0 = arith.constant 0 : index
    %c0_1 = arith.constant 0 : index
    %3 = vector.load %arg3[%c0, %c0_1] : memref<288x128xbf16, #tpu.memory_space<vmem>>, vector<288x128xbf16>
    %cst = arith.constant 0.000000e+00 : bf16
    %4 = vector.broadcast %cst : bf16 to vector<288x128xbf16>
    %5 = arith.maximumf %3, %4 : vector<288x128xbf16>
    %c0_2 = arith.constant 0 : index
    %c0_3 = arith.constant 0 : index
    %6 = vector.load %arg5[%c0_2, %c0_3] : memref<32x128xf32, #tpu.memory_space<vmem>>, vector<32x128xf32>
    %7 = arith.index_cast %arg1 : i32 to index
    %c0_4 = arith.constant 0 : index
    %c0_5 = arith.constant 0 : index
    %8 = vector.load %arg2[%7, %c0_4, %c0_5] : memref<1x32x288xbf16, #tpu.memory_space<vmem>>, vector<1x32x288xbf16>
    %9 = vector.shape_cast %8 : vector<1x32x288xbf16> to vector<32x288xbf16>
    %cst_6 = arith.constant dense<0.000000e+00> : vector<32x128xf32>
    %10 = tpu.matmul %9, %5, %cst_6 {dimension_numbers = #tpu.dot_dimension_numbers<[1], [0], [0], [1], [0, 0, 1, 1], [], []>} : vector<32x288xbf16>, vector<288x128xbf16>, vector<32x128xf32> -> vector<32x128xf32>
    %11 = arith.addf %6, %10 : vector<32x128xf32>
    %c0_7 = arith.constant 0 : index
    %c0_8 = arith.constant 0 : index
    %12 = vector.load %arg5[%c0_7, %c0_8] : memref<32x128xf32, #tpu.memory_space<vmem>>, vector<32x128xf32>
    tpu.vector_store %arg5[%c0_7, %c0_8], %11 {strides = array<i32>} : memref<32x128xf32, #tpu.memory_space<vmem>>, vector<32x128xf32>,
    %c0_i32_9 = arith.constant 0 : i32
    %13 = arith.cmpi eq, %arg1, %c0_i32_9 : i32
    %14 = arith.extui %13 : i1 to i32
    %c0_i32_10 = arith.constant 0 : i32
    %15 = arith.cmpi ne, %14, %c0_i32_10 : i32
    scf.if %15 {
      %c0_11 = arith.constant 0 : index
      %c0_12 = arith.constant 0 : index
      %16 = vector.load %arg5[%c0_11, %c0_12] : memref<32x128xf32, #tpu.memory_space<vmem>>, vector<32x128xf32>
      %c0_13 = arith.constant 0 : index
      %c0_14 = arith.constant 0 : index
      %17 = vector.load %arg4[%c0_13, %c0_14] : memref<32x1xf32, #tpu.memory_space<vmem>>, vector<32x1xf32>
      %18 = vector.broadcast %17 : vector<32x1xf32> to vector<32x128xf32>
      %19 = arith.addf %16, %18 : vector<32x128xf32>
      %cst_15 = arith.constant 0.000000e+00 : f32
      %20 = vector.broadcast %cst_15 : f32 to vector<32x128xf32>
      %21 = arith.maximumf %19, %20 : vector<32x128xf32>
      %c0_16 = arith.constant 0 : index
      %c0_17 = arith.constant 0 : index
      %22 = vector.load %arg5[%c0_16, %c0_17] : memref<32x128xf32, #tpu.memory_space<vmem>>, vector<32x128xf32>
      tpu.vector_store %arg5[%c0_16, %c0_17], %21 {strides = array<i32>} : memref<32x128xf32, #tpu.memory_space<vmem>>, vector<32x128xf32>,
    } else {
    }
    return
  }
  func.func @transform_0(%arg0: i32, %arg1: i32) -> (i32, i32, i32) {
    %c0_i32 = arith.constant 0 : i32
    %c0_i32_0 = arith.constant 0 : i32
    %c0_i32_1 = arith.constant 0 : i32
    %c0_i32_2 = arith.constant 0 : i32
    return %c0_i32, %c0_i32_0, %c0_i32_1 : i32, i32, i32
  }
  func.func @transform_1(%arg0: i32, %arg1: i32) -> (i32, i32) {
    %c0_i32 = arith.constant 0 : i32
    return %arg1, %arg0 : i32, i32
  }
  func.func @transform_2(%arg0: i32, %arg1: i32) -> (i32, i32) {
    %c0_i32 = arith.constant 0 : i32
    %c0_i32_0 = arith.constant 0 : i32
    %c0_i32_1 = arith.constant 0 : i32
    return %c0_i32, %c0_i32_0 : i32, i32
  }
  func.func @transform_3(%arg0: i32, %arg1: i32) -> (i32, i32) {
    %c0_i32 = arith.constant 0 : i32
    %c0_i32_0 = arith.constant 0 : i32
    return %c0_i32, %arg0 : i32, i32
  }
}

module attributes {stable_mosaic.version = 11 : i64} {
  func.func @_gemm_kernel(%arg0: i32, %arg1: i32, %arg2: memref<2x32x288xbf16, #tpu.memory_space<vmem>>, %arg3: memref<288x128xbf16, #tpu.memory_space<vmem>>, %arg4: memref<32x1xf32, #tpu.memory_space<vmem>>, %arg5: memref<32x128xf32, #tpu.memory_space<vmem>>) attributes {dimension_semantics = [#tpu.dimension_semantics<parallel>, #tpu.dimension_semantics<arbitrary>], iteration_bounds = array<i64: 2, 2>, scalar_prefetch = 0 : i64, scratch_operands = 0 : i64, tpu.core_type = #tpu.core_type<tc>, window_params = [{pipeline_mode = #tpu.pipeline_mode<synchronous>, transform_indices = @transform_0, window_bounds = array<i64: 2, 32, 288>}, {transform_indices = @transform_1, window_bounds = array<i64: 288, 128>}, {pipeline_mode = #tpu.pipeline_mode<synchronous>, transform_indices = @transform_2, window_bounds = array<i64: 32, 1>}, {transform_indices = @transform_3, window_bounds = array<i64: 32, 128>}]} {
    %c0_i32 = arith.constant 0 : i32
    %0 = arith.cmpi eq, %arg1, %c0_i32 : i32
    %1 = arith.extui %0 : i1 to i32
    %c0_i32_0 = arith.constant 0 : i32
    %2 = arith.cmpi ne, %1, %c0_i32_0 : i32
    scf.if %2 {
      %cst_9 = arith.constant 0.000000e+00 : f32
      %14 = vector.broadcast %cst_9 : f32 to vector<32x128xf32>
      %c0_10 = arith.constant 0 : index
      %c0_11 = arith.constant 0 : index
      %15 = vector.load %arg5[%c0_10, %c0_11] : memref<32x128xf32, #tpu.memory_space<vmem>>, vector<32x128xf32>
      tpu.vector_store %arg5[%c0_10, %c0_11], %14 {strides = array<i32>} : memref<32x128xf32, #tpu.memory_space<vmem>>, vector<32x128xf32>,
    } else {
    }
    %c0 = arith.constant 0 : index
    %c0_1 = arith.constant 0 : index
    %3 = vector.load %arg3[%c0, %c0_1] : memref<288x128xbf16, #tpu.memory_space<vmem>>, vector<288x128xbf16>
    %c0_2 = arith.constant 0 : index
    %c0_3 = arith.constant 0 : index
    %4 = vector.load %arg5[%c0_2, %c0_3] : memref<32x128xf32, #tpu.memory_space<vmem>>, vector<32x128xf32>
    %5 = arith.index_cast %arg1 : i32 to index
    %c0_4 = arith.constant 0 : index
    %c0_5 = arith.constant 0 : index
    %6 = vector.load %arg2[%5, %c0_4, %c0_5] : memref<2x32x288xbf16, #tpu.memory_space<vmem>>, vector<1x32x288xbf16>
    %7 = vector.shape_cast %6 : vector<1x32x288xbf16> to vector<32x288xbf16>
    %cst = arith.constant dense<0.000000e+00> : vector<32x128xf32>
    %8 = tpu.matmul %7, %3, %cst {dimension_numbers = #tpu.dot_dimension_numbers<[1], [0], [0], [1], [0, 0, 1, 1], [], []>} : vector<32x288xbf16>, vector<288x128xbf16>, vector<32x128xf32> -> vector<32x128xf32>
    %9 = arith.addf %4, %8 : vector<32x128xf32>
    %c0_6 = arith.constant 0 : index
    %c0_7 = arith.constant 0 : index
    %10 = vector.load %arg5[%c0_6, %c0_7] : memref<32x128xf32, #tpu.memory_space<vmem>>, vector<32x128xf32>
    tpu.vector_store %arg5[%c0_6, %c0_7], %9 {strides = array<i32>} : memref<32x128xf32, #tpu.memory_space<vmem>>, vector<32x128xf32>,
    %c1_i32 = arith.constant 1 : i32
    %11 = arith.cmpi eq, %arg1, %c1_i32 : i32
    %12 = arith.extui %11 : i1 to i32
    %c0_i32_8 = arith.constant 0 : i32
    %13 = arith.cmpi ne, %12, %c0_i32_8 : i32
    scf.if %13 {
      %c0_9 = arith.constant 0 : index
      %c0_10 = arith.constant 0 : index
      %14 = vector.load %arg5[%c0_9, %c0_10] : memref<32x128xf32, #tpu.memory_space<vmem>>, vector<32x128xf32>
      %c0_11 = arith.constant 0 : index
      %c0_12 = arith.constant 0 : index
      %15 = vector.load %arg4[%c0_11, %c0_12] : memref<32x1xf32, #tpu.memory_space<vmem>>, vector<32x1xf32>
      %16 = vector.broadcast %15 : vector<32x1xf32> to vector<32x128xf32>
      %17 = arith.addf %14, %16 : vector<32x128xf32>
      %cst_13 = arith.constant 0.000000e+00 : f32
      %18 = vector.broadcast %cst_13 : f32 to vector<32x128xf32>
      %19 = arith.maximumf %17, %18 : vector<32x128xf32>
      %c0_14 = arith.constant 0 : index
      %c0_15 = arith.constant 0 : index
      %20 = vector.load %arg5[%c0_14, %c0_15] : memref<32x128xf32, #tpu.memory_space<vmem>>, vector<32x128xf32>
      tpu.vector_store %arg5[%c0_14, %c0_15], %19 {strides = array<i32>} : memref<32x128xf32, #tpu.memory_space<vmem>>, vector<32x128xf32>,
    } else {
    }
    return
  }
  func.func @transform_0(%arg0: i32, %arg1: i32) -> (i32, i32, i32) {
    %c0_i32 = arith.constant 0 : i32
    %c0_i32_0 = arith.constant 0 : i32
    %c0_i32_1 = arith.constant 0 : i32
    %c0_i32_2 = arith.constant 0 : i32
    return %c0_i32, %c0_i32_0, %c0_i32_1 : i32, i32, i32
  }
  func.func @transform_1(%arg0: i32, %arg1: i32) -> (i32, i32) {
    %c0_i32 = arith.constant 0 : i32
    return %arg1, %arg0 : i32, i32
  }
  func.func @transform_2(%arg0: i32, %arg1: i32) -> (i32, i32) {
    %c0_i32 = arith.constant 0 : i32
    %c0_i32_0 = arith.constant 0 : i32
    %c0_i32_1 = arith.constant 0 : i32
    return %c0_i32, %c0_i32_0 : i32, i32
  }
  func.func @transform_3(%arg0: i32, %arg1: i32) -> (i32, i32) {
    %c0_i32 = arith.constant 0 : i32
    %c0_i32_0 = arith.constant 0 : i32
    return %c0_i32, %arg0 : i32, i32
  }
}

module attributes {stable_mosaic.version = 11 : i64} {
  func.func @_gemm_kernel(%arg0: i32, %arg1: i32, %arg2: memref<1x32x32xbf16, #tpu.memory_space<vmem>>, %arg3: memref<32x128xbf16, #tpu.memory_space<vmem>>, %arg4: memref<32x1xf32, #tpu.memory_space<vmem>>, %arg5: memref<32x128xf32, #tpu.memory_space<vmem>>) attributes {dimension_semantics = [#tpu.dimension_semantics<parallel>, #tpu.dimension_semantics<arbitrary>], iteration_bounds = array<i64: 1, 1>, scalar_prefetch = 0 : i64, scratch_operands = 0 : i64, tpu.core_type = #tpu.core_type<tc>, window_params = [{pipeline_mode = #tpu.pipeline_mode<synchronous>, transform_indices = @transform_0, window_bounds = array<i64: 1, 32, 32>}, {transform_indices = @transform_1, window_bounds = array<i64: 32, 128>}, {pipeline_mode = #tpu.pipeline_mode<synchronous>, transform_indices = @transform_2, window_bounds = array<i64: 32, 1>}, {transform_indices = @transform_3, window_bounds = array<i64: 32, 128>}]} {
    %c0_i32 = arith.constant 0 : i32
    %0 = arith.cmpi eq, %arg1, %c0_i32 : i32
    %1 = arith.extui %0 : i1 to i32
    %c0_i32_0 = arith.constant 0 : i32
    %2 = arith.cmpi ne, %1, %c0_i32_0 : i32
    scf.if %2 {
      %cst_10 = arith.constant 0.000000e+00 : f32
      %14 = vector.broadcast %cst_10 : f32 to vector<32x128xf32>
      %c0_11 = arith.constant 0 : index
      %c0_12 = arith.constant 0 : index
      %15 = vector.load %arg5[%c0_11, %c0_12] : memref<32x128xf32, #tpu.memory_space<vmem>>, vector<32x128xf32>
      tpu.vector_store %arg5[%c0_11, %c0_12], %14 {strides = array<i32>} : memref<32x128xf32, #tpu.memory_space<vmem>>, vector<32x128xf32>,
    } else {
    }
    %c0 = arith.constant 0 : index
    %c0_1 = arith.constant 0 : index
    %3 = vector.load %arg3[%c0, %c0_1] : memref<32x128xbf16, #tpu.memory_space<vmem>>, vector<32x128xbf16>
    %c0_2 = arith.constant 0 : index
    %c0_3 = arith.constant 0 : index
    %4 = vector.load %arg5[%c0_2, %c0_3] : memref<32x128xf32, #tpu.memory_space<vmem>>, vector<32x128xf32>
    %5 = arith.index_cast %arg1 : i32 to index
    %c0_4 = arith.constant 0 : index
    %c0_5 = arith.constant 0 : index
    %6 = vector.load %arg2[%5, %c0_4, %c0_5] : memref<1x32x32xbf16, #tpu.memory_space<vmem>>, vector<1x32x32xbf16>
    %7 = vector.shape_cast %6 : vector<1x32x32xbf16> to vector<32x32xbf16>
    %cst = arith.constant dense<0.000000e+00> : vector<32x128xf32>
    %8 = tpu.matmul %7, %3, %cst {dimension_numbers = #tpu.dot_dimension_numbers<[1], [0], [0], [1], [0, 0, 1, 1], [], []>} : vector<32x32xbf16>, vector<32x128xbf16>, vector<32x128xf32> -> vector<32x128xf32>
    %9 = arith.addf %4, %8 : vector<32x128xf32>
    %c0_6 = arith.constant 0 : index
    %c0_7 = arith.constant 0 : index
    %10 = vector.load %arg5[%c0_6, %c0_7] : memref<32x128xf32, #tpu.memory_space<vmem>>, vector<32x128xf32>
    tpu.vector_store %arg5[%c0_6, %c0_7], %9 {strides = array<i32>} : memref<32x128xf32, #tpu.memory_space<vmem>>, vector<32x128xf32>,
    %c0_i32_8 = arith.constant 0 : i32
    %11 = arith.cmpi eq, %arg1, %c0_i32_8 : i32
    %12 = arith.extui %11 : i1 to i32
    %c0_i32_9 = arith.constant 0 : i32
    %13 = arith.cmpi ne, %12, %c0_i32_9 : i32
    scf.if %13 {
      %c0_10 = arith.constant 0 : index
      %c0_11 = arith.constant 0 : index
      %14 = vector.load %arg5[%c0_10, %c0_11] : memref<32x128xf32, #tpu.memory_space<vmem>>, vector<32x128xf32>
      %c0_12 = arith.constant 0 : index
      %c0_13 = arith.constant 0 : index
      %15 = vector.load %arg4[%c0_12, %c0_13] : memref<32x1xf32, #tpu.memory_space<vmem>>, vector<32x1xf32>
      %16 = vector.broadcast %15 : vector<32x1xf32> to vector<32x128xf32>
      %17 = arith.addf %14, %16 : vector<32x128xf32>
      %cst_14 = arith.constant 0.000000e+00 : f32
      %18 = vector.broadcast %cst_14 : f32 to vector<32x128xf32>
      %19 = arith.maximumf %17, %18 : vector<32x128xf32>
      %c0_15 = arith.constant 0 : index
      %c0_16 = arith.constant 0 : index
      %20 = vector.load %arg5[%c0_15, %c0_16] : memref<32x128xf32, #tpu.memory_space<vmem>>, vector<32x128xf32>
      tpu.vector_store %arg5[%c0_15, %c0_16], %19 {strides = array<i32>} : memref<32x128xf32, #tpu.memory_space<vmem>>, vector<32x128xf32>,
    } else {
    }
    return
  }
  func.func @transform_0(%arg0: i32, %arg1: i32) -> (i32, i32, i32) {
    %c0_i32 = arith.constant 0 : i32
    %c0_i32_0 = arith.constant 0 : i32
    %c0_i32_1 = arith.constant 0 : i32
    %c0_i32_2 = arith.constant 0 : i32
    return %c0_i32, %c0_i32_0, %c0_i32_1 : i32, i32, i32
  }
  func.func @transform_1(%arg0: i32, %arg1: i32) -> (i32, i32) {
    %c0_i32 = arith.constant 0 : i32
    return %arg1, %arg0 : i32, i32
  }
  func.func @transform_2(%arg0: i32, %arg1: i32) -> (i32, i32) {
    %c0_i32 = arith.constant 0 : i32
    %c0_i32_0 = arith.constant 0 : i32
    %c0_i32_1 = arith.constant 0 : i32
    return %c0_i32, %c0_i32_0 : i32, i32
  }
  func.func @transform_3(%arg0: i32, %arg1: i32) -> (i32, i32) {
    %c0_i32 = arith.constant 0 : i32
    %c0_i32_0 = arith.constant 0 : i32
    return %c0_i32, %arg0 : i32, i32
  }
}

module attributes {stable_mosaic.version = 11 : i64} {
  func.func @_gemm_kernel(%arg0: i32, %arg1: i32, %arg2: memref<1x32x288xbf16, #tpu.memory_space<vmem>>, %arg3: memref<288x128xbf16, #tpu.memory_space<vmem>>, %arg4: memref<32x1xf32, #tpu.memory_space<vmem>>, %arg5: memref<32x128xf32, #tpu.memory_space<vmem>>) attributes {dimension_semantics = [#tpu.dimension_semantics<parallel>, #tpu.dimension_semantics<arbitrary>], iteration_bounds = array<i64: 1, 1>, scalar_prefetch = 0 : i64, scratch_operands = 0 : i64, tpu.core_type = #tpu.core_type<tc>, window_params = [{pipeline_mode = #tpu.pipeline_mode<synchronous>, transform_indices = @transform_0, window_bounds = array<i64: 1, 32, 288>}, {transform_indices = @transform_1, window_bounds = array<i64: 288, 128>}, {pipeline_mode = #tpu.pipeline_mode<synchronous>, transform_indices = @transform_2, window_bounds = array<i64: 32, 1>}, {transform_indices = @transform_3, window_bounds = array<i64: 32, 128>}]} {
    %c0_i32 = arith.constant 0 : i32
    %0 = arith.cmpi eq, %arg1, %c0_i32 : i32
    %1 = arith.extui %0 : i1 to i32
    %c0_i32_0 = arith.constant 0 : i32
    %2 = arith.cmpi ne, %1, %c0_i32_0 : i32
    scf.if %2 {
      %cst_10 = arith.constant 0.000000e+00 : f32
      %14 = vector.broadcast %cst_10 : f32 to vector<32x128xf32>
      %c0_11 = arith.constant 0 : index
      %c0_12 = arith.constant 0 : index
      %15 = vector.load %arg5[%c0_11, %c0_12] : memref<32x128xf32, #tpu.memory_space<vmem>>, vector<32x128xf32>
      tpu.vector_store %arg5[%c0_11, %c0_12], %14 {strides = array<i32>} : memref<32x128xf32, #tpu.memory_space<vmem>>, vector<32x128xf32>,
    } else {
    }
    %c0 = arith.constant 0 : index
    %c0_1 = arith.constant 0 : index
    %3 = vector.load %arg3[%c0, %c0_1] : memref<288x128xbf16, #tpu.memory_space<vmem>>, vector<288x128xbf16>
    %c0_2 = arith.constant 0 : index
    %c0_3 = arith.constant 0 : index
    %4 = vector.load %arg5[%c0_2, %c0_3] : memref<32x128xf32, #tpu.memory_space<vmem>>, vector<32x128xf32>
    %5 = arith.index_cast %arg1 : i32 to index
    %c0_4 = arith.constant 0 : index
    %c0_5 = arith.constant 0 : index
    %6 = vector.load %arg2[%5, %c0_4, %c0_5] : memref<1x32x288xbf16, #tpu.memory_space<vmem>>, vector<1x32x288xbf16>
    %7 = vector.shape_cast %6 : vector<1x32x288xbf16> to vector<32x288xbf16>
    %cst = arith.constant dense<0.000000e+00> : vector<32x128xf32>
    %8 = tpu.matmul %7, %3, %cst {dimension_numbers = #tpu.dot_dimension_numbers<[1], [0], [0], [1], [0, 0, 1, 1], [], []>} : vector<32x288xbf16>, vector<288x128xbf16>, vector<32x128xf32> -> vector<32x128xf32>
    %9 = arith.addf %4, %8 : vector<32x128xf32>
    %c0_6 = arith.constant 0 : index
    %c0_7 = arith.constant 0 : index
    %10 = vector.load %arg5[%c0_6, %c0_7] : memref<32x128xf32, #tpu.memory_space<vmem>>, vector<32x128xf32>
    tpu.vector_store %arg5[%c0_6, %c0_7], %9 {strides = array<i32>} : memref<32x128xf32, #tpu.memory_space<vmem>>, vector<32x128xf32>,
    %c0_i32_8 = arith.constant 0 : i32
    %11 = arith.cmpi eq, %arg1, %c0_i32_8 : i32
    %12 = arith.extui %11 : i1 to i32
    %c0_i32_9 = arith.constant 0 : i32
    %13 = arith.cmpi ne, %12, %c0_i32_9 : i32
    scf.if %13 {
      %c0_10 = arith.constant 0 : index
      %c0_11 = arith.constant 0 : index
      %14 = vector.load %arg5[%c0_10, %c0_11] : memref<32x128xf32, #tpu.memory_space<vmem>>, vector<32x128xf32>
      %c0_12 = arith.constant 0 : index
      %c0_13 = arith.constant 0 : index
      %15 = vector.load %arg4[%c0_12, %c0_13] : memref<32x1xf32, #tpu.memory_space<vmem>>, vector<32x1xf32>
      %16 = vector.broadcast %15 : vector<32x1xf32> to vector<32x128xf32>
      %17 = arith.addf %14, %16 : vector<32x128xf32>
      %cst_14 = arith.constant 0.000000e+00 : f32
      %18 = vector.broadcast %cst_14 : f32 to vector<32x128xf32>
      %19 = arith.maximumf %17, %18 : vector<32x128xf32>
      %c0_15 = arith.constant 0 : index
      %c0_16 = arith.constant 0 : index
      %20 = vector.load %arg5[%c0_15, %c0_16] : memref<32x128xf32, #tpu.memory_space<vmem>>, vector<32x128xf32>
      tpu.vector_store %arg5[%c0_15, %c0_16], %19 {strides = array<i32>} : memref<32x128xf32, #tpu.memory_space<vmem>>, vector<32x128xf32>,
    } else {
    }
    return
  }
  func.func @transform_0(%arg0: i32, %arg1: i32) -> (i32, i32, i32) {
    %c0_i32 = arith.constant 0 : i32
    %c0_i32_0 = arith.constant 0 : i32
    %c0_i32_1 = arith.constant 0 : i32
    %c0_i32_2 = arith.constant 0 : i32
    return %c0_i32, %c0_i32_0, %c0_i32_1 : i32, i32, i32
  }
  func.func @transform_1(%arg0: i32, %arg1: i32) -> (i32, i32) {
    %c0_i32 = arith.constant 0 : i32
    return %arg1, %arg0 : i32, i32
  }
  func.func @transform_2(%arg0: i32, %arg1: i32) -> (i32, i32) {
    %c0_i32 = arith.constant 0 : i32
    %c0_i32_0 = arith.constant 0 : i32
    %c0_i32_1 = arith.constant 0 : i32
    return %c0_i32, %c0_i32_0 : i32, i32
  }
  func.func @transform_3(%arg0: i32, %arg1: i32) -> (i32, i32) {
    %c0_i32 = arith.constant 0 : i32
    %c0_i32_0 = arith.constant 0 : i32
    return %c0_i32, %arg0 : i32, i32
  }
}

module attributes {stable_mosaic.version = 11 : i64} {
  func.func @_head_kernel(%arg0: i32, %arg1: memref<32x160xbf16, #tpu.memory_space<vmem>>, %arg2: memref<160x128xbf16, #tpu.memory_space<vmem>>, %arg3: memref<32x1xf32, #tpu.memory_space<vmem>>, %arg4: memref<2x32xf32, #tpu.memory_space<vmem>>, %arg5: memref<2x1xf32, #tpu.memory_space<vmem>>, %arg6: memref<2x128xf32, #tpu.memory_space<vmem>>, %arg7: memref<2x128xf32, #tpu.memory_space<vmem>>) attributes {dimension_semantics = [#tpu.dimension_semantics<parallel>], iteration_bounds = array<i64: 1>, scalar_prefetch = 0 : i64, scratch_operands = 0 : i64, tpu.core_type = #tpu.core_type<tc>, window_params = [{pipeline_mode = #tpu.pipeline_mode<synchronous>, transform_indices = @transform_0, window_bounds = array<i64: 32, 160>}, {transform_indices = @transform_1, window_bounds = array<i64: 160, 128>}, {pipeline_mode = #tpu.pipeline_mode<synchronous>, transform_indices = @transform_2, window_bounds = array<i64: 32, 1>}, {pipeline_mode = #tpu.pipeline_mode<synchronous>, transform_indices = @transform_3, window_bounds = array<i64: 2, 32>}, {pipeline_mode = #tpu.pipeline_mode<synchronous>, transform_indices = @transform_4, window_bounds = array<i64: 2, 1>}, {transform_indices = @transform_5, window_bounds = array<i64: 2, 128>}, {transform_indices = @transform_6, window_bounds = array<i64: 2, 128>}]} {
    %c0 = arith.constant 0 : index
    %c0_0 = arith.constant 0 : index
    %0 = vector.load %arg1[%c0, %c0_0] : memref<32x160xbf16, #tpu.memory_space<vmem>>, vector<32x160xbf16>
    %c0_1 = arith.constant 0 : index
    %c0_2 = arith.constant 0 : index
    %1 = vector.load %arg2[%c0_1, %c0_2] : memref<160x128xbf16, #tpu.memory_space<vmem>>, vector<160x128xbf16>
    %cst = arith.constant dense<0.000000e+00> : vector<32x128xf32>
    %2 = tpu.matmul %0, %1, %cst {dimension_numbers = #tpu.dot_dimension_numbers<[1], [0], [0], [1], [0, 0, 1, 1], [], []>} : vector<32x160xbf16>, vector<160x128xbf16>, vector<32x128xf32> -> vector<32x128xf32>
    %c0_3 = arith.constant 0 : index
    %c0_4 = arith.constant 0 : index
    %3 = vector.load %arg3[%c0_3, %c0_4] : memref<32x1xf32, #tpu.memory_space<vmem>>, vector<32x1xf32>
    %4 = vector.broadcast %3 : vector<32x1xf32> to vector<32x128xf32>
    %5 = arith.addf %2, %4 : vector<32x128xf32>
    %cst_5 = arith.constant 0.000000e+00 : f32
    %6 = vector.broadcast %cst_5 : f32 to vector<32x128xf32>
    %7 = arith.maximumf %5, %6 : vector<32x128xf32>
    %c0_6 = arith.constant 0 : index
    %c0_7 = arith.constant 0 : index
    %8 = vector.load %arg4[%c0_6, %c0_7] : memref<2x32xf32, #tpu.memory_space<vmem>>, vector<2x32xf32>
    %cst_8 = arith.constant dense<0.000000e+00> : vector<2x128xf32>
    %9 = tpu.matmul %8, %7, %cst_8 {dimension_numbers = #tpu.dot_dimension_numbers<[1], [0], [0], [1], [0, 0, 1, 1], [], []>} : vector<2x32xf32>, vector<32x128xf32>, vector<2x128xf32> -> vector<2x128xf32>
    %c0_9 = arith.constant 0 : index
    %c0_10 = arith.constant 0 : index
    %10 = vector.load %arg5[%c0_9, %c0_10] : memref<2x1xf32, #tpu.memory_space<vmem>>, vector<2x1xf32>
    %11 = vector.broadcast %10 : vector<2x1xf32> to vector<2x128xf32>
    %12 = arith.addf %9, %11 : vector<2x128xf32>
    %c0_11 = arith.constant 0 : index
    %c0_12 = arith.constant 0 : index
    %13 = vector.load %arg6[%c0_11, %c0_12] : memref<2x128xf32, #tpu.memory_space<vmem>>, vector<2x128xf32>
    tpu.vector_store %arg6[%c0_11, %c0_12], %12 {strides = array<i32>} : memref<2x128xf32, #tpu.memory_space<vmem>>, vector<2x128xf32>,
    %cst_13 = arith.constant dense<0xFF800000> : vector<128xf32>
    %14 = vector.multi_reduction <maximumf>, %12, %cst_13 [0] : vector<2x128xf32> to vector<128xf32>
    %15 = vector.shape_cast %14 : vector<128xf32> to vector<1x128xf32>
    %16 = vector.broadcast %15 : vector<1x128xf32> to vector<2x128xf32>
    %17 = arith.subf %12, %16 : vector<2x128xf32>
    %18 = math.exp %17 : vector<2x128xf32>
    %cst_14 = arith.constant dense<0.000000e+00> : vector<128xf32>
    %19 = vector.multi_reduction <add>, %18, %cst_14 [0] : vector<2x128xf32> to vector<128xf32>
    %20 = vector.shape_cast %19 : vector<128xf32> to vector<1x128xf32>
    %21 = vector.broadcast %20 : vector<1x128xf32> to vector<2x128xf32>
    %22 = arith.divf %18, %21 : vector<2x128xf32>
    %c0_15 = arith.constant 0 : index
    %c0_16 = arith.constant 0 : index
    %23 = vector.load %arg7[%c0_15, %c0_16] : memref<2x128xf32, #tpu.memory_space<vmem>>, vector<2x128xf32>
    tpu.vector_store %arg7[%c0_15, %c0_16], %22 {strides = array<i32>} : memref<2x128xf32, #tpu.memory_space<vmem>>, vector<2x128xf32>,
    return
  }
  func.func @transform_0(%arg0: i32) -> (i32, i32) {
    %c0_i32 = arith.constant 0 : i32
    %c0_i32_0 = arith.constant 0 : i32
    %c0_i32_1 = arith.constant 0 : i32
    return %c0_i32, %c0_i32_0 : i32, i32
  }
  func.func @transform_1(%arg0: i32) -> (i32, i32) {
    %c0_i32 = arith.constant 0 : i32
    %c0_i32_0 = arith.constant 0 : i32
    return %c0_i32, %arg0 : i32, i32
  }
  func.func @transform_2(%arg0: i32) -> (i32, i32) {
    %c0_i32 = arith.constant 0 : i32
    %c0_i32_0 = arith.constant 0 : i32
    %c0_i32_1 = arith.constant 0 : i32
    return %c0_i32, %c0_i32_0 : i32, i32
  }
  func.func @transform_3(%arg0: i32) -> (i32, i32) {
    %c0_i32 = arith.constant 0 : i32
    %c0_i32_0 = arith.constant 0 : i32
    %c0_i32_1 = arith.constant 0 : i32
    return %c0_i32, %c0_i32_0 : i32, i32
  }
  func.func @transform_4(%arg0: i32) -> (i32, i32) {
    %c0_i32 = arith.constant 0 : i32
    %c0_i32_0 = arith.constant 0 : i32
    %c0_i32_1 = arith.constant 0 : i32
    return %c0_i32, %c0_i32_0 : i32, i32
  }
  func.func @transform_5(%arg0: i32) -> (i32, i32) {
    %c0_i32 = arith.constant 0 : i32
    %c0_i32_0 = arith.constant 0 : i32
    return %c0_i32, %arg0 : i32, i32
  }
  func.func @transform_6(%arg0: i32) -> (i32, i32) {
    %c0_i32 = arith.constant 0 : i32
    %c0_i32_0 = arith.constant 0 : i32
    return %c0_i32, %arg0 : i32, i32
  }
}

module attributes {stable_mosaic.version = 11 : i64} {
  func.func @_gemm_kernel(%arg0: i32, %arg1: i32, %arg2: memref<2x32x288xbf16, #tpu.memory_space<vmem>>, %arg3: memref<288x256xbf16, #tpu.memory_space<vmem>>, %arg4: memref<32x1xf32, #tpu.memory_space<vmem>>, %arg5: memref<32x256xf32, #tpu.memory_space<vmem>>) attributes {dimension_semantics = [#tpu.dimension_semantics<parallel>, #tpu.dimension_semantics<arbitrary>], iteration_bounds = array<i64: 2, 2>, scalar_prefetch = 0 : i64, scratch_operands = 0 : i64, tpu.core_type = #tpu.core_type<tc>, window_params = [{pipeline_mode = #tpu.pipeline_mode<synchronous>, transform_indices = @transform_0, window_bounds = array<i64: 2, 32, 288>}, {transform_indices = @transform_1, window_bounds = array<i64: 288, 256>}, {pipeline_mode = #tpu.pipeline_mode<synchronous>, transform_indices = @transform_2, window_bounds = array<i64: 32, 1>}, {transform_indices = @transform_3, window_bounds = array<i64: 32, 256>}]} {
    %c0_i32 = arith.constant 0 : i32
    %0 = arith.cmpi eq, %arg1, %c0_i32 : i32
    %1 = arith.extui %0 : i1 to i32
    %c0_i32_0 = arith.constant 0 : i32
    %2 = arith.cmpi ne, %1, %c0_i32_0 : i32
    scf.if %2 {
      %cst_9 = arith.constant 0.000000e+00 : f32
      %14 = vector.broadcast %cst_9 : f32 to vector<32x256xf32>
      %c0_10 = arith.constant 0 : index
      %c0_11 = arith.constant 0 : index
      %15 = vector.load %arg5[%c0_10, %c0_11] : memref<32x256xf32, #tpu.memory_space<vmem>>, vector<32x256xf32>
      tpu.vector_store %arg5[%c0_10, %c0_11], %14 {strides = array<i32>} : memref<32x256xf32, #tpu.memory_space<vmem>>, vector<32x256xf32>,
    } else {
    }
    %c0 = arith.constant 0 : index
    %c0_1 = arith.constant 0 : index
    %3 = vector.load %arg3[%c0, %c0_1] : memref<288x256xbf16, #tpu.memory_space<vmem>>, vector<288x256xbf16>
    %c0_2 = arith.constant 0 : index
    %c0_3 = arith.constant 0 : index
    %4 = vector.load %arg5[%c0_2, %c0_3] : memref<32x256xf32, #tpu.memory_space<vmem>>, vector<32x256xf32>
    %5 = arith.index_cast %arg1 : i32 to index
    %c0_4 = arith.constant 0 : index
    %c0_5 = arith.constant 0 : index
    %6 = vector.load %arg2[%5, %c0_4, %c0_5] : memref<2x32x288xbf16, #tpu.memory_space<vmem>>, vector<1x32x288xbf16>
    %7 = vector.shape_cast %6 : vector<1x32x288xbf16> to vector<32x288xbf16>
    %cst = arith.constant dense<0.000000e+00> : vector<32x256xf32>
    %8 = tpu.matmul %7, %3, %cst {dimension_numbers = #tpu.dot_dimension_numbers<[1], [0], [0], [1], [0, 0, 1, 1], [], []>} : vector<32x288xbf16>, vector<288x256xbf16>, vector<32x256xf32> -> vector<32x256xf32>
    %9 = arith.addf %4, %8 : vector<32x256xf32>
    %c0_6 = arith.constant 0 : index
    %c0_7 = arith.constant 0 : index
    %10 = vector.load %arg5[%c0_6, %c0_7] : memref<32x256xf32, #tpu.memory_space<vmem>>, vector<32x256xf32>
    tpu.vector_store %arg5[%c0_6, %c0_7], %9 {strides = array<i32>} : memref<32x256xf32, #tpu.memory_space<vmem>>, vector<32x256xf32>,
    %c1_i32 = arith.constant 1 : i32
    %11 = arith.cmpi eq, %arg1, %c1_i32 : i32
    %12 = arith.extui %11 : i1 to i32
    %c0_i32_8 = arith.constant 0 : i32
    %13 = arith.cmpi ne, %12, %c0_i32_8 : i32
    scf.if %13 {
      %c0_9 = arith.constant 0 : index
      %c0_10 = arith.constant 0 : index
      %14 = vector.load %arg5[%c0_9, %c0_10] : memref<32x256xf32, #tpu.memory_space<vmem>>, vector<32x256xf32>
      %c0_11 = arith.constant 0 : index
      %c0_12 = arith.constant 0 : index
      %15 = vector.load %arg4[%c0_11, %c0_12] : memref<32x1xf32, #tpu.memory_space<vmem>>, vector<32x1xf32>
      %16 = vector.broadcast %15 : vector<32x1xf32> to vector<32x256xf32>
      %17 = arith.addf %14, %16 : vector<32x256xf32>
      %cst_13 = arith.constant 0.000000e+00 : f32
      %18 = vector.broadcast %cst_13 : f32 to vector<32x256xf32>
      %19 = arith.maximumf %17, %18 : vector<32x256xf32>
      %c0_14 = arith.constant 0 : index
      %c0_15 = arith.constant 0 : index
      %20 = vector.load %arg5[%c0_14, %c0_15] : memref<32x256xf32, #tpu.memory_space<vmem>>, vector<32x256xf32>
      tpu.vector_store %arg5[%c0_14, %c0_15], %19 {strides = array<i32>} : memref<32x256xf32, #tpu.memory_space<vmem>>, vector<32x256xf32>,
    } else {
    }
    return
  }
  func.func @transform_0(%arg0: i32, %arg1: i32) -> (i32, i32, i32) {
    %c0_i32 = arith.constant 0 : i32
    %c0_i32_0 = arith.constant 0 : i32
    %c0_i32_1 = arith.constant 0 : i32
    %c0_i32_2 = arith.constant 0 : i32
    return %c0_i32, %c0_i32_0, %c0_i32_1 : i32, i32, i32
  }
  func.func @transform_1(%arg0: i32, %arg1: i32) -> (i32, i32) {
    %c0_i32 = arith.constant 0 : i32
    return %arg1, %arg0 : i32, i32
  }
  func.func @transform_2(%arg0: i32, %arg1: i32) -> (i32, i32) {
    %c0_i32 = arith.constant 0 : i32
    %c0_i32_0 = arith.constant 0 : i32
    %c0_i32_1 = arith.constant 0 : i32
    return %c0_i32, %c0_i32_0 : i32, i32
  }
  func.func @transform_3(%arg0: i32, %arg1: i32) -> (i32, i32) {
    %c0_i32 = arith.constant 0 : i32
    %c0_i32_0 = arith.constant 0 : i32
    return %c0_i32, %arg0 : i32, i32
  }
}

module attributes {stable_mosaic.version = 11 : i64} {
  func.func @_head_kernel(%arg0: i32, %arg1: memref<32x160xbf16, #tpu.memory_space<vmem>>, %arg2: memref<160x128xbf16, #tpu.memory_space<vmem>>, %arg3: memref<32x1xf32, #tpu.memory_space<vmem>>, %arg4: memref<2x32xf32, #tpu.memory_space<vmem>>, %arg5: memref<2x1xf32, #tpu.memory_space<vmem>>, %arg6: memref<2x128xf32, #tpu.memory_space<vmem>>, %arg7: memref<2x128xf32, #tpu.memory_space<vmem>>) attributes {dimension_semantics = [#tpu.dimension_semantics<parallel>], iteration_bounds = array<i64: 1>, scalar_prefetch = 0 : i64, scratch_operands = 0 : i64, tpu.core_type = #tpu.core_type<tc>, window_params = [{pipeline_mode = #tpu.pipeline_mode<synchronous>, transform_indices = @transform_0, window_bounds = array<i64: 32, 160>}, {transform_indices = @transform_1, window_bounds = array<i64: 160, 128>}, {pipeline_mode = #tpu.pipeline_mode<synchronous>, transform_indices = @transform_2, window_bounds = array<i64: 32, 1>}, {pipeline_mode = #tpu.pipeline_mode<synchronous>, transform_indices = @transform_3, window_bounds = array<i64: 2, 32>}, {pipeline_mode = #tpu.pipeline_mode<synchronous>, transform_indices = @transform_4, window_bounds = array<i64: 2, 1>}, {transform_indices = @transform_5, window_bounds = array<i64: 2, 128>}, {transform_indices = @transform_6, window_bounds = array<i64: 2, 128>}]} {
    %c0 = arith.constant 0 : index
    %c0_0 = arith.constant 0 : index
    %0 = vector.load %arg1[%c0, %c0_0] : memref<32x160xbf16, #tpu.memory_space<vmem>>, vector<32x160xbf16>
    %c0_1 = arith.constant 0 : index
    %c0_2 = arith.constant 0 : index
    %1 = vector.load %arg2[%c0_1, %c0_2] : memref<160x128xbf16, #tpu.memory_space<vmem>>, vector<160x128xbf16>
    %cst = arith.constant dense<0.000000e+00> : vector<32x128xf32>
    %2 = tpu.matmul %0, %1, %cst {dimension_numbers = #tpu.dot_dimension_numbers<[1], [0], [0], [1], [0, 0, 1, 1], [], []>} : vector<32x160xbf16>, vector<160x128xbf16>, vector<32x128xf32> -> vector<32x128xf32>
    %c0_3 = arith.constant 0 : index
    %c0_4 = arith.constant 0 : index
    %3 = vector.load %arg3[%c0_3, %c0_4] : memref<32x1xf32, #tpu.memory_space<vmem>>, vector<32x1xf32>
    %4 = vector.broadcast %3 : vector<32x1xf32> to vector<32x128xf32>
    %5 = arith.addf %2, %4 : vector<32x128xf32>
    %cst_5 = arith.constant 0.000000e+00 : f32
    %6 = vector.broadcast %cst_5 : f32 to vector<32x128xf32>
    %7 = arith.maximumf %5, %6 : vector<32x128xf32>
    %c0_6 = arith.constant 0 : index
    %c0_7 = arith.constant 0 : index
    %8 = vector.load %arg4[%c0_6, %c0_7] : memref<2x32xf32, #tpu.memory_space<vmem>>, vector<2x32xf32>
    %cst_8 = arith.constant dense<0.000000e+00> : vector<2x128xf32>
    %9 = tpu.matmul %8, %7, %cst_8 {dimension_numbers = #tpu.dot_dimension_numbers<[1], [0], [0], [1], [0, 0, 1, 1], [], []>} : vector<2x32xf32>, vector<32x128xf32>, vector<2x128xf32> -> vector<2x128xf32>
    %c0_9 = arith.constant 0 : index
    %c0_10 = arith.constant 0 : index
    %10 = vector.load %arg5[%c0_9, %c0_10] : memref<2x1xf32, #tpu.memory_space<vmem>>, vector<2x1xf32>
    %11 = vector.broadcast %10 : vector<2x1xf32> to vector<2x128xf32>
    %12 = arith.addf %9, %11 : vector<2x128xf32>
    %c0_11 = arith.constant 0 : index
    %c0_12 = arith.constant 0 : index
    %13 = vector.load %arg6[%c0_11, %c0_12] : memref<2x128xf32, #tpu.memory_space<vmem>>, vector<2x128xf32>
    tpu.vector_store %arg6[%c0_11, %c0_12], %12 {strides = array<i32>} : memref<2x128xf32, #tpu.memory_space<vmem>>, vector<2x128xf32>,
    %cst_13 = arith.constant dense<0xFF800000> : vector<128xf32>
    %14 = vector.multi_reduction <maximumf>, %12, %cst_13 [0] : vector<2x128xf32> to vector<128xf32>
    %15 = vector.shape_cast %14 : vector<128xf32> to vector<1x128xf32>
    %16 = vector.broadcast %15 : vector<1x128xf32> to vector<2x128xf32>
    %17 = arith.subf %12, %16 : vector<2x128xf32>
    %18 = math.exp %17 : vector<2x128xf32>
    %cst_14 = arith.constant dense<0.000000e+00> : vector<128xf32>
    %19 = vector.multi_reduction <add>, %18, %cst_14 [0] : vector<2x128xf32> to vector<128xf32>
    %20 = vector.shape_cast %19 : vector<128xf32> to vector<1x128xf32>
    %21 = vector.broadcast %20 : vector<1x128xf32> to vector<2x128xf32>
    %22 = arith.divf %18, %21 : vector<2x128xf32>
    %c0_15 = arith.constant 0 : index
    %c0_16 = arith.constant 0 : index
    %23 = vector.load %arg7[%c0_15, %c0_16] : memref<2x128xf32, #tpu.memory_space<vmem>>, vector<2x128xf32>
    tpu.vector_store %arg7[%c0_15, %c0_16], %22 {strides = array<i32>} : memref<2x128xf32, #tpu.memory_space<vmem>>, vector<2x128xf32>,
    return
  }
  func.func @transform_0(%arg0: i32) -> (i32, i32) {
    %c0_i32 = arith.constant 0 : i32
    %c0_i32_0 = arith.constant 0 : i32
    %c0_i32_1 = arith.constant 0 : i32
    return %c0_i32, %c0_i32_0 : i32, i32
  }
  func.func @transform_1(%arg0: i32) -> (i32, i32) {
    %c0_i32 = arith.constant 0 : i32
    %c0_i32_0 = arith.constant 0 : i32
    return %c0_i32, %arg0 : i32, i32
  }
  func.func @transform_2(%arg0: i32) -> (i32, i32) {
    %c0_i32 = arith.constant 0 : i32
    %c0_i32_0 = arith.constant 0 : i32
    %c0_i32_1 = arith.constant 0 : i32
    return %c0_i32, %c0_i32_0 : i32, i32
  }
  func.func @transform_3(%arg0: i32) -> (i32, i32) {
    %c0_i32 = arith.constant 0 : i32
    %c0_i32_0 = arith.constant 0 : i32
    %c0_i32_1 = arith.constant 0 : i32
    return %c0_i32, %c0_i32_0 : i32, i32
  }
  func.func @transform_4(%arg0: i32) -> (i32, i32) {
    %c0_i32 = arith.constant 0 : i32
    %c0_i32_0 = arith.constant 0 : i32
    %c0_i32_1 = arith.constant 0 : i32
    return %c0_i32, %c0_i32_0 : i32, i32
  }
  func.func @transform_5(%arg0: i32) -> (i32, i32) {
    %c0_i32 = arith.constant 0 : i32
    %c0_i32_0 = arith.constant 0 : i32
    return %c0_i32, %arg0 : i32, i32
  }
  func.func @transform_6(%arg0: i32) -> (i32, i32) {
    %c0_i32 = arith.constant 0 : i32
    %c0_i32_0 = arith.constant 0 : i32
    return %c0_i32, %arg0 : i32, i32
  }
}

</mosaic_0001>

<bundles_post_ra>
// kernel: rpmms_forward.56
= control target key start
LH: loop header
LB: loop body
LE: loop exit
PB: predicated region body
PF: predicated region fallthrough
CT: control target
= control target key end

     0   :  { %s598_s12 = smov 0   ;;  %s600_s13 = smov 0   ;;  %s679_s0 = inlined_call_operand.vmem [shape: bf16[1,16,32], index: 0, kind: input, shape index: {}]   ;;  %s680_s1 = inlined_call_operand.vmem [shape: bf16[32,256], index: 1, kind: input, shape index: {}]   ;;  %s681_s2 = inlined_call_operand.vmem [shape: f32[16,1], index: 2, kind: input, shape index: {}]   ;;  %s682_s3 = inlined_call_operand.vmem [shape: f32[16,256], index: 3, kind: output, shape index: {}]  }
   0x1   :  { %s602_s14 = smov 0   ;;  %s604_s15 = smov 0  }
   0x2   :  { %s606_s16 = smov 0  }
   0x3 LB: > { %s25_s17 = sadd.s32 1, %s569_s15  ;;  %s460_s18 = sadd.s32 4294967295, %s573_s16   ;;  %s573_s16 = sphi %s606_s16, %s13_s16   ;;  %s569_s15 = sphi %s604_s15, %s687_s15   ;;  %s565_s14 = sphi %s602_s14, %s686_s14   ;;  %s561_s13 = sphi %s600_s13, %s685_s13   ;;  %s557_s12 = sphi %s598_s12, %s684_s12  }
   0x4   : > { %p27_p0 = scmp.ge.s32.totalorder %s25_s17, 2  ;;  %p62_p1 = scmp.ne.s32.totalorder %s561_s13, %s557_s12 }
   0x5   : > { %p63_p2 = scmp.eq.s32.totalorder %s573_s16, 0  ;;  %p113_p4 = scmp.eq.s32.totalorder %s460_s18, 1 }
   0x6   : > { %s689_s17 = smov (%p27_p0, %s25_s17), 0  ;;  %s55_s20 = sadd.s32 1, %s561_s13 }
   0x7   : > { %p64_p3 = por %p63_p2, %p62_p1  ;;  %s51_s19 = ssub.s32 %s569_s15, %s689_s17 }
   0x8   : > { %p53_p5 = scmp.eq.s32.totalorder %s51_s19, 0  ;;  %p633_p6 = por %p113_p4, %p62_p1 }
   0x9   : > { %p463_p7 = scmp.ge.s32.totalorder %s573_s16, 2 }
   0xa   : > { %s638_s22 = scalar_select %p53_p5, %s561_s13, %s55_s20  }
   0xb   : > { %141 = sbr.rel (%p463_p7) target bundleno = 22 (0x16), region = 24 }
  0x10   : > { %144 = sbr.rel (!%p64_p3) target bundleno = 22 (0x16), region = 28  ;;  %s146_s23 = sand.u32 (%p64_p3), 1, %s561_s13  }
  0x11   : > { %s465_s24 = sshll.u32 (%p64_p3), %s569_s15, 2  ;;  %s464_s25 = sshll.u32 (%p64_p3), %s146_s23, 4 }
  0x12   : > { %s153_s28 = scalar_lea.vmem (%p64_p3), %s680_s1, %s465_s24  ;;  %s148_s29 = scalar_lea.vmem (%p64_p3), [#allocation2], %s464_s25 }
  0x13   : > { %v170_v0 = vld [vmem:[%s153_s28] sm:$0xf] (%p64_p3)  ;;  %v172_v1 = vld [vmem:[%s153_s28 + $0x8] sm:$0xf] (%p64_p3)  ;;  %v174_v2 = vld [vmem:[%s153_s28 + $0x10] sm:$0xf] (%p64_p3) }
  0x14   : > { %171 = vst [vmem:[%s148_s29] sm:$0xf] (%p64_p3), %v170_v0  ;;  %173 = vst [vmem:[%s148_s29 + $0x4] sm:$0xf] (%p64_p3), %v172_v1  ;;  %v176_v3 = vld [vmem:[%s153_s28 + $0x18] sm:$0xf] (%p64_p3) }
  0x15   : > { %175 = vst [vmem:[%s148_s29 + $0x8] sm:$0xf] %v174_v2  ;;  %177 = vst [vmem:[%s148_s29 + $0xc] sm:$0xf] %v176_v3 }
  0x16 PF: > { %p466_p8 = scmp.ge.s32.totalorder %s573_s16, 1  ;;  %p208_p9 = scmp.lt.s32.totalorder %s573_s16, 3 }
  0x18   : > { %p209_p10 = pnand %p466_p8, %p208_p9 }
  0x19   : > { %s215_s30 = sand.u32 (!%p209_p10), 1, %s557_s12  }
  0x1a   : > { %212 = sbr.rel (%p209_p10) target bundleno = 250 (0xfa), region = 69  ;;  %s467_s4 = sshll.u32 (!%p209_p10), %s215_s30, 4 }
  0x1b   : > { %s217_s7 = scalar_lea.vmem (!%p209_p10), [#allocation2], %s467_s4  ;;  %s236_s12 = scalar_lea.vmem (!%p209_p10), [#allocation3], %s467_s4 }
  0x1f   : > { %v575_v4 = vmov 0.0   ;;  %vm576_vm0 = vmmov 0   ;;  %v327_v5 = vld [vmem:[%s681_s2] sm:$0xff]  ;;  %v577_v6 = vmov 0   ;;  %v532_v7 = vld [vmem:[%s217_s7 + $0x8] sm:$0xff]   ;;  %vm273_vm1 = vcmask 261120  }
  0x20   : > { %480 = vmatprep.subr.bf16.mxu0 %v575_v4  ;;  %484 = vmatprep.mubr.msk.bf16.mxu0 %vm576_vm0, %v575_v4  ;;  %v328_v8 = vld [vmem:[%s681_s2 + $0x8] sm:$0xff]  ;;  %v533_v9 = vld [vmem:[%s217_s7] sm:$0xff]   ;;  %s474_s18 = sshll.u32 (%p633_p6), %s565_s14, 3 }
  0x21   : > { %531 = vset.pattern.permute.xlu0 %v577_v6  ;;  %481 = vmatpush3.bf16.msra.mxu0 %v532_v7  ;;  %v534_v10 = vld [vmem:[%s679_s0] sm:$0xff]   ;;  %s353_s23 = scalar_lea.vmem (%p633_p6), %s682_s3, %s474_s18 }
  0x22   : > { %331 = vperm.xlu0 %531, %v327_v5   ;;  %482 = vmatprep.subr.bf16.mxu0 %v575_v4 }
  0x25   : > { %483 = vmatpush3.bf16.msra.mxu0 %v533_v9 }
  0x26   : > { %336 = vperm.xlu0 %531, %v328_v8  }
  0x28   : > { %485 = vmatmul.mubr.msk.bf16.vlgmr.msra.gmra.mxu0 %vm273_vm1, %v534_v10 }
  0x9d   : > { %v332_v12 = vpop.permute.xlu0 %331 }
  0xa1   : > { %v337_v18 = vpop.permute.xlu0 %336 }
  0xe8   : > { %v311_v11 = vpop.f32.mrf.mxu0 }
  0xe9   : > { %v339_v14 = vadd.f32 %v332_v12, %v311_v11 }
  0xea   : > { %v486_v13 = vpop.f32.mrf.mxu0 }
  0xeb   : > { %v341_v16 = vmax.f32 %v339_v14, 0.0 }
  0xec   : > { %v314_v15 = vpop.f32.mrf.mxu0 }
  0xed   : > { %343 = vst [vmem:[%s236_s12] sm:$0xff] %v341_v16  ;;  %v340_v19 = vadd.f32 %v337_v18, %v314_v15  ;;  %351 = sbr.rel (!%p633_p6) target bundleno = 250 (0xfa), region = 85 }
  0xee   : > { %v487_v17 = vpop.f32.mrf.mxu0 }
  0xef   : > { %v342_v20 = vmax.f32 %v340_v19, 0.0 }
  0xf1   : > { %344 = vst [vmem:[%s236_s12 + $0x8] sm:$0xff] %v342_v20 }
  0xf4   : > { %v384_v21 = vld [vmem:[%s236_s12] sm:$0xff] }
  0xf5   : > { %385 = vst [vmem:[%s353_s23] sm:$0xff] %v384_v21 }
  0xf8   : > { %v386_v22 = vld [vmem:[%s236_s12 + $0x8] sm:$0xff] }
  0xf9   : > { %387 = vst [vmem:[%s353_s23 + $0x10] sm:$0xff] %v386_v22 }
  0xfa PF: > { %s13_s16 = sadd.s32 1, %s573_s16   ;;  %s684_s12 = smov %s561_s13 }
  0xfb   : > { %p10_p11 = scmp.ge.s32.totalorder %s13_s16, 4   ;;  %s685_s13 = smov %s638_s22 }
  0xfc   : > { %s686_s14 = smov %s569_s15  ;;  %s687_s15 = smov %s689_s17 }
  0xfd   :  { %12 = sbr.rel (!%p10_p11) target bundleno = 3 (0x3), region = 155 }

// kernel: rpmms_forward.57
= control target key start
LH: loop header
LB: loop body
LE: loop exit
PB: predicated region body
PF: predicated region fallthrough
CT: control target
= control target key end

     0   :  { %v212_v0 = vmov 0   ;;  %vm109_vm0 = vcmask 130048   ;;  %s278_s1 = inlined_call_operand.vmem [shape: bf16[144,128], index: 1, kind: input, shape index: {}]   ;;  %s279_s0 = inlined_call_operand.vmem [shape: bf16[1,16,144], index: 0, kind: input, shape index: {}]   ;;  %s280_s2 = inlined_call_operand.vmem [shape: f32[16,1], index: 2, kind: input, shape index: {}]   ;;  %s281_s3 = inlined_call_operand.vmem [shape: f32[16,128], index: 3, kind: output, shape index: {}]  }
   0x1   :  { %113 = vmatprep.subr.bf16.mxu0 %v212_v0  ;;  %v200_v1 = vld [vmem:[%s278_s1 + $0x38] sm:$0xff]   ;;  %199 = vset.pattern.permute.xlu0 %v212_v0  ;;  %v201_v2 = vld [vmem:[%s278_s1 + $0x30] sm:$0xff]   ;;  %v202_v3 = vld [vmem:[%s278_s1 + $0x28] sm:$0xff]  }
   0x2   :  { %114 = vmatpush1.bf16.msra.mxu0 %v200_v1  ;;  %v203_v4 = vld [vmem:[%s278_s1 + $0x20] sm:$0xff]   ;;  %v164_v7 = vld [vmem:[%s280_s2 + $0x8] sm:$0xff]  ;;  %v204_v8 = vld [vmem:[%s278_s1 + $0x18] sm:$0xff]  }
   0x3   :  { %115 = vmatprep.subr.bf16.mxu0 %v212_v0  ;;  %v211_v5 = vld [vmem:[%s279_s0 + $0x4] ss:$8 sps:$4 sm:$0xff]   ;;  %v205_v9 = vld [vmem:[%s278_s1 + $0x10] sm:$0xff]   ;;  %v209_v13 = vld [vmem:[%s279_s0] ss:$8 sps:$4 sm:$0xff]  }
   0x4   :  { %v163_v6 = vld [vmem:[%s280_s2] sm:$0xff]  ;;  %196 = vmatprep.mubr.msk.bf16.mxu0 %vm109_vm0, %v211_v5  ;;  %v206_v10 = vld [vmem:[%s278_s1 + $0x8] sm:$0xff]  }
   0x5   :  { %167 = vperm.xlu0 %199, %v163_v6   ;;  %v207_v11 = vld [vmem:[%s278_s1] sm:$0xff]  }
   0x6   :  { %116 = vmatpush1.bf16.msra.mxu0 %v201_v2  ;;  %v208_v12 = vld [vmem:[%s278_s1 + $0x40] sm:$0xff]  }
   0x7   :  { %117 = vmatprep.subr.bf16.mxu0 %v212_v0 }
   0x9   :  { %172 = vperm.xlu0 %199, %v164_v7  }
   0xa   :  { %118 = vmatpush1.bf16.msra.mxu0 %v202_v3 }
   0xb   :  { %119 = vmatprep.subr.bf16.mxu0 %v212_v0 }
   0xe   :  { %120 = vmatpush1.bf16.msra.mxu0 %v203_v4 }
   0xf   :  { %121 = vmatprep.subr.bf16.mxu0 %v212_v0 }
  0x12   :  { %122 = vmatpush1.bf16.msra.mxu0 %v204_v8 }
  0x13   :  { %123 = vmatprep.subr.bf16.mxu0 %v212_v0 }
  0x16   :  { %124 = vmatpush1.bf16.msra.mxu0 %v205_v9 }
  0x17   :  { %125 = vmatprep.subr.bf16.mxu0 %v212_v0 }
  0x1a   :  { %126 = vmatpush1.bf16.msra.mxu0 %v206_v10 }
  0x1b   :  { %127 = vmatprep.subr.bf16.mxu0 %v212_v0 }
  0x1e   :  { %128 = vmatpush1.bf16.msra.mxu0 %v207_v11 }
  0x1f   :  { %143 = vmatprep.subr.bf16.mxu0 %v212_v0 }
  0x22   :  { %144 = vmatpush2.bf16.msra.mxu0 %v208_v12 }
  0x25   :  { %146 = vmatmul.mubr.bf16.vlgmr.msra.gmra.mxu0 %v209_v13 }
  0x80   :  { %v168_v15 = vpop.permute.xlu0 %167 }
  0x84   :  { %v173_v21 = vpop.permute.xlu0 %172 }
  0xe5   :  { %v147_v14 = vpop.f32.mrf.mxu0 }
  0xe6   :  { %v175_v17 = vadd.f32 %v168_v15, %v147_v14 }
  0xe7   :  { %v149_v16 = vpop.f32.mrf.mxu0 }
  0xe8   :  { %v177_v19 = vmax.f32 %v175_v17, 0.0 }
  0xe9   :  { %v150_v18 = vpop.f32.mrf.mxu0 }
  0xea   :  { %179 = vst [vmem:[%s281_s3] sm:$0xff] %v177_v19  ;;  %v176_v22 = vadd.f32 %v173_v21, %v150_v18 }
  0xeb   :  { %v152_v20 = vpop.f32.mrf.mxu0 }
  0xec   :  { %v178_v23 = vmax.f32 %v176_v22, 0.0 }
  0xee   :  { %180 = vst [vmem:[%s281_s3 + $0x8] sm:$0xff] %v178_v23 }

// kernel: rpmms_forward.58
= control target key start
LH: loop header
LB: loop body
LE: loop exit
PB: predicated region body
PF: predicated region fallthrough
CT: control target
= control target key end

     0   :  { %v287_v0 = vmov 0   ;;  %vm124_vm0 = vcmask 130048   ;;  %s371_s1 = inlined_call_operand.vmem [shape: bf16[144,128], index: 1, kind: input, shape index: {}]   ;;  %s372_s0 = inlined_call_operand.vmem [shape: bf16[1,32,144], index: 0, kind: input, shape index: {}]   ;;  %s373_s2 = inlined_call_operand.vmem [shape: f32[32,1], index: 2, kind: input, shape index: {}]   ;;  %s374_s3 = inlined_call_operand.vmem [shape: f32[32,128], index: 3, kind: output, shape index: {}]  }
   0x1   :  { %131 = vmatprep.subr.bf16.mxu0 %v287_v0  ;;  %250 = vmatprep.subr.bf16.mxu1 %v287_v0  ;;  %v272_v1 = vld [vmem:[%s371_s1 + $0x38] sm:$0xff]   ;;  %v273_v2 = vld [vmem:[%s371_s1 + $0x30] sm:$0xff]   ;;  %v274_v3 = vld [vmem:[%s371_s1 + $0x28] sm:$0xff]  }
   0x2   :  { %271 = vset.pattern.permute.xlu1 %v287_v0  ;;  %270 = vset.pattern.permute.xlu0 %v287_v0  ;;  %v275_v4 = vld [vmem:[%s371_s1 + $0x20] sm:$0xff]   ;;  %v286_v6 = vld [vmem:[%s372_s0 + $0x14] ss:$8 sps:$4 sm:$0xff]   ;;  %v196_v11 = vld [vmem:[%s373_s2 + $0x8] sm:$0xff] }
   0x3   :  { %132 = vmatpush1.bf16.msra.mxu0 %v272_v1  ;;  %259 = vmatpush1.bf16.msra.mxu1 %v272_v1  ;;  %v283_v5 = vld [vmem:[%s372_s0 + $0x4] ss:$8 sps:$4 sm:$0xff]   ;;  %v197_v7 = vld [vmem:[%s373_s2 + $0x10] sm:$0xff]  ;;  %v198_v9 = vld [vmem:[%s373_s2 + $0x18] sm:$0xff] }
   0x4   :  { %133 = vmatprep.subr.bf16.mxu0 %v287_v0  ;;  %251 = vmatprep.subr.bf16.mxu1 %v287_v0  ;;  %v195_v8 = vld [vmem:[%s373_s2] sm:$0xff]  ;;  %v276_v10 = vld [vmem:[%s371_s1 + $0x18] sm:$0xff]   ;;  %v277_v12 = vld [vmem:[%s371_s1 + $0x10] sm:$0xff]  }
   0x5   :  { %248 = vmatprep.mubr.msk.bf16.mxu0 %vm124_vm0, %v283_v5  ;;  %211 = vperm.xlu1 %271, %v197_v7   ;;  %v278_v13 = vld [vmem:[%s371_s1 + $0x8] sm:$0xff]   ;;  %v279_v14 = vld [vmem:[%s371_s1] sm:$0xff]   ;;  %v284_v17 = vld [vmem:[%s372_s0 + $0x10] ss:$8 sps:$4 sm:$0xff]  }
   0x6   :  { %249 = vmatprep.mubr.msk.bf16.mxu1 %vm124_vm0, %v286_v6  ;;  %201 = vperm.xlu0 %270, %v195_v8   ;;  %v280_v15 = vld [vmem:[%s371_s1 + $0x40] sm:$0xff]  }
   0x7   :  { %134 = vmatpush1.bf16.msra.mxu0 %v273_v2  ;;  %260 = vmatpush1.bf16.msra.mxu1 %v273_v2  ;;  %v281_v16 = vld [vmem:[%s372_s0] ss:$8 sps:$4 sm:$0xff]  }
   0x8   :  { %135 = vmatprep.subr.bf16.mxu0 %v287_v0  ;;  %252 = vmatprep.subr.bf16.mxu1 %v287_v0 }
   0x9   :  { %216 = vperm.xlu1 %271, %v198_v9  }
   0xa   :  { %206 = vperm.xlu0 %270, %v196_v11  }
   0xb   :  { %136 = vmatpush1.bf16.msra.mxu0 %v274_v3  ;;  %261 = vmatpush1.bf16.msra.mxu1 %v274_v3 }
   0xc   :  { %137 = vmatprep.subr.bf16.mxu0 %v287_v0  ;;  %253 = vmatprep.subr.bf16.mxu1 %v287_v0 }
   0xf   :  { %138 = vmatpush1.bf16.msra.mxu0 %v275_v4  ;;  %262 = vmatpush1.bf16.msra.mxu1 %v275_v4 }
  0x10   :  { %139 = vmatprep.subr.bf16.mxu0 %v287_v0  ;;  %254 = vmatprep.subr.bf16.mxu1 %v287_v0 }
  0x13   :  { %140 = vmatpush1.bf16.msra.mxu0 %v276_v10  ;;  %263 = vmatpush1.bf16.msra.mxu1 %v276_v10 }
  0x14   :  { %141 = vmatprep.subr.bf16.mxu0 %v287_v0  ;;  %255 = vmatprep.subr.bf16.mxu1 %v287_v0 }
  0x17   :  { %142 = vmatpush1.bf16.msra.mxu0 %v277_v12  ;;  %264 = vmatpush1.bf16.msra.mxu1 %v277_v12 }
  0x18   :  { %143 = vmatprep.subr.bf16.mxu0 %v287_v0  ;;  %256 = vmatprep.subr.bf16.mxu1 %v287_v0 }
  0x1b   :  { %144 = vmatpush1.bf16.msra.mxu0 %v278_v13  ;;  %265 = vmatpush1.bf16.msra.mxu1 %v278_v13 }
  0x1c   :  { %145 = vmatprep.subr.bf16.mxu0 %v287_v0  ;;  %257 = vmatprep.subr.bf16.mxu1 %v287_v0 }
  0x1f   :  { %146 = vmatpush1.bf16.msra.mxu0 %v279_v14  ;;  %266 = vmatpush1.bf16.msra.mxu1 %v279_v14 }
  0x20   :  { %161 = vmatprep.subr.bf16.mxu0 %v287_v0  ;;  %258 = vmatprep.subr.bf16.mxu1 %v287_v0 }
  0x23   :  { %162 = vmatpush2.bf16.msra.mxu0 %v280_v15  ;;  %267 = vmatpush2.bf16.msra.mxu1 %v280_v15 }
  0x26   :  { %164 = vmatmul.mubr.bf16.vlgmr.msra.gmra.mxu0 %v281_v16  ;;  %172 = vmatmul.mubr.bf16.vlgmr.msra.gmra.mxu1 %v284_v17 }
  0x80   :  { %v212_v18 = vpop.permute.xlu1 %211 }
  0x81   :  { %v202_v19 = vpop.permute.xlu0 %201 }
  0x84   :  { %v217_v30 = vpop.permute.xlu1 %216 }
  0x85   :  { %v207_v31 = vpop.permute.xlu0 %206 }
  0xe6   :  { %v165_v20 = vpop.f32.mrf.mxu0  ;;  %v173_v21 = vpop.f32.mrf.mxu1 }
  0xe7   :  { %v221_v24 = vadd.f32 %v212_v18, %v173_v21  ;;  %v219_v25 = vadd.f32 %v202_v19, %v165_v20 }
  0xe8   :  { %v167_v22 = vpop.f32.mrf.mxu0  ;;  %v175_v23 = vpop.f32.mrf.mxu1 }
  0xe9   :  { %v225_v28 = vmax.f32 %v221_v24, 0.0  ;;  %v223_v29 = vmax.f32 %v219_v25, 0.0 }
  0xea   :  { %v168_v26 = vpop.f32.mrf.mxu0  ;;  %v176_v27 = vpop.f32.mrf.mxu1 }
  0xeb   :  { %229 = vst [vmem:[%s374_s3 + $0x10] sm:$0xff] %v225_v28  ;;  %227 = vst [vmem:[%s374_s3] sm:$0xff] %v223_v29  ;;  %v222_v34 = vadd.f32 %v217_v30, %v176_v27  ;;  %v220_v35 = vadd.f32 %v207_v31, %v168_v26 }
  0xec   :  { %v170_v32 = vpop.f32.mrf.mxu0  ;;  %v178_v33 = vpop.f32.mrf.mxu1 }
  0xed   :  { %v226_v36 = vmax.f32 %v222_v34, 0.0  ;;  %v224_v37 = vmax.f32 %v220_v35, 0.0 }
  0xef   :  { %230 = vst [vmem:[%s374_s3 + $0x18] sm:$0xff] %v226_v36  ;;  %228 = vst [vmem:[%s374_s3 + $0x8] sm:$0xff] %v224_v37 }

// kernel: rpmms_forward.59
= control target key start
LH: loop header
LB: loop body
LE: loop exit
PB: predicated region body
PF: predicated region fallthrough
CT: control target
= control target key end

     0   :  { %v560_v0 = vmov 0   ;;  %vm292_vm0 = vcmask 392192   ;;  %s725_s1 = inlined_call_operand.vmem [shape: bf16[432,128], index: 1, kind: input, shape index: {}]   ;;  %s726_s0 = inlined_call_operand.vmem [shape: bf16[1,32,432], index: 0, kind: input, shape index: {}]   ;;  %s727_s2 = inlined_call_operand.vmem [shape: f32[32,1], index: 2, kind: input, shape index: {}]   ;;  %s728_s3 = inlined_call_operand.vmem [shape: f32[32,128], index: 3, kind: output, shape index: {}]  }
   0x1   :  { %348 = vmatprep.subr.bf16.mxu1 %v560_v0  ;;  %v521_v1 = vld [vmem:[%s725_s1 + $0xb8] sm:$0xff]   ;;  %519 = vset.pattern.permute.xlu0 %v560_v0  ;;  %v524_v4 = vld [vmem:[%s725_s1 + $0xb0] sm:$0xff]   ;;  %v527_v7 = vld [vmem:[%s725_s1 + $0xa8] sm:$0xff]  }
   0x2   :  { %v522_v2 = vld [vmem:[%s725_s1 + $0x78] sm:$0xff]   ;;  %520 = vset.pattern.permute.xlu1 %v560_v0  ;;  %349 = vmatpush1.bf16.msra.mxu1 %v521_v1  ;;  %v525_v5 = vld [vmem:[%s725_s1 + $0x70] sm:$0xff]   ;;  %v528_v8 = vld [vmem:[%s725_s1 + $0x68] sm:$0xff]  }
   0x3   :  { %v523_v3 = vld [vmem:[%s725_s1 + $0x38] sm:$0xff]   ;;  %489 = vmatprep.subr.bf16.mxu0 %v522_v2  ;;  %350 = vmatprep.subr.bf16.mxu1 %v560_v0  ;;  %v526_v6 = vld [vmem:[%s725_s1 + $0x30] sm:$0xff]   ;;  %v529_v9 = vld [vmem:[%s725_s1 + $0x28] sm:$0xff]  }
   0x4   :  { %490 = vmatpush3.bf16.msra.mxu0 %v523_v3  ;;  %v530_v10 = vld [vmem:[%s725_s1 + $0xa0] sm:$0xff]   ;;  %v534_v13 = vld [vmem:[%s725_s1 + $0x58] sm:$0xff]   ;;  %v537_v16 = vld [vmem:[%s725_s1 + $0x50] sm:$0xff]  }
   0x5   :  { %491 = vmatprep.subr.bf16.mxu0 %v525_v5  ;;  %v531_v11 = vld [vmem:[%s725_s1 + $0x60] sm:$0xff]   ;;  %v533_v14 = vld [vmem:[%s725_s1 + $0x98] sm:$0xff]   ;;  %v536_v17 = vld [vmem:[%s725_s1 + $0x90] sm:$0xff]  }
   0x6   :  { %351 = vmatpush1.bf16.msra.mxu1 %v524_v4  ;;  %v532_v12 = vld [vmem:[%s725_s1 + $0x20] sm:$0xff]   ;;  %v535_v15 = vld [vmem:[%s725_s1 + $0x18] sm:$0xff]   ;;  %v538_v18 = vld [vmem:[%s725_s1 + $0x10] sm:$0xff]  }
   0x7   :  { %352 = vmatprep.subr.bf16.mxu1 %v560_v0  ;;  %v540_v19 = vld [vmem:[%s725_s1 + $0x48] sm:$0xff]   ;;  %v543_v22 = vld [vmem:[%s725_s1 + $0x40] sm:$0xff]   ;;  %v548_v26 = vld [vmem:[%s725_s1 + $0xd0] sm:$0xff]  }
   0x8   :  { %492 = vmatpush3.bf16.msra.mxu0 %v526_v6  ;;  %v539_v20 = vld [vmem:[%s725_s1 + $0x88] sm:$0xff]   ;;  %v547_v23 = vld [vmem:[%s726_s0 + $0x4] ss:$16 sps:$4 sm:$0xff]   ;;  %v545_v28 = vld [vmem:[%s726_s0] ss:$16 sps:$4 sm:$0xff]  }
   0x9   :  { %493 = vmatprep.subr.bf16.mxu0 %v528_v8  ;;  %v541_v21 = vld [vmem:[%s725_s1 + $0x8] sm:$0xff]   ;;  %v542_v24 = vld [vmem:[%s725_s1 + $0x80] sm:$0xff]   ;;  %331 = vmatprep.mubr.bf16.mxu0 %v547_v23  ;;  %v414_v31 = vld [vmem:[%s727_s2 + $0x10] sm:$0xff] }
   0xa   :  { %353 = vmatpush1.bf16.msra.mxu1 %v527_v7  ;;  %v544_v25 = vld [vmem:[%s725_s1] sm:$0xff]   ;;  %v556_v27 = vld [vmem:[%s726_s0 + $0xc] ss:$16 sps:$4 sm:$0xff]   ;;  %428 = vperm.xlu1 %520, %v414_v31   ;;  %v554_v37 = vld [vmem:[%s726_s0 + $0x8] ss:$16 sps:$4 sm:$0xff]  }
   0xb   :  { %354 = vmatprep.subr.bf16.mxu1 %v560_v0  ;;  %v550_v29 = vld [vmem:[%s726_s0 + $0x24] ss:$16 sps:$4 sm:$0xff]   ;;  %487 = vmatprep.mubr.msk.bf16.mxu1 %vm292_vm0, %v556_v27  ;;  %v549_v32 = vld [vmem:[%s725_s1 + $0xc8] sm:$0xff]   ;;  %v415_v34 = vld [vmem:[%s727_s2 + $0x18] sm:$0xff] }
   0xc   :  { %494 = vmatpush3.bf16.msra.mxu0 %v529_v9  ;;  %v412_v30 = vld [vmem:[%s727_s2] sm:$0xff]  ;;  %v413_v33 = vld [vmem:[%s727_s2 + $0x8] sm:$0xff] }
   0xd   :  { %495 = vmatprep.subr.bf16.mxu0 %v531_v11  ;;  %418 = vperm.xlu0 %519, %v412_v30   ;;  %v552_v35 = vld [vmem:[%s725_s1 + $0xc0] sm:$0xff]   ;;  %v557_v38 = vld [vmem:[%s726_s0 + $0x2c] ss:$16 sps:$4 sm:$0xff]   ;;  %v559_v39 = vld [vmem:[%s726_s0 + $0x28] ss:$16 sps:$4 sm:$0xff]  }
   0xe   :  { %355 = vmatpush1.bf16.msra.mxu1 %v530_v10  ;;  %433 = vperm.xlu1 %520, %v415_v34   ;;  %v553_v36 = vld [vmem:[%s726_s0 + $0x20] ss:$16 sps:$4 sm:$0xff]  }
   0xf   :  { %356 = vmatprep.subr.bf16.mxu1 %v560_v0 }
  0x10   :  { %496 = vmatpush3.bf16.msra.mxu0 %v532_v12 }
  0x11   :  { %497 = vmatprep.subr.bf16.mxu0 %v534_v13  ;;  %423 = vperm.xlu0 %519, %v413_v33  }
  0x12   :  { %357 = vmatpush1.bf16.msra.mxu1 %v533_v14 }
  0x13   :  { %358 = vmatprep.subr.bf16.mxu1 %v560_v0 }
  0x14   :  { %498 = vmatpush3.bf16.msra.mxu0 %v535_v15 }
  0x15   :  { %499 = vmatprep.subr.bf16.mxu0 %v537_v16 }
  0x16   :  { %359 = vmatpush1.bf16.msra.mxu1 %v536_v17 }
  0x17   :  { %360 = vmatprep.subr.bf16.mxu1 %v560_v0 }
  0x18   :  { %500 = vmatpush3.bf16.msra.mxu0 %v538_v18 }
  0x19   :  { %501 = vmatprep.subr.bf16.mxu0 %v540_v19 }
  0x1a   :  { %361 = vmatpush1.bf16.msra.mxu1 %v539_v20 }
  0x1b   :  { %362 = vmatprep.subr.bf16.mxu1 %v560_v0 }
  0x1c   :  { %502 = vmatpush3.bf16.msra.mxu0 %v541_v21 }
  0x1d   :  { %503 = vmatprep.subr.bf16.mxu0 %v543_v22 }
  0x1e   :  { %363 = vmatpush1.bf16.msra.mxu1 %v542_v24 }
  0x1f   :  { %374 = vmatprep.subr.bf16.mxu1 %v560_v0 }
  0x20   :  { %504 = vmatpush3.bf16.msra.mxu0 %v544_v25 }
  0x22   :  { %375 = vmatpush2.bf16.msra.mxu1 %v548_v26 }
  0x23   :  { %332 = vmatmul.mubr.bf16.vlgmr.msra.gmra.mxu0 %v545_v28  ;;  %376 = vmatprep.subr.bf16.mxu1 %v560_v0 }
  0x24   :  { %339 = vmatprep.mubr.bf16.mxu0 %v550_v29 }
  0x26   :  { %377 = vmatpush2.bf16.msra.mxu1 %v549_v32 }
  0x27   :  { %378 = vmatprep.subr.bf16.mxu1 %v560_v0 }
  0x2a   :  { %379 = vmatpush2.bf16.msra.mxu1 %v552_v35 }
  0x2b   :  { %340 = vmatmul.mubr.bf16.gmra.mxu0 %v553_v36 }
  0x2d   :  { %381 = vmatmul.mubr.bf16.vlgmr.msra.gmra.mxu1 %v554_v37 }
  0x2e   :  { %488 = vmatprep.mubr.msk.bf16.mxu1 %vm292_vm0, %v557_v38 }
  0x35   :  { %389 = vmatmul.mubr.bf16.gmra.mxu1 %v559_v39 }
  0x85   :  { %v429_v1 = vpop.permute.xlu1 %428 }
  0x88   :  { %v419_v46 = vpop.permute.xlu0 %418 }
  0x89   :  { %v434_v9 = vpop.permute.xlu1 %433 }
  0x8c   :  { %v424_v57 = vpop.permute.xlu0 %423 }
  0xe3   :  { %v505_v40 = vpop.f32.mrf.mxu0 }
  0xe5   :  { %v506_v41 = vpop.f32.mrf.mxu0 }
  0xe6   :  { %v507_v45 = vadd.f32 %v506_v41, %v505_v40 }
  0xe7   :  { %v508_v42 = vpop.f32.mrf.mxu0 }
  0xe9   :  { %v509_v43 = vpop.f32.mrf.mxu0 }
  0xea   :  { %v510_v51 = vadd.f32 %v509_v43, %v508_v42 }
  0xeb   :  { %v511_v44 = vpop.f32.mrf.mxu0 }
  0xed   :  { %v512_v47 = vpop.f32.mrf.mxu0  ;;  %v382_v48 = vpop.f32.mrf.mxu1 }
  0xee   :  { %v383_v49 = vadd.f32 %v507_v45, %v382_v48  ;;  %v513_v58 = vadd.f32 %v512_v47, %v511_v44 }
  0xef   :  { %v384_v50 = vpop.f32.mrf.mxu1  ;;  %v514_v52 = vpop.f32.mrf.mxu0 }
  0xf0   :  { %v436_v55 = vadd.f32 %v419_v46, %v383_v49 }
  0xf1   :  { %v385_v53 = vpop.f32.mrf.mxu1  ;;  %v515_v60 = vpop.f32.mrf.mxu0 }
  0xf2   :  { %v386_v54 = vadd.f32 %v510_v51, %v385_v53  ;;  %v440_v59 = vmax.f32 %v436_v55, 0.0  ;;  %v516_v2 = vadd.f32 %v515_v60, %v514_v52 }
  0xf3   :  { %v387_v56 = vpop.f32.mrf.mxu1 }
  0xf4   :  { %444 = vst [vmem:[%s728_s3] sm:$0xff] %v440_v59  ;;  %v437_v63 = vadd.f32 %v424_v57, %v386_v54 }
  0xf5   :  { %v390_v61 = vpop.f32.mrf.mxu1 }
  0xf6   :  { %v391_v62 = vadd.f32 %v513_v58, %v390_v61  ;;  %v441_v3 = vmax.f32 %v437_v63, 0.0 }
  0xf7   :  { %v392_v0 = vpop.f32.mrf.mxu1 }
  0xf8   :  { %v438_v6 = vadd.f32 %v429_v1, %v391_v62  ;;  %445 = vst [vmem:[%s728_s3 + $0x8] sm:$0xff] %v441_v3 }
  0xf9   :  { %v393_v4 = vpop.f32.mrf.mxu1 }
  0xfa   :  { %v394_v5 = vadd.f32 %v516_v2, %v393_v4  ;;  %v442_v8 = vmax.f32 %v438_v6, 0.0 }
  0xfb   :  { %v395_v7 = vpop.f32.mrf.mxu1 }
  0xfc   :  { %446 = vst [vmem:[%s728_s3 + $0x10] sm:$0xff] %v442_v8  ;;  %v439_v10 = vadd.f32 %v434_v9, %v394_v5 }
  0xfe   :  { %v443_v11 = vmax.f32 %v439_v10, 0.0 }
 0x100   :  { %447 = vst [vmem:[%s728_s3 + $0x18] sm:$0xff] %v443_v11 }

// kernel: rpmms_forward.61
= control target key start
LH: loop header
LB: loop body
LE: loop exit
PB: predicated region body
PF: predicated region fallthrough
CT: control target
= control target key end

     0   :  { %s616_s12 = smov 0   ;;  %s618_s13 = smov 0   ;;  %s674_s0 = inlined_call_operand.vmem [shape: f32[1,32,64], index: 0, kind: input, shape index: {}]   ;;  %s675_s1 = inlined_call_operand.vmem [shape: f32[1,3,16,32], index: 1, kind: input, shape index: {}]   ;;  %s676_s2 = inlined_call_operand.vmem [shape: f32[3,16,1], index: 2, kind: input, shape index: {}]   ;;  %s677_s3 = inlined_call_operand.vmem [shape: f32[1,3,2,64], index: 3, kind: output, shape index: {}]  }
   0x1   :  { %s620_s14 = smov 0  }
   0x2 LB: > { %s22_s15 = sadd.s32 1, %s589_s13  ;;  %p510_p0 = scmp.ge.s32.totalorder %s593_s14, 1  ;;  %s593_s14 = sphi %s620_s14, %s13_s14   ;;  %s589_s13 = sphi %s618_s13, %s679_s13   ;;  %s585_s12 = sphi %s616_s12, %s678_s12  }
   0x3   : > { %p23_p1 = scmp.ge.s32.totalorder %s22_s15, 3  ;;  %p177_p2 = scmp.lt.s32.totalorder %s593_s14, 4 }
   0x5   : > { %s681_s15 = smov (%p23_p1, %s22_s15), 0  ;;  %p178_p3 = pnand %p510_p0, %p177_p2 }
   0x6   : > { %p225_p4 = scmp.lt.s32.totalorder (!%p178_p3), %s585_s12, 2 }
   0x7   : > { %181 = sbr.rel (%p178_p3) target bundleno = 298 (0x12a), region = 32 }
   0xc   : > { %v248_v0 = vld [vmem:[%s674_s0 + $0x18] sm:$0xff]  ;;  %v247_v1 = vld [vmem:[%s674_s0 + $0x10] sm:$0xff]  ;;  %v595_v2 = vmov 0   ;;  %v246_v3 = vld [vmem:[%s674_s0 + $0x8] sm:$0xff]  ;;  %s683_s12 = smov (!%p225_p4, %s585_s12), 2  ;;  %vm263_vm0 = vcmask 261120  }
   0xd   : > { %528 = vmatprep.subr.mxu0 %v248_v0  ;;  %564 = vset.pattern.permute.xlu0 %v595_v2  ;;  %v245_v4 = vld [vmem:[%s674_s0] sm:$0xff]  ;;  %s520_s24 = sshll.u32 %s683_s12, 4  ;;  %vm345_vm1 = vcmask 523264   ;;  %s515_s4 = sshll.u32 %s683_s12, 1  ;;  %vm387_vm2 = vcmask 1040384   ;;  %vm389_vm3 = vcmask 517120  }
   0xe   : > { %529 = vmatpush3.msra.mxu0 %v248_v0  ;;  %s231_s27 = scalar_lea.vmem %s675_s1, %s520_s24  ;;  %s236_s30 = scalar_lea.vmem %s676_s2, %s520_s24 }
   0xf   : > { %530 = vmatprep.subr.mxu0 %v247_v1  ;;  %v249_v5 = vld [vmem:[%s231_s27] sm:$0xff]  ;;  %v250_v6 = vld [vmem:[%s231_s27 + $0x8] sm:$0xff]  ;;  %s244_s7 = scalar_lea.vmem %s677_s3, %s515_s4 }
  0x10   : > { %531 = vmatpush3.msra.mxu0 %v247_v1  ;;  %536 = vmatprep.mubr.msk.f32.mxu0 %vm263_vm0, %v249_v5  ;;  %v251_v7 = vld [vmem:[%s236_s30] sm:$0xff]  ;;  %v252_v8 = vld [vmem:[%s236_s30 + $0x8] sm:$0xff] }
  0x11   : > { %532 = vmatprep.subr.mxu0 %v246_v3  ;;  %255 = vperm.xlu0 %564, %v251_v7  }
  0x12   : > { %533 = vmatpush3.msra.mxu0 %v246_v3 }
  0x13   : > { %534 = vmatprep.subr.mxu0 %v245_v4 }
  0x14   : > { %535 = vmatpush3.msra.mxu0 %v245_v4 }
  0x15   : > { %537 = vmatmul.mubr.msk.f32.vlgmr.msra.gmra.mxu0 %vm263_vm0, %v250_v6  ;;  %260 = vperm.xlu0 %564, %v252_v8  }
  0x8c   : > { %v256_v9 = vpop.permute.xlu0 %255 }
  0x90   : > { %v261_v10 = vpop.permute.xlu0 %260 }
  0xd5   : > { %v538_v11 = vpop.f32.mrf.mxu0 }
  0xd6   : > { %v342_v12 = vadd.f32 %v538_v11, %v261_v10 }
  0xd7   : > { %v336_v13 = vpop.f32.mrf.mxu0 }
  0xd8   : > { %v337_v14 = vadd.f32 %v336_v13, %v256_v9  ;;  %v347_v15 = vsel %vm345_vm1, %v342_v12, -inf }
  0xda   : > { %v346_v16 = vsel %vm345_vm1, %v337_v14, -inf }
  0xdb   : > { %v348_v17 = vmax.f32 %v346_v16, %v347_v15 }
  0xdd   : > { %v349_v18 = vrot.slane %v348_v17, 4 }
  0xdf   : > { %v350_v19 = vmax.f32 %v348_v17, %v349_v18 }
  0xe1   : > { %v351_v20 = vrot.slane %v350_v19, 2 }
  0xe3   : > { %v352_v21 = vmax.f32 %v350_v19, %v351_v20 }
  0xe5   : > { %v353_v22 = vrot.slane %v352_v21, 1 }
  0xe7   : > { %v354_v23 = vmax.f32 %v352_v21, %v353_v22 }
  0xe9   : > { %v355_v24 = vsub.f32 %v337_v14, %v354_v23  ;;  %v356_v25 = vsub.f32 %v342_v12, %v354_v23 }
  0xeb   : > { %v357_v26 = vmul.f32 1.442695, %v355_v24  ;;  %v359_v27 = vmul.f32 1.442695, %v356_v25 }
  0xed   : > { %565 = vpow2.f32 %v357_v26 }
  0xee   : > { %567 = vpow2.f32 %v359_v27 }
  0xfa   : > { %v566_v28 = vpop.eup %565 }
  0xfb   : > { %v568_v29 = vpop.eup %567  ;;  %v361_v30 = vsel %vm345_vm1, %v566_v28, 0.0 }
  0xfc   : > { %v362_v31 = vsel %vm345_vm1, %v568_v29, 0.0 }
  0xfd   : > { %v363_v32 = vadd.f32 %v362_v31, %v361_v30 }
  0xff   : > { %v364_v33 = vrot.slane %v363_v32, 4 }
 0x101   : > { %v365_v34 = vadd.f32 %v364_v33, %v363_v32 }
 0x103   : > { %v366_v35 = vrot.slane %v365_v34, 2 }
 0x105   : > { %v367_v36 = vadd.f32 %v366_v35, %v365_v34 }
 0x107   : > { %v368_v37 = vrot.slane %v367_v36, 1 }
 0x109   : > { %v369_v38 = vadd.f32 %v368_v37, %v367_v36 }
 0x10b   : > { %569 = vrcp.f32 %v369_v38 }
 0x118   : > { %v570_v39 = vpop.eup %569 }
 0x119   : > { %v371_v40 = vmul.f32 %v570_v39, %v566_v28  ;;  %v372_v41 = vmul.f32 %v570_v39, %v568_v29 }
 0x11b   : > { %v373_v42 = vsel %vm345_vm1, %v371_v40, 0.0  ;;  %v380_v43 = vsel %vm345_vm1, %v372_v41, 0.0 }
 0x11c   : > { %v374_v44 = vrot.slane %v373_v42, 4  ;;  %v381_v45 = vrot.slane %v380_v43, 4 }
 0x11e   : > { %v375_v46 = vadd.f32 %v374_v44, %v373_v42  ;;  %v382_v47 = vadd.f32 %v381_v45, %v380_v43 }
 0x120   : > { %v376_v48 = vrot.slane %v375_v46, 2  ;;  %v383_v49 = vrot.slane %v382_v47, 2 }
 0x122   : > { %v377_v50 = vadd.f32 %v376_v48, %v375_v46  ;;  %v384_v51 = vadd.f32 %v383_v49, %v382_v47 }
 0x124   : > { %v378_v52 = vrot.slane %v377_v50, 1  ;;  %v385_v53 = vrot.slane %v384_v51, 1 }
 0x126   : > { %v379_v54 = vadd.f32 %v378_v52, %v377_v50  ;;  %v386_v55 = vadd.f32 %v385_v53, %v384_v51 }
 0x128   : > { %v388_v56 = vsel %vm387_vm2, %v386_v55, %v379_v54 }
 0x129   : > { %390 = vst.msk [vmem:[%s244_s7] sm:$0x3] %vm389_vm3, %v388_v56 }
 0x12a PF: > { %s13_s14 = sadd.s32 1, %s593_s14   ;;  %s678_s12 = smov %s589_s13 }
 0x12b   : > { %p10_p5 = scmp.ge.s32.totalorder %s13_s14, 5   ;;  %s679_s13 = smov %s681_s15 }
 0x12d   :  { %12 = sbr.rel (!%p10_p5) target bundleno = 2 (0x2), region = 68 }

// kernel: rpmms_forward.60
= control target key start
LH: loop header
LB: loop body
LE: loop exit
PB: predicated region body
PF: predicated region fallthrough
CT: control target
= control target key end

     0   :  { %s2830_s12 = smov 0   ;;  %s2832_s13 = smov 0   ;;  %s3229_s0 = inlined_call_operand.vmem [shape: f32[2,32,64], index: 0, kind: input, shape index: {}]   ;;  %s3230_s1 = inlined_call_operand.vmem [shape: f32[3,8,32], index: 1, kind: input, shape index: {}]   ;;  %s3231_s2 = inlined_call_operand.vmem [shape: f32[3,8,1], index: 2, kind: input, shape index: {}]   ;;  %s3232_s3 = inlined_call_operand.vmem [shape: f32[2,3,8,32], index: 3, kind: output, shape index: {}]  }
   0x1   :  { %s2834_s14 = smov 0   ;;  %s2836_s15 = smov 0  }
   0x2   :  { %s2838_s16 = smov 0  }
   0x3 LB: > { %s22_s17 = sadd.s32 1, %s2797_s14  ;;  %s25_s18 = sadd.s32 1, %s2801_s15  ;;  %s2805_s16 = sphi %s2838_s16, %s13_s16   ;;  %s2801_s15 = sphi %s2836_s15, %s3236_s15   ;;  %s2797_s14 = sphi %s2834_s14, %s3235_s14   ;;  %s2793_s13 = sphi %s2832_s13, %s3234_s13   ;;  %s2789_s12 = sphi %s2830_s12, %s3233_s12  }
   0x4   : > { %p23_p0 = scmp.ge.s32.totalorder %s22_s17, 3  ;;  %p2229_p1 = scmp.ge.s32.totalorder %s2805_s16, 1 }
   0x5   : > { %p169_p2 = scmp.lt.s32.totalorder %s2805_s16, 7 }
   0x6   : > { %s3238_s17 = smov (%p23_p0, %s22_s17), 0  ;;  %s3240_s18 = smov (!%p23_p0, %s25_s18), %s2801_s15 }
   0x7   : > { %p170_p3 = pnand %p2229_p1, %p169_p2  ;;  %p27_p4 = scmp.ge.s32.totalorder %s3240_s18, 2 }
   0x8   : > { %p204_p5 = scmp.lt.s32.totalorder (!%p170_p3), %s2793_s13, 1  ;;  %p209_p6 = scmp.lt.s32.totalorder (!%p170_p3), %s2789_s12, 2 }
   0x9   : > { %s3242_s18 = smov (%p27_p4, %s3240_s18), 0  ;;  %173 = sbr.rel (%p170_p3) target bundleno = 7866 (0x1eba), region = 32 }
   0xe   : > { %v2807_v0 = vmov 0.0   ;;  %vm2808_vm0 = vmmov 0   ;;  %s3244_s13 = smov (!%p204_p5, %s2793_s13), 1  ;;  %v2809_v1 = vmov 0   ;;  %s3246_s12 = smov (!%p209_p6, %s2789_s12), 2  ;;  %vm231_vm1 = vcmask 261120  }
   0xf   : > { %2398 = vmatprep.subr.mxu1 %v2807_v0  ;;  %2406 = vmatprep.mubr.msk.f32.mxu1 %vm2808_vm0, %v2807_v0  ;;  %s2297_s19 = sshll.u32 %s3244_s13, 5  ;;  %s2618_s20 = smul.u32 3, %s3244_s13  ;;  %vm312_vm2 = vcmask 523264  }
  0x10   : > { %2662 = vset.pattern.permute.xlu0 %v2809_v1  ;;  %2420 = vmatprep.subr.mxu0 %v2807_v0  ;;  %s2869_s23 = scalar_lea.vmem %s3229_s0, %s2297_s19  ;;  %s2232_s24 = sshll.u32 %s3246_s12, 3 }
  0x11   : > { %2428 = vmatprep.mubr.msk.f32.mxu0 %vm2808_vm0, %v2807_v0  ;;  %v2872_v2 = vld [vmem:[%s2869_s23 + $0x18] sm:$0xff]  ;;  %v2875_v3 = vld [vmem:[%s2869_s23 + $0x10] sm:$0xff]  ;;  %s2877_s25 = sadd.s32 %s2618_s20, %s3246_s12  ;;  %s216_s28 = scalar_lea.vmem %s3231_s2, %s2232_s24  ;;  %v2886_v4 = vld [vmem:[%s2869_s23 + $0x8] sm:$0xff] }
  0x12   : > { %2399 = vmatpush3.msra.mxu1 %v2872_v2  ;;  %2421 = vmatpush3.msra.mxu0 %v2872_v2  ;;  %s212_s4 = scalar_lea.vmem %s3230_s1, %s2232_s24  ;;  %v229_v5 = vld [vmem:[%s216_s28] sm:$0xff]  ;;  %s2234_s5 = sshll.u32 %s2877_s25, 3 }
  0x13   : > { %2400 = vmatprep.subr.mxu1 %v2807_v0  ;;  %2422 = vmatprep.subr.mxu0 %v2807_v0  ;;  %v2895_v6 = vld [vmem:[%s2869_s23] sm:$0xff]  ;;  %s224_s8 = scalar_lea.vmem %s3232_s3, %s2234_s5 }
  0x14   : > { %2401 = vmatpush3.msra.mxu1 %v2875_v3  ;;  %308 = vperm.xlu0 %2662, %v229_v5   ;;  %v230_v7 = vld [vmem:[%s212_s4] sm:$0xff] }
  0x15   : > { %2402 = vmatprep.subr.mxu1 %v2807_v0  ;;  %2423 = vmatpush3.msra.mxu0 %v2875_v3 }
  0x16   : > { %2403 = vmatpush3.msra.mxu1 %v2886_v4  ;;  %2424 = vmatprep.subr.mxu0 %v2807_v0 }
  0x17   : > { %2404 = vmatprep.subr.mxu1 %v2807_v0  ;;  %2425 = vmatpush3.msra.mxu0 %v2886_v4 }
  0x18   : > { %2405 = vmatpush3.msra.mxu1 %v2895_v6  ;;  %2426 = vmatprep.subr.mxu0 %v2807_v0 }
  0x19   : > { %2407 = vmatmul.mubr.msk.f32.vlgmr.msra.gmra.mxu1 %vm231_vm1, %v230_v7  ;;  %2409 = vmatprep.subr.mxu1 %v2807_v0 }
  0x1a   : > { %2417 = vmatprep.mubr.msk.f32.mxu1 %vm2808_vm0, %v2807_v0  ;;  %2427 = vmatpush3.msra.mxu0 %v2895_v6 }
  0x1b   : > { %2431 = vmatprep.subr.mxu0 %v2807_v0  ;;  %2410 = vmatpush3.xpose.msk.msra.mxu1 %vm312_vm2, %v2872_v2 }
  0x1c   : > { %2411 = vmatprep.subr.mxu1 %v2807_v0 }
  0x1f   : > { %2412 = vmatpush3.xpose.msk.msra.mxu1 %vm312_vm2, %v2875_v3 }
  0x20   : > { %2413 = vmatprep.subr.mxu1 %v2807_v0 }
  0x23   : > { %2414 = vmatpush3.xpose.msk.msra.mxu1 %vm312_vm2, %v2886_v4 }
  0x24   : > { %2415 = vmatprep.subr.mxu1 %v2807_v0 }
  0x27   : > { %2416 = vmatpush3.xpose.msk.msra.mxu1 %vm312_vm2, %v2895_v6 }
  0x28   : > { %2442 = vmatprep.subr.mxu1 %v2807_v0 }
  0x8f   : > { %v2922_v9 = vpop.permute.xlu0 %308 }
  0xd9   : > { %v301_v8 = vpop.f32.mrf.mxu1 }
  0xda   : > { %v305_v10 = vmul.f32 20.0, %v301_v8 }
  0xdb   : > { %v2408_v11 = vpop.f32.mrf.mxu1 }
  0xdc   : > { %v311_v12 = vadd.f32 %v2922_v9, %v305_v10 }
  0xde   : > { %v313_v13 = vsel %vm312_vm2, %v311_v12, -inf }
  0xdf   : > { %v314_v14 = vrot.slane %v313_v13, 4 }
  0xe1   : > { %v315_v15 = vmax.f32 %v313_v13, %v314_v14 }
  0xe3   : > { %v316_v16 = vrot.slane %v315_v15, 2 }
  0xe5   : > { %v317_v17 = vmax.f32 %v315_v15, %v316_v16 }
  0xe7   : > { %v318_v18 = vrot.slane %v317_v17, 1 }
  0xe9   : > { %v319_v19 = vmax.f32 %v317_v17, %v318_v18 }
  0xeb   : > { %v320_v20 = vsub.f32 %v311_v12, %v319_v19 }
  0xed   : > { %v321_v21 = vmul.f32 1.442695, %v320_v20 }
  0xef   : > { %2663 = vpow2.f32 %v321_v21 }
  0xfc   : > { %v2664_v22 = vpop.eup %2663 }
  0xfd   : > { %v323_v23 = vsel %vm312_vm2, %v2664_v22, 0.0 }
  0xfe   : > { %v324_v24 = vrot.slane %v323_v23, 4 }
 0x100   : > { %v325_v25 = vadd.f32 %v324_v24, %v323_v23 }
 0x102   : > { %v326_v26 = vrot.slane %v325_v25, 2 }
 0x104   : > { %v327_v27 = vadd.f32 %v326_v26, %v325_v25 }
 0x106   : > { %v328_v28 = vrot.slane %v327_v27, 1 }
 0x108   : > { %v329_v29 = vadd.f32 %v328_v28, %v327_v27 }
 0x10a   : > { %2665 = vrcp.f32 %v329_v29 }
 0x117   : > { %v2666_v30 = vpop.eup %2665 }
 0x118   : > { %v331_v31 = vmul.f32 %v2666_v30, %v2664_v22 }
 0x11a   : > { %v332_v32 = vsel %vm312_vm2, %v331_v31, 0.0 }
 0x11b   : > { %333 = vadd.xlane.f32.xlu0 %v332_v32 }
 0x1a4   : > { %v334_v33 = vpop.xlane.xlu0 %333 }
 0x1a5   : > { %v335_v34 = vadd.f32 1e-06, %v334_v33 }
 0x1a7   : > { %2667 = vrcp.f32 %v335_v34 }
 0x1b4   : > { %v2668_v35 = vpop.eup %2667 }
 0x1b5   : > { %v337_v36 = vmul.f32 %v2668_v35, %v331_v31 }
 0x1b7   : > { %2418 = vmatmul.mubr.msk.f32.vlgmr.msra.gmra.mxu1 %vm312_vm2, %v337_v36 }
 0x1b8   : > { %2443 = vmatpush3.msra.mxu1 %v2872_v2  ;;  %2450 = vmatprep.mubr.msk.f32.mxu1 %vm2808_vm0, %v2807_v0 }
 0x1b9   : > { %2444 = vmatprep.subr.mxu1 %v2807_v0 }
 0x1ba   : > { %2445 = vmatpush3.msra.mxu1 %v2875_v3 }
 0x1bb   : > { %2446 = vmatprep.subr.mxu1 %v2807_v0 }
 0x1bc   : > { %2447 = vmatpush3.msra.mxu1 %v2886_v4 }
 0x1bd   : > { %2448 = vmatprep.subr.mxu1 %v2807_v0 }
 0x1be   : > { %2449 = vmatpush3.msra.mxu1 %v2895_v6 }
 0x1bf   : > { %2453 = vmatprep.subr.mxu1 %v2807_v0 }
 0x277   : > { %v419_v37 = vpop.f32.mrf.mxu1 }
 0x278   : > { %v423_v38 = vmul.f32 %v419_v37, %v419_v37 }
 0x279   : > { %v2419_v39 = vpop.f32.mrf.mxu1 }
 0x27a   : > { %v424_v40 = vsel %vm231_vm1, %v423_v38, 0.0 }
 0x27b   : > { %425 = vadd.xlane.f32.xlu1 %v424_v40 }
 0x304   : > { %v426_v41 = vpop.xlane.xlu1 %425 }
 0x305   : > { %2669 = vrsqrt.f32 %v426_v41  ;;  %vm429_vm3 = vcmp.eq.f32.partialorder %v426_v41, inf  ;;  %v432_v44 = vand.u32 2147483648, %v426_v41  ;;  %vm431_vm4 = vcmp.eq.f32.partialorder %v426_v41, 0.0 }
 0x312   : > { %v2670_v42 = vpop.eup %2669 }
 0x313   : > { %v428_v43 = vmul.f32 %v2670_v42, %v426_v41 }
 0x315   : > { %v430_v45 = vsel %vm429_vm3, %v426_v41, %v428_v43 }
 0x316   : > { %v433_v46 = vsel %vm431_vm4, %v432_v44, %v430_v45 }
 0x317   : > { %v434_v47 = vadd.f32 1e-06, %v433_v46 }
 0x319   : > { %2671 = vrcp.f32 %v434_v47 }
 0x326   : > { %v2672_v48 = vpop.eup %2671 }
 0x327   : > { %v436_v49 = vmul.f32 %v2672_v48, %v419_v37 }
 0x329   : > { %2429 = vmatmul.mubr.msk.f32.vlgmr.msra.gmra.mxu0 %vm231_vm1, %v436_v49 }
 0x32a   : > { %2432 = vmatpush3.xpose.msk.msra.mxu0 %vm312_vm2, %v2872_v2  ;;  %2439 = vmatprep.mubr.msk.f32.mxu0 %vm2808_vm0, %v2807_v0 }
 0x32b   : > { %2433 = vmatprep.subr.mxu0 %v2807_v0 }
 0x32e   : > { %2434 = vmatpush3.xpose.msk.msra.mxu0 %vm312_vm2, %v2875_v3 }
 0x32f   : > { %2435 = vmatprep.subr.mxu0 %v2807_v0 }
 0x332   : > { %2436 = vmatpush3.xpose.msk.msra.mxu0 %vm312_vm2, %v2886_v4 }
 0x333   : > { %2437 = vmatprep.subr.mxu0 %v2807_v0 }
 0x336   : > { %2438 = vmatpush3.xpose.msk.msra.mxu0 %vm312_vm2, %v2895_v6 }
 0x337   : > { %2464 = vmatprep.subr.mxu0 %v2807_v0 }
 0x3e9   : > { %v506_v50 = vpop.f32.mrf.mxu0 }
 0x3ea   : > { %v510_v51 = vmul.f32 20.0, %v506_v50 }
 0x3eb   : > { %v2430_v52 = vpop.f32.mrf.mxu0 }
 0x3ec   : > { %v511_v53 = vadd.f32 %v510_v51, %v2922_v9 }
 0x3ee   : > { %v512_v54 = vsel %vm312_vm2, %v511_v53, -inf }
 0x3ef   : > { %v513_v55 = vrot.slane %v512_v54, 4 }
 0x3f1   : > { %v514_v56 = vmax.f32 %v512_v54, %v513_v55 }
 0x3f3   : > { %v515_v57 = vrot.slane %v514_v56, 2 }
 0x3f5   : > { %v516_v58 = vmax.f32 %v514_v56, %v515_v57 }
 0x3f7   : > { %v517_v59 = vrot.slane %v516_v58, 1 }
 0x3f9   : > { %v518_v60 = vmax.f32 %v516_v58, %v517_v59 }
 0x3fb   : > { %v519_v61 = vsub.f32 %v511_v53, %v518_v60 }
 0x3fd   : > { %v520_v62 = vmul.f32 1.442695, %v519_v61 }
 0x3ff   : > { %2673 = vpow2.f32 %v520_v62 }
 0x40c   : > { %v2674_v63 = vpop.eup %2673 }
 0x40d   : > { %v522_v1 = vsel %vm312_vm2, %v2674_v63, 0.0 }
 0x40e   : > { %v523_v5 = vrot.slane %v522_v1, 4 }
 0x410   : > { %v524_v7 = vadd.f32 %v523_v5, %v522_v1 }
 0x412   : > { %v525_v8 = vrot.slane %v524_v7, 2 }
 0x414   : > { %v526_v10 = vadd.f32 %v525_v8, %v524_v7 }
 0x416   : > { %v527_v11 = vrot.slane %v526_v10, 1 }
 0x418   : > { %v528_v12 = vadd.f32 %v527_v11, %v526_v10 }
 0x41a   : > { %2675 = vrcp.f32 %v528_v12 }
 0x427   : > { %v2676_v13 = vpop.eup %2675 }
 0x428   : > { %v530_v14 = vmul.f32 %v2676_v13, %v2674_v63 }
 0x42a   : > { %v531_v15 = vsel %vm312_vm2, %v530_v14, 0.0 }
 0x42b   : > { %532 = vadd.xlane.f32.xlu1 %v531_v15 }
 0x4b4   : > { %v533_v16 = vpop.xlane.xlu1 %532 }
 0x4b5   : > { %v534_v17 = vadd.f32 1e-06, %v533_v16 }
 0x4b7   : > { %2677 = vrcp.f32 %v534_v17 }
 0x4c4   : > { %v2678_v18 = vpop.eup %2677 }
 0x4c5   : > { %v536_v19 = vmul.f32 %v2678_v18, %v530_v14 }
 0x4c7   : > { %2440 = vmatmul.mubr.msk.f32.vlgmr.msra.gmra.mxu0 %vm312_vm2, %v536_v19 }
 0x4c8   : > { %2465 = vmatpush3.msra.mxu0 %v2872_v2  ;;  %2472 = vmatprep.mubr.msk.f32.mxu0 %vm2808_vm0, %v2807_v0 }
 0x4c9   : > { %2466 = vmatprep.subr.mxu0 %v2807_v0 }
 0x4ca   : > { %2467 = vmatpush3.msra.mxu0 %v2875_v3 }
 0x4cb   : > { %2468 = vmatprep.subr.mxu0 %v2807_v0 }
 0x4cc   : > { %2469 = vmatpush3.msra.mxu0 %v2886_v4 }
 0x4cd   : > { %2470 = vmatprep.subr.mxu0 %v2807_v0 }
 0x4ce   : > { %2471 = vmatpush3.msra.mxu0 %v2895_v6 }
 0x4cf   : > { %2475 = vmatprep.subr.mxu0 %v2807_v0 }
 0x587   : > { %v606_v20 = vpop.f32.mrf.mxu0 }
 0x588   : > { %v610_v21 = vmul.f32 %v606_v20, %v606_v20 }
 0x589   : > { %v2441_v22 = vpop.f32.mrf.mxu0 }
 0x58a   : > { %v611_v23 = vsel %vm231_vm1, %v610_v21, 0.0 }
 0x58b   : > { %612 = vadd.xlane.f32.xlu1 %v611_v23 }
 0x614   : > { %v613_v24 = vpop.xlane.xlu1 %612 }
 0x615   : > { %2679 = vrsqrt.f32 %v613_v24  ;;  %vm616_vm5 = vcmp.eq.f32.partialorder %v613_v24, inf  ;;  %v619_v27 = vand.u32 2147483648, %v613_v24  ;;  %vm618_vm6 = vcmp.eq.f32.partialorder %v613_v24, 0.0 }
 0x622   : > { %v2680_v25 = vpop.eup %2679 }
 0x623   : > { %v615_v26 = vmul.f32 %v2680_v25, %v613_v24 }
 0x625   : > { %v617_v28 = vsel %vm616_vm5, %v613_v24, %v615_v26 }
 0x626   : > { %v620_v29 = vsel %vm618_vm6, %v619_v27, %v617_v28 }
 0x627   : > { %v621_v30 = vadd.f32 1e-06, %v620_v29 }
 0x629   : > { %2681 = vrcp.f32 %v621_v30 }
 0x636   : > { %v2682_v31 = vpop.eup %2681 }
 0x637   : > { %v623_v32 = vmul.f32 %v2682_v31, %v606_v20 }
 0x639   : > { %2451 = vmatmul.mubr.msk.f32.vlgmr.msra.gmra.mxu1 %vm231_vm1, %v623_v32 }
 0x63a   : > { %2454 = vmatpush3.xpose.msk.msra.mxu1 %vm312_vm2, %v2872_v2  ;;  %2461 = vmatprep.mubr.msk.f32.mxu1 %vm2808_vm0, %v2807_v0 }
 0x63b   : > { %2455 = vmatprep.subr.mxu1 %v2807_v0 }
 0x63e   : > { %2456 = vmatpush3.xpose.msk.msra.mxu1 %vm312_vm2, %v2875_v3 }
 0x63f   : > { %2457 = vmatprep.subr.mxu1 %v2807_v0 }
 0x642   : > { %2458 = vmatpush3.xpose.msk.msra.mxu1 %vm312_vm2, %v2886_v4 }
 0x643   : > { %2459 = vmatprep.subr.mxu1 %v2807_v0 }
 0x646   : > { %2460 = vmatpush3.xpose.msk.msra.mxu1 %vm312_vm2, %v2895_v6 }
 0x647   : > { %2486 = vmatprep.subr.mxu1 %v2807_v0 }
 0x6f9   : > { %v693_v33 = vpop.f32.mrf.mxu1 }
 0x6fa   : > { %v697_v34 = vmul.f32 20.0, %v693_v33 }
 0x6fb   : > { %v2452_v35 = vpop.f32.mrf.mxu1 }
 0x6fc   : > { %v698_v36 = vadd.f32 %v697_v34, %v2922_v9 }
 0x6fe   : > { %v699_v37 = vsel %vm312_vm2, %v698_v36, -inf }
 0x6ff   : > { %v700_v38 = vrot.slane %v699_v37, 4 }
 0x701   : > { %v701_v39 = vmax.f32 %v699_v37, %v700_v38 }
 0x703   : > { %v702_v40 = vrot.slane %v701_v39, 2 }
 0x705   : > { %v703_v41 = vmax.f32 %v701_v39, %v702_v40 }
 0x707   : > { %v704_v42 = vrot.slane %v703_v41, 1 }
 0x709   : > { %v705_v43 = vmax.f32 %v703_v41, %v704_v42 }
 0x70b   : > { %v706_v44 = vsub.f32 %v698_v36, %v705_v43 }
 0x70d   : > { %v707_v45 = vmul.f32 1.442695, %v706_v44 }
 0x70f   : > { %2683 = vpow2.f32 %v707_v45 }
 0x71c   : > { %v2684_v46 = vpop.eup %2683 }
 0x71d   : > { %v709_v47 = vsel %vm312_vm2, %v2684_v46, 0.0 }
 0x71e   : > { %v710_v48 = vrot.slane %v709_v47, 4 }
 0x720   : > { %v711_v49 = vadd.f32 %v710_v48, %v709_v47 }
 0x722   : > { %v712_v50 = vrot.slane %v711_v49, 2 }
 0x724   : > { %v713_v51 = vadd.f32 %v712_v50, %v711_v49 }
 0x726   : > { %v714_v52 = vrot.slane %v713_v51, 1 }
 0x728   : > { %v715_v53 = vadd.f32 %v714_v52, %v713_v51 }
 0x72a   : > { %2685 = vrcp.f32 %v715_v53 }
 0x737   : > { %v2686_v54 = vpop.eup %2685 }
 0x738   : > { %v717_v55 = vmul.f32 %v2686_v54, %v2684_v46 }
 0x73a   : > { %v718_v56 = vsel %vm312_vm2, %v717_v55, 0.0 }
 0x73b   : > { %719 = vadd.xlane.f32.xlu1 %v718_v56 }
 0x7c4   : > { %v720_v57 = vpop.xlane.xlu1 %719 }
 0x7c5   : > { %v721_v58 = vadd.f32 1e-06, %v720_v57 }
 0x7c7   : > { %2687 = vrcp.f32 %v721_v58 }
 0x7d4   : > { %v2688_v59 = vpop.eup %2687 }
 0x7d5   : > { %v723_v60 = vmul.f32 %v2688_v59, %v717_v55 }
 0x7d7   : > { %2462 = vmatmul.mubr.msk.f32.vlgmr.msra.gmra.mxu1 %vm312_vm2, %v723_v60 }
 0x7d8   : > { %2487 = vmatpush3.msra.mxu1 %v2872_v2  ;;  %2494 = vmatprep.mubr.msk.f32.mxu1 %vm2808_vm0, %v2807_v0 }
 0x7d9   : > { %2488 = vmatprep.subr.mxu1 %v2807_v0 }
 0x7da   : > { %2489 = vmatpush3.msra.mxu1 %v2875_v3 }
 0x7db   : > { %2490 = vmatprep.subr.mxu1 %v2807_v0 }
 0x7dc   : > { %2491 = vmatpush3.msra.mxu1 %v2886_v4 }
 0x7dd   : > { %2492 = vmatprep.subr.mxu1 %v2807_v0 }
 0x7de   : > { %2493 = vmatpush3.msra.mxu1 %v2895_v6 }
 0x7df   : > { %2497 = vmatprep.subr.mxu1 %v2807_v0 }
 0x897   : > { %v793_v61 = vpop.f32.mrf.mxu1 }
 0x898   : > { %v797_v62 = vmul.f32 %v793_v61, %v793_v61 }
 0x899   : > { %v2463_v63 = vpop.f32.mrf.mxu1 }
 0x89a   : > { %v798_v1 = vsel %vm231_vm1, %v797_v62, 0.0 }
 0x89b   : > { %799 = vadd.xlane.f32.xlu1 %v798_v1 }
 0x924   : > { %v800_v5 = vpop.xlane.xlu1 %799 }
 0x925   : > { %2689 = vrsqrt.f32 %v800_v5  ;;  %vm803_vm7 = vcmp.eq.f32.partialorder %v800_v5, inf  ;;  %v806_v10 = vand.u32 2147483648, %v800_v5  ;;  %vm805_vm8 = vcmp.eq.f32.partialorder %v800_v5, 0.0 }
 0x932   : > { %v2690_v7 = vpop.eup %2689 }
 0x933   : > { %v802_v8 = vmul.f32 %v2690_v7, %v800_v5 }
 0x935   : > { %v804_v11 = vsel %vm803_vm7, %v800_v5, %v802_v8 }
 0x936   : > { %v807_v12 = vsel %vm805_vm8, %v806_v10, %v804_v11 }
 0x937   : > { %v808_v13 = vadd.f32 1e-06, %v807_v12 }
 0x939   : > { %2691 = vrcp.f32 %v808_v13 }
 0x946   : > { %v2692_v14 = vpop.eup %2691 }
 0x947   : > { %v810_v15 = vmul.f32 %v2692_v14, %v793_v61 }
 0x949   : > { %2473 = vmatmul.mubr.msk.f32.vlgmr.msra.gmra.mxu0 %vm231_vm1, %v810_v15 }
 0x94a   : > { %2476 = vmatpush3.xpose.msk.msra.mxu0 %vm312_vm2, %v2872_v2  ;;  %2483 = vmatprep.mubr.msk.f32.mxu0 %vm2808_vm0, %v2807_v0 }
 0x94b   : > { %2477 = vmatprep.subr.mxu0 %v2807_v0 }
 0x94e   : > { %2478 = vmatpush3.xpose.msk.msra.mxu0 %vm312_vm2, %v2875_v3 }
 0x94f   : > { %2479 = vmatprep.subr.mxu0 %v2807_v0 }
 0x952   : > { %2480 = vmatpush3.xpose.msk.msra.mxu0 %vm312_vm2, %v2886_v4 }
 0x953   : > { %2481 = vmatprep.subr.mxu0 %v2807_v0 }
 0x956   : > { %2482 = vmatpush3.xpose.msk.msra.mxu0 %vm312_vm2, %v2895_v6 }
 0x957   : > { %2508 = vmatprep.subr.mxu0 %v2807_v0 }
 0xa09   : > { %v880_v16 = vpop.f32.mrf.mxu0 }
 0xa0a   : > { %v884_v17 = vmul.f32 20.0, %v880_v16 }
 0xa0b   : > { %v2474_v18 = vpop.f32.mrf.mxu0 }
 0xa0c   : > { %v885_v19 = vadd.f32 %v884_v17, %v2922_v9 }
 0xa0e   : > { %v886_v20 = vsel %vm312_vm2, %v885_v19, -inf }
 0xa0f   : > { %v887_v21 = vrot.slane %v886_v20, 4 }
 0xa11   : > { %v888_v22 = vmax.f32 %v886_v20, %v887_v21 }
 0xa13   : > { %v889_v23 = vrot.slane %v888_v22, 2 }
 0xa15   : > { %v890_v24 = vmax.f32 %v888_v22, %v889_v23 }
 0xa17   : > { %v891_v25 = vrot.slane %v890_v24, 1 }
 0xa19   : > { %v892_v26 = vmax.f32 %v890_v24, %v891_v25 }
 0xa1b   : > { %v893_v27 = vsub.f32 %v885_v19, %v892_v26 }
 0xa1d   : > { %v894_v28 = vmul.f32 1.442695, %v893_v27 }
 0xa1f   : > { %2693 = vpow2.f32 %v894_v28 }
 0xa2c   : > { %v2694_v29 = vpop.eup %2693 }
 0xa2d   : > { %v896_v30 = vsel %vm312_vm2, %v2694_v29, 0.0 }
 0xa2e   : > { %v897_v31 = vrot.slane %v896_v30, 4 }
 0xa30   : > { %v898_v32 = vadd.f32 %v897_v31, %v896_v30 }
 0xa32   : > { %v899_v33 = vrot.slane %v898_v32, 2 }
 0xa34   : > { %v900_v34 = vadd.f32 %v899_v33, %v898_v32 }
 0xa36   : > { %v901_v35 = vrot.slane %v900_v34, 1 }
 0xa38   : > { %v902_v36 = vadd.f32 %v901_v35, %v900_v34 }
 0xa3a   : > { %2695 = vrcp.f32 %v902_v36 }
 0xa47   : > { %v2696_v37 = vpop.eup %2695 }
 0xa48   : > { %v904_v38 = vmul.f32 %v2696_v37, %v2694_v29 }
 0xa4a   : > { %v905_v39 = vsel %vm312_vm2, %v904_v38, 0.0 }
 0xa4b   : > { %906 = vadd.xlane.f32.xlu1 %v905_v39 }
 0xad4   : > { %v907_v40 = vpop.xlane.xlu1 %906 }
 0xad5   : > { %v908_v41 = vadd.f32 1e-06, %v907_v40 }
 0xad7   : > { %2697 = vrcp.f32 %v908_v41 }
 0xae4   : > { %v2698_v42 = vpop.eup %2697 }
 0xae5   : > { %v910_v43 = vmul.f32 %v2698_v42, %v904_v38 }
 0xae7   : > { %2484 = vmatmul.mubr.msk.f32.vlgmr.msra.gmra.mxu0 %vm312_vm2, %v910_v43 }
 0xae8   : > { %2509 = vmatpush3.msra.mxu0 %v2872_v2  ;;  %2516 = vmatprep.mubr.msk.f32.mxu0 %vm2808_vm0, %v2807_v0 }
 0xae9   : > { %2510 = vmatprep.subr.mxu0 %v2807_v0 }
 0xaea   : > { %2511 = vmatpush3.msra.mxu0 %v2875_v3 }
 0xaeb   : > { %2512 = vmatprep.subr.mxu0 %v2807_v0 }
 0xaec   : > { %2513 = vmatpush3.msra.mxu0 %v2886_v4 }
 0xaed   : > { %2514 = vmatprep.subr.mxu0 %v2807_v0 }
 0xaee   : > { %2515 = vmatpush3.msra.mxu0 %v2895_v6 }
 0xaef   : > { %2519 = vmatprep.subr.mxu0 %v2807_v0 }
 0xba7   : > { %v980_v44 = vpop.f32.mrf.mxu0 }
 0xba8   : > { %v984_v45 = vmul.f32 %v980_v44, %v980_v44 }
 0xba9   : > { %v2485_v46 = vpop.f32.mrf.mxu0 }
 0xbaa   : > { %v985_v47 = vsel %vm231_vm1, %v984_v45, 0.0 }
 0xbab   : > { %986 = vadd.xlane.f32.xlu1 %v985_v47 }
 0xc34   : > { %v987_v48 = vpop.xlane.xlu1 %986 }
 0xc35   : > { %2699 = vrsqrt.f32 %v987_v48  ;;  %vm990_vm9 = vcmp.eq.f32.partialorder %v987_v48, inf  ;;  %v993_v51 = vand.u32 2147483648, %v987_v48  ;;  %vm992_vm10 = vcmp.eq.f32.partialorder %v987_v48, 0.0 }
 0xc42   : > { %v2700_v49 = vpop.eup %2699 }
 0xc43   : > { %v989_v50 = vmul.f32 %v2700_v49, %v987_v48 }
 0xc45   : > { %v991_v52 = vsel %vm990_vm9, %v987_v48, %v989_v50 }
 0xc46   : > { %v994_v53 = vsel %vm992_vm10, %v993_v51, %v991_v52 }
 0xc47   : > { %v995_v54 = vadd.f32 1e-06, %v994_v53 }
 0xc49   : > { %2701 = vrcp.f32 %v995_v54 }
 0xc56   : > { %v2702_v55 = vpop.eup %2701 }
 0xc57   : > { %v997_v56 = vmul.f32 %v2702_v55, %v980_v44 }
 0xc59   : > { %2495 = vmatmul.mubr.msk.f32.vlgmr.msra.gmra.mxu1 %vm231_vm1, %v997_v56 }
 0xc5a   : > { %2498 = vmatpush3.xpose.msk.msra.mxu1 %vm312_vm2, %v2872_v2  ;;  %2505 = vmatprep.mubr.msk.f32.mxu1 %vm2808_vm0, %v2807_v0 }
 0xc5b   : > { %2499 = vmatprep.subr.mxu1 %v2807_v0 }
 0xc5e   : > { %2500 = vmatpush3.xpose.msk.msra.mxu1 %vm312_vm2, %v2875_v3 }
 0xc5f   : > { %2501 = vmatprep.subr.mxu1 %v2807_v0 }
 0xc62   : > { %2502 = vmatpush3.xpose.msk.msra.mxu1 %vm312_vm2, %v2886_v4 }
 0xc63   : > { %2503 = vmatprep.subr.mxu1 %v2807_v0 }
 0xc66   : > { %2504 = vmatpush3.xpose.msk.msra.mxu1 %vm312_vm2, %v2895_v6 }
 0xc67   : > { %2530 = vmatprep.subr.mxu1 %v2807_v0 }
 0xd19   : > { %v1067_v57 = vpop.f32.mrf.mxu1 }
 0xd1a   : > { %v1071_v58 = vmul.f32 20.0, %v1067_v57 }
 0xd1b   : > { %v2496_v59 = vpop.f32.mrf.mxu1 }
 0xd1c   : > { %v1072_v60 = vadd.f32 %v1071_v58, %v2922_v9 }
 0xd1e   : > { %v1073_v61 = vsel %vm312_vm2, %v1072_v60, -inf }
 0xd1f   : > { %v1074_v62 = vrot.slane %v1073_v61, 4 }
 0xd21   : > { %v1075_v63 = vmax.f32 %v1073_v61, %v1074_v62 }
 0xd23   : > { %v1076_v1 = vrot.slane %v1075_v63, 2 }
 0xd25   : > { %v1077_v5 = vmax.f32 %v1075_v63, %v1076_v1 }
 0xd27   : > { %v1078_v7 = vrot.slane %v1077_v5, 1 }
 0xd29   : > { %v1079_v8 = vmax.f32 %v1077_v5, %v1078_v7 }
 0xd2b   : > { %v1080_v10 = vsub.f32 %v1072_v60, %v1079_v8 }
 0xd2d   : > { %v1081_v11 = vmul.f32 1.442695, %v1080_v10 }
 0xd2f   : > { %2703 = vpow2.f32 %v1081_v11 }
 0xd3c   : > { %v2704_v12 = vpop.eup %2703 }
 0xd3d   : > { %v1083_v13 = vsel %vm312_vm2, %v2704_v12, 0.0 }
 0xd3e   : > { %v1084_v14 = vrot.slane %v1083_v13, 4 }
 0xd40   : > { %v1085_v15 = vadd.f32 %v1084_v14, %v1083_v13 }
 0xd42   : > { %v1086_v16 = vrot.slane %v1085_v15, 2 }
 0xd44   : > { %v1087_v17 = vadd.f32 %v1086_v16, %v1085_v15 }
 0xd46   : > { %v1088_v18 = vrot.slane %v1087_v17, 1 }
 0xd48   : > { %v1089_v19 = vadd.f32 %v1088_v18, %v1087_v17 }
 0xd4a   : > { %2705 = vrcp.f32 %v1089_v19 }
 0xd57   : > { %v2706_v20 = vpop.eup %2705 }
 0xd58   : > { %v1091_v21 = vmul.f32 %v2706_v20, %v2704_v12 }
 0xd5a   : > { %v1092_v22 = vsel %vm312_vm2, %v1091_v21, 0.0 }
 0xd5b   : > { %1093 = vadd.xlane.f32.xlu1 %v1092_v22 }
 0xde4   : > { %v1094_v23 = vpop.xlane.xlu1 %1093 }
 0xde5   : > { %v1095_v24 = vadd.f32 1e-06, %v1094_v23 }
 0xde7   : > { %2707 = vrcp.f32 %v1095_v24 }
 0xdf4   : > { %v2708_v25 = vpop.eup %2707 }
 0xdf5   : > { %v1097_v26 = vmul.f32 %v2708_v25, %v1091_v21 }
 0xdf7   : > { %2506 = vmatmul.mubr.msk.f32.vlgmr.msra.gmra.mxu1 %vm312_vm2, %v1097_v26 }
 0xdf8   : > { %2531 = vmatpush3.msra.mxu1 %v2872_v2  ;;  %2538 = vmatprep.mubr.msk.f32.mxu1 %vm2808_vm0, %v2807_v0 }
 0xdf9   : > { %2532 = vmatprep.subr.mxu1 %v2807_v0 }
 0xdfa   : > { %2533 = vmatpush3.msra.mxu1 %v2875_v3 }
 0xdfb   : > { %2534 = vmatprep.subr.mxu1 %v2807_v0 }
 0xdfc   : > { %2535 = vmatpush3.msra.mxu1 %v2886_v4 }
 0xdfd   : > { %2536 = vmatprep.subr.mxu1 %v2807_v0 }
 0xdfe   : > { %2537 = vmatpush3.msra.mxu1 %v2895_v6 }
 0xdff   : > { %2541 = vmatprep.subr.mxu1 %v2807_v0 }
 0xeb7   : > { %v1167_v27 = vpop.f32.mrf.mxu1 }
 0xeb8   : > { %v1171_v28 = vmul.f32 %v1167_v27, %v1167_v27 }
 0xeb9   : > { %v2507_v29 = vpop.f32.mrf.mxu1 }
 0xeba   : > { %v1172_v30 = vsel %vm231_vm1, %v1171_v28, 0.0 }
 0xebb   : > { %1173 = vadd.xlane.f32.xlu1 %v1172_v30 }
 0xf44   : > { %v1174_v31 = vpop.xlane.xlu1 %1173 }
 0xf45   : > { %2709 = vrsqrt.f32 %v1174_v31  ;;  %vm1177_vm11 = vcmp.eq.f32.partialorder %v1174_v31, inf  ;;  %v1180_v34 = vand.u32 2147483648, %v1174_v31  ;;  %vm1179_vm12 = vcmp.eq.f32.partialorder %v1174_v31, 0.0 }
 0xf52   : > { %v2710_v32 = vpop.eup %2709 }
 0xf53   : > { %v1176_v33 = vmul.f32 %v2710_v32, %v1174_v31 }
 0xf55   : > { %v1178_v35 = vsel %vm1177_vm11, %v1174_v31, %v1176_v33 }
 0xf56   : > { %v1181_v36 = vsel %vm1179_vm12, %v1180_v34, %v1178_v35 }
 0xf57   : > { %v1182_v37 = vadd.f32 1e-06, %v1181_v36 }
 0xf59   : > { %2711 = vrcp.f32 %v1182_v37 }
 0xf66   : > { %v2712_v38 = vpop.eup %2711 }
 0xf67   : > { %v1184_v39 = vmul.f32 %v2712_v38, %v1167_v27 }
 0xf69   : > { %2517 = vmatmul.mubr.msk.f32.vlgmr.msra.gmra.mxu0 %vm231_vm1, %v1184_v39 }
 0xf6a   : > { %2520 = vmatpush3.xpose.msk.msra.mxu0 %vm312_vm2, %v2872_v2  ;;  %2527 = vmatprep.mubr.msk.f32.mxu0 %vm2808_vm0, %v2807_v0 }
 0xf6b   : > { %2521 = vmatprep.subr.mxu0 %v2807_v0 }
 0xf6e   : > { %2522 = vmatpush3.xpose.msk.msra.mxu0 %vm312_vm2, %v2875_v3 }
 0xf6f   : > { %2523 = vmatprep.subr.mxu0 %v2807_v0 }
 0xf72   : > { %2524 = vmatpush3.xpose.msk.msra.mxu0 %vm312_vm2, %v2886_v4 }
 0xf73   : > { %2525 = vmatprep.subr.mxu0 %v2807_v0 }
 0xf76   : > { %2526 = vmatpush3.xpose.msk.msra.mxu0 %vm312_vm2, %v2895_v6 }
 0xf77   : > { %2552 = vmatprep.subr.mxu0 %v2807_v0 }
0x1029   : > { %v1254_v40 = vpop.f32.mrf.mxu0 }
0x102a   : > { %v1258_v41 = vmul.f32 20.0, %v1254_v40 }
0x102b   : > { %v2518_v42 = vpop.f32.mrf.mxu0 }
0x102c   : > { %v1259_v43 = vadd.f32 %v1258_v41, %v2922_v9 }
0x102e   : > { %v1260_v44 = vsel %vm312_vm2, %v1259_v43, -inf }
0x102f   : > { %v1261_v45 = vrot.slane %v1260_v44, 4 }
0x1031   : > { %v1262_v46 = vmax.f32 %v1260_v44, %v1261_v45 }
0x1033   : > { %v1263_v47 = vrot.slane %v1262_v46, 2 }
0x1035   : > { %v1264_v48 = vmax.f32 %v1262_v46, %v1263_v47 }
0x1037   : > { %v1265_v49 = vrot.slane %v1264_v48, 1 }
0x1039   : > { %v1266_v50 = vmax.f32 %v1264_v48, %v1265_v49 }
0x103b   : > { %v1267_v51 = vsub.f32 %v1259_v43, %v1266_v50 }
0x103d   : > { %v1268_v52 = vmul.f32 1.442695, %v1267_v51 }
0x103f   : > { %2713 = vpow2.f32 %v1268_v52 }
0x104c   : > { %v2714_v53 = vpop.eup %2713 }
0x104d   : > { %v1270_v54 = vsel %vm312_vm2, %v2714_v53, 0.0 }
0x104e   : > { %v1271_v55 = vrot.slane %v1270_v54, 4 }
0x1050   : > { %v1272_v56 = vadd.f32 %v1271_v55, %v1270_v54 }
0x1052   : > { %v1273_v57 = vrot.slane %v1272_v56, 2 }
0x1054   : > { %v1274_v58 = vadd.f32 %v1273_v57, %v1272_v56 }
0x1056   : > { %v1275_v59 = vrot.slane %v1274_v58, 1 }
0x1058   : > { %v1276_v60 = vadd.f32 %v1275_v59, %v1274_v58 }
0x105a   : > { %2715 = vrcp.f32 %v1276_v60  ;;  %v3128_v60 = vld [vmem:[%s2869_s23 + $0x18] sm:$0xff] }
0x1067   : > { %v2716_v61 = vpop.eup %2715 }
0x1068   : > { %v1278_v62 = vmul.f32 %v2716_v61, %v2714_v53  ;;  %v3136_v61 = vld [vmem:[%s2869_s23 + $0x10] sm:$0xff] }
0x106a   : > { %v1279_v63 = vsel %vm312_vm2, %v1278_v62, 0.0 }
0x106b   : > { %1280 = vadd.xlane.f32.xlu0 %v1279_v63  ;;  %v3148_v63 = vld [vmem:[%s2869_s23] sm:$0xff] }
0x10f4   : > { %v1281_v1 = vpop.xlane.xlu0 %1280 }
0x10f5   : > { %v1282_v5 = vadd.f32 1e-06, %v1281_v1 }
0x10f7   : > { %2717 = vrcp.f32 %v1282_v5 }
0x1104   : > { %v2718_v7 = vpop.eup %2717 }
0x1105   : > { %v1284_v8 = vmul.f32 %v2718_v7, %v1278_v62  ;;  %v3142_v62 = vld [vmem:[%s2869_s23 + $0x8] sm:$0xff] }
0x1107   : > { %2528 = vmatmul.mubr.msk.f32.vlgmr.msra.gmra.mxu0 %vm312_vm2, %v1284_v8 }
0x1108   : > { %2553 = vmatpush3.msra.mxu0 %v2872_v2  ;;  %2560 = vmatprep.mubr.msk.f32.mxu0 %vm2808_vm0, %v2807_v0 }
0x1109   : > { %2554 = vmatprep.subr.mxu0 %v2807_v0 }
0x110a   : > { %2555 = vmatpush3.msra.mxu0 %v2875_v3 }
0x110b   : > { %2556 = vmatprep.subr.mxu0 %v2807_v0 }
0x110c   : > { %2557 = vmatpush3.msra.mxu0 %v2886_v4 }
0x110d   : > { %2558 = vmatprep.subr.mxu0 %v2807_v0 }
0x110e   : > { %2559 = vmatpush3.msra.mxu0 %v2895_v6 }
0x110f   : > { %2563 = vmatprep.subr.mxu0 %v2807_v0 }
0x11c7   : > { %v1354_v10 = vpop.f32.mrf.mxu0 }
0x11c8   : > { %v1358_v11 = vmul.f32 %v1354_v10, %v1354_v10 }
0x11c9   : > { %v2529_v12 = vpop.f32.mrf.mxu0 }
0x11ca   : > { %v1359_v13 = vsel %vm231_vm1, %v1358_v11, 0.0 }
0x11cb   : > { %1360 = vadd.xlane.f32.xlu1 %v1359_v13 }
0x1254   : > { %v1361_v14 = vpop.xlane.xlu1 %1360 }
0x1255   : > { %2719 = vrsqrt.f32 %v1361_v14  ;;  %vm1364_vm13 = vcmp.eq.f32.partialorder %v1361_v14, inf  ;;  %v1367_v17 = vand.u32 2147483648, %v1361_v14  ;;  %vm1366_vm14 = vcmp.eq.f32.partialorder %v1361_v14, 0.0 }
0x1262   : > { %v2720_v15 = vpop.eup %2719 }
0x1263   : > { %v1363_v16 = vmul.f32 %v2720_v15, %v1361_v14 }
0x1265   : > { %v1365_v18 = vsel %vm1364_vm13, %v1361_v14, %v1363_v16 }
0x1266   : > { %v1368_v19 = vsel %vm1366_vm14, %v1367_v17, %v1365_v18 }
0x1267   : > { %v1369_v20 = vadd.f32 1e-06, %v1368_v19 }
0x1269   : > { %2721 = vrcp.f32 %v1369_v20 }
0x1276   : > { %v2722_v21 = vpop.eup %2721 }
0x1277   : > { %v1371_v22 = vmul.f32 %v2722_v21, %v1354_v10 }
0x1279   : > { %2539 = vmatmul.mubr.msk.f32.vlgmr.msra.gmra.mxu1 %vm231_vm1, %v1371_v22 }
0x127a   : > { %2542 = vmatpush3.xpose.msk.msra.mxu1 %vm312_vm2, %v2872_v2  ;;  %2549 = vmatprep.mubr.msk.f32.mxu1 %vm2808_vm0, %v2807_v0 }
0x127b   : > { %2543 = vmatprep.subr.mxu1 %v2807_v0 }
0x127e   : > { %2544 = vmatpush3.xpose.msk.msra.mxu1 %vm312_vm2, %v2875_v3 }
0x127f   : > { %2545 = vmatprep.subr.mxu1 %v2807_v0 }
0x1282   : > { %2546 = vmatpush3.xpose.msk.msra.mxu1 %vm312_vm2, %v2886_v4 }
0x1283   : > { %2547 = vmatprep.subr.mxu1 %v2807_v0 }
0x1286   : > { %2548 = vmatpush3.xpose.msk.msra.mxu1 %vm312_vm2, %v2895_v6 }
0x1287   : > { %2574 = vmatprep.subr.mxu1 %v2807_v0 }
0x1339   : > { %v1441_v23 = vpop.f32.mrf.mxu1 }
0x133a   : > { %v1445_v24 = vmul.f32 20.0, %v1441_v23 }
0x133b   : > { %v2540_v25 = vpop.f32.mrf.mxu1 }
0x133c   : > { %v1446_v26 = vadd.f32 %v1445_v24, %v2922_v9 }
0x133e   : > { %v1447_v27 = vsel %vm312_vm2, %v1446_v26, -inf }
0x133f   : > { %v1448_v28 = vrot.slane %v1447_v27, 4 }
0x1341   : > { %v1449_v29 = vmax.f32 %v1447_v27, %v1448_v28 }
0x1343   : > { %v1450_v30 = vrot.slane %v1449_v29, 2 }
0x1345   : > { %v1451_v31 = vmax.f32 %v1449_v29, %v1450_v30 }
0x1347   : > { %v1452_v32 = vrot.slane %v1451_v31, 1 }
0x1349   : > { %v1453_v33 = vmax.f32 %v1451_v31, %v1452_v32 }
0x134b   : > { %v1454_v34 = vsub.f32 %v1446_v26, %v1453_v33 }
0x134d   : > { %v1455_v35 = vmul.f32 1.442695, %v1454_v34 }
0x134f   : > { %2723 = vpow2.f32 %v1455_v35 }
0x135c   : > { %v2724_v36 = vpop.eup %2723 }
0x135d   : > { %v1457_v37 = vsel %vm312_vm2, %v2724_v36, 0.0 }
0x135e   : > { %v1458_v38 = vrot.slane %v1457_v37, 4 }
0x1360   : > { %v1459_v39 = vadd.f32 %v1458_v38, %v1457_v37 }
0x1362   : > { %v1460_v40 = vrot.slane %v1459_v39, 2 }
0x1364   : > { %v1461_v41 = vadd.f32 %v1460_v40, %v1459_v39 }
0x1366   : > { %v1462_v42 = vrot.slane %v1461_v41, 1 }
0x1368   : > { %v1463_v43 = vadd.f32 %v1462_v42, %v1461_v41 }
0x136a   : > { %2725 = vrcp.f32 %v1463_v43 }
0x1377   : > { %v2726_v44 = vpop.eup %2725 }
0x1378   : > { %v1465_v45 = vmul.f32 %v2726_v44, %v2724_v36 }
0x137a   : > { %v1466_v46 = vsel %vm312_vm2, %v1465_v45, 0.0 }
0x137b   : > { %1467 = vadd.xlane.f32.xlu0 %v1466_v46 }
0x1404   : > { %v1468_v47 = vpop.xlane.xlu0 %1467 }
0x1405   : > { %v1469_v48 = vadd.f32 1e-06, %v1468_v47 }
0x1407   : > { %2727 = vrcp.f32 %v1469_v48 }
0x1414   : > { %v2728_v49 = vpop.eup %2727 }
0x1415   : > { %v1471_v50 = vmul.f32 %v2728_v49, %v1465_v45 }
0x1417   : > { %2550 = vmatmul.mubr.msk.f32.vlgmr.msra.gmra.mxu1 %vm312_vm2, %v1471_v50 }
0x1418   : > { %2575 = vmatpush3.msra.mxu1 %v2872_v2  ;;  %2582 = vmatprep.mubr.msk.f32.mxu1 %vm2808_vm0, %v2807_v0 }
0x1419   : > { %2576 = vmatprep.subr.mxu1 %v2807_v0 }
0x141a   : > { %2577 = vmatpush3.msra.mxu1 %v2875_v3 }
0x141b   : > { %2578 = vmatprep.subr.mxu1 %v2807_v0 }
0x141c   : > { %2579 = vmatpush3.msra.mxu1 %v2886_v4 }
0x141d   : > { %2580 = vmatprep.subr.mxu1 %v2807_v0 }
0x141e   : > { %2581 = vmatpush3.msra.mxu1 %v2895_v6 }
0x141f   : > { %2585 = vmatprep.subr.mxu1 %v2807_v0 }
0x14d7   : > { %v1541_v51 = vpop.f32.mrf.mxu1 }
0x14d8   : > { %v1545_v52 = vmul.f32 %v1541_v51, %v1541_v51 }
0x14d9   : > { %v2551_v2 = vpop.f32.mrf.mxu1 }
0x14da   : > { %v1546_v53 = vsel %vm231_vm1, %v1545_v52, 0.0 }
0x14db   : > { %1547 = vadd.xlane.f32.xlu1 %v1546_v53 }
0x1564   : > { %v1548_v54 = vpop.xlane.xlu1 %1547 }
0x1565   : > { %2729 = vrsqrt.f32 %v1548_v54  ;;  %vm1551_vm15 = vcmp.eq.f32.partialorder %v1548_v54, inf  ;;  %v1554_v4 = vand.u32 2147483648, %v1548_v54  ;;  %vm1553_vm3 = vcmp.eq.f32.partialorder %v1548_v54, 0.0 }
0x1572   : > { %v2730_v3 = vpop.eup %2729 }
0x1573   : > { %v1550_v55 = vmul.f32 %v2730_v3, %v1548_v54 }
0x1575   : > { %v1552_v56 = vsel %vm1551_vm15, %v1548_v54, %v1550_v55 }
0x1576   : > { %v1555_v6 = vsel %vm1553_vm3, %v1554_v4, %v1552_v56 }
0x1577   : > { %v1556_v57 = vadd.f32 1e-06, %v1555_v6 }
0x1579   : > { %2731 = vrcp.f32 %v1556_v57 }
0x1586   : > { %v2732_v58 = vpop.eup %2731 }
0x1587   : > { %v1558_v59 = vmul.f32 %v2732_v58, %v1541_v51 }
0x1589   : > { %2561 = vmatmul.mubr.msk.f32.vlgmr.msra.gmra.mxu0 %vm231_vm1, %v1558_v59 }
0x158a   : > { %2564 = vmatpush3.xpose.msk.msra.mxu0 %vm312_vm2, %v3128_v60  ;;  %2571 = vmatprep.mubr.msk.f32.mxu0 %vm2808_vm0, %v2807_v0 }
0x158b   : > { %2565 = vmatprep.subr.mxu0 %v2807_v0 }
0x158e   : > { %2566 = vmatpush3.xpose.msk.msra.mxu0 %vm312_vm2, %v3136_v61 }
0x158f   : > { %2567 = vmatprep.subr.mxu0 %v2807_v0 }
0x1592   : > { %2568 = vmatpush3.xpose.msk.msra.mxu0 %vm312_vm2, %v3142_v62 }
0x1593   : > { %2569 = vmatprep.subr.mxu0 %v2807_v0 }
0x1596   : > { %2570 = vmatpush3.xpose.msk.msra.mxu0 %vm312_vm2, %v3148_v63 }
0x1597   : > { %2596 = vmatprep.subr.mxu0 %v2807_v0 }
0x1649   : > { %v1628_v1 = vpop.f32.mrf.mxu0 }
0x164a   : > { %v1632_v5 = vmul.f32 20.0, %v1628_v1 }
0x164b   : > { %v2562_v7 = vpop.f32.mrf.mxu0 }
0x164c   : > { %v1633_v8 = vadd.f32 %v1632_v5, %v2922_v9 }
0x164e   : > { %v1634_v10 = vsel %vm312_vm2, %v1633_v8, -inf }
0x164f   : > { %v1635_v11 = vrot.slane %v1634_v10, 4 }
0x1651   : > { %v1636_v12 = vmax.f32 %v1634_v10, %v1635_v11 }
0x1653   : > { %v1637_v13 = vrot.slane %v1636_v12, 2 }
0x1655   : > { %v1638_v14 = vmax.f32 %v1636_v12, %v1637_v13 }
0x1657   : > { %v1639_v15 = vrot.slane %v1638_v14, 1 }
0x1659   : > { %v1640_v16 = vmax.f32 %v1638_v14, %v1639_v15 }
0x165b   : > { %v1641_v17 = vsub.f32 %v1633_v8, %v1640_v16 }
0x165d   : > { %v1642_v18 = vmul.f32 1.442695, %v1641_v17 }
0x165f   : > { %2733 = vpow2.f32 %v1642_v18 }
0x166c   : > { %v2734_v19 = vpop.eup %2733 }
0x166d   : > { %v1644_v20 = vsel %vm312_vm2, %v2734_v19, 0.0 }
0x166e   : > { %v1645_v21 = vrot.slane %v1644_v20, 4 }
0x1670   : > { %v1646_v22 = vadd.f32 %v1645_v21, %v1644_v20 }
0x1672   : > { %v1647_v23 = vrot.slane %v1646_v22, 2 }
0x1674   : > { %v1648_v24 = vadd.f32 %v1647_v23, %v1646_v22 }
0x1676   : > { %v1649_v25 = vrot.slane %v1648_v24, 1 }
0x1678   : > { %v1650_v26 = vadd.f32 %v1649_v25, %v1648_v24 }
0x167a   : > { %2735 = vrcp.f32 %v1650_v26 }
0x1687   : > { %v2736_v27 = vpop.eup %2735 }
0x1688   : > { %v1652_v28 = vmul.f32 %v2736_v27, %v2734_v19 }
0x168a   : > { %v1653_v29 = vsel %vm312_vm2, %v1652_v28, 0.0 }
0x168b   : > { %1654 = vadd.xlane.f32.xlu0 %v1653_v29 }
0x1714   : > { %v1655_v30 = vpop.xlane.xlu0 %1654 }
0x1715   : > { %v1656_v31 = vadd.f32 1e-06, %v1655_v30 }
0x1717   : > { %2737 = vrcp.f32 %v1656_v31 }
0x1724   : > { %v2738_v32 = vpop.eup %2737 }
0x1725   : > { %v1658_v33 = vmul.f32 %v2738_v32, %v1652_v28 }
0x1727   : > { %2572 = vmatmul.mubr.msk.f32.vlgmr.msra.gmra.mxu0 %vm312_vm2, %v1658_v33 }
0x1728   : > { %2597 = vmatpush3.msra.mxu0 %v3128_v60  ;;  %2604 = vmatprep.mubr.msk.f32.mxu0 %vm2808_vm0, %v2807_v0 }
0x1729   : > { %2598 = vmatprep.subr.mxu0 %v2807_v0 }
0x172a   : > { %2599 = vmatpush3.msra.mxu0 %v3136_v61 }
0x172b   : > { %2600 = vmatprep.subr.mxu0 %v2807_v0 }
0x172c   : > { %2601 = vmatpush3.msra.mxu0 %v3142_v62 }
0x172d   : > { %2602 = vmatprep.subr.mxu0 %v2807_v0 }
0x172e   : > { %2603 = vmatpush3.msra.mxu0 %v3148_v63 }
0x172f   : > { %2607 = vmatprep.subr.mxu0 %v2807_v0 }
0x17e7   : > { %v1728_v34 = vpop.f32.mrf.mxu0 }
0x17e8   : > { %v1732_v35 = vmul.f32 %v1728_v34, %v1728_v34 }
0x17e9   : > { %v2573_v36 = vpop.f32.mrf.mxu0 }
0x17ea   : > { %v1733_v37 = vsel %vm231_vm1, %v1732_v35, 0.0 }
0x17eb   : > { %1734 = vadd.xlane.f32.xlu1 %v1733_v37 }
0x1874   : > { %v1735_v38 = vpop.xlane.xlu1 %1734 }
0x1875   : > { %2739 = vrsqrt.f32 %v1735_v38  ;;  %vm1738_vm4 = vcmp.eq.f32.partialorder %v1735_v38, inf  ;;  %v1741_v41 = vand.u32 2147483648, %v1735_v38  ;;  %vm1740_vm5 = vcmp.eq.f32.partialorder %v1735_v38, 0.0 }
0x1882   : > { %v2740_v39 = vpop.eup %2739 }
0x1883   : > { %v1737_v40 = vmul.f32 %v2740_v39, %v1735_v38 }
0x1885   : > { %v1739_v42 = vsel %vm1738_vm4, %v1735_v38, %v1737_v40 }
0x1886   : > { %v1742_v43 = vsel %vm1740_vm5, %v1741_v41, %v1739_v42 }
0x1887   : > { %v1743_v44 = vadd.f32 1e-06, %v1742_v43 }
0x1889   : > { %2741 = vrcp.f32 %v1743_v44 }
0x1896   : > { %v2742_v45 = vpop.eup %2741 }
0x1897   : > { %v1745_v46 = vmul.f32 %v2742_v45, %v1728_v34 }
0x1899   : > { %2583 = vmatmul.mubr.msk.f32.vlgmr.msra.gmra.mxu1 %vm231_vm1, %v1745_v46 }
0x189a   : > { %2586 = vmatpush3.xpose.msk.msra.mxu1 %vm312_vm2, %v3128_v60  ;;  %2593 = vmatprep.mubr.msk.f32.mxu1 %vm2808_vm0, %v2807_v0 }
0x189b   : > { %2587 = vmatprep.subr.mxu1 %v2807_v0 }
0x189e   : > { %2588 = vmatpush3.xpose.msk.msra.mxu1 %vm312_vm2, %v3136_v61 }
0x189f   : > { %2589 = vmatprep.subr.mxu1 %v2807_v0 }
0x18a2   : > { %2590 = vmatpush3.xpose.msk.msra.mxu1 %vm312_vm2, %v3142_v62 }
0x18a3   : > { %2591 = vmatprep.subr.mxu1 %v2807_v0 }
0x18a6   : > { %2592 = vmatpush3.xpose.msk.msra.mxu1 %vm312_vm2, %v3148_v63 }
0x1959   : > { %v1815_v47 = vpop.f32.mrf.mxu1 }
0x195a   : > { %v1819_v48 = vmul.f32 20.0, %v1815_v47 }
0x195b   : > { %v2584_v49 = vpop.f32.mrf.mxu1 }
0x195c   : > { %v1820_v50 = vadd.f32 %v1819_v48, %v2922_v9 }
0x195e   : > { %v1821_v51 = vsel %vm312_vm2, %v1820_v50, -inf }
0x195f   : > { %v1822_v52 = vrot.slane %v1821_v51, 4 }
0x1961   : > { %v1823_v2 = vmax.f32 %v1821_v51, %v1822_v52 }
0x1963   : > { %v1824_v53 = vrot.slane %v1823_v2, 2 }
0x1965   : > { %v1825_v54 = vmax.f32 %v1823_v2, %v1824_v53 }
0x1967   : > { %v1826_v3 = vrot.slane %v1825_v54, 1 }
0x1969   : > { %v1827_v55 = vmax.f32 %v1825_v54, %v1826_v3 }
0x196b   : > { %v1828_v4 = vsub.f32 %v1820_v50, %v1827_v55 }
0x196d   : > { %v1829_v56 = vmul.f32 1.442695, %v1828_v4 }
0x196f   : > { %2743 = vpow2.f32 %v1829_v56 }
0x197c   : > { %v2744_v6 = vpop.eup %2743 }
0x197d   : > { %v1831_v57 = vsel %vm312_vm2, %v2744_v6, 0.0 }
0x197e   : > { %v1832_v58 = vrot.slane %v1831_v57, 4 }
0x1980   : > { %v1833_v59 = vadd.f32 %v1832_v58, %v1831_v57 }
0x1982   : > { %v1834_v1 = vrot.slane %v1833_v59, 2 }
0x1984   : > { %v1835_v5 = vadd.f32 %v1834_v1, %v1833_v59 }
0x1986   : > { %v1836_v7 = vrot.slane %v1835_v5, 1 }
0x1988   : > { %v1837_v8 = vadd.f32 %v1836_v7, %v1835_v5 }
0x198a   : > { %2745 = vrcp.f32 %v1837_v8 }
0x1997   : > { %v2746_v10 = vpop.eup %2745 }
0x1998   : > { %v1839_v11 = vmul.f32 %v2746_v10, %v2744_v6 }
0x199a   : > { %v1840_v12 = vsel %vm312_vm2, %v1839_v11, 0.0 }
0x199b   : > { %1841 = vadd.xlane.f32.xlu0 %v1840_v12 }
0x1a24   : > { %v1842_v13 = vpop.xlane.xlu0 %1841 }
0x1a25   : > { %v1843_v14 = vadd.f32 1e-06, %v1842_v13 }
0x1a27   : > { %2747 = vrcp.f32 %v1843_v14 }
0x1a34   : > { %v2748_v15 = vpop.eup %2747 }
0x1a35   : > { %v1845_v16 = vmul.f32 %v2748_v15, %v1839_v11 }
0x1a37   : > { %2594 = vmatmul.mubr.msk.f32.vlgmr.msra.gmra.mxu1 %vm312_vm2, %v1845_v16 }
0x1af7   : > { %v1915_v17 = vpop.f32.mrf.mxu1 }
0x1af8   : > { %v1919_v18 = vmul.f32 %v1915_v17, %v1915_v17 }
0x1af9   : > { %v2595_v19 = vpop.f32.mrf.mxu1 }
0x1afa   : > { %v1920_v20 = vsel %vm231_vm1, %v1919_v18, 0.0 }
0x1afb   : > { %1921 = vadd.xlane.f32.xlu1 %v1920_v20 }
0x1b84   : > { %v1922_v21 = vpop.xlane.xlu1 %1921 }
0x1b85   : > { %2749 = vrsqrt.f32 %v1922_v21  ;;  %vm1925_vm6 = vcmp.eq.f32.partialorder %v1922_v21, inf  ;;  %v1928_v24 = vand.u32 2147483648, %v1922_v21  ;;  %vm1927_vm7 = vcmp.eq.f32.partialorder %v1922_v21, 0.0 }
0x1b92   : > { %v2750_v22 = vpop.eup %2749 }
0x1b93   : > { %v1924_v23 = vmul.f32 %v2750_v22, %v1922_v21 }
0x1b95   : > { %v1926_v25 = vsel %vm1925_vm6, %v1922_v21, %v1924_v23 }
0x1b96   : > { %v1929_v26 = vsel %vm1927_vm7, %v1928_v24, %v1926_v25 }
0x1b97   : > { %v1930_v27 = vadd.f32 1e-06, %v1929_v26 }
0x1b99   : > { %2751 = vrcp.f32 %v1930_v27 }
0x1ba6   : > { %v2752_v28 = vpop.eup %2751 }
0x1ba7   : > { %v1932_v29 = vmul.f32 %v2752_v28, %v1915_v17 }
0x1ba9   : > { %2605 = vmatmul.mubr.msk.f32.vlgmr.msra.gmra.mxu0 %vm231_vm1, %v1932_v29 }
0x1baa   : > { %2608 = vmatpush3.xpose.msk.msra.mxu0 %vm312_vm2, %v3128_v60  ;;  %2615 = vmatprep.mubr.msk.f32.mxu0 %vm2808_vm0, %v2807_v0 }
0x1bab   : > { %2609 = vmatprep.subr.mxu0 %v2807_v0 }
0x1bae   : > { %2610 = vmatpush3.xpose.msk.msra.mxu0 %vm312_vm2, %v3136_v61 }
0x1baf   : > { %2611 = vmatprep.subr.mxu0 %v2807_v0 }
0x1bb2   : > { %2612 = vmatpush3.xpose.msk.msra.mxu0 %vm312_vm2, %v3142_v62 }
0x1bb3   : > { %2613 = vmatprep.subr.mxu0 %v2807_v0 }
0x1bb6   : > { %2614 = vmatpush3.xpose.msk.msra.mxu0 %vm312_vm2, %v3148_v63 }
0x1c69   : > { %v2002_v30 = vpop.f32.mrf.mxu0 }
0x1c6a   : > { %v2006_v60 = vmul.f32 20.0, %v2002_v30 }
0x1c6b   : > { %v2606_v31 = vpop.f32.mrf.mxu0 }
0x1c6c   : > { %v2007_v32 = vadd.f32 %v2006_v60, %v2922_v9 }
0x1c6e   : > { %v2008_v33 = vsel %vm312_vm2, %v2007_v32, -inf }
0x1c6f   : > { %v2009_v34 = vrot.slane %v2008_v33, 4 }
0x1c71   : > { %v2010_v35 = vmax.f32 %v2008_v33, %v2009_v34 }
0x1c73   : > { %v2011_v61 = vrot.slane %v2010_v35, 2 }
0x1c75   : > { %v2012_v36 = vmax.f32 %v2010_v35, %v2011_v61 }
0x1c77   : > { %v2013_v37 = vrot.slane %v2012_v36, 1 }
0x1c79   : > { %v2014_v38 = vmax.f32 %v2012_v36, %v2013_v37 }
0x1c7b   : > { %v2015_v39 = vsub.f32 %v2007_v32, %v2014_v38 }
0x1c7d   : > { %v2016_v62 = vmul.f32 1.442695, %v2015_v39 }
0x1c7f   : > { %2753 = vpow2.f32 %v2016_v62 }
0x1c8c   : > { %v2754_v0 = vpop.eup %2753 }
0x1c8d   : > { %v2018_v40 = vsel %vm312_vm2, %v2754_v0, 0.0 }
0x1c8e   : > { %v2019_v63 = vrot.slane %v2018_v40, 4 }
0x1c90   : > { %v2020_v41 = vadd.f32 %v2019_v63, %v2018_v40 }
0x1c92   : > { %v2021_v42 = vrot.slane %v2020_v41, 2 }
0x1c94   : > { %v2022_v43 = vadd.f32 %v2021_v42, %v2020_v41 }
0x1c96   : > { %v2023_v44 = vrot.slane %v2022_v43, 1 }
0x1c98   : > { %v2024_v9 = vadd.f32 %v2023_v44, %v2022_v43 }
0x1c9a   : > { %2755 = vrcp.f32 %v2024_v9 }
0x1ca7   : > { %v2756_v45 = vpop.eup %2755 }
0x1ca8   : > { %v2026_v46 = vmul.f32 %v2756_v45, %v2754_v0 }
0x1caa   : > { %v2027_v47 = vsel %vm312_vm2, %v2026_v46, 0.0 }
0x1cab   : > { %2028 = vadd.xlane.f32.xlu0 %v2027_v47 }
0x1d34   : > { %v2029_v48 = vpop.xlane.xlu0 %2028 }
0x1d35   : > { %v2030_v49 = vadd.f32 1e-06, %v2029_v48 }
0x1d37   : > { %2757 = vrcp.f32 %v2030_v49 }
0x1d44   : > { %v2758_v50 = vpop.eup %2757 }
0x1d45   : > { %v2032_v51 = vmul.f32 %v2758_v50, %v2026_v46 }
0x1d47   : > { %2616 = vmatmul.mubr.msk.f32.vlgmr.msra.gmra.mxu0 %vm312_vm2, %v2032_v51 }
0x1e07   : > { %v2102_v52 = vpop.f32.mrf.mxu0 }
0x1e08   : > { %v2106_v2 = vmul.f32 %v2102_v52, %v2102_v52 }
0x1e09   : > { %v2617_v53 = vpop.f32.mrf.mxu0 }
0x1e0a   : > { %v2107_v54 = vsel %vm231_vm1, %v2106_v2, 0.0 }
0x1e0b   : > { %2108 = vadd.xlane.f32.xlu1 %v2107_v54 }
0x1e94   : > { %v2109_v3 = vpop.xlane.xlu1 %2108 }
0x1e95   : > { %2759 = vrsqrt.f32 %v2109_v3  ;;  %vm2112_vm0 = vcmp.eq.f32.partialorder %v2109_v3, inf  ;;  %v2115_v56 = vand.u32 2147483648, %v2109_v3  ;;  %vm2114_vm8 = vcmp.eq.f32.partialorder %v2109_v3, 0.0 }
0x1ea2   : > { %v2760_v55 = vpop.eup %2759 }
0x1ea3   : > { %v2111_v4 = vmul.f32 %v2760_v55, %v2109_v3 }
0x1ea5   : > { %v2113_v6 = vsel %vm2112_vm0, %v2109_v3, %v2111_v4 }
0x1ea6   : > { %v2116_v57 = vsel %vm2114_vm8, %v2115_v56, %v2113_v6 }
0x1ea7   : > { %v2117_v58 = vadd.f32 1e-06, %v2116_v57 }
0x1ea9   : > { %2761 = vrcp.f32 %v2117_v58 }
0x1eb6   : > { %v2762_v59 = vpop.eup %2761 }
0x1eb7   : > { %v2119_v1 = vmul.f32 %v2762_v59, %v2102_v52 }
0x1eb9   : > { %2120 = vst.msk [vmem:[%s224_s8] sm:$0xff] %vm231_vm1, %v2119_v1 }
0x1eba PF: > { %s13_s16 = sadd.s32 1, %s2805_s16   ;;  %s3233_s12 = smov %s2797_s14 }
0x1ebb   : > { %p10_p7 = scmp.ge.s32.totalorder %s13_s16, 8   ;;  %s3234_s13 = smov %s2801_s15 }
0x1ebc   : > { %s3235_s14 = smov %s3238_s17  ;;  %s3236_s15 = smov %s3242_s18 }
0x1ebd   :  { %12 = sbr.rel (!%p10_p7) target bundleno = 3 (0x3), region = 68 }

// kernel: rpmms_forward.62
= control target key start
LH: loop header
LB: loop body
LE: loop exit
PB: predicated region body
PF: predicated region fallthrough
CT: control target
= control target key end

     0   :  { %s791_s12 = smov 0   ;;  %s793_s13 = smov 0   ;;  %s922_s0 = inlined_call_operand.vmem [shape: bf16[2,32,288], index: 0, kind: input, shape index: {}]   ;;  %s923_s1 = inlined_call_operand.vmem [shape: bf16[576,128], index: 1, kind: input, shape index: {}]   ;;  %s924_s2 = inlined_call_operand.vmem [shape: f32[32,1], index: 2, kind: input, shape index: {}]   ;;  %s925_s3 = inlined_call_operand.vmem [shape: f32[32,128], index: 3, kind: output, shape index: {}]  }
   0x1   :  { %s795_s14 = smov 0  }
   0x2 LB: > { %s22_s15 = sadd.s32 1, %s763_s13  ;;  %p616_p0 = scmp.ge.s32.totalorder %s767_s14, 1  ;;  %s767_s14 = sphi %s795_s14, %s13_s14   ;;  %s763_s13 = sphi %s793_s13, %s927_s13   ;;  %s759_s12 = sphi %s791_s12, %s926_s12  }
   0x3   : > { %p23_p1 = scmp.ge.s32.totalorder %s22_s15, 2  ;;  %p155_p2 = scmp.lt.s32.totalorder %s767_s14, 3 }
   0x5   : > { %s929_s15 = smov (%p23_p1, %s22_s15), 0  ;;  %p156_p3 = pnand %p616_p0, %p155_p2 }
   0x6   : > { %s181_s16 = smul.u32 (!%p156_p3), 36, %s759_s12  ;;  %p618_p5 = scmp.ne.s32.totalorder (!%p156_p3), %s759_s12, 0 }
   0x7   : > { %159 = sbr.rel (%p156_p3) target bundleno = 402 (0x192), region = 32 }
   0x8   : > { %p182_p4 = scmp.lt.s32.totalorder (!%p156_p3), %s181_s16, 71 }
   0xc   : > { %s931_s16 = smov (!%p182_p4, %s181_s16), 71  ;;  %198 = sbr.rel (%p618_p5) target bundleno = 20 (0x14), region = 36 }
   0xd   : > { %s617_s17 = sshll.u32 %s931_s16, 2 }
   0xe   : > { %s815_s20 = scalar_lea.vmem %s923_s1, %s617_s17 }
  0x11   : > { %v769_v0 = vmov 0.0  }
  0x12   : > { %199 = vst [vmem:[%s925_s3] sm:$0xff] %v769_v0  ;;  %200 = vst [vmem:[%s925_s3 + $0x8] sm:$0xff] %v769_v0 }
  0x13   : > { %201 = vst [vmem:[%s925_s3 + $0x10] sm:$0xff] %v769_v0  ;;  %202 = vst [vmem:[%s925_s3 + $0x18] sm:$0xff] %v769_v0 }
  0x14 PF: > { %v717_v1 = vld [vmem:[%s815_s20 + $0x78] sm:$0xff]   ;;  %v719_v3 = vld [vmem:[%s815_s20 + $0x70] sm:$0xff]   ;;  %v721_v5 = vld [vmem:[%s815_s20 + $0x68] sm:$0xff]   ;;  %s650_s29 = smul.u32 48, %s759_s12  ;;  %vm392_vm0 = vcmask 261120   ;;  %p646_p6 = scmp.ne.s32.totalorder %s759_s12, 1 }
  0x15   : > { %v718_v2 = vld [vmem:[%s815_s20 + $0x38] sm:$0xff]   ;;  %651 = vmatprep.subr.bf16.mxu0 %v717_v1  ;;  %v720_v4 = vld [vmem:[%s815_s20 + $0x30] sm:$0xff]   ;;  %v722_v6 = vld [vmem:[%s815_s20 + $0x28] sm:$0xff]  }
  0x16   : > { %652 = vmatpush3.bf16.msra.mxu0 %v718_v2  ;;  %v723_v7 = vld [vmem:[%s815_s20 + $0x60] sm:$0xff]   ;;  %v725_v9 = vld [vmem:[%s815_s20 + $0x58] sm:$0xff]   ;;  %v731_v10 = vld [vmem:[%s815_s20 + $0x88] sm:$0xff]   ;;  %s245_s5 = scalar_lea.vmem %s922_s0, %s650_s29 }
  0x17   : > { %653 = vmatprep.subr.bf16.mxu0 %v719_v3  ;;  %v724_v8 = vld [vmem:[%s815_s20 + $0x20] sm:$0xff]   ;;  %v726_v11 = vld [vmem:[%s815_s20 + $0x18] sm:$0xff]   ;;  %v727_v12 = vld [vmem:[%s815_s20 + $0x50] sm:$0xff]   ;;  %683 = vmatprep.subr.bf16.mxu1 %v731_v10 }
  0x18   : > { %v728_v13 = vld [vmem:[%s815_s20 + $0x10] sm:$0xff]   ;;  %684 = vmatpush3.bf16.msra.mxu1 %v731_v10  ;;  %v734_v14 = vld [vmem:[%s815_s20 + $0x80] sm:$0xff]   ;;  %v729_v15 = vld [vmem:[%s815_s20 + $0x48] sm:$0xff]  }
  0x19   : > { %685 = vmatprep.subr.bf16.mxu1 %v734_v14  ;;  %v737_v16 = vld [vmem:[%s245_s5 + $0x4] ss:$12 sps:$4 sm:$0xff]   ;;  %v738_v17 = vld [vmem:[%s245_s5 + $0x8] ss:$12 sps:$4 sm:$0xff]   ;;  %v739_v18 = vld [vmem:[%s245_s5 + $0x20] ss:$12 sps:$4 sm:$0xff]  }
  0x1a   : > { %654 = vmatpush3.bf16.msra.mxu0 %v720_v4  ;;  %431 = vmatprep.mubr.bf16.mxu0 %v737_v16  ;;  %v730_v19 = vld [vmem:[%s815_s20 + $0x8] sm:$0xff]   ;;  %v732_v20 = vld [vmem:[%s815_s20 + $0x40] sm:$0xff]   ;;  %v241_v44 = vld [vmem:[%s925_s3 + $0x10] sm:$0xff] }
  0x1b   : > { %655 = vmatprep.subr.bf16.mxu0 %v721_v5  ;;  %687 = vmatprep.mubr.msk.bf16.mxu1 %vm392_vm0, %v738_v17  ;;  %v733_v21 = vld [vmem:[%s815_s20] sm:$0xff]   ;;  %v740_v23 = vld [vmem:[%s245_s5 + $0x1c] ss:$12 sps:$4 sm:$0xff]  }
  0x1c   : > { %686 = vmatpush3.bf16.msra.mxu1 %v734_v14  ;;  %v735_v22 = vld [vmem:[%s245_s5] ss:$12 sps:$4 sm:$0xff]   ;;  %v742_v24 = vld [vmem:[%s245_s5 + $0x18] ss:$12 sps:$4 sm:$0xff]  }
  0x1d   : > { %v239_v32 = vld [vmem:[%s925_s3] sm:$0xff]  ;;  %v240_v39 = vld [vmem:[%s925_s3 + $0x8] sm:$0xff]  ;;  %v242_v50 = vld [vmem:[%s925_s3 + $0x18] sm:$0xff] }
  0x1e   : > { %656 = vmatpush3.bf16.msra.mxu0 %v722_v6 }
  0x1f   : > { %657 = vmatprep.subr.bf16.mxu0 %v723_v7  ;;  %688 = vmatmul.mubr.msk.bf16.vlgmr.msra.gmra.mxu1 %vm392_vm0, %v739_v18 }
  0x22   : > { %658 = vmatpush3.bf16.msra.mxu0 %v724_v8 }
  0x23   : > { %659 = vmatprep.subr.bf16.mxu0 %v725_v9 }
  0x26   : > { %660 = vmatpush3.bf16.msra.mxu0 %v726_v11 }
  0x27   : > { %661 = vmatprep.subr.bf16.mxu0 %v727_v12 }
  0x2a   : > { %662 = vmatpush3.bf16.msra.mxu0 %v728_v13 }
  0x2b   : > { %663 = vmatprep.subr.bf16.mxu0 %v729_v15 }
  0x2e   : > { %664 = vmatpush3.bf16.msra.mxu0 %v730_v19 }
  0x2f   : > { %665 = vmatprep.subr.bf16.mxu0 %v732_v20 }
  0x32   : > { %666 = vmatpush3.bf16.msra.mxu0 %v733_v21 }
  0x35   : > { %432 = vmatmul.mubr.bf16.vlgmr.msra.gmra.mxu0 %v735_v22 }
  0x36   : > { %439 = vmatprep.mubr.bf16.mxu0 %v740_v23 }
  0x3d   : > { %440 = vmatmul.mubr.bf16.gmra.mxu0 %v742_v24 }
  0xdf   : > { %v689_v25 = vpop.f32.mrf.mxu1 }
  0xe1   : > { %v482_v26 = vpop.f32.mrf.mxu1 }
  0xe3   : > { %v690_v29 = vpop.f32.mrf.mxu1 }
  0xe5   : > { %v485_v35 = vpop.f32.mrf.mxu1 }
  0xf5   : > { %v667_v27 = vpop.f32.mrf.mxu0 }
  0xf7   : > { %v668_v28 = vpop.f32.mrf.mxu0 }
  0xf8   : > { %v669_v30 = vadd.f32 %v668_v28, %v667_v27 }
  0xf9   : > { %v670_v31 = vpop.f32.mrf.mxu0 }
  0xfa   : > { %v483_v33 = vadd.f32 %v669_v30, %v482_v26 }
  0xfb   : > { %v671_v34 = vpop.f32.mrf.mxu0 }
  0xfc   : > { %v497_v36 = vadd.f32 %v483_v33, %v239_v32  ;;  %v672_v37 = vadd.f32 %v671_v34, %v670_v31 }
  0xfd   : > { %v673_v38 = vpop.f32.mrf.mxu0 }
  0xfe   : > { %501 = vst [vmem:[%s925_s3] sm:$0xff] %v497_v36  ;;  %v486_v40 = vadd.f32 %v672_v37, %v485_v35 }
  0xff   : > { %v674_v41 = vpop.f32.mrf.mxu0 }
 0x100   : > { %v498_v42 = vadd.f32 %v486_v40, %v240_v39  ;;  %v675_v43 = vadd.f32 %v674_v41, %v673_v38 }
 0x101   : > { %v676_v45 = vpop.f32.mrf.mxu0 }
 0x102   : > { %502 = vst [vmem:[%s925_s3 + $0x8] sm:$0xff] %v498_v42  ;;  %v491_v46 = vadd.f32 %v689_v25, %v675_v43 }
 0x103   : > { %v677_v47 = vpop.f32.mrf.mxu0 }
 0x104   : > { %v499_v48 = vadd.f32 %v491_v46, %v241_v44  ;;  %v678_v49 = vadd.f32 %v677_v47, %v676_v45 }
 0x106   : > { %503 = vst [vmem:[%s925_s3 + $0x10] sm:$0xff] %v499_v48  ;;  %v494_v51 = vadd.f32 %v690_v29, %v678_v49  ;;  %508 = sbr.rel (%p646_p6) target bundleno = 402 (0x192), region = 40 }
 0x108   : > { %v500_v52 = vadd.f32 %v494_v51, %v242_v50 }
 0x10a   : > { %504 = vst [vmem:[%s925_s3 + $0x18] sm:$0xff] %v500_v52 }
 0x10b   : > { %v515_v53 = vld [vmem:[%s924_s2 + $0x10] sm:$0xff]  ;;  %v513_v54 = vld [vmem:[%s924_s2] sm:$0xff]  ;;  %v770_v55 = vmov 0   ;;  %v516_v56 = vld [vmem:[%s924_s2 + $0x18] sm:$0xff] }
 0x10c   : > { %744 = vset.pattern.permute.xlu1 %v770_v55  ;;  %743 = vset.pattern.permute.xlu0 %v770_v55  ;;  %v514_v57 = vld [vmem:[%s924_s2 + $0x8] sm:$0xff]  ;;  %v509_v59 = vld [vmem:[%s925_s3] sm:$0xff] }
 0x10d   : > { %529 = vperm.xlu1 %744, %v515_v53   ;;  %519 = vperm.xlu0 %743, %v513_v54   ;;  %v511_v58 = vld [vmem:[%s925_s3 + $0x10] sm:$0xff]  ;;  %v510_v1 = vld [vmem:[%s925_s3 + $0x8] sm:$0xff] }
 0x111   : > { %534 = vperm.xlu1 %744, %v516_v56   ;;  %524 = vperm.xlu0 %743, %v514_v57   ;;  %v512_v0 = vld [vmem:[%s925_s3 + $0x18] sm:$0xff] }
 0x188   : > { %v530_v60 = vpop.permute.xlu1 %529  ;;  %v520_v61 = vpop.permute.xlu0 %519 }
 0x189   : > { %v539_v62 = vadd.f32 %v530_v60, %v511_v58  ;;  %v537_v63 = vadd.f32 %v520_v61, %v509_v59 }
 0x18b   : > { %v543_v2 = vmax.f32 %v539_v62, 0.0  ;;  %v541_v3 = vmax.f32 %v537_v63, 0.0 }
 0x18c   : > { %v535_v4 = vpop.permute.xlu1 %534  ;;  %v525_v5 = vpop.permute.xlu0 %524 }
 0x18d   : > { %547 = vst [vmem:[%s925_s3 + $0x10] sm:$0xff] %v543_v2  ;;  %545 = vst [vmem:[%s925_s3] sm:$0xff] %v541_v3  ;;  %v540_v6 = vadd.f32 %v535_v4, %v512_v0  ;;  %v538_v7 = vadd.f32 %v525_v5, %v510_v1 }
 0x18f   : > { %v544_v8 = vmax.f32 %v540_v6, 0.0  ;;  %v542_v9 = vmax.f32 %v538_v7, 0.0 }
 0x191   : > { %548 = vst [vmem:[%s925_s3 + $0x18] sm:$0xff] %v544_v8  ;;  %546 = vst [vmem:[%s925_s3 + $0x8] sm:$0xff] %v542_v9 }
 0x192 PF: > { %s13_s14 = sadd.s32 1, %s767_s14   ;;  %s926_s12 = smov %s763_s13 }
 0x193   : > { %p10_p7 = scmp.ge.s32.totalorder %s13_s14, 4   ;;  %s927_s13 = smov %s929_s15 }
 0x195   :  { %12 = sbr.rel (!%p10_p7) target bundleno = 2 (0x2), region = 71 }

// kernel: rpmms_forward.63
= control target key start
LH: loop header
LB: loop body
LE: loop exit
PB: predicated region body
PF: predicated region fallthrough
CT: control target
= control target key end

     0   :  { %v495_v1 = vmov 0   ;;  %vm231_vm0 = vcmask 1043456   ;;  %vm224_vm1 = vcmask 457728   ;;  %s620_s1 = inlined_call_operand.vmem [shape: bf16[312,128], index: 1, kind: input, shape index: {}]   ;;  %s621_s0 = inlined_call_operand.vmem [shape: bf16[1,32,312], index: 0, kind: input, shape index: {}]   ;;  %s622_s2 = inlined_call_operand.vmem [shape: f32[32,1], index: 2, kind: input, shape index: {}]   ;;  %s623_s3 = inlined_call_operand.vmem [shape: f32[32,128], index: 3, kind: output, shape index: {}]  }
   0x1   :  { %v467_v0 = vld [vmem:[%s620_s1 + $0x78] sm:$0xff]   ;;  %465 = vset.pattern.permute.xlu0 %v495_v1  ;;  %466 = vset.pattern.permute.xlu1 %v495_v1  ;;  %v469_v3 = vld [vmem:[%s620_s1 + $0x70] sm:$0xff]   ;;  %v471_v5 = vld [vmem:[%s620_s1 + $0x68] sm:$0xff]  }
   0x2   :  { %v468_v2 = vld [vmem:[%s620_s1 + $0x38] sm:$0xff]   ;;  %416 = vmatprep.subr.bf16.mxu0 %v467_v0  ;;  %v470_v4 = vld [vmem:[%s620_s1 + $0x30] sm:$0xff]   ;;  %v472_v6 = vld [vmem:[%s620_s1 + $0x28] sm:$0xff]  }
   0x3   :  { %417 = vmatpush3.bf16.msra.mxu0 %v468_v2  ;;  %v473_v7 = vld [vmem:[%s620_s1 + $0x60] sm:$0xff]   ;;  %v477_v8 = vld [vmem:[%s620_s1 + $0x98] ss:$0 sps:$4 sm:$0xff]   ;;  %v480_v12 = vld [vmem:[%s620_s1 + $0x90] sm:$0xff]  }
   0x4   :  { %418 = vmatprep.subr.bf16.mxu0 %v469_v3  ;;  %v474_v9 = vld [vmem:[%s620_s1 + $0x20] sm:$0xff]   ;;  %v475_v10 = vld [vmem:[%s620_s1 + $0x58] sm:$0xff]   ;;  %462 = vmatprep.subr.msk.bf16.mxu1 %vm231_vm0, %v477_v8  ;;  %v233_v11 = vsel %vm231_vm0, %v477_v8, 0  ;;  %v478_v14 = vld [vmem:[%s620_s1 + $0x50] sm:$0xff]  }
   0x5   :  { %451 = vmatpush3.bf16.msra.mxu1 %v233_v11  ;;  %v476_v13 = vld [vmem:[%s620_s1 + $0x18] sm:$0xff]   ;;  %v483_v15 = vld [vmem:[%s620_s1 + $0x88] sm:$0xff]   ;;  %v479_v16 = vld [vmem:[%s620_s1 + $0x10] sm:$0xff]  }
   0x6   :  { %452 = vmatprep.subr.bf16.mxu1 %v480_v12  ;;  %v486_v17 = vld [vmem:[%s620_s1 + $0x80] sm:$0xff]   ;;  %v481_v18 = vld [vmem:[%s620_s1 + $0x48] sm:$0xff]   ;;  %v350_v25 = vld [vmem:[%s622_s2 + $0x10] sm:$0xff] }
   0x7   :  { %419 = vmatpush3.bf16.msra.mxu0 %v470_v4  ;;  %v489_v19 = vld [vmem:[%s621_s0 + $0x4] ss:$12 sps:$4 sm:$0xff]   ;;  %v490_v20 = vld [vmem:[%s621_s0 + $0x8] ss:$12 sps:$4 sm:$0xff]   ;;  %v491_v23 = vld [vmem:[%s621_s0 + $0x20] ss:$12 sps:$4 sm:$0xff]   ;;  %364 = vperm.xlu1 %466, %v350_v25  }
   0x8   :  { %420 = vmatprep.subr.bf16.mxu0 %v471_v5  ;;  %v482_v21 = vld [vmem:[%s620_s1 + $0x8] sm:$0xff]   ;;  %267 = vmatprep.mubr.bf16.mxu0 %v489_v19  ;;  %v484_v22 = vld [vmem:[%s620_s1 + $0x40] sm:$0xff]   ;;  %v351_v28 = vld [vmem:[%s622_s2 + $0x18] sm:$0xff] }
   0x9   :  { %453 = vmatpush3.bf16.msra.mxu1 %v480_v12  ;;  %458 = vmatprep.mubr.msk.bf16.mxu1 %vm224_vm1, %v490_v20  ;;  %v348_v24 = vld [vmem:[%s622_s2] sm:$0xff]  ;;  %v349_v26 = vld [vmem:[%s622_s2 + $0x8] sm:$0xff] }
   0xa   :  { %454 = vmatprep.subr.bf16.mxu1 %v483_v15  ;;  %354 = vperm.xlu0 %465, %v348_v24   ;;  %v485_v27 = vld [vmem:[%s620_s1] sm:$0xff]   ;;  %v492_v30 = vld [vmem:[%s621_s0 + $0x1c] ss:$12 sps:$4 sm:$0xff]  }
   0xb   :  { %421 = vmatpush3.bf16.msra.mxu0 %v472_v6  ;;  %v487_v29 = vld [vmem:[%s621_s0] ss:$12 sps:$4 sm:$0xff]   ;;  %369 = vperm.xlu1 %466, %v351_v28   ;;  %v494_v31 = vld [vmem:[%s621_s0 + $0x18] ss:$12 sps:$4 sm:$0xff]  }
   0xc   :  { %422 = vmatprep.subr.bf16.mxu0 %v473_v7 }
   0xd   :  { %455 = vmatpush3.bf16.msra.mxu1 %v483_v15 }
   0xe   :  { %456 = vmatprep.subr.bf16.mxu1 %v486_v17  ;;  %359 = vperm.xlu0 %465, %v349_v26  }
   0xf   :  { %423 = vmatpush3.bf16.msra.mxu0 %v474_v9 }
  0x10   :  { %424 = vmatprep.subr.bf16.mxu0 %v475_v10 }
  0x11   :  { %457 = vmatpush3.bf16.msra.mxu1 %v486_v17 }
  0x13   :  { %425 = vmatpush3.bf16.msra.mxu0 %v476_v13 }
  0x14   :  { %426 = vmatprep.subr.bf16.mxu0 %v478_v14  ;;  %459 = vmatmul.mubr.msk.bf16.vlgmr.msra.gmra.mxu1 %vm224_vm1, %v491_v23 }
  0x17   :  { %427 = vmatpush3.bf16.msra.mxu0 %v479_v16 }
  0x18   :  { %428 = vmatprep.subr.bf16.mxu0 %v481_v18 }
  0x1b   :  { %429 = vmatpush3.bf16.msra.mxu0 %v482_v21 }
  0x1c   :  { %430 = vmatprep.subr.bf16.mxu0 %v484_v22 }
  0x1f   :  { %431 = vmatpush3.bf16.msra.mxu0 %v485_v27 }
  0x22   :  { %268 = vmatmul.mubr.bf16.vlgmr.msra.gmra.mxu0 %v487_v29 }
  0x23   :  { %275 = vmatprep.mubr.bf16.mxu0 %v492_v30 }
  0x2a   :  { %276 = vmatmul.mubr.bf16.gmra.mxu0 %v494_v31 }
  0x82   :  { %v365_v55 = vpop.permute.xlu1 %364 }
  0x85   :  { %v355_v39 = vpop.permute.xlu0 %354 }
  0x86   :  { %v370_v61 = vpop.permute.xlu1 %369 }
  0x89   :  { %v360_v48 = vpop.permute.xlu0 %359 }
  0xd4   :  { %v460_v32 = vpop.f32.mrf.mxu1 }
  0xd6   :  { %v318_v33 = vpop.f32.mrf.mxu1 }
  0xd8   :  { %v461_v36 = vpop.f32.mrf.mxu1 }
  0xda   :  { %v321_v42 = vpop.f32.mrf.mxu1 }
  0xe2   :  { %v432_v34 = vpop.f32.mrf.mxu0 }
  0xe4   :  { %v433_v35 = vpop.f32.mrf.mxu0 }
  0xe5   :  { %v434_v37 = vadd.f32 %v433_v35, %v432_v34 }
  0xe6   :  { %v435_v38 = vpop.f32.mrf.mxu0 }
  0xe7   :  { %v319_v40 = vadd.f32 %v434_v37, %v318_v33 }
  0xe8   :  { %v436_v41 = vpop.f32.mrf.mxu0 }
  0xe9   :  { %v437_v43 = vadd.f32 %v436_v41, %v435_v38  ;;  %v372_v46 = vadd.f32 %v355_v39, %v319_v40 }
  0xea   :  { %v438_v44 = vpop.f32.mrf.mxu0 }
  0xeb   :  { %v322_v45 = vadd.f32 %v437_v43, %v321_v42  ;;  %v376_v50 = vmax.f32 %v372_v46, 0.0 }
  0xec   :  { %v439_v47 = vpop.f32.mrf.mxu0 }
  0xed   :  { %v440_v49 = vadd.f32 %v439_v47, %v438_v44  ;;  %380 = vst [vmem:[%s623_s3] sm:$0xff] %v376_v50  ;;  %v373_v53 = vadd.f32 %v360_v48, %v322_v45 }
  0xee   :  { %v441_v51 = vpop.f32.mrf.mxu0 }
  0xef   :  { %v327_v52 = vadd.f32 %v460_v32, %v440_v49  ;;  %v377_v57 = vmax.f32 %v373_v53, 0.0 }
  0xf0   :  { %v442_v54 = vpop.f32.mrf.mxu0 }
  0xf1   :  { %v443_v56 = vadd.f32 %v442_v54, %v441_v51  ;;  %v374_v59 = vadd.f32 %v365_v55, %v327_v52  ;;  %381 = vst [vmem:[%s623_s3 + $0x8] sm:$0xff] %v377_v57 }
  0xf3   :  { %v330_v58 = vadd.f32 %v461_v36, %v443_v56  ;;  %v378_v60 = vmax.f32 %v374_v59, 0.0 }
  0xf5   :  { %382 = vst [vmem:[%s623_s3 + $0x10] sm:$0xff] %v378_v60  ;;  %v375_v62 = vadd.f32 %v370_v61, %v330_v58 }
  0xf7   :  { %v379_v63 = vmax.f32 %v375_v62, 0.0 }
  0xf9   :  { %383 = vst [vmem:[%s623_s3 + $0x18] sm:$0xff] %v379_v63 }

// kernel: rpmms_forward.64
= control target key start
LH: loop header
LB: loop body
LE: loop exit
PB: predicated region body
PF: predicated region fallthrough
CT: control target
= control target key end

     0   :  { %v514_v3 = vmov 0   ;;  %vm270_vm0 = vcmask 1043456   ;;  %vm263_vm1 = vcmask 457728   ;;  %s739_s1 = inlined_call_operand.vmem [shape: bf16[312,128], index: 1, kind: input, shape index: {}]   ;;  %s740_s0 = inlined_call_operand.vmem [shape: bf16[1,32,312], index: 0, kind: input, shape index: {}]   ;;  %s741_s2 = inlined_call_operand.vmem [shape: f32[32,1], index: 2, kind: input, shape index: {}]   ;;  %s742_s3 = inlined_call_operand.vmem [shape: f32[32,128], index: 3, kind: output, shape index: {}]  }
   0x1   :  { %v53_v0 = vld [vmem:[%s739_s1 + $0x78] sm:$0xf]  ;;  %v54_v1 = vld [vmem:[%s739_s1 + $0x7c] sm:$0xf]  ;;  %504 = vset.pattern.permute.xlu0 %v514_v3  ;;  %505 = vset.pattern.permute.xlu1 %v514_v3  ;;  %v51_v8 = vld [vmem:[%s739_s1 + $0x70] sm:$0xf] }
   0x2   :  { %v37_v2 = vld [vmem:[%s739_s1 + $0x38] sm:$0xf]  ;;  %v92_v4 = vmax.bf16 %v514_v3, %v53_v0  ;;  %v93_v5 = vmax.bf16 %v514_v3, %v54_v1  ;;  %v38_v6 = vld [vmem:[%s739_s1 + $0x3c] sm:$0xf]  ;;  %v52_v9 = vld [vmem:[%s739_s1 + $0x74] sm:$0xf]  ;;  %v90_v11 = vmax.bf16 %v514_v3, %v51_v8 }
   0x3   :  { %v76_v7 = vmax.bf16 %v514_v3, %v37_v2  ;;  %v77_v10 = vmax.bf16 %v514_v3, %v38_v6  ;;  %v91_v12 = vmax.bf16 %v514_v3, %v52_v9  ;;  %v35_v13 = vld [vmem:[%s739_s1 + $0x30] sm:$0xf]  ;;  %v36_v14 = vld [vmem:[%s739_s1 + $0x34] sm:$0xf]  ;;  %v49_v15 = vld [vmem:[%s739_s1 + $0x68] sm:$0xf] }
   0x4   :  { %v448_v16 = vcombine.low %v92_v4, %v93_v5  ;;  %v74_v17 = vmax.bf16 %v514_v3, %v35_v13  ;;  %v75_v18 = vmax.bf16 %v514_v3, %v36_v14  ;;  %v50_v19 = vld [vmem:[%s739_s1 + $0x6c] sm:$0xf]  ;;  %v88_v20 = vmax.bf16 %v514_v3, %v49_v15  ;;  %v33_v21 = vld [vmem:[%s739_s1 + $0x28] sm:$0xf]  ;;  %v47_v26 = vld [vmem:[%s739_s1 + $0x60] sm:$0xf] }
   0x5   :  { %v34_v22 = vld [vmem:[%s739_s1 + $0x2c] sm:$0xf]  ;;  %v440_v23 = vcombine.low %v76_v7, %v77_v10  ;;  %v447_v24 = vcombine.low %v90_v11, %v91_v12  ;;  %v89_v25 = vmax.bf16 %v514_v3, %v50_v19  ;;  %v48_v27 = vld [vmem:[%s739_s1 + $0x64] sm:$0xf]  ;;  %v72_v28 = vmax.bf16 %v514_v3, %v33_v21  ;;  %v31_v30 = vld [vmem:[%s739_s1 + $0x20] sm:$0xf] }
   0x6   :  { %455 = vmatprep.subr.bf16.mxu0 %v448_v16  ;;  %v73_v29 = vmax.bf16 %v514_v3, %v34_v22  ;;  %v439_v31 = vcombine.low %v74_v17, %v75_v18  ;;  %v32_v32 = vld [vmem:[%s739_s1 + $0x24] sm:$0xf]  ;;  %v45_v33 = vld [vmem:[%s739_s1 + $0x58] sm:$0xf]  ;;  %v86_v36 = vmax.bf16 %v514_v3, %v47_v26  ;;  %v87_v37 = vmax.bf16 %v514_v3, %v48_v27  ;;  %v46_v38 = vld [vmem:[%s739_s1 + $0x5c] sm:$0xf] }
   0x7   :  { %456 = vmatpush3.bf16.msra.mxu0 %v440_v23  ;;  %v61_v34 = vld [vmem:[%s739_s1 + $0x98] sm:$0xf]  ;;  %v446_v35 = vcombine.low %v88_v20, %v89_v25  ;;  %v59_v40 = vld [vmem:[%s739_s1 + $0x90] sm:$0xf]  ;;  %v60_v41 = vld [vmem:[%s739_s1 + $0x94] sm:$0xf]  ;;  %v70_v43 = vmax.bf16 %v514_v3, %v31_v30  ;;  %v71_v44 = vmax.bf16 %v514_v3, %v32_v32  ;;  %v84_v45 = vmax.bf16 %v514_v3, %v45_v33 }
   0x8   :  { %457 = vmatprep.subr.bf16.mxu0 %v447_v24  ;;  %v100_v39 = vmax.bf16 %v514_v3, %v61_v34  ;;  %v438_v42 = vcombine.low %v72_v28, %v73_v29  ;;  %v85_v46 = vmax.bf16 %v514_v3, %v46_v38  ;;  %v29_v47 = vld [vmem:[%s739_s1 + $0x18] sm:$0xf]  ;;  %v98_v49 = vmax.bf16 %v514_v3, %v59_v40  ;;  %v57_v51 = vld [vmem:[%s739_s1 + $0x88] sm:$0xf]  ;;  %v58_v52 = vld [vmem:[%s739_s1 + $0x8c] sm:$0xf] }
   0x9   :  { %v99_v50 = vmax.bf16 %v514_v3, %v60_v41  ;;  %v445_v53 = vcombine.low %v86_v36, %v87_v37  ;;  %v30_v54 = vld [vmem:[%s739_s1 + $0x1c] sm:$0xf]  ;;  %v43_v55 = vld [vmem:[%s739_s1 + $0x50] sm:$0xf]  ;;  %v44_v56 = vld [vmem:[%s739_s1 + $0x54] sm:$0xf]  ;;  %v437_v61 = vcombine.low %v70_v43, %v71_v44  ;;  %v68_v62 = vmax.bf16 %v514_v3, %v29_v47 }
   0xa   :  { %v452_v48 = vcombine.low %v100_v39, %v100_v39  ;;  %v27_v58 = vld [vmem:[%s739_s1 + $0x10] sm:$0xf]  ;;  %v55_v60 = vld [vmem:[%s739_s1 + $0x80] sm:$0xf]  ;;  %v28_v63 = vld [vmem:[%s739_s1 + $0x14] sm:$0xf]  ;;  %v96_v0 = vmax.bf16 %v514_v3, %v57_v51  ;;  %v97_v1 = vmax.bf16 %v514_v3, %v58_v52  ;;  %v444_v4 = vcombine.low %v84_v45, %v85_v46 }
   0xb   :  { %458 = vmatpush3.bf16.msra.mxu0 %v439_v31  ;;  %v451_v59 = vcombine.low %v98_v49, %v99_v50  ;;  %v56_v2 = vld [vmem:[%s739_s1 + $0x84] sm:$0xf]  ;;  %v69_v5 = vmax.bf16 %v514_v3, %v30_v54  ;;  %v82_v6 = vmax.bf16 %v514_v3, %v43_v55  ;;  %v41_v7 = vld [vmem:[%s739_s1 + $0x48] sm:$0xf]  ;;  %v83_v9 = vmax.bf16 %v514_v3, %v44_v56  ;;  %v42_v14 = vld [vmem:[%s739_s1 + $0x4c] sm:$0xf] }
   0xc   :  { %459 = vmatprep.subr.bf16.mxu0 %v446_v35  ;;  %501 = vmatprep.subr.msk.bf16.mxu1 %vm270_vm0, %v452_v48  ;;  %v272_v57 = vsel %vm270_vm0, %v452_v48, 0  ;;  %v508_v8 = vld [vmem:[%s740_s0 + $0x4] ss:$12 sps:$4 sm:$0xff]   ;;  %v450_v10 = vcombine.low %v96_v0, %v97_v1  ;;  %v94_v11 = vmax.bf16 %v514_v3, %v55_v60  ;;  %v95_v12 = vmax.bf16 %v514_v3, %v56_v2  ;;  %v509_v13 = vld [vmem:[%s740_s0 + $0x8] ss:$12 sps:$4 sm:$0xff]   ;;  %v390_v29 = vld [vmem:[%s741_s2 + $0x18] sm:$0xff] }
   0xd   :  { %490 = vmatpush3.bf16.msra.mxu1 %v272_v57  ;;  %306 = vmatprep.mubr.bf16.mxu0 %v508_v8  ;;  %v66_v15 = vmax.bf16 %v514_v3, %v27_v58  ;;  %v387_v16 = vld [vmem:[%s741_s2] sm:$0xff]  ;;  %v436_v17 = vcombine.low %v68_v62, %v69_v5  ;;  %v67_v18 = vmax.bf16 %v514_v3, %v28_v63  ;;  %v389_v20 = vld [vmem:[%s741_s2 + $0x10] sm:$0xff]  ;;  %v25_v24 = vld [vmem:[%s739_s1 + $0x8] sm:$0xf] }
   0xe   :  { %491 = vmatprep.subr.bf16.mxu1 %v451_v59  ;;  %497 = vmatprep.mubr.msk.bf16.mxu1 %vm263_vm1, %v509_v13  ;;  %v449_v19 = vcombine.low %v94_v11, %v95_v12  ;;  %v443_v21 = vcombine.low %v82_v6, %v83_v9  ;;  %v80_v22 = vmax.bf16 %v514_v3, %v41_v7  ;;  %v26_v25 = vld [vmem:[%s739_s1 + $0xc] sm:$0xf]  ;;  %v39_v26 = vld [vmem:[%s739_s1 + $0x40] sm:$0xf]  ;;  %v40_v27 = vld [vmem:[%s739_s1 + $0x44] sm:$0xf] }
   0xf   :  { %460 = vmatpush3.bf16.msra.mxu0 %v438_v42  ;;  %v81_v23 = vmax.bf16 %v514_v3, %v42_v14  ;;  %393 = vperm.xlu0 %504, %v387_v16   ;;  %v388_v28 = vld [vmem:[%s741_s2 + $0x8] sm:$0xff]  ;;  %v435_v30 = vcombine.low %v66_v15, %v67_v18  ;;  %v64_v31 = vmax.bf16 %v514_v3, %v25_v24  ;;  %v23_v36 = vld [vmem:[%s739_s1] sm:$0xf]  ;;  %v24_v37 = vld [vmem:[%s739_s1 + $0x4] sm:$0xf] }
  0x10   :  { %461 = vmatprep.subr.bf16.mxu0 %v445_v53  ;;  %403 = vperm.xlu1 %505, %v389_v20   ;;  %v65_v32 = vmax.bf16 %v514_v3, %v26_v25  ;;  %v78_v34 = vmax.bf16 %v514_v3, %v39_v26  ;;  %v79_v35 = vmax.bf16 %v514_v3, %v40_v27  ;;  %v510_v38 = vld [vmem:[%s740_s0 + $0x20] ss:$12 sps:$4 sm:$0xff]   ;;  %v511_v45 = vld [vmem:[%s740_s0 + $0x1c] ss:$12 sps:$4 sm:$0xff]  }
  0x11   :  { %492 = vmatpush3.bf16.msra.mxu1 %v451_v59  ;;  %v442_v33 = vcombine.low %v80_v22, %v81_v23  ;;  %v62_v40 = vmax.bf16 %v514_v3, %v23_v36  ;;  %v63_v41 = vmax.bf16 %v514_v3, %v24_v37  ;;  %v506_v44 = vld [vmem:[%s740_s0] ss:$12 sps:$4 sm:$0xff]   ;;  %v513_v3 = vld [vmem:[%s740_s0 + $0x18] ss:$12 sps:$4 sm:$0xff]  }
  0x12   :  { %493 = vmatprep.subr.bf16.mxu1 %v450_v10  ;;  %v434_v39 = vcombine.low %v64_v31, %v65_v32  ;;  %v441_v42 = vcombine.low %v78_v34, %v79_v35 }
  0x13   :  { %462 = vmatpush3.bf16.msra.mxu0 %v437_v61  ;;  %398 = vperm.xlu0 %504, %v388_v28   ;;  %v433_v43 = vcombine.low %v62_v40, %v63_v41 }
  0x14   :  { %463 = vmatprep.subr.bf16.mxu0 %v444_v4  ;;  %408 = vperm.xlu1 %505, %v390_v29  }
  0x15   :  { %494 = vmatpush3.bf16.msra.mxu1 %v450_v10 }
  0x16   :  { %495 = vmatprep.subr.bf16.mxu1 %v449_v19 }
  0x17   :  { %464 = vmatpush3.bf16.msra.mxu0 %v436_v17 }
  0x18   :  { %465 = vmatprep.subr.bf16.mxu0 %v443_v21 }
  0x19   :  { %496 = vmatpush3.bf16.msra.mxu1 %v449_v19 }
  0x1b   :  { %466 = vmatpush3.bf16.msra.mxu0 %v435_v30 }
  0x1c   :  { %467 = vmatprep.subr.bf16.mxu0 %v442_v33  ;;  %498 = vmatmul.mubr.msk.bf16.vlgmr.msra.gmra.mxu1 %vm263_vm1, %v510_v38 }
  0x1f   :  { %468 = vmatpush3.bf16.msra.mxu0 %v434_v39 }
  0x20   :  { %469 = vmatprep.subr.bf16.mxu0 %v441_v42 }
  0x23   :  { %470 = vmatpush3.bf16.msra.mxu0 %v433_v43 }
  0x26   :  { %307 = vmatmul.mubr.bf16.vlgmr.msra.gmra.mxu0 %v506_v44 }
  0x27   :  { %314 = vmatprep.mubr.bf16.mxu0 %v511_v45 }
  0x2e   :  { %315 = vmatmul.mubr.bf16.gmra.mxu0 %v513_v3 }
  0x8a   :  { %v394_v53 = vpop.permute.xlu0 %393 }
  0x8b   :  { %v404_v6 = vpop.permute.xlu1 %403 }
  0x8e   :  { %v399_v62 = vpop.permute.xlu0 %398 }
  0x8f   :  { %v409_v12 = vpop.permute.xlu1 %408 }
  0xdc   :  { %v499_v46 = vpop.f32.mrf.mxu1 }
  0xde   :  { %v357_v47 = vpop.f32.mrf.mxu1 }
  0xe0   :  { %v500_v50 = vpop.f32.mrf.mxu1 }
  0xe2   :  { %v360_v56 = vpop.f32.mrf.mxu1 }
  0xe6   :  { %v471_v48 = vpop.f32.mrf.mxu0 }
  0xe8   :  { %v472_v49 = vpop.f32.mrf.mxu0 }
  0xe9   :  { %v473_v51 = vadd.f32 %v472_v49, %v471_v48 }
  0xea   :  { %v474_v52 = vpop.f32.mrf.mxu0 }
  0xeb   :  { %v358_v54 = vadd.f32 %v473_v51, %v357_v47 }
  0xec   :  { %v475_v55 = vpop.f32.mrf.mxu0 }
  0xed   :  { %v476_v57 = vadd.f32 %v475_v55, %v474_v52  ;;  %v411_v60 = vadd.f32 %v394_v53, %v358_v54 }
  0xee   :  { %v477_v58 = vpop.f32.mrf.mxu0 }
  0xef   :  { %v361_v59 = vadd.f32 %v476_v57, %v360_v56  ;;  %v415_v0 = vmax.f32 %v411_v60, 0.0 }
  0xf0   :  { %v478_v61 = vpop.f32.mrf.mxu0 }
  0xf1   :  { %v479_v63 = vadd.f32 %v478_v61, %v477_v58  ;;  %419 = vst [vmem:[%s742_s3] sm:$0xff] %v415_v0  ;;  %v412_v4 = vadd.f32 %v399_v62, %v361_v59 }
  0xf2   :  { %v480_v1 = vpop.f32.mrf.mxu0 }
  0xf3   :  { %v366_v2 = vadd.f32 %v499_v46, %v479_v63  ;;  %v416_v8 = vmax.f32 %v412_v4, 0.0 }
  0xf4   :  { %v481_v5 = vpop.f32.mrf.mxu0 }
  0xf5   :  { %v482_v7 = vadd.f32 %v481_v5, %v480_v1  ;;  %v413_v10 = vadd.f32 %v404_v6, %v366_v2  ;;  %420 = vst [vmem:[%s742_s3 + $0x8] sm:$0xff] %v416_v8 }
  0xf7   :  { %v369_v9 = vadd.f32 %v500_v50, %v482_v7  ;;  %v417_v11 = vmax.f32 %v413_v10, 0.0 }
  0xf9   :  { %421 = vst [vmem:[%s742_s3 + $0x10] sm:$0xff] %v417_v11  ;;  %v414_v13 = vadd.f32 %v409_v12, %v369_v9 }
  0xfb   :  { %v418_v14 = vmax.f32 %v414_v13, 0.0 }
  0xfd   :  { %422 = vst [vmem:[%s742_s3 + $0x18] sm:$0xff] %v418_v14 }

// kernel: rpmms_forward.65
= control target key start
LH: loop header
LB: loop body
LE: loop exit
PB: predicated region body
PF: predicated region fallthrough
CT: control target
= control target key end

     0   :  { %v464_v1 = vmov 0   ;;  %vm212_vm0 = vcmask 261120   ;;  %s583_s1 = inlined_call_operand.vmem [shape: bf16[288,128], index: 1, kind: input, shape index: {}]   ;;  %s584_s0 = inlined_call_operand.vmem [shape: bf16[1,32,288], index: 0, kind: input, shape index: {}]   ;;  %s585_s2 = inlined_call_operand.vmem [shape: f32[32,1], index: 2, kind: input, shape index: {}]   ;;  %s586_s3 = inlined_call_operand.vmem [shape: f32[32,128], index: 3, kind: output, shape index: {}]  }
   0x1   :  { %v438_v0 = vld [vmem:[%s583_s1 + $0x78] sm:$0xff]   ;;  %436 = vset.pattern.permute.xlu0 %v464_v1  ;;  %437 = vset.pattern.permute.xlu1 %v464_v1  ;;  %v440_v3 = vld [vmem:[%s583_s1 + $0x70] sm:$0xff]   ;;  %v442_v5 = vld [vmem:[%s583_s1 + $0x68] sm:$0xff]  }
   0x2   :  { %v439_v2 = vld [vmem:[%s583_s1 + $0x38] sm:$0xff]   ;;  %394 = vmatprep.subr.bf16.mxu0 %v438_v0  ;;  %v441_v4 = vld [vmem:[%s583_s1 + $0x30] sm:$0xff]   ;;  %v443_v6 = vld [vmem:[%s583_s1 + $0x28] sm:$0xff]  }
   0x3   :  { %395 = vmatpush3.bf16.msra.mxu0 %v439_v2  ;;  %v444_v7 = vld [vmem:[%s583_s1 + $0x60] sm:$0xff]   ;;  %v446_v9 = vld [vmem:[%s583_s1 + $0x58] sm:$0xff]   ;;  %v452_v10 = vld [vmem:[%s583_s1 + $0x88] sm:$0xff]  }
   0x4   :  { %396 = vmatprep.subr.bf16.mxu0 %v440_v3  ;;  %v445_v8 = vld [vmem:[%s583_s1 + $0x20] sm:$0xff]   ;;  %v447_v11 = vld [vmem:[%s583_s1 + $0x18] sm:$0xff]   ;;  %v448_v12 = vld [vmem:[%s583_s1 + $0x50] sm:$0xff]   ;;  %426 = vmatprep.subr.bf16.mxu1 %v452_v10 }
   0x5   :  { %v449_v13 = vld [vmem:[%s583_s1 + $0x10] sm:$0xff]   ;;  %427 = vmatpush3.bf16.msra.mxu1 %v452_v10  ;;  %v455_v14 = vld [vmem:[%s583_s1 + $0x80] sm:$0xff]   ;;  %v450_v15 = vld [vmem:[%s583_s1 + $0x48] sm:$0xff]  }
   0x6   :  { %428 = vmatprep.subr.bf16.mxu1 %v455_v14  ;;  %v458_v16 = vld [vmem:[%s584_s0 + $0x4] ss:$12 sps:$4 sm:$0xff]   ;;  %v459_v17 = vld [vmem:[%s584_s0 + $0x8] ss:$12 sps:$4 sm:$0xff]   ;;  %v460_v18 = vld [vmem:[%s584_s0 + $0x20] ss:$12 sps:$4 sm:$0xff]  }
   0x7   :  { %397 = vmatpush3.bf16.msra.mxu0 %v441_v4  ;;  %251 = vmatprep.mubr.bf16.mxu0 %v458_v16  ;;  %v332_v19 = vld [vmem:[%s585_s2] sm:$0xff]  ;;  %v451_v20 = vld [vmem:[%s583_s1 + $0x8] sm:$0xff]   ;;  %v334_v21 = vld [vmem:[%s585_s2 + $0x10] sm:$0xff] }
   0x8   :  { %398 = vmatprep.subr.bf16.mxu0 %v442_v5  ;;  %430 = vmatprep.mubr.msk.bf16.mxu1 %vm212_vm0, %v459_v17  ;;  %v453_v22 = vld [vmem:[%s583_s1 + $0x40] sm:$0xff]   ;;  %v333_v23 = vld [vmem:[%s585_s2 + $0x8] sm:$0xff]  ;;  %v335_v24 = vld [vmem:[%s585_s2 + $0x18] sm:$0xff] }
   0x9   :  { %429 = vmatpush3.bf16.msra.mxu1 %v455_v14  ;;  %338 = vperm.xlu0 %436, %v332_v19   ;;  %v454_v25 = vld [vmem:[%s583_s1] sm:$0xff]   ;;  %v461_v27 = vld [vmem:[%s584_s0 + $0x1c] ss:$12 sps:$4 sm:$0xff]  }
   0xa   :  { %348 = vperm.xlu1 %437, %v334_v21   ;;  %v456_v26 = vld [vmem:[%s584_s0] ss:$12 sps:$4 sm:$0xff]   ;;  %v463_v28 = vld [vmem:[%s584_s0 + $0x18] ss:$12 sps:$4 sm:$0xff]  }
   0xb   :  { %399 = vmatpush3.bf16.msra.mxu0 %v443_v6 }
   0xc   :  { %400 = vmatprep.subr.bf16.mxu0 %v444_v7  ;;  %431 = vmatmul.mubr.msk.bf16.vlgmr.msra.gmra.mxu1 %vm212_vm0, %v460_v18 }
   0xd   :  { %343 = vperm.xlu0 %436, %v333_v23  }
   0xe   :  { %353 = vperm.xlu1 %437, %v335_v24  }
   0xf   :  { %401 = vmatpush3.bf16.msra.mxu0 %v445_v8 }
  0x10   :  { %402 = vmatprep.subr.bf16.mxu0 %v446_v9 }
  0x13   :  { %403 = vmatpush3.bf16.msra.mxu0 %v447_v11 }
  0x14   :  { %404 = vmatprep.subr.bf16.mxu0 %v448_v12 }
  0x17   :  { %405 = vmatpush3.bf16.msra.mxu0 %v449_v13 }
  0x18   :  { %406 = vmatprep.subr.bf16.mxu0 %v450_v15 }
  0x1b   :  { %407 = vmatpush3.bf16.msra.mxu0 %v451_v20 }
  0x1c   :  { %408 = vmatprep.subr.bf16.mxu0 %v453_v22 }
  0x1f   :  { %409 = vmatpush3.bf16.msra.mxu0 %v454_v25 }
  0x22   :  { %252 = vmatmul.mubr.bf16.vlgmr.msra.gmra.mxu0 %v456_v26 }
  0x23   :  { %259 = vmatprep.mubr.bf16.mxu0 %v461_v27 }
  0x2a   :  { %260 = vmatmul.mubr.bf16.gmra.mxu0 %v463_v28 }
  0x84   :  { %v339_v36 = vpop.permute.xlu0 %338 }
  0x85   :  { %v349_v51 = vpop.permute.xlu1 %348 }
  0x88   :  { %v344_v45 = vpop.permute.xlu0 %343 }
  0x89   :  { %v354_v55 = vpop.permute.xlu1 %353 }
  0xcc   :  { %v432_v29 = vpop.f32.mrf.mxu1 }
  0xce   :  { %v302_v30 = vpop.f32.mrf.mxu1 }
  0xd0   :  { %v433_v33 = vpop.f32.mrf.mxu1 }
  0xd2   :  { %v305_v39 = vpop.f32.mrf.mxu1 }
  0xe2   :  { %v410_v31 = vpop.f32.mrf.mxu0 }
  0xe4   :  { %v411_v32 = vpop.f32.mrf.mxu0 }
  0xe5   :  { %v412_v34 = vadd.f32 %v411_v32, %v410_v31 }
  0xe6   :  { %v413_v35 = vpop.f32.mrf.mxu0 }
  0xe7   :  { %v303_v37 = vadd.f32 %v412_v34, %v302_v30 }
  0xe8   :  { %v414_v38 = vpop.f32.mrf.mxu0 }
  0xe9   :  { %v415_v40 = vadd.f32 %v414_v38, %v413_v35  ;;  %v356_v43 = vadd.f32 %v339_v36, %v303_v37 }
  0xea   :  { %v416_v41 = vpop.f32.mrf.mxu0 }
  0xeb   :  { %v306_v42 = vadd.f32 %v415_v40, %v305_v39  ;;  %360 = vst [vmem:[%s586_s3] sm:$0xff] %v356_v43 }
  0xec   :  { %v417_v44 = vpop.f32.mrf.mxu0 }
  0xed   :  { %v418_v46 = vadd.f32 %v417_v44, %v416_v41  ;;  %v357_v49 = vadd.f32 %v344_v45, %v306_v42 }
  0xee   :  { %v419_v47 = vpop.f32.mrf.mxu0 }
  0xef   :  { %v311_v48 = vadd.f32 %v432_v29, %v418_v46  ;;  %361 = vst [vmem:[%s586_s3 + $0x8] sm:$0xff] %v357_v49 }
  0xf0   :  { %v420_v50 = vpop.f32.mrf.mxu0 }
  0xf1   :  { %v421_v52 = vadd.f32 %v420_v50, %v419_v47  ;;  %v358_v54 = vadd.f32 %v349_v51, %v311_v48 }
  0xf3   :  { %v314_v53 = vadd.f32 %v433_v33, %v421_v52  ;;  %362 = vst [vmem:[%s586_s3 + $0x10] sm:$0xff] %v358_v54 }
  0xf5   :  { %v359_v56 = vadd.f32 %v354_v55, %v314_v53 }
  0xf7   :  { %363 = vst [vmem:[%s586_s3 + $0x18] sm:$0xff] %v359_v56 }

// kernel: rpmms_forward.66
= control target key start
LH: loop header
LB: loop body
LE: loop exit
PB: predicated region body
PF: predicated region fallthrough
CT: control target
= control target key end

     0   :  { %v486_v3 = vmov 0   ;;  %vm248_vm0 = vcmask 261120   ;;  %s697_s1 = inlined_call_operand.vmem [shape: bf16[288,128], index: 1, kind: input, shape index: {}]   ;;  %s698_s0 = inlined_call_operand.vmem [shape: bf16[1,32,288], index: 0, kind: input, shape index: {}]   ;;  %s699_s2 = inlined_call_operand.vmem [shape: f32[32,1], index: 2, kind: input, shape index: {}]   ;;  %s700_s3 = inlined_call_operand.vmem [shape: f32[32,128], index: 3, kind: output, shape index: {}]  }
   0x1   :  { %v53_v0 = vld [vmem:[%s697_s1 + $0x78] sm:$0xf]  ;;  %v54_v1 = vld [vmem:[%s697_s1 + $0x7c] sm:$0xf]  ;;  %476 = vset.pattern.permute.xlu0 %v486_v3  ;;  %477 = vset.pattern.permute.xlu1 %v486_v3  ;;  %v51_v8 = vld [vmem:[%s697_s1 + $0x70] sm:$0xf] }
   0x2   :  { %v37_v2 = vld [vmem:[%s697_s1 + $0x38] sm:$0xf]  ;;  %v89_v4 = vmax.bf16 %v486_v3, %v53_v0  ;;  %v90_v5 = vmax.bf16 %v486_v3, %v54_v1  ;;  %v38_v6 = vld [vmem:[%s697_s1 + $0x3c] sm:$0xf]  ;;  %v52_v9 = vld [vmem:[%s697_s1 + $0x74] sm:$0xf]  ;;  %v87_v11 = vmax.bf16 %v486_v3, %v51_v8 }
   0x3   :  { %v73_v7 = vmax.bf16 %v486_v3, %v37_v2  ;;  %v74_v10 = vmax.bf16 %v486_v3, %v38_v6  ;;  %v88_v12 = vmax.bf16 %v486_v3, %v52_v9  ;;  %v35_v13 = vld [vmem:[%s697_s1 + $0x30] sm:$0xf]  ;;  %v36_v14 = vld [vmem:[%s697_s1 + $0x34] sm:$0xf]  ;;  %v49_v15 = vld [vmem:[%s697_s1 + $0x68] sm:$0xf] }
   0x4   :  { %v429_v16 = vcombine.low %v89_v4, %v90_v5  ;;  %v71_v17 = vmax.bf16 %v486_v3, %v35_v13  ;;  %v72_v18 = vmax.bf16 %v486_v3, %v36_v14  ;;  %v50_v19 = vld [vmem:[%s697_s1 + $0x6c] sm:$0xf]  ;;  %v85_v20 = vmax.bf16 %v486_v3, %v49_v15  ;;  %v33_v21 = vld [vmem:[%s697_s1 + $0x28] sm:$0xf]  ;;  %v47_v26 = vld [vmem:[%s697_s1 + $0x60] sm:$0xf] }
   0x5   :  { %v34_v22 = vld [vmem:[%s697_s1 + $0x2c] sm:$0xf]  ;;  %v421_v23 = vcombine.low %v73_v7, %v74_v10  ;;  %v428_v24 = vcombine.low %v87_v11, %v88_v12  ;;  %v86_v25 = vmax.bf16 %v486_v3, %v50_v19  ;;  %v48_v27 = vld [vmem:[%s697_s1 + $0x64] sm:$0xf]  ;;  %v69_v29 = vmax.bf16 %v486_v3, %v33_v21  ;;  %v31_v34 = vld [vmem:[%s697_s1 + $0x20] sm:$0xf] }
   0x6   :  { %434 = vmatprep.subr.bf16.mxu0 %v429_v16  ;;  %v420_v28 = vcombine.low %v71_v17, %v72_v18  ;;  %v70_v30 = vmax.bf16 %v486_v3, %v34_v22  ;;  %v83_v32 = vmax.bf16 %v486_v3, %v47_v26  ;;  %v84_v33 = vmax.bf16 %v486_v3, %v48_v27  ;;  %v32_v35 = vld [vmem:[%s697_s1 + $0x24] sm:$0xf]  ;;  %v45_v36 = vld [vmem:[%s697_s1 + $0x58] sm:$0xf]  ;;  %v46_v37 = vld [vmem:[%s697_s1 + $0x5c] sm:$0xf] }
   0x7   :  { %435 = vmatpush3.bf16.msra.mxu0 %v421_v23  ;;  %v427_v31 = vcombine.low %v85_v20, %v86_v25  ;;  %v57_v38 = vld [vmem:[%s697_s1 + $0x88] sm:$0xf]  ;;  %v58_v39 = vld [vmem:[%s697_s1 + $0x8c] sm:$0xf]  ;;  %v67_v41 = vmax.bf16 %v486_v3, %v31_v34  ;;  %v68_v42 = vmax.bf16 %v486_v3, %v32_v35  ;;  %v81_v43 = vmax.bf16 %v486_v3, %v45_v36  ;;  %v29_v44 = vld [vmem:[%s697_s1 + $0x18] sm:$0xf] }
   0x8   :  { %436 = vmatprep.subr.bf16.mxu0 %v428_v24  ;;  %v419_v40 = vcombine.low %v69_v29, %v70_v30  ;;  %v30_v45 = vld [vmem:[%s697_s1 + $0x1c] sm:$0xf]  ;;  %v426_v46 = vcombine.low %v83_v32, %v84_v33  ;;  %v82_v47 = vmax.bf16 %v486_v3, %v46_v37  ;;  %v43_v48 = vld [vmem:[%s697_s1 + $0x50] sm:$0xf]  ;;  %v93_v49 = vmax.bf16 %v486_v3, %v57_v38  ;;  %v55_v51 = vld [vmem:[%s697_s1 + $0x80] sm:$0xf] }
   0x9   :  { %v94_v50 = vmax.bf16 %v486_v3, %v58_v39  ;;  %v56_v52 = vld [vmem:[%s697_s1 + $0x84] sm:$0xf]  ;;  %v44_v53 = vld [vmem:[%s697_s1 + $0x54] sm:$0xf]  ;;  %v27_v54 = vld [vmem:[%s697_s1 + $0x10] sm:$0xf]  ;;  %v91_v56 = vmax.bf16 %v486_v3, %v55_v51  ;;  %v418_v58 = vcombine.low %v67_v41, %v68_v42  ;;  %v65_v59 = vmax.bf16 %v486_v3, %v29_v44 }
   0xa   :  { %v480_v57 = vld [vmem:[%s698_s0 + $0x4] ss:$12 sps:$4 sm:$0xff]   ;;  %v66_v60 = vmax.bf16 %v486_v3, %v30_v45  ;;  %v92_v61 = vmax.bf16 %v486_v3, %v56_v52  ;;  %v481_v62 = vld [vmem:[%s698_s0 + $0x8] ss:$12 sps:$4 sm:$0xff]   ;;  %v425_v63 = vcombine.low %v81_v43, %v82_v47  ;;  %v79_v0 = vmax.bf16 %v486_v3, %v43_v48  ;;  %v42_v5 = vld [vmem:[%s697_s1 + $0x4c] sm:$0xf] }
   0xb   :  { %437 = vmatpush3.bf16.msra.mxu0 %v420_v28  ;;  %v431_v55 = vcombine.low %v93_v49, %v94_v50  ;;  %v80_v1 = vmax.bf16 %v486_v3, %v44_v53  ;;  %v28_v2 = vld [vmem:[%s697_s1 + $0x14] sm:$0xf]  ;;  %v41_v4 = vld [vmem:[%s697_s1 + $0x48] sm:$0xf]  ;;  %287 = vmatprep.mubr.bf16.mxu0 %v480_v57  ;;  %v368_v7 = vld [vmem:[%s699_s2] sm:$0xff]  ;;  %v63_v10 = vmax.bf16 %v486_v3, %v27_v54 }
   0xc   :  { %438 = vmatprep.subr.bf16.mxu0 %v427_v31  ;;  %v430_v6 = vcombine.low %v91_v56, %v92_v61  ;;  %470 = vmatprep.mubr.msk.bf16.mxu1 %vm248_vm0, %v481_v62  ;;  %v370_v8 = vld [vmem:[%s699_s2 + $0x10] sm:$0xff]  ;;  %v417_v9 = vcombine.low %v65_v59, %v66_v60  ;;  %v64_v11 = vmax.bf16 %v486_v3, %v28_v2  ;;  %v369_v12 = vld [vmem:[%s699_s2 + $0x8] sm:$0xff]  ;;  %v39_v19 = vld [vmem:[%s697_s1 + $0x40] sm:$0xf] }
   0xd   :  { %466 = vmatprep.subr.bf16.mxu1 %v431_v55  ;;  %374 = vperm.xlu0 %476, %v368_v7   ;;  %v424_v13 = vcombine.low %v79_v0, %v80_v1  ;;  %v77_v14 = vmax.bf16 %v486_v3, %v41_v4  ;;  %v78_v15 = vmax.bf16 %v486_v3, %v42_v5  ;;  %v25_v16 = vld [vmem:[%s697_s1 + $0x8] sm:$0xf]  ;;  %v26_v17 = vld [vmem:[%s697_s1 + $0xc] sm:$0xf]  ;;  %v40_v20 = vld [vmem:[%s697_s1 + $0x44] sm:$0xf] }
   0xe   :  { %467 = vmatpush3.bf16.msra.mxu1 %v431_v55  ;;  %v482_v18 = vld [vmem:[%s698_s0 + $0x20] ss:$12 sps:$4 sm:$0xff]   ;;  %384 = vperm.xlu1 %477, %v370_v8   ;;  %v371_v21 = vld [vmem:[%s699_s2 + $0x18] sm:$0xff]  ;;  %v416_v22 = vcombine.low %v63_v10, %v64_v11  ;;  %v61_v23 = vmax.bf16 %v486_v3, %v25_v16  ;;  %v62_v24 = vmax.bf16 %v486_v3, %v26_v17  ;;  %v24_v29 = vld [vmem:[%s697_s1 + $0x4] sm:$0xf] }
   0xf   :  { %439 = vmatpush3.bf16.msra.mxu0 %v419_v40  ;;  %468 = vmatprep.subr.bf16.mxu1 %v430_v6  ;;  %v423_v25 = vcombine.low %v77_v14, %v78_v15  ;;  %v75_v26 = vmax.bf16 %v486_v3, %v39_v19  ;;  %v76_v27 = vmax.bf16 %v486_v3, %v40_v20  ;;  %v23_v28 = vld [vmem:[%s697_s1] sm:$0xf]  ;;  %v483_v36 = vld [vmem:[%s698_s0 + $0x1c] ss:$12 sps:$4 sm:$0xff]  }
  0x10   :  { %440 = vmatprep.subr.bf16.mxu0 %v426_v46  ;;  %v415_v30 = vcombine.low %v61_v23, %v62_v24  ;;  %v59_v31 = vmax.bf16 %v486_v3, %v23_v28  ;;  %v60_v32 = vmax.bf16 %v486_v3, %v24_v29  ;;  %v478_v35 = vld [vmem:[%s698_s0] ss:$12 sps:$4 sm:$0xff]   ;;  %v485_v3 = vld [vmem:[%s698_s0 + $0x18] ss:$12 sps:$4 sm:$0xff]  }
  0x11   :  { %379 = vperm.xlu0 %476, %v369_v12   ;;  %v422_v33 = vcombine.low %v75_v26, %v76_v27 }
  0x12   :  { %469 = vmatpush3.bf16.msra.mxu1 %v430_v6  ;;  %389 = vperm.xlu1 %477, %v371_v21   ;;  %v414_v34 = vcombine.low %v59_v31, %v60_v32 }
  0x13   :  { %441 = vmatpush3.bf16.msra.mxu0 %v418_v58 }
  0x14   :  { %442 = vmatprep.subr.bf16.mxu0 %v425_v63 }
  0x15   :  { %471 = vmatmul.mubr.msk.bf16.vlgmr.msra.gmra.mxu1 %vm248_vm0, %v482_v18 }
  0x17   :  { %443 = vmatpush3.bf16.msra.mxu0 %v417_v9 }
  0x18   :  { %444 = vmatprep.subr.bf16.mxu0 %v424_v13 }
  0x1b   :  { %445 = vmatpush3.bf16.msra.mxu0 %v416_v22 }
  0x1c   :  { %446 = vmatprep.subr.bf16.mxu0 %v423_v25 }
  0x1f   :  { %447 = vmatpush3.bf16.msra.mxu0 %v415_v30 }
  0x20   :  { %448 = vmatprep.subr.bf16.mxu0 %v422_v33 }
  0x23   :  { %449 = vmatpush3.bf16.msra.mxu0 %v414_v34 }
  0x26   :  { %288 = vmatmul.mubr.bf16.vlgmr.msra.gmra.mxu0 %v478_v35 }
  0x27   :  { %295 = vmatprep.mubr.bf16.mxu0 %v483_v36 }
  0x2e   :  { %296 = vmatmul.mubr.bf16.gmra.mxu0 %v485_v3 }
  0x88   :  { %v375_v44 = vpop.permute.xlu0 %374 }
  0x89   :  { %v385_v60 = vpop.permute.xlu1 %384 }
  0x8c   :  { %v380_v53 = vpop.permute.xlu0 %379 }
  0x8d   :  { %v390_v2 = vpop.permute.xlu1 %389 }
  0xd5   :  { %v472_v37 = vpop.f32.mrf.mxu1 }
  0xd7   :  { %v338_v38 = vpop.f32.mrf.mxu1 }
  0xd9   :  { %v473_v41 = vpop.f32.mrf.mxu1 }
  0xdb   :  { %v341_v47 = vpop.f32.mrf.mxu1 }
  0xe6   :  { %v450_v39 = vpop.f32.mrf.mxu0 }
  0xe8   :  { %v451_v40 = vpop.f32.mrf.mxu0 }
  0xe9   :  { %v452_v42 = vadd.f32 %v451_v40, %v450_v39 }
  0xea   :  { %v453_v43 = vpop.f32.mrf.mxu0 }
  0xeb   :  { %v339_v45 = vadd.f32 %v452_v42, %v338_v38 }
  0xec   :  { %v454_v46 = vpop.f32.mrf.mxu0 }
  0xed   :  { %v455_v48 = vadd.f32 %v454_v46, %v453_v43  ;;  %v392_v51 = vadd.f32 %v375_v44, %v339_v45 }
  0xee   :  { %v456_v49 = vpop.f32.mrf.mxu0 }
  0xef   :  { %v342_v50 = vadd.f32 %v455_v48, %v341_v47  ;;  %v396_v55 = vmax.f32 %v392_v51, 0.0 }
  0xf0   :  { %v457_v52 = vpop.f32.mrf.mxu0 }
  0xf1   :  { %v458_v54 = vadd.f32 %v457_v52, %v456_v49  ;;  %400 = vst [vmem:[%s700_s3] sm:$0xff] %v396_v55  ;;  %v393_v58 = vadd.f32 %v380_v53, %v342_v50 }
  0xf2   :  { %v459_v56 = vpop.f32.mrf.mxu0 }
  0xf3   :  { %v347_v57 = vadd.f32 %v472_v37, %v458_v54  ;;  %v397_v62 = vmax.f32 %v393_v58, 0.0 }
  0xf4   :  { %v460_v59 = vpop.f32.mrf.mxu0 }
  0xf5   :  { %v461_v61 = vadd.f32 %v460_v59, %v459_v56  ;;  %v394_v0 = vadd.f32 %v385_v60, %v347_v57  ;;  %401 = vst [vmem:[%s700_s3 + $0x8] sm:$0xff] %v397_v62 }
  0xf7   :  { %v350_v63 = vadd.f32 %v473_v41, %v461_v61  ;;  %v398_v1 = vmax.f32 %v394_v0, 0.0 }
  0xf9   :  { %402 = vst [vmem:[%s700_s3 + $0x10] sm:$0xff] %v398_v1  ;;  %v395_v4 = vadd.f32 %v390_v2, %v350_v63 }
  0xfb   :  { %v399_v5 = vmax.f32 %v395_v4, 0.0 }
  0xfd   :  { %403 = vst [vmem:[%s700_s3 + $0x18] sm:$0xff] %v399_v5 }

// kernel: rpmms_forward.76
= control target key start
LH: loop header
LB: loop body
LE: loop exit
PB: predicated region body
PF: predicated region fallthrough
CT: control target
= control target key end

     0   :  { %s1128_s12 = smov 0   ;;  %s1130_s13 = smov 0   ;;  %s1392_s0 = inlined_call_operand.vmem [shape: bf16[2,32,288], index: 0, kind: input, shape index: {}]   ;;  %s1393_s1 = inlined_call_operand.vmem [shape: bf16[576,256], index: 1, kind: input, shape index: {}]   ;;  %s1394_s2 = inlined_call_operand.vmem [shape: f32[32,1], index: 2, kind: input, shape index: {}]   ;;  %s1395_s3 = inlined_call_operand.vmem [shape: f32[32,256], index: 3, kind: output, shape index: {}]  }
   0x1   :  { %s1132_s14 = smov 0   ;;  %s1134_s15 = smov 0  }
   0x2   :  { %s1136_s16 = smov 0   ;;  %s1138_s17 = smov 0  }
   0x3   :  { %s1140_s18 = smov 0   ;;  %s1142_s19 = smov 0  }
   0x4   :  { %s1144_s20 = smov 0  }
   0x5 LB: > { %s22_s21 = sadd.s32 1, %s1096_s18  ;;  %s25_s22 = sadd.s32 1, %s1100_s19  ;;  %s1104_s20 = sphi %s1144_s20, %s13_s20   ;;  %s1100_s19 = sphi %s1142_s19, %s1405_s19   ;;  %s1096_s18 = sphi %s1140_s18, %s1404_s18   ;;  %s1092_s17 = sphi %s1138_s17, %s1403_s17   ;;  %s1088_s16 = sphi %s1136_s16, %s1402_s16   ;;  %s1084_s15 = sphi %s1134_s15, %s1401_s15   ;;  %s1080_s14 = sphi %s1132_s14, %s1400_s14   ;;  %s1076_s13 = sphi %s1130_s13, %s1399_s13   ;;  %s1072_s12 = sphi %s1128_s12, %s1398_s12  }
   0x6   : > { %p23_p0 = scmp.ge.s32.totalorder %s22_s21, 2  ;;  %p62_p1 = scmp.ne.s32.totalorder %s1084_s15, %s1080_s14 }
   0x7   : > { %s847_s23 = sadd.s32 4294967295, %s1104_s20   ;;  %p63_p2 = scmp.eq.s32.totalorder %s1104_s20, 0 }
   0x8   : > { %s1407_s21 = smov (%p23_p0, %s22_s21), 0  ;;  %s1409_s22 = smov (!%p23_p0, %s25_s22), %s1100_s19 }
   0x9   : > { %p27_p3 = scmp.ge.s32.totalorder %s1409_s22, 2  ;;  %s50_s24 = ssub.s32 %s1096_s18, %s1407_s21 }
   0xa   : > { %p1184_p4 = por %p63_p2, %p62_p1  ;;  %p112_p5 = scmp.ne.s32.totalorder %s1076_s13, %s1072_s12 }
   0xb   : > { %s1411_s22 = smov (%p27_p3, %s1409_s22), 0  ;;  %s55_s26 = sadd.s32 1, %s1084_s15 }
   0xc   : > { %p113_p6 = scmp.eq.s32.totalorder %s847_s23, 3  ;;  %s51_s27 = ssub.s32 %s1100_s19, %s1411_s22 }
   0xd   : > { %s102_s28 = sadd.s32 1, %s1076_s13  ;;  %s52_s29 = sor.u32 %s51_s27, %s50_s24 }
   0xe   : > { %p100_p7 = scmp.eq.s32.totalorder %s51_s27, 0  ;;  %p53_p8 = scmp.eq.s32.totalorder %s52_s29, 0 }
   0xf   : > { %p1196_p9 = por %p113_p6, %p112_p5  ;;  %p850_p10 = scmp.ge.s32.totalorder %s1104_s20, 4 }
  0x10   : > { %s1201_s4 = scalar_select %p100_p7, %s1076_s13, %s102_s28  }
  0x11   : > { %s1204_s5 = scalar_select %p53_p8, %s1084_s15, %s55_s26  }
  0x12   : > { %141 = sbr.rel (%p850_p10) target bundleno = 54 (0x36), region = 24 }
  0x17   : > { %144 = sbr.rel (!%p1184_p4) target bundleno = 54 (0x36), region = 28  ;;  %s146_s6 = sand.u32 (%p1184_p4), 1, %s1084_s15  }
  0x18   : > { %s888_s7 = smul.u32 (%p1184_p4), 72, %s1096_s18 }
  0x19   : > { %s930_s8 = smul.u32 (%p1184_p4), 144, %s146_s6 }
  0x1a   : > { %s151_s9 = sadd.s32 (%p1184_p4), %s1100_s19, %s888_s7 }
  0x1b   : > { %s852_s10 = sshll.u32 (%p1184_p4), %s151_s9, 2  ;;  %s1220_s25 = scalar_lea.vmem (%p1184_p4), [#allocation2], %s930_s8 }
  0x1c   : > { %s1215_s24 = scalar_lea.vmem %s1393_s1, %s852_s10 }
  0x1d   : > { %v170_v0 = vld [vmem:[%s1215_s24] sm:$0xf]  ;;  %v172_v1 = vld [vmem:[%s1215_s24 + $0x8] sm:$0xf]  ;;  %v174_v2 = vld [vmem:[%s1215_s24 + $0x10] sm:$0xf] }
  0x1e   : > { %171 = vst [vmem:[%s1220_s25] sm:$0xf] %v170_v0  ;;  %173 = vst [vmem:[%s1220_s25 + $0x4] sm:$0xf] %v172_v1  ;;  %v176_v3 = vld [vmem:[%s1215_s24 + $0x18] sm:$0xf] }
  0x1f   : > { %175 = vst [vmem:[%s1220_s25 + $0x8] sm:$0xf] %v174_v2  ;;  %v178_v4 = vld [vmem:[%s1215_s24 + $0x20] sm:$0xf]  ;;  %v180_v5 = vld [vmem:[%s1215_s24 + $0x28] sm:$0xf] }
  0x20   : > { %177 = vst [vmem:[%s1220_s25 + $0xc] sm:$0xf] %v176_v3  ;;  %179 = vst [vmem:[%s1220_s25 + $0x10] sm:$0xf] %v178_v4  ;;  %v182_v6 = vld [vmem:[%s1215_s24 + $0x30] sm:$0xf] }
  0x21   : > { %181 = vst [vmem:[%s1220_s25 + $0x14] sm:$0xf] %v180_v5  ;;  %v184_v7 = vld [vmem:[%s1215_s24 + $0x38] sm:$0xf]  ;;  %v186_v8 = vld [vmem:[%s1215_s24 + $0x40] sm:$0xf] }
  0x22   : > { %183 = vst [vmem:[%s1220_s25 + $0x18] sm:$0xf] %v182_v6  ;;  %185 = vst [vmem:[%s1220_s25 + $0x1c] sm:$0xf] %v184_v7  ;;  %v188_v9 = vld [vmem:[%s1215_s24 + $0x48] sm:$0xf] }
  0x23   : > { %187 = vst [vmem:[%s1220_s25 + $0x20] sm:$0xf] %v186_v8  ;;  %v190_v10 = vld [vmem:[%s1215_s24 + $0x50] sm:$0xf]  ;;  %v192_v11 = vld [vmem:[%s1215_s24 + $0x58] sm:$0xf] }
  0x24   : > { %189 = vst [vmem:[%s1220_s25 + $0x24] sm:$0xf] %v188_v9  ;;  %191 = vst [vmem:[%s1220_s25 + $0x28] sm:$0xf] %v190_v10  ;;  %v194_v12 = vld [vmem:[%s1215_s24 + $0x60] sm:$0xf] }
  0x25   : > { %193 = vst [vmem:[%s1220_s25 + $0x2c] sm:$0xf] %v192_v11  ;;  %v196_v13 = vld [vmem:[%s1215_s24 + $0x68] sm:$0xf]  ;;  %v198_v14 = vld [vmem:[%s1215_s24 + $0x70] sm:$0xf] }
  0x26   : > { %195 = vst [vmem:[%s1220_s25 + $0x30] sm:$0xf] %v194_v12  ;;  %197 = vst [vmem:[%s1220_s25 + $0x34] sm:$0xf] %v196_v13  ;;  %v200_v15 = vld [vmem:[%s1215_s24 + $0x78] sm:$0xf] }
  0x27   : > { %199 = vst [vmem:[%s1220_s25 + $0x38] sm:$0xf] %v198_v14  ;;  %v202_v16 = vld [vmem:[%s1215_s24 + $0x80] sm:$0xf]  ;;  %v204_v17 = vld [vmem:[%s1215_s24 + $0x88] sm:$0xf] }
  0x28   : > { %201 = vst [vmem:[%s1220_s25 + $0x3c] sm:$0xf] %v200_v15  ;;  %203 = vst [vmem:[%s1220_s25 + $0x40] sm:$0xf] %v202_v16  ;;  %v206_v18 = vld [vmem:[%s1215_s24 + $0x90] sm:$0xf] }
  0x29   : > { %205 = vst [vmem:[%s1220_s25 + $0x44] sm:$0xf] %v204_v17  ;;  %v208_v19 = vld [vmem:[%s1215_s24 + $0x98] sm:$0xf]  ;;  %v210_v20 = vld [vmem:[%s1215_s24 + $0xa0] sm:$0xf] }
  0x2a   : > { %207 = vst [vmem:[%s1220_s25 + $0x48] sm:$0xf] %v206_v18  ;;  %209 = vst [vmem:[%s1220_s25 + $0x4c] sm:$0xf] %v208_v19  ;;  %v212_v21 = vld [vmem:[%s1215_s24 + $0xa8] sm:$0xf] }
  0x2b   : > { %211 = vst [vmem:[%s1220_s25 + $0x50] sm:$0xf] %v210_v20  ;;  %v214_v22 = vld [vmem:[%s1215_s24 + $0xb0] sm:$0xf]  ;;  %v216_v23 = vld [vmem:[%s1215_s24 + $0xb8] sm:$0xf] }
  0x2c   : > { %213 = vst [vmem:[%s1220_s25 + $0x54] sm:$0xf] %v212_v21  ;;  %215 = vst [vmem:[%s1220_s25 + $0x58] sm:$0xf] %v214_v22  ;;  %v218_v24 = vld [vmem:[%s1215_s24 + $0xc0] sm:$0xf] }
  0x2d   : > { %217 = vst [vmem:[%s1220_s25 + $0x5c] sm:$0xf] %v216_v23  ;;  %v220_v25 = vld [vmem:[%s1215_s24 + $0xc8] sm:$0xf]  ;;  %v222_v26 = vld [vmem:[%s1215_s24 + $0xd0] sm:$0xf] }
  0x2e   : > { %219 = vst [vmem:[%s1220_s25 + $0x60] sm:$0xf] %v218_v24  ;;  %221 = vst [vmem:[%s1220_s25 + $0x64] sm:$0xf] %v220_v25  ;;  %v224_v27 = vld [vmem:[%s1215_s24 + $0xd8] sm:$0xf] }
  0x2f   : > { %223 = vst [vmem:[%s1220_s25 + $0x68] sm:$0xf] %v222_v26  ;;  %v226_v28 = vld [vmem:[%s1215_s24 + $0xe0] sm:$0xf]  ;;  %v228_v29 = vld [vmem:[%s1215_s24 + $0xe8] sm:$0xf] }
  0x30   : > { %225 = vst [vmem:[%s1220_s25 + $0x6c] sm:$0xf] %v224_v27  ;;  %227 = vst [vmem:[%s1220_s25 + $0x70] sm:$0xf] %v226_v28  ;;  %v230_v30 = vld [vmem:[%s1215_s24 + $0xf0] sm:$0xf] }
  0x31   : > { %229 = vst [vmem:[%s1220_s25 + $0x74] sm:$0xf] %v228_v29  ;;  %v232_v31 = vld [vmem:[%s1215_s24 + $0xf8] sm:$0xf]  ;;  %v234_v32 = vld [vmem:[%s1215_s24 + $0x100] sm:$0xf] }
  0x32   : > { %231 = vst [vmem:[%s1220_s25 + $0x78] sm:$0xf] %v230_v30  ;;  %233 = vst [vmem:[%s1220_s25 + $0x7c] sm:$0xf] %v232_v31  ;;  %v236_v33 = vld [vmem:[%s1215_s24 + $0x108] sm:$0xf] }
  0x33   : > { %235 = vst [vmem:[%s1220_s25 + $0x80] sm:$0xf] %v234_v32  ;;  %v238_v34 = vld [vmem:[%s1215_s24 + $0x110] sm:$0xf]  ;;  %v240_v35 = vld [vmem:[%s1215_s24 + $0x118] sm:$0xf] }
  0x34   : > { %237 = vst [vmem:[%s1220_s25 + $0x84] sm:$0xf] %v236_v33  ;;  %239 = vst [vmem:[%s1220_s25 + $0x88] sm:$0xf] %v238_v34 }
  0x35   : > { %241 = vst [vmem:[%s1220_s25 + $0x8c] sm:$0xf] %v240_v35 }
  0x36 PF: > { %p853_p11 = scmp.ge.s32.totalorder %s1104_s20, 1  ;;  %p336_p12 = scmp.lt.s32.totalorder %s1104_s20, 5 }
  0x38   : > { %p337_p13 = pnand %p853_p11, %p336_p12 }
  0x39   : > { %s343_s26 = sand.u32 (!%p337_p13), 1, %s1080_s14   ;;  %s362_s27 = sand.u32 (!%p337_p13), 1, %s1072_s12  }
  0x3a   : > { %340 = sbr.rel (%p337_p13) target bundleno = 461 (0x1cd), region = 69  ;;  %s854_s29 = sshll.u32 (!%p337_p13), %s362_s27, 5 }
  0x3b   : > { %s931_s28 = smul.u32 (!%p337_p13), 144, %s343_s26  ;;  %s1297_s7 = scalar_lea.vmem (!%p337_p13), [#allocation3], %s854_s29 }
  0x3c   : > { %p855_p0 = scmp.ne.s32.totalorder (!%p337_p13), %s1088_s16, 0 }
  0x3d   : > { %s1295_s6 = scalar_lea.vmem (!%p337_p13), [#allocation2], %s931_s28 }
  0x3f   : > { %370 = sbr.rel (%p855_p0) target bundleno = 71 (0x47), region = 77 }
  0x44   : > { %v1106_v36 = vmov 0.0  }
  0x45   : > { %371 = vst [vmem:[%s1297_s7] sm:$0xff] %v1106_v36  ;;  %372 = vst [vmem:[%s1297_s7 + $0x8] sm:$0xff] %v1106_v36 }
  0x46   : > { %373 = vst [vmem:[%s1297_s7 + $0x10] sm:$0xff] %v1106_v36  ;;  %374 = vst [vmem:[%s1297_s7 + $0x18] sm:$0xff] %v1106_v36 }
  0x47 PF: > { %v1006_v37 = vld [vmem:[%s1295_s6 + $0x78] sm:$0xff]   ;;  %v1008_v39 = vld [vmem:[%s1295_s6 + $0x70] sm:$0xff]   ;;  %v1010_v41 = vld [vmem:[%s1295_s6 + $0x68] sm:$0xff]   ;;  %s889_s12 = smul.u32 48, %s1088_s16  ;;  %vm564_vm0 = vcmask 261120   ;;  %p883_p1 = scmp.ne.s32.totalorder %s1088_s16, 1 }
  0x48   : > { %v1007_v38 = vld [vmem:[%s1295_s6 + $0x38] sm:$0xff]   ;;  %890 = vmatprep.subr.bf16.mxu0 %v1006_v37  ;;  %v1009_v40 = vld [vmem:[%s1295_s6 + $0x30] sm:$0xff]   ;;  %v1011_v42 = vld [vmem:[%s1295_s6 + $0x28] sm:$0xff]  }
  0x49   : > { %891 = vmatpush3.bf16.msra.mxu0 %v1007_v38  ;;  %v1012_v43 = vld [vmem:[%s1295_s6 + $0x60] sm:$0xff]   ;;  %v1014_v45 = vld [vmem:[%s1295_s6 + $0x58] sm:$0xff]   ;;  %v1020_v46 = vld [vmem:[%s1295_s6 + $0x88] sm:$0xff]   ;;  %s417_s9 = scalar_lea.vmem %s1392_s0, %s889_s12 }
  0x4a   : > { %892 = vmatprep.subr.bf16.mxu0 %v1008_v39  ;;  %v1013_v44 = vld [vmem:[%s1295_s6 + $0x20] sm:$0xff]   ;;  %v1015_v47 = vld [vmem:[%s1295_s6 + $0x18] sm:$0xff]   ;;  %v1016_v48 = vld [vmem:[%s1295_s6 + $0x50] sm:$0xff]   ;;  %922 = vmatprep.subr.bf16.mxu1 %v1020_v46 }
  0x4b   : > { %v1017_v49 = vld [vmem:[%s1295_s6 + $0x10] sm:$0xff]   ;;  %923 = vmatpush3.bf16.msra.mxu1 %v1020_v46  ;;  %v1023_v50 = vld [vmem:[%s1295_s6 + $0x80] sm:$0xff]   ;;  %v1018_v51 = vld [vmem:[%s1295_s6 + $0x48] sm:$0xff]  }
  0x4c   : > { %924 = vmatprep.subr.bf16.mxu1 %v1023_v50  ;;  %v1026_v52 = vld [vmem:[%s417_s9 + $0x4] ss:$12 sps:$4 sm:$0xff]   ;;  %v1027_v53 = vld [vmem:[%s417_s9 + $0x8] ss:$12 sps:$4 sm:$0xff]   ;;  %v1028_v54 = vld [vmem:[%s417_s9 + $0x20] ss:$12 sps:$4 sm:$0xff]  }
  0x4d   : > { %893 = vmatpush3.bf16.msra.mxu0 %v1009_v40  ;;  %603 = vmatprep.mubr.bf16.mxu0 %v1026_v52  ;;  %v1019_v55 = vld [vmem:[%s1295_s6 + $0x8] sm:$0xff]   ;;  %v1021_v56 = vld [vmem:[%s1295_s6 + $0x40] sm:$0xff]  }
  0x4e   : > { %894 = vmatprep.subr.bf16.mxu0 %v1010_v41  ;;  %926 = vmatprep.mubr.msk.bf16.mxu1 %vm564_vm0, %v1027_v53  ;;  %v1022_v57 = vld [vmem:[%s1295_s6] sm:$0xff]   ;;  %v1029_v59 = vld [vmem:[%s417_s9 + $0x1c] ss:$12 sps:$4 sm:$0xff]  }
  0x4f   : > { %925 = vmatpush3.bf16.msra.mxu1 %v1023_v50  ;;  %v1024_v58 = vld [vmem:[%s417_s9] ss:$12 sps:$4 sm:$0xff]   ;;  %v1031_v60 = vld [vmem:[%s417_s9 + $0x18] ss:$12 sps:$4 sm:$0xff]   ;;  %v413_v16 = vld [vmem:[%s1297_s7 + $0x10] sm:$0xff] }
  0x50   : > { %v411_v4 = vld [vmem:[%s1297_s7] sm:$0xff]  ;;  %v412_v11 = vld [vmem:[%s1297_s7 + $0x8] sm:$0xff]  ;;  %v414_v22 = vld [vmem:[%s1297_s7 + $0x18] sm:$0xff] }
  0x51   : > { %895 = vmatpush3.bf16.msra.mxu0 %v1011_v42 }
  0x52   : > { %896 = vmatprep.subr.bf16.mxu0 %v1012_v43  ;;  %927 = vmatmul.mubr.msk.bf16.vlgmr.msra.gmra.mxu1 %vm564_vm0, %v1028_v54 }
  0x55   : > { %897 = vmatpush3.bf16.msra.mxu0 %v1013_v44 }
  0x56   : > { %898 = vmatprep.subr.bf16.mxu0 %v1014_v45 }
  0x59   : > { %899 = vmatpush3.bf16.msra.mxu0 %v1015_v47 }
  0x5a   : > { %900 = vmatprep.subr.bf16.mxu0 %v1016_v48 }
  0x5d   : > { %901 = vmatpush3.bf16.msra.mxu0 %v1017_v49 }
  0x5e   : > { %902 = vmatprep.subr.bf16.mxu0 %v1018_v51 }
  0x61   : > { %903 = vmatpush3.bf16.msra.mxu0 %v1019_v55 }
  0x62   : > { %904 = vmatprep.subr.bf16.mxu0 %v1021_v56 }
  0x65   : > { %905 = vmatpush3.bf16.msra.mxu0 %v1022_v57 }
  0x68   : > { %604 = vmatmul.mubr.bf16.vlgmr.msra.gmra.mxu0 %v1024_v58 }
  0x69   : > { %611 = vmatprep.mubr.bf16.mxu0 %v1029_v59 }
  0x70   : > { %612 = vmatmul.mubr.bf16.gmra.mxu0 %v1031_v60 }
 0x112   : > { %v928_v61 = vpop.f32.mrf.mxu1 }
 0x114   : > { %v654_v62 = vpop.f32.mrf.mxu1 }
 0x116   : > { %v929_v1 = vpop.f32.mrf.mxu1 }
 0x118   : > { %v657_v7 = vpop.f32.mrf.mxu1 }
 0x128   : > { %v906_v63 = vpop.f32.mrf.mxu0 }
 0x12a   : > { %v907_v0 = vpop.f32.mrf.mxu0 }
 0x12b   : > { %v908_v2 = vadd.f32 %v907_v0, %v906_v63 }
 0x12c   : > { %v909_v3 = vpop.f32.mrf.mxu0 }
 0x12d   : > { %v655_v5 = vadd.f32 %v908_v2, %v654_v62 }
 0x12e   : > { %v910_v6 = vpop.f32.mrf.mxu0 }
 0x12f   : > { %v669_v8 = vadd.f32 %v655_v5, %v411_v4  ;;  %v911_v9 = vadd.f32 %v910_v6, %v909_v3 }
 0x130   : > { %v912_v10 = vpop.f32.mrf.mxu0 }
 0x131   : > { %673 = vst [vmem:[%s1297_s7] sm:$0xff] %v669_v8  ;;  %v658_v12 = vadd.f32 %v911_v9, %v657_v7 }
 0x132   : > { %v913_v13 = vpop.f32.mrf.mxu0 }
 0x133   : > { %v670_v14 = vadd.f32 %v658_v12, %v412_v11  ;;  %v914_v15 = vadd.f32 %v913_v13, %v912_v10 }
 0x134   : > { %v915_v17 = vpop.f32.mrf.mxu0 }
 0x135   : > { %674 = vst [vmem:[%s1297_s7 + $0x8] sm:$0xff] %v670_v14  ;;  %v663_v18 = vadd.f32 %v928_v61, %v914_v15 }
 0x136   : > { %v916_v19 = vpop.f32.mrf.mxu0 }
 0x137   : > { %v671_v20 = vadd.f32 %v663_v18, %v413_v16  ;;  %v917_v21 = vadd.f32 %v916_v19, %v915_v17 }
 0x139   : > { %675 = vst [vmem:[%s1297_s7 + $0x10] sm:$0xff] %v671_v20  ;;  %v666_v23 = vadd.f32 %v929_v1, %v917_v21  ;;  %680 = sbr.rel (%p883_p1) target bundleno = 453 (0x1c5), region = 81 }
 0x13b   : > { %v672_v24 = vadd.f32 %v666_v23, %v414_v22 }
 0x13d   : > { %676 = vst [vmem:[%s1297_s7 + $0x18] sm:$0xff] %v672_v24 }
 0x13e   : > { %v687_v25 = vld [vmem:[%s1394_s2 + $0x10] sm:$0xff]  ;;  %v685_v26 = vld [vmem:[%s1394_s2] sm:$0xff]  ;;  %v1107_v27 = vmov 0   ;;  %v688_v28 = vld [vmem:[%s1394_s2 + $0x18] sm:$0xff] }
 0x13f   : > { %1033 = vset.pattern.permute.xlu1 %v1107_v27  ;;  %1032 = vset.pattern.permute.xlu0 %v1107_v27  ;;  %v686_v29 = vld [vmem:[%s1394_s2 + $0x8] sm:$0xff]  ;;  %v681_v31 = vld [vmem:[%s1297_s7] sm:$0xff] }
 0x140   : > { %701 = vperm.xlu1 %1033, %v687_v25   ;;  %691 = vperm.xlu0 %1032, %v685_v26   ;;  %v683_v30 = vld [vmem:[%s1297_s7 + $0x10] sm:$0xff]  ;;  %v682_v37 = vld [vmem:[%s1297_s7 + $0x8] sm:$0xff] }
 0x144   : > { %706 = vperm.xlu1 %1033, %v688_v28   ;;  %696 = vperm.xlu0 %1032, %v686_v29   ;;  %v684_v36 = vld [vmem:[%s1297_s7 + $0x18] sm:$0xff] }
 0x1bb   : > { %v702_v32 = vpop.permute.xlu1 %701  ;;  %v692_v33 = vpop.permute.xlu0 %691 }
 0x1bc   : > { %v711_v34 = vadd.f32 %v702_v32, %v683_v30  ;;  %v709_v35 = vadd.f32 %v692_v33, %v681_v31 }
 0x1be   : > { %v715_v38 = vmax.f32 %v711_v34, 0.0  ;;  %v713_v39 = vmax.f32 %v709_v35, 0.0 }
 0x1bf   : > { %v707_v40 = vpop.permute.xlu1 %706  ;;  %v697_v41 = vpop.permute.xlu0 %696 }
 0x1c0   : > { %719 = vst [vmem:[%s1297_s7 + $0x10] sm:$0xff] %v715_v38  ;;  %717 = vst [vmem:[%s1297_s7] sm:$0xff] %v713_v39  ;;  %v712_v42 = vadd.f32 %v707_v40, %v684_v36  ;;  %v710_v43 = vadd.f32 %v697_v41, %v682_v37 }
 0x1c2   : > { %v716_v44 = vmax.f32 %v712_v42, 0.0  ;;  %v714_v45 = vmax.f32 %v710_v43, 0.0 }
 0x1c4   : > { %720 = vst [vmem:[%s1297_s7 + $0x18] sm:$0xff] %v716_v44  ;;  %718 = vst [vmem:[%s1297_s7 + $0x8] sm:$0xff] %v714_v45 }
 0x1c5 PF: > { %727 = sbr.rel (!%p1196_p9) target bundleno = 461 (0x1cd), region = 85  ;;  %s885_s28 = sshll.u32 (%p1196_p9), %s1092_s17, 3 }
 0x1c6   : > { %s729_s12 = scalar_lea.vmem (%p1196_p9), %s1395_s3, %s885_s28 }
 0x1c7   : > { %v764_v46 = vld [vmem:[%s1297_s7] sm:$0xff] (%p1196_p9)  ;;  %v768_v48 = vld [vmem:[%s1297_s7 + $0x10] sm:$0xff] (%p1196_p9) }
 0x1c8   : > { %765 = vst [vmem:[%s729_s12] sm:$0xff] (%p1196_p9), %v764_v46  ;;  %769 = vst [vmem:[%s729_s12 + $0x20] sm:$0xff] (%p1196_p9), %v768_v48 }
 0x1cb   : > { %v766_v47 = vld [vmem:[%s1297_s7 + $0x8] sm:$0xff]  ;;  %v770_v49 = vld [vmem:[%s1297_s7 + $0x18] sm:$0xff] }
 0x1cc   : > { %767 = vst [vmem:[%s729_s12 + $0x10] sm:$0xff] %v766_v47  ;;  %771 = vst [vmem:[%s729_s12 + $0x30] sm:$0xff] %v770_v49 }
 0x1cd PF: > { %s13_s20 = sadd.s32 1, %s1104_s20   ;;  %s1398_s12 = smov %s1076_s13 }
 0x1ce   : > { %p10_p2 = scmp.ge.s32.totalorder %s13_s20, 6   ;;  %s1399_s13 = smov %s1201_s4 }
 0x1cf   : > { %s1400_s14 = smov %s1084_s15  ;;  %s1401_s15 = smov %s1204_s5 }
 0x1d0   : > { %s1402_s16 = smov %s1096_s18  ;;  %s1403_s17 = smov %s1100_s19 }
 0x1d1   : > { %s1404_s18 = smov %s1407_s21  ;;  %s1405_s19 = smov %s1411_s22 }
 0x1d2   :  { %12 = sbr.rel (!%p10_p2) target bundleno = 5 (0x5), region = 155 }

// kernel: rpmms_forward.70
= control target key start
LH: loop header
LB: loop body
LE: loop exit
PB: predicated region body
PF: predicated region fallthrough
CT: control target
= control target key end

     0   :  { %v197_v1 = vmov 0   ;;  %vm60_vm0 = vcmask 261120   ;;  %s256_s1 = inlined_call_operand.vmem [shape: bf16[32,128], index: 1, kind: input, shape index: {}]   ;;  %s257_s0 = inlined_call_operand.vmem [shape: bf16[1,32,32], index: 0, kind: input, shape index: {}]   ;;  %s258_s2 = inlined_call_operand.vmem [shape: f32[32,1], index: 2, kind: input, shape index: {}]   ;;  %s259_s3 = inlined_call_operand.vmem [shape: f32[32,128], index: 3, kind: output, shape index: {}]  }
   0x1   :  { %v193_v0 = vld [vmem:[%s256_s1 + $0x8] sm:$0xff]   ;;  %192 = vset.pattern.permute.xlu1 %v197_v1  ;;  %191 = vset.pattern.permute.xlu0 %v197_v1  ;;  %v194_v2 = vld [vmem:[%s256_s1] sm:$0xff]   ;;  %v133_v4 = vld [vmem:[%s258_s2 + $0x10] sm:$0xff] }
   0x2   :  { %181 = vmatprep.subr.bf16.mxu0 %v193_v0  ;;  %v195_v3 = vld [vmem:[%s257_s0] sm:$0xff]   ;;  %147 = vperm.xlu1 %192, %v133_v4   ;;  %v196_v6 = vld [vmem:[%s257_s0 + $0x8] sm:$0xff]   ;;  %v134_v7 = vld [vmem:[%s258_s2 + $0x18] sm:$0xff] }
   0x3   :  { %182 = vmatpush3.bf16.msra.mxu0 %v193_v0  ;;  %185 = vmatprep.mubr.msk.bf16.mxu0 %vm60_vm0, %v195_v3  ;;  %v131_v5 = vld [vmem:[%s258_s2] sm:$0xff]  ;;  %v132_v8 = vld [vmem:[%s258_s2 + $0x8] sm:$0xff] }
   0x4   :  { %183 = vmatprep.subr.bf16.mxu0 %v194_v2  ;;  %137 = vperm.xlu0 %191, %v131_v5  }
   0x6   :  { %152 = vperm.xlu1 %192, %v134_v7  }
   0x7   :  { %184 = vmatpush3.bf16.msra.mxu0 %v194_v2 }
   0x8   :  { %142 = vperm.xlu0 %191, %v132_v8  }
   0xa   :  { %186 = vmatmul.mubr.msk.bf16.vlgmr.msra.gmra.mxu0 %vm60_vm0, %v196_v6 }
  0x7d   :  { %v148_v10 = vpop.permute.xlu1 %147 }
  0x7f   :  { %v138_v12 = vpop.permute.xlu0 %137 }
  0x81   :  { %v153_v18 = vpop.permute.xlu1 %152 }
  0x83   :  { %v143_v21 = vpop.permute.xlu0 %142 }
  0xca   :  { %v187_v9 = vpop.f32.mrf.mxu0 }
  0xcb   :  { %v157_v13 = vadd.f32 %v187_v9, %v148_v10 }
  0xcc   :  { %v101_v11 = vpop.f32.mrf.mxu0 }
  0xcd   :  { %v161_v15 = vmax.f32 %v157_v13, 0.0  ;;  %v155_v16 = vadd.f32 %v138_v12, %v101_v11 }
  0xce   :  { %v188_v14 = vpop.f32.mrf.mxu0 }
  0xcf   :  { %165 = vst [vmem:[%s259_s3 + $0x10] sm:$0xff] %v161_v15  ;;  %v159_v19 = vmax.f32 %v155_v16, 0.0  ;;  %v158_v20 = vadd.f32 %v188_v14, %v153_v18 }
  0xd0   :  { %v104_v17 = vpop.f32.mrf.mxu0 }
  0xd1   :  { %163 = vst [vmem:[%s259_s3] sm:$0xff] %v159_v19  ;;  %v162_v22 = vmax.f32 %v158_v20, 0.0  ;;  %v156_v23 = vadd.f32 %v143_v21, %v104_v17 }
  0xd3   :  { %166 = vst [vmem:[%s259_s3 + $0x18] sm:$0xff] %v162_v22  ;;  %v160_v24 = vmax.f32 %v156_v23, 0.0 }
  0xd5   :  { %164 = vst [vmem:[%s259_s3 + $0x8] sm:$0xff] %v160_v24 }

// kernel: rpmms_forward.72
= control target key start
LH: loop header
LB: loop body
LE: loop exit
PB: predicated region body
PF: predicated region fallthrough
CT: control target
= control target key end

     0   :  { %v468_v1 = vmov 0   ;;  %vm212_vm0 = vcmask 261120   ;;  %s587_s1 = inlined_call_operand.vmem [shape: bf16[288,128], index: 1, kind: input, shape index: {}]   ;;  %s588_s0 = inlined_call_operand.vmem [shape: bf16[1,32,288], index: 0, kind: input, shape index: {}]   ;;  %s589_s2 = inlined_call_operand.vmem [shape: f32[32,1], index: 2, kind: input, shape index: {}]   ;;  %s590_s3 = inlined_call_operand.vmem [shape: f32[32,128], index: 3, kind: output, shape index: {}]  }
   0x1   :  { %v442_v0 = vld [vmem:[%s587_s1 + $0x78] sm:$0xff]   ;;  %440 = vset.pattern.permute.xlu0 %v468_v1  ;;  %441 = vset.pattern.permute.xlu1 %v468_v1  ;;  %v444_v3 = vld [vmem:[%s587_s1 + $0x70] sm:$0xff]   ;;  %v446_v5 = vld [vmem:[%s587_s1 + $0x68] sm:$0xff]  }
   0x2   :  { %v443_v2 = vld [vmem:[%s587_s1 + $0x38] sm:$0xff]   ;;  %398 = vmatprep.subr.bf16.mxu0 %v442_v0  ;;  %v445_v4 = vld [vmem:[%s587_s1 + $0x30] sm:$0xff]   ;;  %v447_v6 = vld [vmem:[%s587_s1 + $0x28] sm:$0xff]  }
   0x3   :  { %399 = vmatpush3.bf16.msra.mxu0 %v443_v2  ;;  %v448_v7 = vld [vmem:[%s587_s1 + $0x60] sm:$0xff]   ;;  %v450_v9 = vld [vmem:[%s587_s1 + $0x58] sm:$0xff]   ;;  %v456_v10 = vld [vmem:[%s587_s1 + $0x88] sm:$0xff]  }
   0x4   :  { %400 = vmatprep.subr.bf16.mxu0 %v444_v3  ;;  %v449_v8 = vld [vmem:[%s587_s1 + $0x20] sm:$0xff]   ;;  %v451_v11 = vld [vmem:[%s587_s1 + $0x18] sm:$0xff]   ;;  %v452_v12 = vld [vmem:[%s587_s1 + $0x50] sm:$0xff]   ;;  %430 = vmatprep.subr.bf16.mxu1 %v456_v10 }
   0x5   :  { %v453_v13 = vld [vmem:[%s587_s1 + $0x10] sm:$0xff]   ;;  %431 = vmatpush3.bf16.msra.mxu1 %v456_v10  ;;  %v459_v14 = vld [vmem:[%s587_s1 + $0x80] sm:$0xff]   ;;  %v454_v15 = vld [vmem:[%s587_s1 + $0x48] sm:$0xff]  }
   0x6   :  { %432 = vmatprep.subr.bf16.mxu1 %v459_v14  ;;  %v462_v16 = vld [vmem:[%s588_s0 + $0x4] ss:$12 sps:$4 sm:$0xff]   ;;  %v463_v17 = vld [vmem:[%s588_s0 + $0x8] ss:$12 sps:$4 sm:$0xff]   ;;  %v464_v18 = vld [vmem:[%s588_s0 + $0x20] ss:$12 sps:$4 sm:$0xff]  }
   0x7   :  { %401 = vmatpush3.bf16.msra.mxu0 %v445_v4  ;;  %251 = vmatprep.mubr.bf16.mxu0 %v462_v16  ;;  %v332_v19 = vld [vmem:[%s589_s2] sm:$0xff]  ;;  %v455_v20 = vld [vmem:[%s587_s1 + $0x8] sm:$0xff]   ;;  %v334_v21 = vld [vmem:[%s589_s2 + $0x10] sm:$0xff] }
   0x8   :  { %402 = vmatprep.subr.bf16.mxu0 %v446_v5  ;;  %434 = vmatprep.mubr.msk.bf16.mxu1 %vm212_vm0, %v463_v17  ;;  %v457_v22 = vld [vmem:[%s587_s1 + $0x40] sm:$0xff]   ;;  %v333_v23 = vld [vmem:[%s589_s2 + $0x8] sm:$0xff]  ;;  %v335_v24 = vld [vmem:[%s589_s2 + $0x18] sm:$0xff] }
   0x9   :  { %433 = vmatpush3.bf16.msra.mxu1 %v459_v14  ;;  %338 = vperm.xlu0 %440, %v332_v19   ;;  %v458_v25 = vld [vmem:[%s587_s1] sm:$0xff]   ;;  %v465_v27 = vld [vmem:[%s588_s0 + $0x1c] ss:$12 sps:$4 sm:$0xff]  }
   0xa   :  { %348 = vperm.xlu1 %441, %v334_v21   ;;  %v460_v26 = vld [vmem:[%s588_s0] ss:$12 sps:$4 sm:$0xff]   ;;  %v467_v28 = vld [vmem:[%s588_s0 + $0x18] ss:$12 sps:$4 sm:$0xff]  }
   0xb   :  { %403 = vmatpush3.bf16.msra.mxu0 %v447_v6 }
   0xc   :  { %404 = vmatprep.subr.bf16.mxu0 %v448_v7  ;;  %435 = vmatmul.mubr.msk.bf16.vlgmr.msra.gmra.mxu1 %vm212_vm0, %v464_v18 }
   0xd   :  { %343 = vperm.xlu0 %440, %v333_v23  }
   0xe   :  { %353 = vperm.xlu1 %441, %v335_v24  }
   0xf   :  { %405 = vmatpush3.bf16.msra.mxu0 %v449_v8 }
  0x10   :  { %406 = vmatprep.subr.bf16.mxu0 %v450_v9 }
  0x13   :  { %407 = vmatpush3.bf16.msra.mxu0 %v451_v11 }
  0x14   :  { %408 = vmatprep.subr.bf16.mxu0 %v452_v12 }
  0x17   :  { %409 = vmatpush3.bf16.msra.mxu0 %v453_v13 }
  0x18   :  { %410 = vmatprep.subr.bf16.mxu0 %v454_v15 }
  0x1b   :  { %411 = vmatpush3.bf16.msra.mxu0 %v455_v20 }
  0x1c   :  { %412 = vmatprep.subr.bf16.mxu0 %v457_v22 }
  0x1f   :  { %413 = vmatpush3.bf16.msra.mxu0 %v458_v25 }
  0x22   :  { %252 = vmatmul.mubr.bf16.vlgmr.msra.gmra.mxu0 %v460_v26 }
  0x23   :  { %259 = vmatprep.mubr.bf16.mxu0 %v465_v27 }
  0x2a   :  { %260 = vmatmul.mubr.bf16.gmra.mxu0 %v467_v28 }
  0x84   :  { %v339_v36 = vpop.permute.xlu0 %338 }
  0x85   :  { %v349_v52 = vpop.permute.xlu1 %348 }
  0x88   :  { %v344_v45 = vpop.permute.xlu0 %343 }
  0x89   :  { %v354_v58 = vpop.permute.xlu1 %353 }
  0xcc   :  { %v436_v29 = vpop.f32.mrf.mxu1 }
  0xce   :  { %v302_v30 = vpop.f32.mrf.mxu1 }
  0xd0   :  { %v437_v33 = vpop.f32.mrf.mxu1 }
  0xd2   :  { %v305_v39 = vpop.f32.mrf.mxu1 }
  0xe2   :  { %v414_v31 = vpop.f32.mrf.mxu0 }
  0xe4   :  { %v415_v32 = vpop.f32.mrf.mxu0 }
  0xe5   :  { %v416_v34 = vadd.f32 %v415_v32, %v414_v31 }
  0xe6   :  { %v417_v35 = vpop.f32.mrf.mxu0 }
  0xe7   :  { %v303_v37 = vadd.f32 %v416_v34, %v302_v30 }
  0xe8   :  { %v418_v38 = vpop.f32.mrf.mxu0 }
  0xe9   :  { %v419_v40 = vadd.f32 %v418_v38, %v417_v35  ;;  %v356_v43 = vadd.f32 %v339_v36, %v303_v37 }
  0xea   :  { %v420_v41 = vpop.f32.mrf.mxu0 }
  0xeb   :  { %v306_v42 = vadd.f32 %v419_v40, %v305_v39  ;;  %v360_v47 = vmax.f32 %v356_v43, 0.0 }
  0xec   :  { %v421_v44 = vpop.f32.mrf.mxu0 }
  0xed   :  { %v422_v46 = vadd.f32 %v421_v44, %v420_v41  ;;  %364 = vst [vmem:[%s590_s3] sm:$0xff] %v360_v47  ;;  %v357_v50 = vadd.f32 %v344_v45, %v306_v42 }
  0xee   :  { %v423_v48 = vpop.f32.mrf.mxu0 }
  0xef   :  { %v311_v49 = vadd.f32 %v436_v29, %v422_v46  ;;  %v361_v54 = vmax.f32 %v357_v50, 0.0 }
  0xf0   :  { %v424_v51 = vpop.f32.mrf.mxu0 }
  0xf1   :  { %v425_v53 = vadd.f32 %v424_v51, %v423_v48  ;;  %v358_v56 = vadd.f32 %v349_v52, %v311_v49  ;;  %365 = vst [vmem:[%s590_s3 + $0x8] sm:$0xff] %v361_v54 }
  0xf3   :  { %v314_v55 = vadd.f32 %v437_v33, %v425_v53  ;;  %v362_v57 = vmax.f32 %v358_v56, 0.0 }
  0xf5   :  { %366 = vst [vmem:[%s590_s3 + $0x10] sm:$0xff] %v362_v57  ;;  %v359_v59 = vadd.f32 %v354_v58, %v314_v55 }
  0xf7   :  { %v363_v60 = vmax.f32 %v359_v59, 0.0 }
  0xf9   :  { %367 = vst [vmem:[%s590_s3 + $0x18] sm:$0xff] %v363_v60 }

// kernel: rpmms_forward.75
= control target key start
LH: loop header
LB: loop body
LE: loop exit
PB: predicated region body
PF: predicated region fallthrough
CT: control target
= control target key end

     0   :  { %v397_v0 = vmov 0   ;;  %vm149_vm0 = vcmask 261120   ;;  %v398_v20 = vmov 0.0   ;;  %vm399_vm1 = vmmov 0   ;;  %s526_s1 = inlined_call_operand.vmem [shape: bf16[160,128], index: 1, kind: input, shape index: {}]   ;;  %s527_s0 = inlined_call_operand.vmem [shape: bf16[32,160], index: 0, kind: input, shape index: {}]   ;;  %s528_s2 = inlined_call_operand.vmem [shape: f32[32,1], index: 2, kind: input, shape index: {}]   ;;  %s529_s4 = inlined_call_operand.vmem [shape: f32[2,1], index: 4, kind: input, shape index: {}]   ;;  %s530_s3 = inlined_call_operand.vmem [shape: f32[2,32], index: 3, kind: input, shape index: {}]   ;;  %s531_s5 = inlined_call_operand.vmem [shape: f32[2,128], index: 5, kind: output, shape index: {0}]   ;;  %s532_s6 = inlined_call_operand.vmem [shape: f32[2,128], index: 6, kind: output, shape index: {1}]  }
   0x1   :  { %156 = vmatprep.subr.bf16.mxu0 %v397_v0  ;;  %352 = vmatprep.subr.bf16.mxu1 %v397_v0  ;;  %v377_v1 = vld [vmem:[%s526_s1 + $0x38] sm:$0xff]   ;;  %v378_v2 = vld [vmem:[%s526_s1 + $0x30] sm:$0xff]   ;;  %v379_v3 = vld [vmem:[%s526_s1 + $0x28] sm:$0xff]   ;;  %vm290_vm2 = vcmask 1041408  }
   0x2   :  { %375 = vset.pattern.permute.xlu0 %v397_v0  ;;  %376 = vset.pattern.permute.xlu1 %v397_v0  ;;  %v380_v4 = vld [vmem:[%s526_s1 + $0x20] sm:$0xff]   ;;  %v392_v6 = vld [vmem:[%s527_s0 + $0x14] ss:$8 sps:$4 sm:$0xff]   ;;  %v48_v8 = vld [vmem:[%s528_s2 + $0x8] sm:$0xff] }
   0x3   :  { %157 = vmatpush1.bf16.msra.mxu0 %v377_v1  ;;  %362 = vmatpush1.bf16.msra.mxu1 %v377_v1  ;;  %v389_v5 = vld [vmem:[%s527_s0 + $0x4] ss:$8 sps:$4 sm:$0xff]   ;;  %v50_v7 = vld [vmem:[%s528_s2 + $0x18] sm:$0xff]  ;;  %v49_v10 = vld [vmem:[%s528_s2 + $0x10] sm:$0xff] }
   0x4   :  { %158 = vmatprep.subr.bf16.mxu0 %v397_v0  ;;  %353 = vmatprep.subr.bf16.mxu1 %v397_v0  ;;  %v381_v9 = vld [vmem:[%s526_s1 + $0x18] sm:$0xff]   ;;  %v47_v11 = vld [vmem:[%s528_s2] sm:$0xff]  ;;  %v382_v12 = vld [vmem:[%s526_s1 + $0x10] sm:$0xff]  }
   0x5   :  { %333 = vmatprep.mubr.msk.bf16.mxu0 %vm149_vm0, %v389_v5  ;;  %68 = vperm.xlu0 %375, %v50_v7   ;;  %v210_v13 = vld [vmem:[%s529_s4] sm:$0x3]  ;;  %v383_v14 = vld [vmem:[%s526_s1 + $0x8] sm:$0xff]   ;;  %v390_v19 = vld [vmem:[%s527_s0 + $0x10] ss:$8 sps:$4 sm:$0xff]  }
   0x6   :  { %334 = vmatprep.mubr.msk.bf16.mxu1 %vm149_vm0, %v392_v6  ;;  %58 = vperm.xlu1 %376, %v48_v8   ;;  %v384_v15 = vld [vmem:[%s526_s1] sm:$0xff]   ;;  %v385_v16 = vld [vmem:[%s526_s1 + $0x48] sm:$0xff]  }
   0x7   :  { %159 = vmatpush1.bf16.msra.mxu0 %v378_v2  ;;  %363 = vmatpush1.bf16.msra.mxu1 %v378_v2  ;;  %v386_v17 = vld [vmem:[%s526_s1 + $0x40] sm:$0xff]  }
   0x8   :  { %160 = vmatprep.subr.bf16.mxu0 %v397_v0  ;;  %354 = vmatprep.subr.bf16.mxu1 %v397_v0  ;;  %v387_v18 = vld [vmem:[%s527_s0] ss:$8 sps:$4 sm:$0xff]  }
   0x9   :  { %63 = vperm.xlu0 %375, %v49_v10   ;;  %v209_v41 = vld [vmem:[%s530_s3] sm:$0x3] }
   0xa   :  { %53 = vperm.xlu1 %376, %v47_v11  }
   0xb   :  { %161 = vmatpush1.bf16.msra.mxu0 %v379_v3  ;;  %364 = vmatpush1.bf16.msra.mxu1 %v379_v3 }
   0xc   :  { %162 = vmatprep.subr.bf16.mxu0 %v397_v0  ;;  %355 = vmatprep.subr.bf16.mxu1 %v397_v0 }
   0xd   :  { %213 = vperm.xlu0 %375, %v210_v13  }
   0xf   :  { %163 = vmatpush1.bf16.msra.mxu0 %v380_v4  ;;  %365 = vmatpush1.bf16.msra.mxu1 %v380_v4 }
  0x10   :  { %164 = vmatprep.subr.bf16.mxu0 %v397_v0  ;;  %356 = vmatprep.subr.bf16.mxu1 %v397_v0 }
  0x13   :  { %165 = vmatpush1.bf16.msra.mxu0 %v381_v9  ;;  %366 = vmatpush1.bf16.msra.mxu1 %v381_v9 }
  0x14   :  { %166 = vmatprep.subr.bf16.mxu0 %v397_v0  ;;  %357 = vmatprep.subr.bf16.mxu1 %v397_v0 }
  0x17   :  { %167 = vmatpush1.bf16.msra.mxu0 %v382_v12  ;;  %367 = vmatpush1.bf16.msra.mxu1 %v382_v12 }
  0x18   :  { %168 = vmatprep.subr.bf16.mxu0 %v397_v0  ;;  %358 = vmatprep.subr.bf16.mxu1 %v397_v0 }
  0x1b   :  { %169 = vmatpush1.bf16.msra.mxu0 %v383_v14  ;;  %368 = vmatpush1.bf16.msra.mxu1 %v383_v14 }
  0x1c   :  { %170 = vmatprep.subr.bf16.mxu0 %v397_v0  ;;  %359 = vmatprep.subr.bf16.mxu1 %v397_v0 }
  0x1f   :  { %171 = vmatpush1.bf16.msra.mxu0 %v384_v15  ;;  %369 = vmatpush1.bf16.msra.mxu1 %v384_v15 }
  0x20   :  { %184 = vmatprep.subr.bf16.mxu0 %v397_v0  ;;  %360 = vmatprep.subr.bf16.mxu1 %v397_v0 }
  0x23   :  { %185 = vmatpush2.bf16.msra.mxu0 %v385_v16  ;;  %370 = vmatpush2.bf16.msra.mxu1 %v385_v16 }
  0x24   :  { %186 = vmatprep.subr.bf16.mxu0 %v397_v0  ;;  %361 = vmatprep.subr.bf16.mxu1 %v397_v0 }
  0x27   :  { %187 = vmatpush2.bf16.msra.mxu0 %v386_v17  ;;  %371 = vmatpush2.bf16.msra.mxu1 %v386_v17 }
  0x28   :  { %341 = vmatprep.subr.mxu1 %v398_v20 }
  0x2a   :  { %189 = vmatmul.mubr.bf16.vlgmr.msra.gmra.mxu0 %v387_v18  ;;  %197 = vmatmul.mubr.bf16.vlgmr.msra.gmra.mxu1 %v390_v19 }
  0x2b   :  { %349 = vmatprep.mubr.msk.f32.mxu1 %vm399_vm1, %v398_v20 }
  0x80   :  { %v69_v21 = vpop.permute.xlu0 %68 }
  0x81   :  { %v59_v22 = vpop.permute.xlu1 %58 }
  0x84   :  { %v64_v27 = vpop.permute.xlu0 %63 }
  0x85   :  { %v54_v31 = vpop.permute.xlu1 %53 }
  0x88   :  { %v214_v42 = vpop.permute.xlu0 %213 }
  0xea   :  { %v190_v23 = vpop.f32.mrf.mxu0  ;;  %v198_v24 = vpop.f32.mrf.mxu1 }
  0xeb   :  { %v199_v30 = vadd.f32 %v198_v24, %v64_v27  ;;  %v191_v38 = vadd.f32 %v190_v23, %v54_v31 }
  0xec   :  { %v192_v25 = vpop.f32.mrf.mxu0  ;;  %v200_v26 = vpop.f32.mrf.mxu1 }
  0xed   :  { %v207_v37 = vmax.f32 %v199_v30, 0.0  ;;  %v205_v40 = vmax.f32 %v191_v38, 0.0 }
  0xee   :  { %v193_v28 = vpop.f32.mrf.mxu0  ;;  %v201_v29 = vpop.f32.mrf.mxu1 }
  0xef   :  { %v202_v32 = vadd.f32 %v201_v29, %v69_v21  ;;  %v194_v35 = vadd.f32 %v193_v28, %v59_v22 }
  0xf0   :  { %v195_v33 = vpop.f32.mrf.mxu0  ;;  %v203_v34 = vpop.f32.mrf.mxu1 }
  0xf1   :  { %v208_v36 = vmax.f32 %v202_v32, 0.0  ;;  %v206_v39 = vmax.f32 %v194_v35, 0.0 }
  0xf3   :  { %342 = vmatpush3.msra.mxu1 %v208_v36 }
  0xf4   :  { %343 = vmatprep.subr.mxu1 %v398_v20 }
  0xf5   :  { %344 = vmatpush3.msra.mxu1 %v207_v37 }
  0xf6   :  { %345 = vmatprep.subr.mxu1 %v398_v20 }
  0xf7   :  { %346 = vmatpush3.msra.mxu1 %v206_v39 }
  0xf8   :  { %347 = vmatprep.subr.mxu1 %v398_v20 }
  0xf9   :  { %348 = vmatpush3.msra.mxu1 %v205_v40 }
  0xfa   :  { %350 = vmatmul.mubr.msk.f32.vlgmr.msra.gmra.mxu1 %vm149_vm0, %v209_v41 }
 0x1ba   :  { %v285_v43 = vpop.f32.mrf.mxu1 }
 0x1bb   :  { %v286_v44 = vadd.f32 %v285_v43, %v214_v42 }
 0x1bc   :  { %v351_v45 = vpop.f32.mrf.mxu1 }
 0x1bd   :  { %289 = vst [vmem:[%s531_s5] sm:$0x3] %v286_v44  ;;  %v291_v46 = vsel %vm290_vm2, %v286_v44, -inf }
 0x1be   :  { %v292_v47 = vrot.slane %v291_v46, 4 }
 0x1c0   :  { %v293_v48 = vmax.f32 %v291_v46, %v292_v47 }
 0x1c2   :  { %v294_v49 = vrot.slane %v293_v48, 2 }
 0x1c4   :  { %v295_v50 = vmax.f32 %v293_v48, %v294_v49 }
 0x1c6   :  { %v296_v51 = vrot.slane %v295_v50, 1 }
 0x1c8   :  { %v297_v52 = vmax.f32 %v295_v50, %v296_v51 }
 0x1ca   :  { %v298_v53 = vsub.f32 %v286_v44, %v297_v52 }
 0x1cc   :  { %v299_v54 = vmul.f32 1.442695, %v298_v53 }
 0x1ce   :  { %393 = vpow2.f32 %v299_v54 }
 0x1db   :  { %v394_v55 = vpop.eup %393 }
 0x1dc   :  { %v301_v56 = vsel %vm290_vm2, %v394_v55, 0.0 }
 0x1dd   :  { %v302_v57 = vrot.slane %v301_v56, 4 }
 0x1df   :  { %v303_v58 = vadd.f32 %v302_v57, %v301_v56 }
 0x1e1   :  { %v304_v59 = vrot.slane %v303_v58, 2 }
 0x1e3   :  { %v305_v60 = vadd.f32 %v304_v59, %v303_v58 }
 0x1e5   :  { %v306_v61 = vrot.slane %v305_v60, 1 }
 0x1e7   :  { %v307_v62 = vadd.f32 %v306_v61, %v305_v60 }
 0x1e9   :  { %395 = vrcp.f32 %v307_v62 }
 0x1f6   :  { %v396_v63 = vpop.eup %395 }
 0x1f7   :  { %v309_v0 = vmul.f32 %v396_v63, %v394_v55 }
 0x1f9   :  { %310 = vst [vmem:[%s532_s6] sm:$0x3] %v309_v0 }

// kernel: rpmms_forward.90
= control target key start
LH: loop header
LB: loop body
LE: loop exit
PB: predicated region body
PF: predicated region fallthrough
CT: control target
= control target key end

     0   :  { %s1242_s12 = smov 0   ;;  %s1244_s13 = smov 0   ;;  %s1558_s0 = inlined_call_operand.vmem [shape: bf16[2,32,288], index: 0, kind: input, shape index: {}]   ;;  %s1559_s1 = inlined_call_operand.vmem [shape: bf16[576,512], index: 1, kind: input, shape index: {}]   ;;  %s1560_s2 = inlined_call_operand.vmem [shape: f32[32,1], index: 2, kind: input, shape index: {}]   ;;  %s1561_s3 = inlined_call_operand.vmem [shape: f32[32,512], index: 3, kind: output, shape index: {}]  }
   0x1   :  { %s1246_s14 = smov 0   ;;  %s1248_s15 = smov 0  }
   0x2   :  { %s1250_s16 = smov 0   ;;  %s1252_s17 = smov 0  }
   0x3   :  { %s1254_s18 = smov 0   ;;  %s1256_s19 = smov 0  }
   0x4   :  { %s1258_s20 = smov 0  }
   0x5 LB: > { %s22_s21 = sadd.s32 1, %s1209_s18  ;;  %s25_s22 = sadd.s32 1, %s1213_s19  ;;  %s1217_s20 = sphi %s1258_s20, %s13_s20   ;;  %s1213_s19 = sphi %s1256_s19, %s1571_s19   ;;  %s1209_s18 = sphi %s1254_s18, %s1570_s18   ;;  %s1205_s17 = sphi %s1252_s17, %s1569_s17   ;;  %s1201_s16 = sphi %s1250_s16, %s1568_s16   ;;  %s1197_s15 = sphi %s1248_s15, %s1567_s15   ;;  %s1193_s14 = sphi %s1246_s14, %s1566_s14   ;;  %s1189_s13 = sphi %s1244_s13, %s1565_s13   ;;  %s1185_s12 = sphi %s1242_s12, %s1564_s12  }
   0x6   : > { %p23_p0 = scmp.ge.s32.totalorder %s22_s21, 2  ;;  %p62_p1 = scmp.ne.s32.totalorder %s1197_s15, %s1193_s14 }
   0x7   : > { %s942_s23 = sadd.s32 4294967295, %s1217_s20   ;;  %p63_p2 = scmp.eq.s32.totalorder %s1217_s20, 0 }
   0x8   : > { %s1573_s21 = smov (%p23_p0, %s22_s21), 0  ;;  %s1575_s22 = smov (!%p23_p0, %s25_s22), %s1213_s19 }
   0x9   : > { %p27_p3 = scmp.ge.s32.totalorder %s1575_s22, 2  ;;  %s50_s24 = ssub.s32 %s1209_s18, %s1573_s21 }
   0xa   : > { %p1298_p4 = por %p63_p2, %p62_p1  ;;  %p112_p5 = scmp.ne.s32.totalorder %s1189_s13, %s1185_s12 }
   0xb   : > { %s1577_s22 = smov (%p27_p3, %s1575_s22), 0  ;;  %s55_s26 = sadd.s32 1, %s1197_s15 }
   0xc   : > { %p113_p6 = scmp.eq.s32.totalorder %s942_s23, 3  ;;  %s51_s27 = ssub.s32 %s1213_s19, %s1577_s22 }
   0xd   : > { %s102_s28 = sadd.s32 1, %s1189_s13  ;;  %s52_s29 = sor.u32 %s51_s27, %s50_s24 }
   0xe   : > { %p100_p7 = scmp.eq.s32.totalorder %s51_s27, 0  ;;  %p53_p8 = scmp.eq.s32.totalorder %s52_s29, 0 }
   0xf   : > { %p1310_p9 = por %p113_p6, %p112_p5  ;;  %p945_p10 = scmp.ge.s32.totalorder %s1217_s20, 4 }
  0x10   : > { %s1315_s4 = scalar_select %p100_p7, %s1189_s13, %s102_s28  }
  0x11   : > { %s1318_s5 = scalar_select %p53_p8, %s1197_s15, %s55_s26  }
  0x12   : > { %141 = sbr.rel (%p945_p10) target bundleno = 49 (0x31), region = 24 }
  0x17   : > { %144 = sbr.rel (!%p1298_p4) target bundleno = 49 (0x31), region = 28  ;;  %s146_s6 = sand.u32 (%p1298_p4), 1, %s1197_s15  }
  0x18   : > { %s1006_s7 = smul.u32 (%p1298_p4), 288, %s146_s6  ;;  %s946_s8 = sshll.u32 (%p1298_p4), %s1213_s19, 1 }
  0x19   : > { %s1003_s9 = smul.u32 (%p1298_p4), 144, %s1209_s18 }
  0x1a   : > { %s1334_s25 = scalar_lea.vmem (%p1298_p4), [#allocation2], %s1006_s7 }
  0x1b   : > { %s152_s10 = sadd.s32 (%p1298_p4), %s1003_s9, %s946_s8 }
  0x1c   : > { %s948_s11 = sshll.u32 %s152_s10, 2 }
  0x1d   : > { %s1329_s26 = scalar_lea.vmem %s1559_s1, %s948_s11 }
  0x1e   : > { %v253_v0 = vld [vmem:[%s1329_s26] sm:$0xff]  ;;  %v255_v1 = vld [vmem:[%s1329_s26 + $0x10] sm:$0xff] }
  0x1f   : > { %v257_v2 = vld [vmem:[%s1329_s26 + $0x20] sm:$0xff]  ;;  %254 = vst [vmem:[%s1334_s25] sm:$0xff] %v253_v0  ;;  %256 = vst [vmem:[%s1334_s25 + $0x8] sm:$0xff] %v255_v1  ;;  %v259_v3 = vld [vmem:[%s1329_s26 + $0x30] sm:$0xff] }
  0x20   : > { %258 = vst [vmem:[%s1334_s25 + $0x10] sm:$0xff] %v257_v2  ;;  %v261_v4 = vld [vmem:[%s1329_s26 + $0x40] sm:$0xff]  ;;  %v263_v5 = vld [vmem:[%s1329_s26 + $0x50] sm:$0xff]  ;;  %260 = vst [vmem:[%s1334_s25 + $0x18] sm:$0xff] %v259_v3 }
  0x21   : > { %262 = vst [vmem:[%s1334_s25 + $0x20] sm:$0xff] %v261_v4  ;;  %264 = vst [vmem:[%s1334_s25 + $0x28] sm:$0xff] %v263_v5  ;;  %v265_v6 = vld [vmem:[%s1329_s26 + $0x60] sm:$0xff]  ;;  %v267_v7 = vld [vmem:[%s1329_s26 + $0x70] sm:$0xff] }
  0x22   : > { %v269_v8 = vld [vmem:[%s1329_s26 + $0x80] sm:$0xff]  ;;  %266 = vst [vmem:[%s1334_s25 + $0x30] sm:$0xff] %v265_v6  ;;  %268 = vst [vmem:[%s1334_s25 + $0x38] sm:$0xff] %v267_v7  ;;  %v271_v9 = vld [vmem:[%s1329_s26 + $0x90] sm:$0xff] }
  0x23   : > { %270 = vst [vmem:[%s1334_s25 + $0x40] sm:$0xff] %v269_v8  ;;  %v273_v10 = vld [vmem:[%s1329_s26 + $0xa0] sm:$0xff]  ;;  %v275_v11 = vld [vmem:[%s1329_s26 + $0xb0] sm:$0xff]  ;;  %272 = vst [vmem:[%s1334_s25 + $0x48] sm:$0xff] %v271_v9 }
  0x24   : > { %274 = vst [vmem:[%s1334_s25 + $0x50] sm:$0xff] %v273_v10  ;;  %276 = vst [vmem:[%s1334_s25 + $0x58] sm:$0xff] %v275_v11  ;;  %v277_v12 = vld [vmem:[%s1329_s26 + $0xc0] sm:$0xff]  ;;  %v279_v13 = vld [vmem:[%s1329_s26 + $0xd0] sm:$0xff] }
  0x25   : > { %v281_v14 = vld [vmem:[%s1329_s26 + $0xe0] sm:$0xff]  ;;  %278 = vst [vmem:[%s1334_s25 + $0x60] sm:$0xff] %v277_v12  ;;  %280 = vst [vmem:[%s1334_s25 + $0x68] sm:$0xff] %v279_v13  ;;  %v283_v15 = vld [vmem:[%s1329_s26 + $0xf0] sm:$0xff] }
  0x26   : > { %282 = vst [vmem:[%s1334_s25 + $0x70] sm:$0xff] %v281_v14  ;;  %v285_v16 = vld [vmem:[%s1329_s26 + $0x100] sm:$0xff]  ;;  %v287_v17 = vld [vmem:[%s1329_s26 + $0x110] sm:$0xff]  ;;  %284 = vst [vmem:[%s1334_s25 + $0x78] sm:$0xff] %v283_v15 }
  0x27   : > { %286 = vst [vmem:[%s1334_s25 + $0x80] sm:$0xff] %v285_v16  ;;  %288 = vst [vmem:[%s1334_s25 + $0x88] sm:$0xff] %v287_v17  ;;  %v289_v18 = vld [vmem:[%s1329_s26 + $0x120] sm:$0xff]  ;;  %v291_v19 = vld [vmem:[%s1329_s26 + $0x130] sm:$0xff] }
  0x28   : > { %v293_v20 = vld [vmem:[%s1329_s26 + $0x140] sm:$0xff]  ;;  %290 = vst [vmem:[%s1334_s25 + $0x90] sm:$0xff] %v289_v18  ;;  %292 = vst [vmem:[%s1334_s25 + $0x98] sm:$0xff] %v291_v19  ;;  %v295_v21 = vld [vmem:[%s1329_s26 + $0x150] sm:$0xff] }
  0x29   : > { %294 = vst [vmem:[%s1334_s25 + $0xa0] sm:$0xff] %v293_v20  ;;  %v297_v22 = vld [vmem:[%s1329_s26 + $0x160] sm:$0xff]  ;;  %v299_v23 = vld [vmem:[%s1329_s26 + $0x170] sm:$0xff]  ;;  %296 = vst [vmem:[%s1334_s25 + $0xa8] sm:$0xff] %v295_v21 }
  0x2a   : > { %298 = vst [vmem:[%s1334_s25 + $0xb0] sm:$0xff] %v297_v22  ;;  %300 = vst [vmem:[%s1334_s25 + $0xb8] sm:$0xff] %v299_v23  ;;  %v301_v24 = vld [vmem:[%s1329_s26 + $0x180] sm:$0xff]  ;;  %v303_v25 = vld [vmem:[%s1329_s26 + $0x190] sm:$0xff] }
  0x2b   : > { %v305_v26 = vld [vmem:[%s1329_s26 + $0x1a0] sm:$0xff]  ;;  %302 = vst [vmem:[%s1334_s25 + $0xc0] sm:$0xff] %v301_v24  ;;  %304 = vst [vmem:[%s1334_s25 + $0xc8] sm:$0xff] %v303_v25  ;;  %v307_v27 = vld [vmem:[%s1329_s26 + $0x1b0] sm:$0xff] }
  0x2c   : > { %306 = vst [vmem:[%s1334_s25 + $0xd0] sm:$0xff] %v305_v26  ;;  %v309_v28 = vld [vmem:[%s1329_s26 + $0x1c0] sm:$0xff]  ;;  %v311_v29 = vld [vmem:[%s1329_s26 + $0x1d0] sm:$0xff]  ;;  %308 = vst [vmem:[%s1334_s25 + $0xd8] sm:$0xff] %v307_v27 }
  0x2d   : > { %310 = vst [vmem:[%s1334_s25 + $0xe0] sm:$0xff] %v309_v28  ;;  %312 = vst [vmem:[%s1334_s25 + $0xe8] sm:$0xff] %v311_v29  ;;  %v313_v30 = vld [vmem:[%s1329_s26 + $0x1e0] sm:$0xff]  ;;  %v315_v31 = vld [vmem:[%s1329_s26 + $0x1f0] sm:$0xff] }
  0x2e   : > { %v317_v32 = vld [vmem:[%s1329_s26 + $0x200] sm:$0xff]  ;;  %314 = vst [vmem:[%s1334_s25 + $0xf0] sm:$0xff] %v313_v30  ;;  %316 = vst [vmem:[%s1334_s25 + $0xf8] sm:$0xff] %v315_v31  ;;  %v319_v33 = vld [vmem:[%s1329_s26 + $0x210] sm:$0xff] }
  0x2f   : > { %318 = vst [vmem:[%s1334_s25 + $0x100] sm:$0xff] %v317_v32  ;;  %v321_v34 = vld [vmem:[%s1329_s26 + $0x220] sm:$0xff]  ;;  %v323_v35 = vld [vmem:[%s1329_s26 + $0x230] sm:$0xff]  ;;  %320 = vst [vmem:[%s1334_s25 + $0x108] sm:$0xff] %v319_v33 }
  0x30   : > { %322 = vst [vmem:[%s1334_s25 + $0x110] sm:$0xff] %v321_v34  ;;  %324 = vst [vmem:[%s1334_s25 + $0x118] sm:$0xff] %v323_v35 }
  0x31 PF: > { %p949_p11 = scmp.ge.s32.totalorder %s1217_s20, 1  ;;  %p329_p12 = scmp.lt.s32.totalorder %s1217_s20, 5 }
  0x33   : > { %p330_p13 = pnand %p949_p11, %p329_p12 }
  0x34   : > { %s336_s27 = sand.u32 (!%p330_p13), 1, %s1193_s14   ;;  %s355_s28 = sand.u32 (!%p330_p13), 1, %s1185_s12  }
  0x35   : > { %333 = sbr.rel (%p330_p13) target bundleno = 490 (0x1ea), region = 66  ;;  %s950_s6 = sshll.u32 (!%p330_p13), %s355_s28, 6 }
  0x36   : > { %s1007_s29 = smul.u32 (!%p330_p13), 288, %s336_s27  ;;  %s1411_s8 = scalar_lea.vmem (!%p330_p13), [#allocation3], %s950_s6 }
  0x37   : > { %p951_p0 = scmp.ne.s32.totalorder (!%p330_p13), %s1201_s16, 0 }
  0x38   : > { %s1409_s7 = scalar_lea.vmem (!%p330_p13), [#allocation2], %s1007_s29 }
  0x3a   : > { %365 = sbr.rel (%p951_p0) target bundleno = 68 (0x44), region = 74 }
  0x3f   : > { %v1219_v36 = vmov 0.0  }
  0x40   : > { %366 = vst [vmem:[%s1411_s8] sm:$0xff] %v1219_v36  ;;  %367 = vst [vmem:[%s1411_s8 + $0x8] sm:$0xff] %v1219_v36 }
  0x41   : > { %368 = vst [vmem:[%s1411_s8 + $0x10] sm:$0xff] %v1219_v36  ;;  %369 = vst [vmem:[%s1411_s8 + $0x18] sm:$0xff] %v1219_v36 }
  0x42   : > { %370 = vst [vmem:[%s1411_s8 + $0x20] sm:$0xff] %v1219_v36  ;;  %371 = vst [vmem:[%s1411_s8 + $0x28] sm:$0xff] %v1219_v36 }
  0x43   : > { %372 = vst [vmem:[%s1411_s8 + $0x30] sm:$0xff] %v1219_v36  ;;  %373 = vst [vmem:[%s1411_s8 + $0x38] sm:$0xff] %v1219_v36 }
  0x44 PF: > { %v1083_v37 = vld [vmem:[%s1409_s7 + $0x74] ss:$8 sps:$4 sm:$0xff]   ;;  %v1085_v38 = vld [vmem:[%s1409_s7 + $0x70] ss:$8 sps:$4 sm:$0xff]   ;;  %v1220_v39 = vmov 0   ;;  %s1004_s12 = smul.u32 48, %s1201_s16 }
  0x45   : > { %731 = vmatprep.mubr.bf16.mxu1 %v1220_v39  ;;  %646 = vmatprep.subr.bf16.mxu0 %v1083_v37  ;;  %v1086_v40 = vld [vmem:[%s1409_s7 + $0x64] ss:$8 sps:$4 sm:$0xff]   ;;  %v1088_v41 = vld [vmem:[%s1409_s7 + $0x60] ss:$8 sps:$4 sm:$0xff]   ;;  %v1089_v42 = vld [vmem:[%s1409_s7 + $0x54] ss:$8 sps:$4 sm:$0xff]  }
  0x46   : > { %647 = vmatpush1.bf16.msra.mxu0 %v1085_v38  ;;  %v1091_v43 = vld [vmem:[%s1409_s7 + $0x50] ss:$8 sps:$4 sm:$0xff]   ;;  %v1092_v44 = vld [vmem:[%s1409_s7 + $0x44] ss:$8 sps:$4 sm:$0xff]   ;;  %v1094_v45 = vld [vmem:[%s1409_s7 + $0x40] ss:$8 sps:$4 sm:$0xff]   ;;  %s1443_s10 = scalar_lea.vmem %s1558_s0, %s1004_s12 }
  0x47   : > { %648 = vmatprep.subr.bf16.mxu0 %v1086_v40  ;;  %v1095_v46 = vld [vmem:[%s1409_s7 + $0x34] ss:$8 sps:$4 sm:$0xff]   ;;  %v1097_v47 = vld [vmem:[%s1409_s7 + $0x30] ss:$8 sps:$4 sm:$0xff]   ;;  %v1098_v48 = vld [vmem:[%s1409_s7 + $0x24] ss:$8 sps:$4 sm:$0xff]  }
  0x48   : > { %v1122_v49 = vld [vmem:[%s1409_s7 + $0x114] ss:$8 sps:$4 sm:$0xff]   ;;  %v1124_v50 = vld [vmem:[%s1409_s7 + $0x110] ss:$8 sps:$4 sm:$0xff]   ;;  %v1100_v51 = vld [vmem:[%s1409_s7 + $0x20] ss:$8 sps:$4 sm:$0xff]  }
  0x49   : > { %v1101_v52 = vld [vmem:[%s1409_s7 + $0x14] ss:$8 sps:$4 sm:$0xff]   ;;  %711 = vmatprep.subr.bf16.mxu1 %v1122_v49  ;;  %v1128_v53 = vld [vmem:[%s1409_s7 + $0x104] ss:$8 sps:$4 sm:$0xff]   ;;  %v1130_v54 = vld [vmem:[%s1409_s7 + $0x100] ss:$8 sps:$4 sm:$0xff]  }
  0x4a   : > { %649 = vmatpush1.bf16.msra.mxu0 %v1088_v41  ;;  %712 = vmatpush1.bf16.msra.mxu1 %v1124_v50  ;;  %v1103_v55 = vld [vmem:[%s1409_s7 + $0x10] ss:$8 sps:$4 sm:$0xff]   ;;  %v1104_v56 = vld [vmem:[%s1409_s7 + $0x4] ss:$8 sps:$4 sm:$0xff]   ;;  %v1134_v57 = vld [vmem:[%s1443_s10 + $0x8] ss:$12 sps:$4 sm:$0xff]  }
  0x4b   : > { %650 = vmatprep.subr.bf16.mxu0 %v1089_v42  ;;  %713 = vmatprep.subr.bf16.mxu1 %v1128_v53  ;;  %vm639_vm0 = vcmask 261120   ;;  %v1140_v58 = vld [vmem:[%s1443_s10 + $0x4] ss:$12 sps:$4 sm:$0xff]   ;;  %v1106_v59 = vld [vmem:[%s1409_s7] ss:$8 sps:$4 sm:$0xff]   ;;  %v413_v33 = vld [vmem:[%s1411_s8 + $0x18] sm:$0xff] }
  0x4c   : > { %v1107_v60 = vld [vmem:[%s1409_s7 + $0xf4] ss:$8 sps:$4 sm:$0xff]   ;;  %678 = vmatprep.mubr.bf16.mxu0 %v1140_v58  ;;  %v1109_v61 = vld [vmem:[%s1409_s7 + $0xf0] ss:$8 sps:$4 sm:$0xff]   ;;  %v1110_v62 = vld [vmem:[%s1409_s7 + $0xe4] ss:$8 sps:$4 sm:$0xff]  }
  0x4d   : > { %v1141_v63 = vld [vmem:[%s1443_s10 + $0x20] ss:$12 sps:$4 sm:$0xff]   ;;  %v1113_v1 = vld [vmem:[%s1409_s7 + $0xd4] ss:$8 sps:$4 sm:$0xff]   ;;  %v1115_v2 = vld [vmem:[%s1409_s7 + $0xd0] ss:$8 sps:$4 sm:$0xff]  }
  0x4e   : > { %651 = vmatpush1.bf16.msra.mxu0 %v1091_v43  ;;  %714 = vmatpush1.bf16.msra.mxu1 %v1130_v54  ;;  %v1112_v0 = vld [vmem:[%s1409_s7 + $0xe0] ss:$8 sps:$4 sm:$0xff]   ;;  %v1116_v3 = vld [vmem:[%s1409_s7 + $0xc4] ss:$8 sps:$4 sm:$0xff]   ;;  %v1119_v5 = vld [vmem:[%s1409_s7 + $0xb4] ss:$8 sps:$4 sm:$0xff]  }
  0x4f   : > { %652 = vmatprep.subr.bf16.mxu0 %v1092_v44  ;;  %v1118_v4 = vld [vmem:[%s1409_s7 + $0xc0] ss:$8 sps:$4 sm:$0xff]   ;;  %v1121_v6 = vld [vmem:[%s1409_s7 + $0xb0] ss:$8 sps:$4 sm:$0xff]   ;;  %v1125_v7 = vld [vmem:[%s1409_s7 + $0xa4] ss:$8 sps:$4 sm:$0xff]  }
  0x50   : > { %v1127_v8 = vld [vmem:[%s1409_s7 + $0xa0] ss:$8 sps:$4 sm:$0xff]   ;;  %v1131_v9 = vld [vmem:[%s1409_s7 + $0x94] ss:$8 sps:$4 sm:$0xff]   ;;  %v1133_v10 = vld [vmem:[%s1409_s7 + $0x90] ss:$8 sps:$4 sm:$0xff]  }
  0x51   : > { %995 = vmatmul.mubr.msk.bf16.vlgmr.msra.gmra.mxu1 %vm639_vm0, %v1134_v57  ;;  %v1135_v11 = vld [vmem:[%s1409_s7 + $0x84] ss:$8 sps:$4 sm:$0xff]   ;;  %v1137_v12 = vld [vmem:[%s1409_s7 + $0x80] ss:$8 sps:$4 sm:$0xff]   ;;  %v412_v28 = vld [vmem:[%s1411_s8 + $0x10] sm:$0xff]  ;;  %p997_p1 = scmp.ne.s32.totalorder %s1201_s16, 1 }
  0x52   : > { %653 = vmatpush1.bf16.msra.mxu0 %v1094_v45  ;;  %741 = vmatprep.mubr.bf16.mxu1 %v1220_v39  ;;  %v1138_v13 = vld [vmem:[%s1443_s10] ss:$12 sps:$4 sm:$0xff]   ;;  %v1142_v14 = vld [vmem:[%s1443_s10 + $0x1c] ss:$12 sps:$4 sm:$0xff]   ;;  %v1144_v15 = vld [vmem:[%s1443_s10 + $0x18] ss:$12 sps:$4 sm:$0xff]  }
  0x53   : > { %654 = vmatprep.subr.bf16.mxu0 %v1095_v46  ;;  %v410_v20 = vld [vmem:[%s1411_s8] sm:$0xff]  ;;  %v411_v23 = vld [vmem:[%s1411_s8 + $0x8] sm:$0xff]  ;;  %v416_v46 = vld [vmem:[%s1411_s8 + $0x30] sm:$0xff] }
  0x54   : > { %v414_v37 = vld [vmem:[%s1411_s8 + $0x20] sm:$0xff]  ;;  %v415_v42 = vld [vmem:[%s1411_s8 + $0x28] sm:$0xff] }
  0x56   : > { %655 = vmatpush1.bf16.msra.mxu0 %v1097_v47 }
  0x57   : > { %656 = vmatprep.subr.bf16.mxu0 %v1098_v48 }
  0x59   : > { %996 = vmatmul.mubr.msk.bf16.gmra.mxu1 %vm639_vm0, %v1141_v63 }
  0x5a   : > { %657 = vmatpush1.bf16.msra.mxu0 %v1100_v51  ;;  %v417_v51 = vld [vmem:[%s1411_s8 + $0x38] sm:$0xff] }
  0x5b   : > { %658 = vmatprep.subr.bf16.mxu0 %v1101_v52 }
  0x5e   : > { %659 = vmatpush1.bf16.msra.mxu0 %v1103_v55 }
  0x5f   : > { %660 = vmatprep.subr.bf16.mxu0 %v1104_v56 }
  0x62   : > { %661 = vmatpush1.bf16.msra.mxu0 %v1106_v59 }
  0x63   : > { %662 = vmatprep.subr.bf16.mxu0 %v1107_v60 }
  0x66   : > { %663 = vmatpush2.bf16.msra.mxu0 %v1109_v61 }
  0x67   : > { %664 = vmatprep.subr.bf16.mxu0 %v1110_v62 }
  0x6a   : > { %665 = vmatpush2.bf16.msra.mxu0 %v1112_v0 }
  0x6b   : > { %666 = vmatprep.subr.bf16.mxu0 %v1113_v1 }
  0x6e   : > { %667 = vmatpush2.bf16.msra.mxu0 %v1115_v2 }
  0x6f   : > { %668 = vmatprep.subr.bf16.mxu0 %v1116_v3 }
  0x72   : > { %669 = vmatpush2.bf16.msra.mxu0 %v1118_v4 }
  0x73   : > { %670 = vmatprep.subr.bf16.mxu0 %v1119_v5 }
  0x76   : > { %671 = vmatpush2.bf16.msra.mxu0 %v1121_v6 }
  0x77   : > { %672 = vmatprep.subr.bf16.mxu0 %v1125_v7 }
  0x7a   : > { %673 = vmatpush2.bf16.msra.mxu0 %v1127_v8 }
  0x7b   : > { %674 = vmatprep.subr.bf16.mxu0 %v1131_v9 }
  0x7e   : > { %675 = vmatpush2.bf16.msra.mxu0 %v1133_v10 }
  0x7f   : > { %676 = vmatprep.subr.bf16.mxu0 %v1135_v11 }
  0x82   : > { %677 = vmatpush2.bf16.msra.mxu0 %v1137_v12 }
  0x85   : > { %679 = vmatmul.mubr.bf16.vlgmr.msra.gmra.mxu0 %v1138_v13 }
  0x86   : > { %688 = vmatprep.mubr.bf16.mxu0 %v1142_v14 }
  0x8d   : > { %689 = vmatmul.mubr.bf16.gmra.mxu0 %v1144_v15 }
 0x111   : > { %v733_v16 = vpop.f32.mrf.mxu1 }
 0x113   : > { %v735_v17 = vpop.f32.mrf.mxu1 }
 0x115   : > { %v737_v18 = vpop.f32.mrf.mxu1 }
 0x117   : > { %v739_v19 = vpop.f32.mrf.mxu1 }
 0x119   : > { %v743_v25 = vpop.f32.mrf.mxu1 }
 0x11b   : > { %v745_v32 = vpop.f32.mrf.mxu1 }
 0x11d   : > { %v747_v41 = vpop.f32.mrf.mxu1 }
 0x11f   : > { %v749_v50 = vpop.f32.mrf.mxu1 }
 0x145   : > { %v680_v21 = vpop.f32.mrf.mxu0 }
 0x146   : > { %v734_v22 = vadd.f32 %v733_v16, %v680_v21 }
 0x147   : > { %v682_v24 = vpop.f32.mrf.mxu0 }
 0x148   : > { %v752_v26 = vadd.f32 %v734_v22, %v410_v20  ;;  %v736_v27 = vadd.f32 %v735_v17, %v682_v24 }
 0x149   : > { %v684_v29 = vpop.f32.mrf.mxu0 }
 0x14a   : > { %760 = vst [vmem:[%s1411_s8] sm:$0xff] %v752_v26  ;;  %v753_v30 = vadd.f32 %v736_v27, %v411_v23  ;;  %v738_v31 = vadd.f32 %v737_v18, %v684_v29 }
 0x14b   : > { %v686_v34 = vpop.f32.mrf.mxu0 }
 0x14c   : > { %761 = vst [vmem:[%s1411_s8 + $0x8] sm:$0xff] %v753_v30  ;;  %v754_v35 = vadd.f32 %v738_v31, %v412_v28  ;;  %v740_v36 = vadd.f32 %v739_v19, %v686_v34 }
 0x14d   : > { %v690_v38 = vpop.f32.mrf.mxu0 }
 0x14e   : > { %762 = vst [vmem:[%s1411_s8 + $0x10] sm:$0xff] %v754_v35  ;;  %v755_v39 = vadd.f32 %v740_v36, %v413_v33  ;;  %v744_v40 = vadd.f32 %v743_v25, %v690_v38 }
 0x14f   : > { %v692_v43 = vpop.f32.mrf.mxu0 }
 0x150   : > { %763 = vst [vmem:[%s1411_s8 + $0x18] sm:$0xff] %v755_v39  ;;  %v756_v44 = vadd.f32 %v744_v40, %v414_v37  ;;  %v746_v45 = vadd.f32 %v745_v32, %v692_v43 }
 0x151   : > { %v694_v47 = vpop.f32.mrf.mxu0 }
 0x152   : > { %764 = vst [vmem:[%s1411_s8 + $0x20] sm:$0xff] %v756_v44  ;;  %v757_v48 = vadd.f32 %v746_v45, %v415_v42  ;;  %v748_v49 = vadd.f32 %v747_v41, %v694_v47 }
 0x153   : > { %v696_v52 = vpop.f32.mrf.mxu0 }
 0x154   : > { %765 = vst [vmem:[%s1411_s8 + $0x28] sm:$0xff] %v757_v48  ;;  %v758_v53 = vadd.f32 %v748_v49, %v416_v46  ;;  %v750_v54 = vadd.f32 %v749_v50, %v696_v52  ;;  %771 = sbr.rel (%p997_p1) target bundleno = 481 (0x1e1), region = 78 }
 0x156   : > { %766 = vst [vmem:[%s1411_s8 + $0x30] sm:$0xff] %v758_v53  ;;  %v759_v55 = vadd.f32 %v750_v54, %v417_v51 }
 0x158   : > { %767 = vst [vmem:[%s1411_s8 + $0x38] sm:$0xff] %v759_v55 }
 0x159   : > { %v782_v56 = vld [vmem:[%s1560_s2 + $0x10] sm:$0xff]  ;;  %v780_v57 = vld [vmem:[%s1560_s2] sm:$0xff]  ;;  %v1221_v58 = vmov 0   ;;  %v783_v59 = vld [vmem:[%s1560_s2 + $0x18] sm:$0xff] }
 0x15a   : > { %1146 = vset.pattern.permute.xlu1 %v1221_v58  ;;  %1145 = vset.pattern.permute.xlu0 %v1221_v58  ;;  %v781_v60 = vld [vmem:[%s1560_s2 + $0x8] sm:$0xff]  ;;  %v776_v61 = vld [vmem:[%s1411_s8 + $0x20] sm:$0xff]  ;;  %v774_v9 = vld [vmem:[%s1411_s8 + $0x10] sm:$0xff] }
 0x15b   : > { %796 = vperm.xlu1 %1146, %v782_v56   ;;  %786 = vperm.xlu0 %1145, %v780_v57   ;;  %v777_v62 = vld [vmem:[%s1411_s8 + $0x28] sm:$0xff]  ;;  %v772_v63 = vld [vmem:[%s1411_s8] sm:$0xff]  ;;  %v775_v10 = vld [vmem:[%s1411_s8 + $0x18] sm:$0xff] }
 0x15c   : > { %v773_v0 = vld [vmem:[%s1411_s8 + $0x8] sm:$0xff] }
 0x15d   : > { %v778_v7 = vld [vmem:[%s1411_s8 + $0x30] sm:$0xff] }
 0x15f   : > { %801 = vperm.xlu1 %1146, %v783_v59   ;;  %791 = vperm.xlu0 %1145, %v781_v60   ;;  %v779_v8 = vld [vmem:[%s1411_s8 + $0x38] sm:$0xff] }
 0x1d6   : > { %v797_v1 = vpop.permute.xlu1 %796  ;;  %v787_v2 = vpop.permute.xlu0 %786 }
 0x1d7   : > { %v808_v3 = vadd.f32 %v797_v1, %v776_v61  ;;  %v809_v4 = vadd.f32 %v797_v1, %v777_v62  ;;  %v804_v5 = vadd.f32 %v787_v2, %v772_v63  ;;  %v805_v6 = vadd.f32 %v787_v2, %v773_v0 }
 0x1d9   : > { %v816_v11 = vmax.f32 %v808_v3, 0.0  ;;  %v817_v12 = vmax.f32 %v809_v4, 0.0  ;;  %v812_v13 = vmax.f32 %v804_v5, 0.0  ;;  %v813_v14 = vmax.f32 %v805_v6, 0.0 }
 0x1da   : > { %v802_v15 = vpop.permute.xlu1 %801  ;;  %v792_v16 = vpop.permute.xlu0 %791 }
 0x1db   : > { %824 = vst [vmem:[%s1411_s8 + $0x20] sm:$0xff] %v816_v11  ;;  %825 = vst [vmem:[%s1411_s8 + $0x28] sm:$0xff] %v817_v12  ;;  %v810_v17 = vadd.f32 %v802_v15, %v778_v7  ;;  %v811_v18 = vadd.f32 %v802_v15, %v779_v8  ;;  %v806_v19 = vadd.f32 %v792_v16, %v774_v9 }
 0x1dc   : > { %820 = vst [vmem:[%s1411_s8] sm:$0xff] %v812_v13  ;;  %821 = vst [vmem:[%s1411_s8 + $0x8] sm:$0xff] %v813_v14  ;;  %v807_v20 = vadd.f32 %v792_v16, %v775_v10 }
 0x1dd   : > { %v818_v21 = vmax.f32 %v810_v17, 0.0  ;;  %v819_v22 = vmax.f32 %v811_v18, 0.0  ;;  %v814_v23 = vmax.f32 %v806_v19, 0.0 }
 0x1de   : > { %v815_v24 = vmax.f32 %v807_v20, 0.0 }
 0x1df   : > { %826 = vst [vmem:[%s1411_s8 + $0x30] sm:$0xff] %v818_v21  ;;  %827 = vst [vmem:[%s1411_s8 + $0x38] sm:$0xff] %v819_v22 }
 0x1e0   : > { %822 = vst [vmem:[%s1411_s8 + $0x10] sm:$0xff] %v814_v23  ;;  %823 = vst [vmem:[%s1411_s8 + $0x18] sm:$0xff] %v815_v24 }
 0x1e1 PF: > { %834 = sbr.rel (!%p1310_p9) target bundleno = 490 (0x1ea), region = 82  ;;  %s1005_s29 = sshll.u32 (%p1310_p9), %s1205_s17, 4 }
 0x1e2   : > { %s837_s12 = scalar_lea.vmem (%p1310_p9), %s1561_s3, %s1005_s29  ;;  %v858_v29 = vld [vmem:[%s1411_s8 + $0x20] sm:$0xff] (%p1310_p9) }
 0x1e3   : > { %v850_v25 = vld [vmem:[%s1411_s8] sm:$0xff] (%p1310_p9)  ;;  %v852_v26 = vld [vmem:[%s1411_s8 + $0x8] sm:$0xff] (%p1310_p9)  ;;  %859 = vst [vmem:[%s837_s12 + $0x40] sm:$0xff] (%p1310_p9), %v858_v29 }
 0x1e4   : > { %v860_v30 = vld [vmem:[%s1411_s8 + $0x28] sm:$0xff] (%p1310_p9)  ;;  %851 = vst [vmem:[%s837_s12] sm:$0xff] (%p1310_p9), %v850_v25  ;;  %853 = vst [vmem:[%s837_s12 + $0x8] sm:$0xff] (%p1310_p9), %v852_v26 }
 0x1e5   : > { %861 = vst [vmem:[%s837_s12 + $0x48] sm:$0xff] (%p1310_p9), %v860_v30 }
 0x1e6   : > { %v862_v31 = vld [vmem:[%s1411_s8 + $0x30] sm:$0xff] }
 0x1e7   : > { %v854_v27 = vld [vmem:[%s1411_s8 + $0x10] sm:$0xff]  ;;  %v856_v28 = vld [vmem:[%s1411_s8 + $0x18] sm:$0xff]  ;;  %863 = vst [vmem:[%s837_s12 + $0x60] sm:$0xff] %v862_v31 }
 0x1e8   : > { %855 = vst [vmem:[%s837_s12 + $0x20] sm:$0xff] %v854_v27  ;;  %857 = vst [vmem:[%s837_s12 + $0x28] sm:$0xff] %v856_v28  ;;  %v864_v32 = vld [vmem:[%s1411_s8 + $0x38] sm:$0xff] }
 0x1e9   : > { %865 = vst [vmem:[%s837_s12 + $0x68] sm:$0xff] %v864_v32 }
 0x1ea PF: > { %s13_s20 = sadd.s32 1, %s1217_s20   ;;  %s1564_s12 = smov %s1189_s13 }
 0x1eb   : > { %p10_p2 = scmp.ge.s32.totalorder %s13_s20, 6   ;;  %s1565_s13 = smov %s1315_s4 }
 0x1ec   : > { %s1566_s14 = smov %s1197_s15  ;;  %s1567_s15 = smov %s1318_s5 }
 0x1ed   : > { %s1568_s16 = smov %s1209_s18  ;;  %s1569_s17 = smov %s1213_s19 }
 0x1ee   : > { %s1570_s18 = smov %s1573_s21  ;;  %s1571_s19 = smov %s1577_s22 }
 0x1ef   :  { %12 = sbr.rel (!%p10_p2) target bundleno = 5 (0x5), region = 137 }

// kernel: rpmms_forward.103
= control target key start
LH: loop header
LB: loop body
LE: loop exit
PB: predicated region body
PF: predicated region fallthrough
CT: control target
= control target key end

     0   :  { %v431_v1 = vmov 0   ;;  %vm150_vm0 = vcmask 261120   ;;  %s561_s0 = inlined_call_operand.vmem [shape: bf16[32,160], index: 0, kind: input, shape index: {}]   ;;  %s562_s1 = inlined_call_operand.vmem [shape: bf16[160,128], index: 1, kind: input, shape index: {}]   ;;  %s563_s2 = inlined_call_operand.vmem [shape: f32[32,1], index: 2, kind: input, shape index: {}]   ;;  %s564_s3 = inlined_call_operand.vmem [shape: f32[2,32], index: 3, kind: input, shape index: {}]   ;;  %s565_s4 = inlined_call_operand.vmem [shape: f32[2,1], index: 4, kind: input, shape index: {}]   ;;  %s566_s5 = inlined_call_operand.vmem [shape: f32[2,128], index: 5, kind: output, shape index: {0}]   ;;  %s567_s6 = inlined_call_operand.hbm [shape: f32[2,128], index: 6, kind: output, shape index: {1}]  }
   0x1   :  { %v389_v0 = vld [vmem:[%s562_s1 + $0x38] sm:$0xff]   ;;  %157 = vmatprep.subr.bf16.mxu0 %v431_v1  ;;  %363 = vmatprep.subr.bf16.mxu1 %v431_v1  ;;  %v390_v2 = vld [vmem:[%s562_s1 + $0x30] sm:$0xff]   ;;  %v391_v3 = vld [vmem:[%s562_s1 + $0x28] sm:$0xff]  }
   0x2   :  { %158 = vmatpush1.bf16.msra.mxu0 %v389_v0  ;;  %373 = vmatpush1.bf16.msra.mxu1 %v389_v0  ;;  %v392_v4 = vld [vmem:[%s562_s1 + $0x20] sm:$0xff]   ;;  %v404_v6 = vld [vmem:[%s561_s0 + $0x14] ss:$8 sps:$4 sm:$0xff]   ;;  %v49_v8 = vld [vmem:[%s563_s2 + $0x8] sm:$0xff] }
   0x3   :  { %159 = vmatprep.subr.bf16.mxu0 %v431_v1  ;;  %364 = vmatprep.subr.bf16.mxu1 %v431_v1  ;;  %v401_v5 = vld [vmem:[%s561_s0 + $0x4] ss:$8 sps:$4 sm:$0xff]   ;;  %v51_v7 = vld [vmem:[%s563_s2 + $0x18] sm:$0xff]  ;;  %v50_v10 = vld [vmem:[%s563_s2 + $0x10] sm:$0xff] }
   0x4   :  { %387 = vset.pattern.permute.xlu0 %v431_v1  ;;  %388 = vset.pattern.permute.xlu1 %v431_v1  ;;  %v393_v9 = vld [vmem:[%s562_s1 + $0x18] sm:$0xff]  }
   0x5   :  { %344 = vmatprep.mubr.msk.bf16.mxu0 %vm150_vm0, %v401_v5  ;;  %69 = vperm.xlu0 %387, %v51_v7  }
   0x6   :  { %160 = vmatpush1.bf16.msra.mxu0 %v390_v2  ;;  %374 = vmatpush1.bf16.msra.mxu1 %v390_v2 }
   0x7   :  { %161 = vmatprep.subr.bf16.mxu0 %v431_v1  ;;  %365 = vmatprep.subr.bf16.mxu1 %v431_v1 }
   0xa   :  { %162 = vmatpush1.bf16.msra.mxu0 %v391_v3  ;;  %375 = vmatpush1.bf16.msra.mxu1 %v391_v3 }
   0xb   :  { %163 = vmatprep.subr.bf16.mxu0 %v431_v1  ;;  %366 = vmatprep.subr.bf16.mxu1 %v431_v1 }
   0xe   :  { %164 = vmatpush1.bf16.msra.mxu0 %v392_v4  ;;  %376 = vmatpush1.bf16.msra.mxu1 %v392_v4 }
   0xf   :  { %12 = vsyncpa [#allocation3], 0  ;;  %165 = vmatprep.subr.bf16.mxu0 %v431_v1  ;;  %367 = vmatprep.subr.bf16.mxu1 %v431_v1  ;;  %v48_v11 = vld [vmem:[%s563_s2] sm:$0xff]  ;;  %v394_v12 = vld [vmem:[%s562_s1 + $0x10] sm:$0xff]   ;;  %v432_v20 = vmov 0.0   ;;  %vm433_vm1 = vmmov 0  }
  0x10   :  { %345 = vmatprep.mubr.msk.bf16.mxu1 %vm150_vm0, %v404_v6  ;;  %59 = vperm.xlu1 %388, %v49_v8   ;;  %v211_v13 = vld [vmem:[%s565_s4] sm:$0x3]  ;;  %v395_v14 = vld [vmem:[%s562_s1 + $0x8] sm:$0xff]   ;;  %v402_v19 = vld [vmem:[%s561_s0 + $0x10] ss:$8 sps:$4 sm:$0xff]   ;;  %vm291_vm2 = vcmask 1041408  }
  0x11   :  { %64 = vperm.xlu0 %387, %v50_v10   ;;  %v396_v15 = vld [vmem:[%s562_s1] sm:$0xff]   ;;  %v397_v16 = vld [vmem:[%s562_s1 + $0x48] sm:$0xff]  }
  0x12   :  { %166 = vmatpush1.bf16.msra.mxu0 %v393_v9  ;;  %377 = vmatpush1.bf16.msra.mxu1 %v393_v9  ;;  %v398_v17 = vld [vmem:[%s562_s1 + $0x40] sm:$0xff]  }
  0x13   :  { %167 = vmatprep.subr.bf16.mxu0 %v431_v1  ;;  %368 = vmatprep.subr.bf16.mxu1 %v431_v1  ;;  %v399_v18 = vld [vmem:[%s561_s0] ss:$8 sps:$4 sm:$0xff]  }
  0x14   :  { %54 = vperm.xlu1 %388, %v48_v11   ;;  %v210_v41 = vld [vmem:[%s564_s3] sm:$0x3]  ;;  %s434_s3 = smov [#allocation2]  }
  0x15   :  { %214 = vperm.xlu0 %387, %v211_v13  }
  0x16   :  { %168 = vmatpush1.bf16.msra.mxu0 %v394_v12  ;;  %378 = vmatpush1.bf16.msra.mxu1 %v394_v12 }
  0x17   :  { %169 = vmatprep.subr.bf16.mxu0 %v431_v1  ;;  %369 = vmatprep.subr.bf16.mxu1 %v431_v1 }
  0x1a   :  { %170 = vmatpush1.bf16.msra.mxu0 %v395_v14  ;;  %379 = vmatpush1.bf16.msra.mxu1 %v395_v14 }
  0x1b   :  { %171 = vmatprep.subr.bf16.mxu0 %v431_v1  ;;  %370 = vmatprep.subr.bf16.mxu1 %v431_v1 }
  0x1e   :  { %172 = vmatpush1.bf16.msra.mxu0 %v396_v15  ;;  %380 = vmatpush1.bf16.msra.mxu1 %v396_v15 }
  0x1f   :  { %185 = vmatprep.subr.bf16.mxu0 %v431_v1  ;;  %371 = vmatprep.subr.bf16.mxu1 %v431_v1 }
  0x22   :  { %186 = vmatpush2.bf16.msra.mxu0 %v397_v16  ;;  %381 = vmatpush2.bf16.msra.mxu1 %v397_v16 }
  0x23   :  { %187 = vmatprep.subr.bf16.mxu0 %v431_v1  ;;  %372 = vmatprep.subr.bf16.mxu1 %v431_v1 }
  0x26   :  { %188 = vmatpush2.bf16.msra.mxu0 %v398_v17  ;;  %382 = vmatpush2.bf16.msra.mxu1 %v398_v17 }
  0x27   :  { %352 = vmatprep.subr.mxu1 %v432_v20 }
  0x29   :  { %190 = vmatmul.mubr.bf16.vlgmr.msra.gmra.mxu0 %v399_v18  ;;  %198 = vmatmul.mubr.bf16.vlgmr.msra.gmra.mxu1 %v402_v19 }
  0x2a   :  { %360 = vmatprep.mubr.msk.f32.mxu1 %vm433_vm1, %v432_v20 }
  0x80   :  { %v70_v21 = vpop.permute.xlu0 %69 }
  0x8b   :  { %v60_v22 = vpop.permute.xlu1 %59 }
  0x8c   :  { %v65_v27 = vpop.permute.xlu0 %64 }
  0x8f   :  { %v55_v31 = vpop.permute.xlu1 %54 }
  0x90   :  { %v215_v42 = vpop.permute.xlu0 %214 }
  0xe9   :  { %v191_v23 = vpop.f32.mrf.mxu0  ;;  %v199_v24 = vpop.f32.mrf.mxu1 }
  0xea   :  { %v200_v30 = vadd.f32 %v199_v24, %v65_v27  ;;  %v192_v38 = vadd.f32 %v191_v23, %v55_v31 }
  0xeb   :  { %v193_v25 = vpop.f32.mrf.mxu0  ;;  %v201_v26 = vpop.f32.mrf.mxu1 }
  0xec   :  { %v208_v37 = vmax.f32 %v200_v30, 0.0  ;;  %v206_v40 = vmax.f32 %v192_v38, 0.0 }
  0xed   :  { %v194_v28 = vpop.f32.mrf.mxu0  ;;  %v202_v29 = vpop.f32.mrf.mxu1 }
  0xee   :  { %v203_v32 = vadd.f32 %v202_v29, %v70_v21  ;;  %v195_v35 = vadd.f32 %v194_v28, %v60_v22 }
  0xef   :  { %v196_v33 = vpop.f32.mrf.mxu0  ;;  %v204_v34 = vpop.f32.mrf.mxu1 }
  0xf0   :  { %v209_v36 = vmax.f32 %v203_v32, 0.0  ;;  %v207_v39 = vmax.f32 %v195_v35, 0.0 }
  0xf2   :  { %353 = vmatpush3.msra.mxu1 %v209_v36 }
  0xf3   :  { %354 = vmatprep.subr.mxu1 %v432_v20 }
  0xf4   :  { %355 = vmatpush3.msra.mxu1 %v208_v37 }
  0xf5   :  { %356 = vmatprep.subr.mxu1 %v432_v20 }
  0xf6   :  { %357 = vmatpush3.msra.mxu1 %v207_v39 }
  0xf7   :  { %358 = vmatprep.subr.mxu1 %v432_v20 }
  0xf8   :  { %359 = vmatpush3.msra.mxu1 %v206_v40 }
  0xf9   :  { %361 = vmatmul.mubr.msk.f32.vlgmr.msra.gmra.mxu1 %vm150_vm0, %v210_v41 }
 0x1b9   :  { %v286_v43 = vpop.f32.mrf.mxu1 }
 0x1ba   :  { %v287_v44 = vadd.f32 %v286_v43, %v215_v42 }
 0x1bb   :  { %v362_v45 = vpop.f32.mrf.mxu1 }
 0x1bc   :  { %290 = vst [vmem:[%s566_s5] sm:$0x3] %v287_v44  ;;  %v292_v46 = vsel %vm291_vm2, %v287_v44, -inf  ;;  %s320_s5 = sshll.u32 %s434_s3, 4  ;;  %s321_s5 = int_to_ptr.vmem [resolvable:$true] %s320_s5 }
 0x1bd   :  { %v293_v47 = vrot.slane %v292_v46, 4  ;;  %s409_s11 = scalar_lea.vmem %s321_s5, 32  ;;  %p414_p1 = scmp.lt.s32.totalorder %s321_s5, %s321_s5 }
 0x1be   :  { %p410_p0 = scmp.ne.s32.totalorder %s321_s5, %s409_s11  ;;  %p415_p2 = scmp.lt.s32.totalorder %s409_s11, %s409_s11 }
 0x1bf   :  { %v294_v48 = vmax.f32 %v292_v46, %v293_v47 }
 0x1c0   :  { %p416_p3 = por %p415_p2, %p414_p1 }
 0x1c1   :  { %v295_v49 = vrot.slane %v294_v48, 2 }
 0x1c2   :  { %p417_p4 = pnand %p416_p3, %p410_p0 }
 0x1c3   :  { %v296_v50 = vmax.f32 %v294_v48, %v295_v49 }
 0x1c5   :  { %v297_v51 = vrot.slane %v296_v50, 1 }
 0x1c7   :  { %v298_v52 = vmax.f32 %v296_v50, %v297_v51 }
 0x1c9   :  { %v299_v53 = vsub.f32 %v287_v44, %v298_v52 }
 0x1cb   :  { %v300_v54 = vmul.f32 1.442695, %v299_v53 }
 0x1cd   :  { %405 = vpow2.f32 %v300_v54 }
 0x1da   :  { %v406_v55 = vpop.eup %405 }
 0x1db   :  { %v302_v56 = vsel %vm291_vm2, %v406_v55, 0.0 }
 0x1dc   :  { %v303_v57 = vrot.slane %v302_v56, 4 }
 0x1de   :  { %v304_v58 = vadd.f32 %v303_v57, %v302_v56 }
 0x1e0   :  { %v305_v59 = vrot.slane %v304_v58, 2 }
 0x1e2   :  { %v306_v60 = vadd.f32 %v305_v59, %v304_v58 }
 0x1e4   :  { %v307_v61 = vrot.slane %v306_v60, 1 }
 0x1e6   :  { %v308_v62 = vadd.f32 %v307_v61, %v306_v60 }
 0x1e8   :  { %407 = vrcp.f32 %v308_v62 }
 0x1f5   :  { %v408_v63 = vpop.eup %407 }
 0x1f6   :  { %v310_v0 = vmul.f32 %v408_v63, %v406_v55 }
 0x1f8   :  { %311 = vst [vmem:[#allocation2] sm:$0x3] %v310_v0 }
 0x1f9   :  { %420 = shalt.err (!%p417_p4)
}
 0x1fa   :  { %323 = dma.vmem_to_hbm [thread:$0]  %s321_s5, 32, %s567_s6, [#allocation3]  }
 0x1fb   :  { %429 = dma.done.wait [#allocation3], 32  }
 0x1fc   :  { %430 = vsyncadd [#allocation3], 4294967264 }
 0x1fd   :  { %329 = vsyncpa [#allocation3], 1 }

</bundles_post_ra>
